<compile_context>
chip_gen: v7x
topology: tpu7x:2x2x1
jax: 0.10.0
libtpu: 0.0.40
codegen_flags: <defaults>
</compile_context>

<pallas_src>
import jax
import jax.numpy as jnp
from jax.experimental import pallas as pl
from jax.experimental.pallas import tpu as pltpu

IN_DIM, H1, H2, H3, OUT_DIM = 1080, 2048, 512, 256, 70
OUT_PAD = 128   # 70 rounded up to 128 -> lane-dense, unmasked output stores


def _round_up(n, m):
    return ((n + m - 1) // m) * m


def _is_256_mxu():
    # v6e / v7x have 256x256 MXUs; v2-v5 are 128-wide. Conservative default.
    try:
        kind = jax.devices()[0].device_kind.lower()
        return not any(v in kind for v in ("v2", "v3", "v4", "v5"))
    except Exception:
        return False


def mlp_kernel(x_ref, w1_ref, b1_ref, w2_ref, b2_ref,
               w3_ref, b3_ref, w4_ref, b4_ref, o_ref):
    # All four matmuls + biases + ReLUs fused for one batch tile.
    # bf16 operands on the MXU, f32 accumulation; biases / ReLU kept in f32.
    x = x_ref[...].astype(jnp.bfloat16)                       # (tm, 1080)
    h = jnp.dot(x, w1_ref[...], preferred_element_type=jnp.float32) + b1_ref[...]
    h = jnp.maximum(h, 0.0)
    h = jnp.dot(h.astype(jnp.bfloat16), w2_ref[...],
                preferred_element_type=jnp.float32) + b2_ref[...]
    h = jnp.maximum(h, 0.0)
    h = jnp.dot(h.astype(jnp.bfloat16), w3_ref[...],
                preferred_element_type=jnp.float32) + b3_ref[...]
    h = jnp.maximum(h, 0.0)
    h = jnp.dot(h.astype(jnp.bfloat16), w4_ref[...],
                preferred_element_type=jnp.float32) + b4_ref[...]
    o_ref[...] = h.astype(o_ref.dtype)                        # (tm, OUT_PAD) f32


def prepare_params(params):
    """Cast weights to bf16 (halves weight-DMA bytes); pad only the 70-wide output."""
    (w1, b1), (w2, b2), (w3, b3), (w4, b4) = params
    w1p = w1.astype(jnp.bfloat16)                                   # (1080, 2048)
    w2p = w2.astype(jnp.bfloat16)                                   # (2048, 512)
    w3p = w3.astype(jnp.bfloat16)                                   # (512, 256)
    w4p = jnp.pad(w4, ((0, 0), (0, OUT_PAD - OUT_DIM))).astype(jnp.bfloat16)
    b4p = jnp.pad(b4, ((0, 0), (0, OUT_PAD - OUT_DIM)))             # biases stay f32
    return (w1p, b1, w2p, b2, w3p, b3, w4p, b4p)


def net_forward(x, prepared):
    w1, b1, w2, b2, w3, b3, w4, b4 = prepared
    B = x.shape[0]

    # Batch tile: 256 on 256-wide MXUs at large B, else 128, else sublane-rounded B.
    if B >= 256 and _is_256_mxu():
        tm = 256
    elif B >= 128:
        tm = 128
    else:
        tm = _round_up(B, 8)
    b_pad = _round_up(B, tm)
    if b_pad != B:
        x = jnp.pad(x, ((0, b_pad - B), (0, 0)))   # batch pad only (no feature pad)
    n_tiles = b_pad // tm

    def tile_spec(shape):
        # per-batch-tile block
        return pl.BlockSpec(shape, lambda i: (i, 0))

    def resident_spec(shape):
        # Constant block index every grid step -> stays resident in VMEM across
        # batch tiles. Buffered(1): drop the unused second pipeline buffer.
        return pl.BlockSpec(shape, lambda i: (0, 0), pipeline_mode=pl.Buffered(1))

    out = pl.pallas_call(
        mlp_kernel,
        out_shape=jax.ShapeDtypeStruct((b_pad, OUT_PAD), jnp.float32),
        grid_spec=pl.GridSpec(
            grid=(n_tiles,),
            in_specs=[
                tile_spec((tm, IN_DIM)),
                resident_spec(w1.shape), resident_spec(b1.shape),
                resident_spec(w2.shape), resident_spec(b2.shape),
                resident_spec(w3.shape), resident_spec(b3.shape),
                resident_spec(w4.shape), resident_spec(b4.shape),
            ],
            out_specs=tile_spec((tm, OUT_PAD)),
        ),
        compiler_params=pltpu.CompilerParams(
            # Only shard the batch axis across TensorCores when there is enough
            # work per core to amortize the per-TC weight re-fetch (v7x).
            dimension_semantics=("parallel",) if n_tiles >= 8 else ("arbitrary",),
            vmem_limit_bytes=32 << 20,   # ~6.8 MiB bf16 weights (single-buffered) + tiles
        ),
    )(x, w1, b1, w2, b2, w3, b3, w4, b4)

    return out[:B, :OUT_DIM]


def init_params(key):
    # Deterministic synthetic init (PyTorch-Linear-style uniform fan-in bound), f32.
    dims = [(IN_DIM, H1), (H1, H2), (H2, H3), (H3, OUT_DIM)]
    params = []
    for i, (fan_in, fan_out) in enumerate(dims):
        kw, kb = jax.random.split(jax.random.fold_in(key, i))
        bound = 1.0 / jnp.sqrt(fan_in)
        w = jax.random.uniform(kw, (fan_in, fan_out), jnp.float32, -bound, bound)
        b = jax.random.uniform(kb, (1, fan_out), jnp.float32, -bound, bound)
        params.append((w, b))
    return params


def reference_forward(x, params):
    # Pure-JAX reference with the same bf16 weight/activation quantization and
    # f32 accumulation as the kernel (the bf16 cast is an intentional perf
    # tradeoff vs. the f32 PyTorch module).
    h = x
    for i, (w, b) in enumerate(params):
        h = jnp.dot(h.astype(jnp.bfloat16), w.astype(jnp.bfloat16),
                    preferred_element_type=jnp.float32) + b
        if i < len(params) - 1:
            h = jnp.maximum(h, 0.0)
    return h


if __name__ == "__main__":
    key = jax.random.PRNGKey(0)
    k_x, k_p = jax.random.split(key)

    B = 8  # small batch (DQN acting path)
    x = jax.random.normal(k_x, (B, IN_DIM), jnp.float32)
    params = init_params(k_p)
    prepared = prepare_params(params)

    out = net_forward(x, prepared)
    jax.block_until_ready(out)

    ref = reference_forward(x, params)
    assert out.shape == (B, OUT_DIM), out.shape
    assert jnp.allclose(out, ref, atol=2e-3, rtol=2e-3), "mismatch vs reference"

    print("KERNEL_OK")
</pallas_src>

<mosaic_0001>
module attributes {stable_mosaic.version = 11 : i64} {
  func.func @mlp_kernel(%arg0: i32, %arg1: memref<8x1080xf32, #tpu.memory_space<vmem>>, %arg2: memref<1080x2048xbf16, #tpu.memory_space<vmem>>, %arg3: memref<1x2048xf32, #tpu.memory_space<vmem>>, %arg4: memref<2048x512xbf16, #tpu.memory_space<vmem>>, %arg5: memref<1x512xf32, #tpu.memory_space<vmem>>, %arg6: memref<512x256xbf16, #tpu.memory_space<vmem>>, %arg7: memref<1x256xf32, #tpu.memory_space<vmem>>, %arg8: memref<256x128xbf16, #tpu.memory_space<vmem>>, %arg9: memref<1x128xf32, #tpu.memory_space<vmem>>, %arg10: memref<8x128xf32, #tpu.memory_space<vmem>>) attributes {dimension_semantics = [#tpu.dimension_semantics<arbitrary>], iteration_bounds = array<i64: 1>, scalar_prefetch = 0 : i64, scratch_operands = 0 : i64, tpu.core_type = #tpu.core_type<tc>, window_params = [{transform_indices = @transform_0, window_bounds = array<i64: 8, 1080>}, {pipeline_mode = #tpu.pipeline_mode<synchronous>, transform_indices = @transform_1, window_bounds = array<i64: 1080, 2048>}, {pipeline_mode = #tpu.pipeline_mode<synchronous>, transform_indices = @transform_2, window_bounds = array<i64: 1, 2048>}, {pipeline_mode = #tpu.pipeline_mode<synchronous>, transform_indices = @transform_3, window_bounds = array<i64: 2048, 512>}, {pipeline_mode = #tpu.pipeline_mode<synchronous>, transform_indices = @transform_4, window_bounds = array<i64: 1, 512>}, {pipeline_mode = #tpu.pipeline_mode<synchronous>, transform_indices = @transform_5, window_bounds = array<i64: 512, 256>}, {pipeline_mode = #tpu.pipeline_mode<synchronous>, transform_indices = @transform_6, window_bounds = array<i64: 1, 256>}, {pipeline_mode = #tpu.pipeline_mode<synchronous>, transform_indices = @transform_7, window_bounds = array<i64: 256, 128>}, {pipeline_mode = #tpu.pipeline_mode<synchronous>, transform_indices = @transform_8, window_bounds = array<i64: 1, 128>}, {transform_indices = @transform_9, window_bounds = array<i64: 8, 128>}]} {
    %c0 = arith.constant 0 : index
    %c0_0 = arith.constant 0 : index
    %0 = vector.load %arg1[%c0, %c0_0] : memref<8x1080xf32, #tpu.memory_space<vmem>>, vector<8x1080xf32>
    %1 = arith.truncf %0 : vector<8x1080xf32> to vector<8x1080xbf16>
    %c0_1 = arith.constant 0 : index
    %c0_2 = arith.constant 0 : index
    %2 = vector.load %arg2[%c0_1, %c0_2] : memref<1080x2048xbf16, #tpu.memory_space<vmem>>, vector<1080x2048xbf16>
    %cst = arith.constant dense<0.000000e+00> : vector<8x2048xf32>
    %3 = tpu.matmul %1, %2, %cst {dimension_numbers = #tpu.dot_dimension_numbers<[1], [0], [0], [1], [0, 0, 1, 1], [], []>} : vector<8x1080xbf16>, vector<1080x2048xbf16>, vector<8x2048xf32> -> vector<8x2048xf32>
    %c0_3 = arith.constant 0 : index
    %c0_4 = arith.constant 0 : index
    %4 = vector.load %arg3[%c0_3, %c0_4] : memref<1x2048xf32, #tpu.memory_space<vmem>>, vector<1x2048xf32>
    %5 = vector.broadcast %4 : vector<1x2048xf32> to vector<8x2048xf32>
    %6 = arith.addf %3, %5 : vector<8x2048xf32>
    %cst_5 = arith.constant 0.000000e+00 : f32
    %7 = vector.broadcast %cst_5 : f32 to vector<8x2048xf32>
    %8 = arith.maximumf %6, %7 : vector<8x2048xf32>
    %9 = arith.truncf %8 : vector<8x2048xf32> to vector<8x2048xbf16>
    %c0_6 = arith.constant 0 : index
    %c0_7 = arith.constant 0 : index
    %10 = vector.load %arg4[%c0_6, %c0_7] : memref<2048x512xbf16, #tpu.memory_space<vmem>>, vector<2048x512xbf16>
    %cst_8 = arith.constant dense<0.000000e+00> : vector<8x512xf32>
    %11 = tpu.matmul %9, %10, %cst_8 {dimension_numbers = #tpu.dot_dimension_numbers<[1], [0], [0], [1], [0, 0, 1, 1], [], []>} : vector<8x2048xbf16>, vector<2048x512xbf16>, vector<8x512xf32> -> vector<8x512xf32>
    %c0_9 = arith.constant 0 : index
    %c0_10 = arith.constant 0 : index
    %12 = vector.load %arg5[%c0_9, %c0_10] : memref<1x512xf32, #tpu.memory_space<vmem>>, vector<1x512xf32>
    %13 = vector.broadcast %12 : vector<1x512xf32> to vector<8x512xf32>
    %14 = arith.addf %11, %13 : vector<8x512xf32>
    %cst_11 = arith.constant 0.000000e+00 : f32
    %15 = vector.broadcast %cst_11 : f32 to vector<8x512xf32>
    %16 = arith.maximumf %14, %15 : vector<8x512xf32>
    %17 = arith.truncf %16 : vector<8x512xf32> to vector<8x512xbf16>
    %c0_12 = arith.constant 0 : index
    %c0_13 = arith.constant 0 : index
    %18 = vector.load %arg6[%c0_12, %c0_13] : memref<512x256xbf16, #tpu.memory_space<vmem>>, vector<512x256xbf16>
    %cst_14 = arith.constant dense<0.000000e+00> : vector<8x256xf32>
    %19 = tpu.matmul %17, %18, %cst_14 {dimension_numbers = #tpu.dot_dimension_numbers<[1], [0], [0], [1], [0, 0, 1, 1], [], []>} : vector<8x512xbf16>, vector<512x256xbf16>, vector<8x256xf32> -> vector<8x256xf32>
    %c0_15 = arith.constant 0 : index
    %c0_16 = arith.constant 0 : index
    %20 = vector.load %arg7[%c0_15, %c0_16] : memref<1x256xf32, #tpu.memory_space<vmem>>, vector<1x256xf32>
    %21 = vector.broadcast %20 : vector<1x256xf32> to vector<8x256xf32>
    %22 = arith.addf %19, %21 : vector<8x256xf32>
    %cst_17 = arith.constant 0.000000e+00 : f32
    %23 = vector.broadcast %cst_17 : f32 to vector<8x256xf32>
    %24 = arith.maximumf %22, %23 : vector<8x256xf32>
    %25 = arith.truncf %24 : vector<8x256xf32> to vector<8x256xbf16>
    %c0_18 = arith.constant 0 : index
    %c0_19 = arith.constant 0 : index
    %26 = vector.load %arg8[%c0_18, %c0_19] : memref<256x128xbf16, #tpu.memory_space<vmem>>, vector<256x128xbf16>
    %cst_20 = arith.constant dense<0.000000e+00> : vector<8x128xf32>
    %27 = tpu.matmul %25, %26, %cst_20 {dimension_numbers = #tpu.dot_dimension_numbers<[1], [0], [0], [1], [0, 0, 1, 1], [], []>} : vector<8x256xbf16>, vector<256x128xbf16>, vector<8x128xf32> -> vector<8x128xf32>
    %c0_21 = arith.constant 0 : index
    %c0_22 = arith.constant 0 : index
    %28 = vector.load %arg9[%c0_21, %c0_22] : memref<1x128xf32, #tpu.memory_space<vmem>>, vector<1x128xf32>
    %29 = vector.broadcast %28 : vector<1x128xf32> to vector<8x128xf32>
    %30 = arith.addf %27, %29 : vector<8x128xf32>
    %c0_23 = arith.constant 0 : index
    %c0_24 = arith.constant 0 : index
    %31 = vector.load %arg10[%c0_23, %c0_24] : memref<8x128xf32, #tpu.memory_space<vmem>>, vector<8x128xf32>
    tpu.vector_store %arg10[%c0_23, %c0_24], %30 {strides = array<i32>} : memref<8x128xf32, #tpu.memory_space<vmem>>, vector<8x128xf32>,
    return
  }
  func.func @transform_0(%arg0: i32) -> (i32, i32) {
    %c0_i32 = arith.constant 0 : i32
    %c0_i32_0 = arith.constant 0 : i32
    return %arg0, %c0_i32 : i32, i32
  }
  func.func @transform_1(%arg0: i32) -> (i32, i32) {
    %c0_i32 = arith.constant 0 : i32
    %c0_i32_0 = arith.constant 0 : i32
    %c0_i32_1 = arith.constant 0 : i32
    return %c0_i32, %c0_i32_0 : i32, i32
  }
  func.func @transform_2(%arg0: i32) -> (i32, i32) {
    %c0_i32 = arith.constant 0 : i32
    %c0_i32_0 = arith.constant 0 : i32
    %c0_i32_1 = arith.constant 0 : i32
    return %c0_i32, %c0_i32_0 : i32, i32
  }
  func.func @transform_3(%arg0: i32) -> (i32, i32) {
    %c0_i32 = arith.constant 0 : i32
    %c0_i32_0 = arith.constant 0 : i32
    %c0_i32_1 = arith.constant 0 : i32
    return %c0_i32, %c0_i32_0 : i32, i32
  }
  func.func @transform_4(%arg0: i32) -> (i32, i32) {
    %c0_i32 = arith.constant 0 : i32
    %c0_i32_0 = arith.constant 0 : i32
    %c0_i32_1 = arith.constant 0 : i32
    return %c0_i32, %c0_i32_0 : i32, i32
  }
  func.func @transform_5(%arg0: i32) -> (i32, i32) {
    %c0_i32 = arith.constant 0 : i32
    %c0_i32_0 = arith.constant 0 : i32
    %c0_i32_1 = arith.constant 0 : i32
    return %c0_i32, %c0_i32_0 : i32, i32
  }
  func.func @transform_6(%arg0: i32) -> (i32, i32) {
    %c0_i32 = arith.constant 0 : i32
    %c0_i32_0 = arith.constant 0 : i32
    %c0_i32_1 = arith.constant 0 : i32
    return %c0_i32, %c0_i32_0 : i32, i32
  }
  func.func @transform_7(%arg0: i32) -> (i32, i32) {
    %c0_i32 = arith.constant 0 : i32
    %c0_i32_0 = arith.constant 0 : i32
    %c0_i32_1 = arith.constant 0 : i32
    return %c0_i32, %c0_i32_0 : i32, i32
  }
  func.func @transform_8(%arg0: i32) -> (i32, i32) {
    %c0_i32 = arith.constant 0 : i32
    %c0_i32_0 = arith.constant 0 : i32
    %c0_i32_1 = arith.constant 0 : i32
    return %c0_i32, %c0_i32_0 : i32, i32
  }
  func.func @transform_9(%arg0: i32) -> (i32, i32) {
    %c0_i32 = arith.constant 0 : i32
    %c0_i32_0 = arith.constant 0 : i32
    return %arg0, %c0_i32 : i32, i32
  }
}

</mosaic_0001>

<bundles_post_ra>
// kernel: tpu_custom_call.1
= control target key start
LH: loop header
LB: loop body
LE: loop exit
PB: predicated region body
PF: predicated region fallthrough
CT: control target
= control target key end

     0   :  { %14 = vsyncpa [#allocation3], 0  ;;  %s16473_s0 = inlined_call_operand.hbm [shape: f32[8,1080], index: 0, kind: input, shape index: {}]   ;;  %s16474_s1 = inlined_call_operand.hbm [shape: bf16[1080,2048], index: 1, kind: input, shape index: {}]   ;;  %s16475_s2 = inlined_call_operand.hbm [shape: f32[1,2048], index: 2, kind: input, shape index: {}]   ;;  %s16476_s3 = inlined_call_operand.hbm [shape: bf16[2048,512], index: 3, kind: input, shape index: {}]   ;;  %s16477_s4 = inlined_call_operand.hbm [shape: f32[1,512], index: 4, kind: input, shape index: {}]   ;;  %s16478_s5 = inlined_call_operand.hbm [shape: bf16[512,256], index: 5, kind: input, shape index: {}]   ;;  %s16479_s6 = inlined_call_operand.hbm [shape: f32[1,256], index: 6, kind: input, shape index: {}]   ;;  %s16480_s7 = inlined_call_operand.hbm [shape: bf16[256,128], index: 7, kind: input, shape index: {}]   ;;  %s16481_s8 = inlined_call_operand.hbm [shape: f32[1,128], index: 8, kind: input, shape index: {}]   ;;  %s16482_s9 = inlined_call_operand.hbm [shape: f32[8,128], index: 9, kind: output, shape index: {}]  }
   0x1   :  { %15 = vsyncpa [#allocation6], 0 }
   0x2   :  { %16 = vsyncpa [#allocation9], 0 }
   0x3   :  { %17 = vsyncpa [#allocation12], 0 }
   0x4   :  { %18 = vsyncpa [#allocation15], 0 }
   0x5   :  { %19 = vsyncpa [#allocation4], 0  ;;  %s15961_s30 = smov [#allocation5]   ;;  %s15729_s13 = scalar_lea.hbm %s16474_s1, 138240 }
   0x6   :  { %s35_s10 = sshll.u32 %s15961_s30, 4  ;;  %p15730_p0 = scmp.ne.s32.totalorder %s16474_s1, %s15729_s13  ;;  %s36_s10 = int_to_ptr.vmem [resolvable:$true] %s35_s10 }
   0x7   :  { %p15733_p1 = scmp.lt.u32.totalorder %s15729_s13, %s16474_s1 }
   0x9   :  { %p15735_p2 = pnand %p15733_p1, %p15730_p0 }
   0xb   :  { %15738 = shalt.err (!%p15735_p2)
}
   0xc   :  { %s15739_s18 = scalar_lea.vmem %s36_s10, 138240  ;;  %p15744_p4 = scmp.lt.s32.totalorder %s36_s10, %s36_s10 }
   0xd   :  { %p15740_p3 = scmp.ne.s32.totalorder %s36_s10, %s15739_s18  ;;  %p15745_p5 = scmp.lt.s32.totalorder %s15739_s18, %s15739_s18 }
   0xf   :  { %p15746_p6 = por %p15745_p5, %p15744_p4 }
  0x11   :  { %p15747_p7 = pnand %p15746_p6, %p15740_p3 }
  0x13   :  { %15750 = shalt.err (!%p15747_p7)
}
  0x14   :  { %s15962_s19 = smov 1024   ;;  %s15963_s20 = smov 64  }
  0x15   :  { %41 = dma.hbm_to_vmem [thread:$0]  %s16474_s1, 138240, %s36_s10, [#allocation6], %s15962_s19, %s15962_s19, %s15963_s20  }
  0x16   :  { %s15964_s23 = smov [#allocation8]   ;;  %s15751_s27 = scalar_lea.hbm %s16476_s3, 65536 }
  0x17   :  { %s57_s24 = sshll.u32 %s15964_s23, 4  ;;  %p15752_p8 = scmp.ne.s32.totalorder %s16476_s3, %s15751_s27  ;;  %s58_s24 = int_to_ptr.vmem [resolvable:$true] %s57_s24 }
  0x18   :  { %p15755_p9 = scmp.lt.u32.totalorder %s15751_s27, %s16476_s3 }
  0x1a   :  { %p15757_p10 = pnand %p15755_p9, %p15752_p8 }
  0x1c   :  { %15760 = shalt.err (!%p15757_p10)
}
  0x1d   :  { %s15761_s12 = scalar_lea.vmem %s58_s24, 65536  ;;  %p15766_p12 = scmp.lt.s32.totalorder %s58_s24, %s58_s24 }
  0x1e   :  { %p15762_p11 = scmp.ne.s32.totalorder %s58_s24, %s15761_s12  ;;  %p15767_p13 = scmp.lt.s32.totalorder %s15761_s12, %s15761_s12 }
  0x20   :  { %p15768_p0 = por %p15767_p13, %p15766_p12 }
  0x22   :  { %p15769_p1 = pnand %p15768_p0, %p15762_p11 }
  0x24   :  { %15772 = shalt.err (!%p15769_p1)
}
  0x25   :  { %s15965_s1 = smov 256   ;;  %s15966_s10 = smov 16  }
  0x26   :  { %63 = dma.hbm_to_vmem [thread:$0]  %s16476_s3, 65536, %s58_s24, [#allocation9], %s15965_s1, %s15965_s1, %s15966_s10  }
  0x27   :  { %s15967_s15 = smov [#allocation11]   ;;  %s15773_s19 = scalar_lea.hbm %s16478_s5, 8192 }
  0x28   :  { %s79_s16 = sshll.u32 %s15967_s15, 4  ;;  %p15774_p2 = scmp.ne.s32.totalorder %s16478_s5, %s15773_s19  ;;  %s80_s16 = int_to_ptr.vmem [resolvable:$true] %s79_s16 }
  0x29   :  { %p15777_p3 = scmp.lt.u32.totalorder %s15773_s19, %s16478_s5 }
  0x2b   :  { %p15779_p4 = pnand %p15777_p3, %p15774_p2 }
  0x2d   :  { %15782 = shalt.err (!%p15779_p4)
}
  0x2e   :  { %s15783_s26 = scalar_lea.vmem %s80_s16, 8192  ;;  %p15788_p6 = scmp.lt.s32.totalorder %s80_s16, %s80_s16 }
  0x2f   :  { %p15784_p5 = scmp.ne.s32.totalorder %s80_s16, %s15783_s26  ;;  %p15789_p7 = scmp.lt.s32.totalorder %s15783_s26, %s15783_s26 }
  0x31   :  { %p15790_p8 = por %p15789_p7, %p15788_p6 }
  0x33   :  { %p15791_p9 = pnand %p15790_p8, %p15784_p5 }
  0x35   :  { %15794 = shalt.err (!%p15791_p9)
}
  0x36   :  { %s15968_s3 = smov 128   ;;  %s15969_s24 = smov 8  }
  0x37   :  { %85 = dma.hbm_to_vmem [thread:$0]  %s16478_s5, 8192, %s80_s16, [#allocation12], %s15968_s3, %s15968_s3, %s15969_s24  }
  0x38   :  { %s15970_s29 = smov [#allocation14]   ;;  %s15795_s1 = scalar_lea.hbm %s16480_s7, 2048 }
  0x39   :  { %s101_s30 = sshll.u32 %s15970_s29, 4  ;;  %p15796_p10 = scmp.ne.s32.totalorder %s16480_s7, %s15795_s1  ;;  %s102_s30 = int_to_ptr.vmem [resolvable:$true] %s101_s30 }
  0x3a   :  { %p15799_p11 = scmp.lt.u32.totalorder %s15795_s1, %s16480_s7 }
  0x3c   :  { %p15801_p12 = pnand %p15799_p11, %p15796_p10 }
  0x3e   :  { %15804 = shalt.err (!%p15801_p12)
}
  0x3f   :  { %s15805_s17 = scalar_lea.vmem %s102_s30, 2048  ;;  %p15810_p0 = scmp.lt.s32.totalorder %s102_s30, %s102_s30 }
  0x40   :  { %p15806_p13 = scmp.ne.s32.totalorder %s102_s30, %s15805_s17  ;;  %p15811_p1 = scmp.lt.s32.totalorder %s15805_s17, %s15805_s17 }
  0x42   :  { %p15812_p2 = por %p15811_p1, %p15810_p0 }
  0x44   :  { %p15813_p3 = pnand %p15812_p2, %p15806_p13 }
  0x46   :  { %15816 = shalt.err (!%p15813_p3)
}
  0x47   :  { %s15971_s5 = smov 4   ;;  %s15972_s19 = smov [#allocation2]  }
  0x48   :  { %107 = dma.hbm_to_vmem [thread:$0]  %s16480_s7, 2048, %s102_s30, [#allocation15], %s15963_s20, %s15963_s20, %s15971_s5  }
  0x49   :  { %s26_s21 = sshll.u32 %s15972_s19, 4  ;;  %s15973_s22 = smov [#allocation7]   ;;  %s27_s21 = int_to_ptr.vmem [resolvable:$true] %s26_s21 }
  0x4a   :  { %s48_s23 = sshll.u32 %s15973_s22, 4  ;;  %s15817_s3 = scalar_lea.hbm %s16473_s0, 1152  ;;  %s49_s23 = int_to_ptr.vmem [resolvable:$true] %s48_s23 }
  0x4b   :  { %p15818_p4 = scmp.ne.s32.totalorder %s16473_s0, %s15817_s3  ;;  %p15821_p5 = scmp.lt.u32.totalorder %s15817_s3, %s16473_s0 }
  0x4d   :  { %p15823_p6 = pnand %p15821_p5, %p15818_p4 }
  0x4f   :  { %15826 = shalt.err (!%p15823_p6)
}
  0x50   :  { %s15827_s7 = scalar_lea.vmem %s27_s21, 1152  ;;  %p15832_p8 = scmp.lt.s32.totalorder %s27_s21, %s27_s21 }
  0x51   :  { %p15828_p7 = scmp.ne.s32.totalorder %s27_s21, %s15827_s7  ;;  %p15833_p9 = scmp.lt.s32.totalorder %s15827_s7, %s15827_s7 }
  0x53   :  { %p15834_p10 = por %p15833_p9, %p15832_p8 }
  0x55   :  { %p15835_p11 = pnand %p15834_p10, %p15828_p7 }
  0x57   :  { %15838 = shalt.err (!%p15835_p11)
}
  0x58   :  { %29 = dma.hbm_to_vmem [thread:$0]  %s16473_s0, 1152, %s27_s21, [#allocation3]  }
  0x59   :  { %s15839_s1 = scalar_lea.hbm %s16475_s2, 256 }
  0x5a   :  { %p15840_p12 = scmp.ne.s32.totalorder %s16475_s2, %s15839_s1  ;;  %p15843_p13 = scmp.lt.u32.totalorder %s15839_s1, %s16475_s2 }
  0x5c   :  { %p15845_p0 = pnand %p15843_p13, %p15840_p12 }
  0x5e   :  { %15848 = shalt.err (!%p15845_p0)
}
  0x5f   :  { %s15849_s17 = scalar_lea.vmem %s49_s23, 256  ;;  %p15854_p2 = scmp.lt.s32.totalorder %s49_s23, %s49_s23 }
  0x60   :  { %p15850_p1 = scmp.ne.s32.totalorder %s49_s23, %s15849_s17  ;;  %p15855_p3 = scmp.lt.s32.totalorder %s15849_s17, %s15849_s17 }
  0x62   :  { %p15856_p4 = por %p15855_p3, %p15854_p2 }
  0x64   :  { %p15857_p5 = pnand %p15856_p4, %p15850_p1 }
  0x66   :  { %15860 = shalt.err (!%p15857_p5)
}
  0x67   :  { %51 = dma.hbm_to_vmem [thread:$0]  %s16475_s2, 256, %s49_s23, [#allocation6]  }
  0x68   :  { %s15974_s16 = smov [#allocation10]   ;;  %s15975_s19 = smov [#allocation13]  }
  0x69   :  { %s70_s18 = sshll.u32 %s15974_s16, 4  ;;  %s92_s21 = sshll.u32 %s15975_s19, 4  ;;  %s71_s18 = int_to_ptr.vmem [resolvable:$true] %s70_s18  ;;  %s93_s21 = int_to_ptr.vmem [resolvable:$true] %s92_s21 }
  0x6a   :  { %s15861_s26 = scalar_lea.hbm %s16477_s4, 64 }
  0x6b   :  { %p15862_p6 = scmp.ne.s32.totalorder %s16477_s4, %s15861_s26  ;;  %p15865_p7 = scmp.lt.u32.totalorder %s15861_s26, %s16477_s4 }
  0x6d   :  { %p15867_p8 = pnand %p15865_p7, %p15862_p6 }
  0x6f   :  { %15870 = shalt.err (!%p15867_p8)
}
  0x70   :  { %s15871_s2 = scalar_lea.vmem %s71_s18, 64  ;;  %p15876_p10 = scmp.lt.s32.totalorder %s71_s18, %s71_s18 }
  0x71   :  { %p15872_p9 = scmp.ne.s32.totalorder %s71_s18, %s15871_s2  ;;  %p15877_p11 = scmp.lt.s32.totalorder %s15871_s2, %s15871_s2 }
  0x73   :  { %p15878_p12 = por %p15877_p11, %p15876_p10 }
  0x75   :  { %p15879_p13 = pnand %p15878_p12, %p15872_p9 }
  0x77   :  { %15882 = shalt.err (!%p15879_p13)
}
  0x78   :  { %73 = dma.hbm_to_vmem [thread:$0]  %s16477_s4, 64, %s71_s18, [#allocation9]  }
  0x79   :  { %s15883_s30 = scalar_lea.hbm %s16479_s6, 32 }
  0x7a   :  { %p15884_p0 = scmp.ne.s32.totalorder %s16479_s6, %s15883_s30  ;;  %p15887_p1 = scmp.lt.u32.totalorder %s15883_s30, %s16479_s6 }
  0x7c   :  { %p15889_p2 = pnand %p15887_p1, %p15884_p0 }
  0x7e   :  { %15892 = shalt.err (!%p15889_p2)
}
  0x7f   :  { %s15893_s13 = scalar_lea.vmem %s93_s21, 32  ;;  %p15898_p4 = scmp.lt.s32.totalorder %s93_s21, %s93_s21 }
  0x80   :  { %p15894_p3 = scmp.ne.s32.totalorder %s93_s21, %s15893_s13  ;;  %p15899_p5 = scmp.lt.s32.totalorder %s15893_s13, %s15893_s13 }
  0x82   :  { %p15900_p6 = por %p15899_p5, %p15898_p4 }
  0x84   :  { %p15901_p7 = pnand %p15900_p6, %p15894_p3 }
  0x86   :  { %15904 = shalt.err (!%p15901_p7)
}
  0x87   :  { %95 = dma.hbm_to_vmem [thread:$0]  %s16479_s6, 32, %s93_s21, [#allocation12]  }
  0x88   :  { %s15976_s15 = smov [#allocation16]   ;;  %s15905_s16 = scalar_lea.hbm %s16481_s8, 16 }
  0x89   :  { %s114_s17 = sshll.u32 %s15976_s15, 4  ;;  %p15906_p8 = scmp.ne.s32.totalorder %s16481_s8, %s15905_s16  ;;  %s115_s17 = int_to_ptr.vmem [resolvable:$true] %s114_s17 }
  0x8a   :  { %p15909_p9 = scmp.lt.u32.totalorder %s15905_s16, %s16481_s8 }
  0x8c   :  { %p15911_p10 = pnand %p15909_p9, %p15906_p8 }
  0x8e   :  { %15914 = shalt.err (!%p15911_p10)
}
  0x8f   :  { %s15915_s26 = scalar_lea.vmem %s115_s17, 16  ;;  %s15919_s6 = scalar_lea.vmem %s115_s17, 32 }
  0x90   :  { %p15916_p11 = scmp.ne.s32.totalorder %s115_s17, %s15915_s26  ;;  %p15920_p12 = scmp.lt.s32.totalorder %s115_s17, %s115_s17 }
  0x91   :  { %p15921_p13 = scmp.lt.s32.totalorder %s15919_s6, %s15915_s26 }
  0x93   :  { %p15922_p0 = por %p15921_p13, %p15920_p12 }
  0x95   :  { %p15923_p1 = pnand %p15922_p0, %p15916_p11 }
  0x97   :  { %15926 = shalt.err (!%p15923_p1)
}
  0x98   :  { %117 = dma.hbm_to_vmem [thread:$0]  %s16481_s8, 16, %s115_s17, [#allocation15]  }
  0x99   :  { %15949 = dma.done.wait [#allocation3], 1152  }
  0x9a   :  { %15950 = vsyncadd [#allocation3], 4294966144 }
  0x9b   :  { %15951 = dma.done.wait [#allocation6], 138496  }
  0x9c   :  { %15952 = vsyncadd [#allocation6], 4294828800 }
  0x9d   :  { %15953 = dma.done.wait [#allocation9], 65600  }
  0x9e   :  { %15954 = vsyncadd [#allocation9], 4294901696 }
  0x9f   :  { %15955 = dma.done.wait [#allocation12], 8224  }
  0xa0   :  { %15956 = vsyncadd [#allocation12], 4294959072 }
  0xa1   :  { %15957 = dma.done.wait [#allocation15], 2064  }
  0xa2   :  { %15958 = vsyncadd [#allocation15], 4294965232  ;;  %v164_v0 = vld [vmem:[#allocation5] sm:$0xff]  ;;  %v149_v58 = vld [vmem:[#allocation2 + $0x18] sm:$0xff]  ;;  %vm6732_vm0 = vcmask 1043456   ;;  %vm6728_vm1 = vcmask 457728  }
  0xa3   :  { %v172_v1 = vld [vmem:[#allocation5 + $0x40] sm:$0xff]  ;;  %v16142_v61 = vpack.c.bf16 %v149_v58, %v149_v58  ;;  %s15978_s8 = smov [#allocation17]  }
  0xa4   :  { %v420_v2 = vld [vmem:[#allocation5 + $0x800] sm:$0xff]  ;;  %v12889_v3 = vcombine.high %v164_v0, %v172_v1  ;;  %v12888_v5 = vcombine.low %v164_v0, %v172_v1  ;;  %s12875_s24 = sshll.u32 %s15978_s8, 4  ;;  %s12876_s24 = int_to_ptr.vmem [resolvable:$true] %s12875_s24 }
  0xa5   :  { %v428_v4 = vld [vmem:[#allocation5 + $0x840] sm:$0xff]  ;;  %6854 = vmatprep.mubr.bf16.mxu0 %v16142_v61  ;;  %s15927_s27 = scalar_lea.vmem %s12876_s24, 128  ;;  %p15932_p3 = scmp.lt.s32.totalorder %s12876_s24, %s12876_s24 }
  0xa6   :  { %v180_v6 = vld [vmem:[#allocation5 + $0x80] sm:$0xff]  ;;  %v13145_v8 = vcombine.high %v420_v2, %v428_v4  ;;  %v13144_v9 = vcombine.low %v420_v2, %v428_v4  ;;  %6781 = vmatprep.subr.bf16.mxu1 %v12889_v3  ;;  %p15928_p2 = scmp.ne.s32.totalorder %s12876_s24, %s15927_s27  ;;  %p15933_p4 = scmp.lt.s32.totalorder %s15927_s27, %s15927_s27 }
  0xa7   :  { %v188_v7 = vld [vmem:[#allocation5 + $0xc0] sm:$0xff]  ;;  %6782 = vmatpush1.bf16.msra.mxu1 %v12888_v5 }
  0xa8   :  { %v12905_v10 = vcombine.high %v180_v6, %v188_v7  ;;  %v436_v11 = vld [vmem:[#allocation5 + $0x880] sm:$0xff]  ;;  %6822 = vmatprep.subr.bf16.mxu0 %v13145_v8  ;;  %v12904_v18 = vcombine.low %v180_v6, %v188_v7  ;;  %p15934_p5 = por %p15933_p4, %p15932_p3 }
  0xa9   :  { %v444_v12 = vld [vmem:[#allocation5 + $0x8c0] sm:$0xff]  ;;  %6823 = vmatpush1.bf16.msra.mxu0 %v13144_v9 }
  0xaa   :  { %v196_v13 = vld [vmem:[#allocation5 + $0x100] sm:$0xff]  ;;  %v13161_v14 = vcombine.high %v436_v11, %v444_v12  ;;  %6783 = vmatprep.subr.bf16.mxu1 %v12905_v10  ;;  %v13160_v19 = vcombine.low %v436_v11, %v444_v12  ;;  %p15935_p6 = pnand %p15934_p5, %p15928_p2 }
  0xab   :  { %v204_v15 = vld [vmem:[#allocation5 + $0x140] sm:$0xff]  ;;  %6784 = vmatpush1.bf16.msra.mxu1 %v12904_v18 }
  0xac   :  { %v452_v16 = vld [vmem:[#allocation5 + $0x900] sm:$0xff]  ;;  %v12921_v20 = vcombine.high %v196_v13, %v204_v15  ;;  %6824 = vmatprep.subr.bf16.mxu0 %v13161_v14  ;;  %v12920_v26 = vcombine.low %v196_v13, %v204_v15 }
  0xad   :  { %v460_v17 = vld [vmem:[#allocation5 + $0x940] sm:$0xff]  ;;  %6825 = vmatpush1.bf16.msra.mxu0 %v13160_v19 }
  0xae   :  { %v13177_v21 = vcombine.high %v452_v16, %v460_v17  ;;  %v212_v22 = vld [vmem:[#allocation5 + $0x180] sm:$0xff]  ;;  %6785 = vmatprep.subr.bf16.mxu1 %v12921_v20  ;;  %v13176_v27 = vcombine.low %v452_v16, %v460_v17 }
  0xaf   :  { %v220_v23 = vld [vmem:[#allocation5 + $0x1c0] sm:$0xff]  ;;  %6786 = vmatpush1.bf16.msra.mxu1 %v12920_v26 }
  0xb0   :  { %v468_v24 = vld [vmem:[#allocation5 + $0x980] sm:$0xff]  ;;  %v12937_v28 = vcombine.high %v212_v22, %v220_v23  ;;  %6826 = vmatprep.subr.bf16.mxu0 %v13177_v21  ;;  %v12936_v34 = vcombine.low %v212_v22, %v220_v23 }
  0xb1   :  { %v476_v25 = vld [vmem:[#allocation5 + $0x9c0] sm:$0xff]  ;;  %6827 = vmatpush1.bf16.msra.mxu0 %v13176_v27 }
  0xb2   :  { %v13193_v29 = vcombine.high %v468_v24, %v476_v25  ;;  %v228_v30 = vld [vmem:[#allocation5 + $0x200] sm:$0xff]  ;;  %6787 = vmatprep.subr.bf16.mxu1 %v12937_v28  ;;  %v13192_v35 = vcombine.low %v468_v24, %v476_v25 }
  0xb3   :  { %v236_v31 = vld [vmem:[#allocation5 + $0x240] sm:$0xff]  ;;  %6788 = vmatpush1.bf16.msra.mxu1 %v12936_v34 }
  0xb4   :  { %v484_v32 = vld [vmem:[#allocation5 + $0xa00] sm:$0xff]  ;;  %v12953_v36 = vcombine.high %v228_v30, %v236_v31  ;;  %6828 = vmatprep.subr.bf16.mxu0 %v13193_v29  ;;  %v12952_v42 = vcombine.low %v228_v30, %v236_v31 }
  0xb5   :  { %v492_v33 = vld [vmem:[#allocation5 + $0xa40] sm:$0xff]  ;;  %6829 = vmatpush1.bf16.msra.mxu0 %v13192_v35 }
  0xb6   :  { %v13209_v37 = vcombine.high %v484_v32, %v492_v33  ;;  %v244_v38 = vld [vmem:[#allocation5 + $0x280] sm:$0xff]  ;;  %6789 = vmatprep.subr.bf16.mxu1 %v12953_v36  ;;  %v13208_v43 = vcombine.low %v484_v32, %v492_v33 }
  0xb7   :  { %v252_v39 = vld [vmem:[#allocation5 + $0x2c0] sm:$0xff]  ;;  %6790 = vmatpush1.bf16.msra.mxu1 %v12952_v42 }
  0xb8   :  { %v500_v40 = vld [vmem:[#allocation5 + $0xa80] sm:$0xff]  ;;  %v12969_v44 = vcombine.high %v244_v38, %v252_v39  ;;  %6830 = vmatprep.subr.bf16.mxu0 %v13209_v37  ;;  %v12968_v50 = vcombine.low %v244_v38, %v252_v39 }
  0xb9   :  { %v508_v41 = vld [vmem:[#allocation5 + $0xac0] sm:$0xff]  ;;  %6831 = vmatpush1.bf16.msra.mxu0 %v13208_v43 }
  0xba   :  { %v13225_v45 = vcombine.high %v500_v40, %v508_v41  ;;  %v260_v46 = vld [vmem:[#allocation5 + $0x300] sm:$0xff]  ;;  %6791 = vmatprep.subr.bf16.mxu1 %v12969_v44  ;;  %v13224_v51 = vcombine.low %v500_v40, %v508_v41 }
  0xbb   :  { %v268_v47 = vld [vmem:[#allocation5 + $0x340] sm:$0xff]  ;;  %6792 = vmatpush1.bf16.msra.mxu1 %v12968_v50 }
  0xbc   :  { %v516_v48 = vld [vmem:[#allocation5 + $0xb00] sm:$0xff]  ;;  %v12985_v52 = vcombine.high %v260_v46, %v268_v47  ;;  %6832 = vmatprep.subr.bf16.mxu0 %v13225_v45  ;;  %v12984_v62 = vcombine.low %v260_v46, %v268_v47 }
  0xbd   :  { %v524_v49 = vld [vmem:[#allocation5 + $0xb40] sm:$0xff]  ;;  %6833 = vmatpush1.bf16.msra.mxu0 %v13224_v51 }
  0xbe   :  { %v147_v53 = vld [vmem:[#allocation2 + $0x8] sm:$0xff]  ;;  %v13241_v54 = vcombine.high %v516_v48, %v524_v49  ;;  %6793 = vmatprep.subr.bf16.mxu1 %v12985_v52  ;;  %v13240_v63 = vcombine.low %v516_v48, %v524_v49 }
  0xbf   :  { %v276_v55 = vld [vmem:[#allocation5 + $0x380] sm:$0xff]  ;;  %v16140_v57 = vpack.c.bf16 %v147_v53, %v147_v53  ;;  %6794 = vmatpush1.bf16.msra.mxu1 %v12984_v62 }
  0xc0   :  { %v284_v56 = vld [vmem:[#allocation5 + $0x3c0] sm:$0xff]  ;;  %6834 = vmatprep.subr.bf16.mxu0 %v13241_v54 }
  0xc1   :  { %v532_v59 = vld [vmem:[#allocation5 + $0xb80] sm:$0xff]  ;;  %6813 = vmatprep.mubr.bf16.mxu1 %v16140_v57  ;;  %v13001_v0 = vcombine.high %v276_v55, %v284_v56  ;;  %v13000_v6 = vcombine.low %v276_v55, %v284_v56  ;;  %6835 = vmatpush1.bf16.msra.mxu0 %v13240_v63 }
  0xc2   :  { %v540_v60 = vld [vmem:[#allocation5 + $0xbc0] sm:$0xff] }
  0xc3   :  { %v13257_v1 = vcombine.high %v532_v59, %v540_v60  ;;  %v292_v2 = vld [vmem:[#allocation5 + $0x400] sm:$0xff]  ;;  %6795 = vmatprep.subr.bf16.mxu1 %v13001_v0  ;;  %v13256_v7 = vcombine.low %v532_v59, %v540_v60 }
  0xc4   :  { %v300_v3 = vld [vmem:[#allocation5 + $0x440] sm:$0xff]  ;;  %6796 = vmatpush1.bf16.msra.mxu1 %v13000_v6 }
  0xc5   :  { %v548_v4 = vld [vmem:[#allocation5 + $0xc00] sm:$0xff]  ;;  %v13017_v8 = vcombine.high %v292_v2, %v300_v3  ;;  %6836 = vmatprep.subr.bf16.mxu0 %v13257_v1  ;;  %v13016_v14 = vcombine.low %v292_v2, %v300_v3 }
  0xc6   :  { %v556_v5 = vld [vmem:[#allocation5 + $0xc40] sm:$0xff]  ;;  %6837 = vmatpush1.bf16.msra.mxu0 %v13256_v7 }
  0xc7   :  { %v13273_v9 = vcombine.high %v548_v4, %v556_v5  ;;  %v308_v10 = vld [vmem:[#allocation5 + $0x480] sm:$0xff]  ;;  %6797 = vmatprep.subr.bf16.mxu1 %v13017_v8  ;;  %v13272_v15 = vcombine.low %v548_v4, %v556_v5  ;;  %v165_v4 = vld [vmem:[#allocation5 + $0x8] sm:$0xff] }
  0xc8   :  { %v316_v11 = vld [vmem:[#allocation5 + $0x4c0] sm:$0xff]  ;;  %6798 = vmatpush1.bf16.msra.mxu1 %v13016_v14  ;;  %v173_v5 = vld [vmem:[#allocation5 + $0x48] sm:$0xff] }
  0xc9   :  { %v564_v12 = vld [vmem:[#allocation5 + $0xc80] sm:$0xff]  ;;  %v13033_v16 = vcombine.high %v308_v10, %v316_v11  ;;  %6838 = vmatprep.subr.bf16.mxu0 %v13273_v9  ;;  %v13032_v22 = vcombine.low %v308_v10, %v316_v11  ;;  %v146_v9 = vld [vmem:[#allocation2] sm:$0xff]  ;;  %v12891_v11 = vcombine.high %v165_v4, %v173_v5  ;;  %v181_v14 = vld [vmem:[#allocation5 + $0x88] sm:$0xff] }
  0xca   :  { %v572_v13 = vld [vmem:[#allocation5 + $0xcc0] sm:$0xff]  ;;  %6839 = vmatpush1.bf16.msra.mxu0 %v13272_v15  ;;  %v189_v15 = vld [vmem:[#allocation5 + $0xc8] sm:$0xff] }
  0xcb   :  { %v13289_v17 = vcombine.high %v564_v12, %v572_v13  ;;  %v324_v18 = vld [vmem:[#allocation5 + $0x500] sm:$0xff]  ;;  %6799 = vmatprep.subr.bf16.mxu1 %v13033_v16  ;;  %v13288_v23 = vcombine.low %v564_v12, %v572_v13  ;;  %v148_v12 = vld [vmem:[#allocation2 + $0x10] sm:$0xff]  ;;  %v16146_v16 = vpack.c.bf16 %v146_v9, %v146_v9 }
  0xcc   :  { %v332_v19 = vld [vmem:[#allocation5 + $0x540] sm:$0xff]  ;;  %6800 = vmatpush1.bf16.msra.mxu1 %v13032_v22 }
  0xcd   :  { %v580_v20 = vld [vmem:[#allocation5 + $0xd00] sm:$0xff]  ;;  %v13049_v24 = vcombine.high %v324_v18, %v332_v19  ;;  %6840 = vmatprep.subr.bf16.mxu0 %v13289_v17  ;;  %v13048_v30 = vcombine.low %v324_v18, %v332_v19 }
  0xce   :  { %v588_v21 = vld [vmem:[#allocation5 + $0xd40] sm:$0xff]  ;;  %6841 = vmatpush1.bf16.msra.mxu0 %v13288_v23  ;;  %v12907_v23 = vcombine.high %v181_v14, %v189_v15 }
  0xcf   :  { %v13305_v25 = vcombine.high %v580_v20, %v588_v21  ;;  %v340_v26 = vld [vmem:[#allocation5 + $0x580] sm:$0xff]  ;;  %6801 = vmatprep.subr.bf16.mxu1 %v13049_v24  ;;  %v13304_v31 = vcombine.low %v580_v20, %v588_v21  ;;  %v12890_v20 = vcombine.low %v165_v4, %v173_v5  ;;  %v16148_v21 = vpack.c.bf16 %v148_v12, %v148_v12  ;;  %v277_v5 = vld [vmem:[#allocation5 + $0x388] sm:$0xff] }
  0xd0   :  { %v348_v27 = vld [vmem:[#allocation5 + $0x5c0] sm:$0xff]  ;;  %6802 = vmatpush1.bf16.msra.mxu1 %v13048_v30  ;;  %v12906_v30 = vcombine.low %v181_v14, %v189_v15  ;;  %v301_v15 = vld [vmem:[#allocation5 + $0x448] sm:$0xff] }
  0xd1   :  { %v596_v28 = vld [vmem:[#allocation5 + $0xd80] sm:$0xff]  ;;  %v13065_v32 = vcombine.high %v340_v26, %v348_v27  ;;  %6842 = vmatprep.subr.bf16.mxu0 %v13305_v25  ;;  %v13064_v38 = vcombine.low %v340_v26, %v348_v27  ;;  %v197_v25 = vld [vmem:[#allocation5 + $0x108] sm:$0xff] }
  0xd2   :  { %v604_v29 = vld [vmem:[#allocation5 + $0xdc0] sm:$0xff]  ;;  %6843 = vmatpush1.bf16.msra.mxu0 %v13304_v31  ;;  %v205_v26 = vld [vmem:[#allocation5 + $0x148] sm:$0xff] }
  0xd3   :  { %v13321_v33 = vcombine.high %v596_v28, %v604_v29  ;;  %v356_v34 = vld [vmem:[#allocation5 + $0x600] sm:$0xff]  ;;  %6803 = vmatprep.subr.bf16.mxu1 %v13065_v32  ;;  %v13320_v39 = vcombine.low %v596_v28, %v604_v29  ;;  %v12923_v32 = vcombine.high %v197_v25, %v205_v26 }
  0xd4   :  { %v364_v35 = vld [vmem:[#allocation5 + $0x640] sm:$0xff]  ;;  %6804 = vmatpush1.bf16.msra.mxu1 %v13064_v38  ;;  %v12922_v38 = vcombine.low %v197_v25, %v205_v26 }
  0xd5   :  { %v612_v36 = vld [vmem:[#allocation5 + $0xe00] sm:$0xff]  ;;  %v13081_v40 = vcombine.high %v356_v34, %v364_v35  ;;  %6844 = vmatprep.subr.bf16.mxu0 %v13321_v33  ;;  %v13080_v46 = vcombine.low %v356_v34, %v364_v35  ;;  %v213_v35 = vld [vmem:[#allocation5 + $0x188] sm:$0xff] }
  0xd6   :  { %v620_v37 = vld [vmem:[#allocation5 + $0xe40] sm:$0xff]  ;;  %6845 = vmatpush1.bf16.msra.mxu0 %v13320_v39 }
  0xd7   :  { %v13337_v41 = vcombine.high %v612_v36, %v620_v37  ;;  %v372_v42 = vld [vmem:[#allocation5 + $0x680] sm:$0xff]  ;;  %6805 = vmatprep.subr.bf16.mxu1 %v13081_v40  ;;  %v13336_v47 = vcombine.low %v612_v36, %v620_v37  ;;  %v221_v37 = vld [vmem:[#allocation5 + $0x1c8] sm:$0xff] }
  0xd8   :  { %v380_v43 = vld [vmem:[#allocation5 + $0x6c0] sm:$0xff]  ;;  %6806 = vmatpush1.bf16.msra.mxu1 %v13080_v46  ;;  %v12939_v40 = vcombine.high %v213_v35, %v221_v37  ;;  %v12938_v46 = vcombine.low %v213_v35, %v221_v37 }
  0xd9   :  { %v628_v44 = vld [vmem:[#allocation5 + $0xe80] sm:$0xff]  ;;  %v13097_v48 = vcombine.high %v372_v42, %v380_v43  ;;  %6846 = vmatprep.subr.bf16.mxu0 %v13337_v41  ;;  %v13096_v54 = vcombine.low %v372_v42, %v380_v43  ;;  %v229_v43 = vld [vmem:[#allocation5 + $0x208] sm:$0xff] }
  0xda   :  { %v636_v45 = vld [vmem:[#allocation5 + $0xec0] sm:$0xff]  ;;  %6847 = vmatpush1.bf16.msra.mxu0 %v13336_v47 }
  0xdb   :  { %v13353_v49 = vcombine.high %v628_v44, %v636_v45  ;;  %v388_v50 = vld [vmem:[#allocation5 + $0x700] sm:$0xff]  ;;  %6807 = vmatprep.subr.bf16.mxu1 %v13097_v48  ;;  %v13352_v55 = vcombine.low %v628_v44, %v636_v45  ;;  %v237_v45 = vld [vmem:[#allocation5 + $0x248] sm:$0xff] }
  0xdc   :  { %v396_v51 = vld [vmem:[#allocation5 + $0x740] sm:$0xff]  ;;  %6808 = vmatpush1.bf16.msra.mxu1 %v13096_v54  ;;  %v12955_v48 = vcombine.high %v229_v43, %v237_v45  ;;  %v12954_v54 = vcombine.low %v229_v43, %v237_v45 }
  0xdd   :  { %v644_v52 = vld [vmem:[#allocation5 + $0xf00] sm:$0xff]  ;;  %v13113_v56 = vcombine.high %v388_v50, %v396_v51  ;;  %6848 = vmatprep.subr.bf16.mxu0 %v13353_v49  ;;  %v13112_v0 = vcombine.low %v388_v50, %v396_v51  ;;  %v245_v51 = vld [vmem:[#allocation5 + $0x288] sm:$0xff] }
  0xde   :  { %v652_v53 = vld [vmem:[#allocation5 + $0xf40] sm:$0xff]  ;;  %6849 = vmatpush1.bf16.msra.mxu0 %v13352_v55 }
  0xdf   :  { %v13369_v58 = vcombine.high %v644_v52, %v652_v53  ;;  %v404_v59 = vld [vmem:[#allocation5 + $0x780] sm:$0xff]  ;;  %6809 = vmatprep.subr.bf16.mxu1 %v13113_v56  ;;  %v13368_v1 = vcombine.low %v644_v52, %v652_v53  ;;  %v253_v52 = vld [vmem:[#allocation5 + $0x2c8] sm:$0xff] }
  0xe0   :  { %v412_v60 = vld [vmem:[#allocation5 + $0x7c0] sm:$0xff]  ;;  %6810 = vmatpush1.bf16.msra.mxu1 %v13112_v0  ;;  %v12971_v56 = vcombine.high %v245_v51, %v253_v52  ;;  %v12970_v0 = vcombine.low %v245_v51, %v253_v52 }
  0xe1   :  { %v660_v62 = vld [vmem:[#allocation5 + $0xf80] sm:$0xff]  ;;  %v13129_v2 = vcombine.high %v404_v59, %v412_v60  ;;  %6850 = vmatprep.subr.bf16.mxu0 %v13369_v58  ;;  %v13128_v8 = vcombine.low %v404_v59, %v412_v60 }
  0xe2   :  { %v668_v63 = vld [vmem:[#allocation5 + $0xfc0] sm:$0xff]  ;;  %6851 = vmatpush1.bf16.msra.mxu0 %v13368_v1 }
  0xe3   :  { %v13385_v3 = vcombine.high %v660_v62, %v668_v63  ;;  %v676_v6 = vld [vmem:[#allocation5 + $0x1000] sm:$0xff]  ;;  %6811 = vmatprep.subr.bf16.mxu1 %v13129_v2  ;;  %v13384_v10 = vcombine.low %v660_v62, %v668_v63  ;;  %v261_v62 = vld [vmem:[#allocation5 + $0x308] sm:$0xff] }
  0xe4   :  { %v684_v7 = vld [vmem:[#allocation5 + $0x1040] sm:$0xff]  ;;  %6812 = vmatpush1.bf16.msra.mxu1 %v13128_v8  ;;  %v269_v63 = vld [vmem:[#allocation5 + $0x348] sm:$0xff] }
  0xe5   :  { %6852 = vmatprep.subr.bf16.mxu0 %v13385_v3  ;;  %v13401_v13 = vcombine.high %v676_v6, %v684_v7  ;;  %v692_v17 = vld [vmem:[#allocation5 + $0x1080] sm:$0xff]  ;;  %v13400_v22 = vcombine.low %v676_v6, %v684_v7  ;;  %6986 = vmatprep.subr.bf16.mxu1 %v12891_v11  ;;  %v12987_v2 = vcombine.high %v261_v62, %v269_v63  ;;  %v285_v7 = vld [vmem:[#allocation5 + $0x3c8] sm:$0xff] }
  0xe6   :  { %v700_v18 = vld [vmem:[#allocation5 + $0x10c0] sm:$0xff]  ;;  %6853 = vmatpush1.bf16.msra.mxu0 %v13384_v10  ;;  %v12986_v8 = vcombine.low %v261_v62, %v269_v63  ;;  %v13003_v10 = vcombine.high %v277_v5, %v285_v7 }
  0xe7   :  { %v151_v19 = vld [vmem:[#allocation2 + $0x28] sm:$0xff]  ;;  %6863 = vmatprep.subr.bf16.mxu0 %v13401_v13  ;;  %v13417_v24 = vcombine.high %v692_v17, %v700_v18  ;;  %6814 = vmatmul.mubr.bf16.vlgmr.msra.gmra.mrb[0].mxu1 %v16146_v16  ;;  %v13416_v31 = vcombine.low %v692_v17, %v700_v18  ;;  %v293_v13 = vld [vmem:[#allocation5 + $0x408] sm:$0xff]  ;;  %v13002_v17 = vcombine.low %v277_v5, %v285_v7 }
  0xe8   :  { %v16150_v27 = vpack.c.bf16 %v151_v19, %v151_v19  ;;  %v708_v28 = vld [vmem:[#allocation5 + $0x1100] sm:$0xff]  ;;  %6987 = vmatpush1.bf16.msra.mxu1 %v12890_v20  ;;  %7018 = vmatprep.mubr.bf16.mxu1 %v16140_v57  ;;  %v13019_v19 = vcombine.high %v293_v13, %v301_v15  ;;  %v13018_v26 = vcombine.low %v293_v13, %v301_v15 }
  0xe9   :  { %v716_v29 = vld [vmem:[#allocation5 + $0x1140] sm:$0xff]  ;;  %6855 = vmatmul.mubr.bf16.vlgmr.msra.gmra.mrb[0].mxu0 %v16148_v21  ;;  %6988 = vmatprep.subr.bf16.mxu1 %v12907_v23  ;;  %v309_v23 = vld [vmem:[#allocation5 + $0x488] sm:$0xff] }
  0xea   :  { %6864 = vmatpush1.bf16.msra.mxu0 %v13400_v22  ;;  %v724_v33 = vld [vmem:[#allocation5 + $0x1180] sm:$0xff]  ;;  %v13433_v36 = vcombine.high %v708_v28, %v716_v29  ;;  %6895 = vmatprep.mubr.bf16.mxu0 %v16150_v27  ;;  %v13432_v39 = vcombine.low %v708_v28, %v716_v29 }
  0xeb   :  { %v732_v34 = vld [vmem:[#allocation5 + $0x11c0] sm:$0xff]  ;;  %6865 = vmatprep.subr.bf16.mxu0 %v13417_v24  ;;  %v317_v24 = vld [vmem:[#allocation5 + $0x4c8] sm:$0xff] }
  0xec   :  { %6989 = vmatpush1.bf16.msra.mxu1 %v12906_v30  ;;  %v740_v41 = vld [vmem:[#allocation5 + $0x1200] sm:$0xff]  ;;  %v13449_v44 = vcombine.high %v724_v33, %v732_v34  ;;  %v13448_v47 = vcombine.low %v724_v33, %v732_v34  ;;  %v13035_v29 = vcombine.high %v309_v23, %v317_v24  ;;  %v333_v34 = vld [vmem:[#allocation5 + $0x548] sm:$0xff]  ;;  %v13034_v35 = vcombine.low %v309_v23, %v317_v24  ;;  %v150_v23 = vld [vmem:[#allocation2 + $0x20] sm:$0xff] }
  0xed   :  { %6990 = vmatprep.subr.bf16.mxu1 %v12923_v32  ;;  %v748_v42 = vld [vmem:[#allocation5 + $0x1240] sm:$0xff]  ;;  %v325_v32 = vld [vmem:[#allocation5 + $0x508] sm:$0xff] }
  0xee   :  { %6866 = vmatpush1.bf16.msra.mxu0 %v13416_v31  ;;  %v756_v49 = vld [vmem:[#allocation5 + $0x1280] sm:$0xff]  ;;  %v13465_v53 = vcombine.high %v740_v41, %v748_v42  ;;  %v13464_v55 = vcombine.low %v740_v41, %v748_v42  ;;  %v13051_v37 = vcombine.high %v325_v32, %v333_v34  ;;  %v349_v42 = vld [vmem:[#allocation5 + $0x5c8] sm:$0xff]  ;;  %v13050_v43 = vcombine.low %v325_v32, %v333_v34 }
  0xef   :  { %6867 = vmatprep.subr.bf16.mxu0 %v13433_v36  ;;  %v764_v50 = vld [vmem:[#allocation5 + $0x12c0] sm:$0xff] }
  0xf0   :  { %6991 = vmatpush1.bf16.msra.mxu1 %v12922_v38  ;;  %v772_v58 = vld [vmem:[#allocation5 + $0x1300] sm:$0xff]  ;;  %v13481_v60 = vcombine.high %v756_v49, %v764_v50  ;;  %v13480_v1 = vcombine.low %v756_v49, %v764_v50  ;;  %v365_v50 = vld [vmem:[#allocation5 + $0x648] sm:$0xff] }
  0xf1   :  { %6992 = vmatprep.subr.bf16.mxu1 %v12939_v40  ;;  %v780_v59 = vld [vmem:[#allocation5 + $0x1340] sm:$0xff]  ;;  %v341_v40 = vld [vmem:[#allocation5 + $0x588] sm:$0xff] }
  0xf2   :  { %6868 = vmatpush1.bf16.msra.mxu0 %v13432_v39  ;;  %v788_v3 = vld [vmem:[#allocation5 + $0x1380] sm:$0xff]  ;;  %v13497_v6 = vcombine.high %v772_v58, %v780_v59  ;;  %v13496_v9 = vcombine.low %v772_v58, %v780_v59  ;;  %v13067_v45 = vcombine.high %v341_v40, %v349_v42  ;;  %v13066_v51 = vcombine.low %v341_v40, %v349_v42  ;;  %v381_v59 = vld [vmem:[#allocation5 + $0x6c8] sm:$0xff] }
  0xf3   :  { %6869 = vmatprep.subr.bf16.mxu0 %v13449_v44  ;;  %v796_v4 = vld [vmem:[#allocation5 + $0x13c0] sm:$0xff]  ;;  %v453_v40 = vld [vmem:[#allocation5 + $0x908] sm:$0xff] }
  0xf4   :  { %6993 = vmatpush1.bf16.msra.mxu1 %v12938_v46  ;;  %v804_v11 = vld [vmem:[#allocation5 + $0x1400] sm:$0xff]  ;;  %v13513_v14 = vcombine.high %v788_v3, %v796_v4  ;;  %v13512_v18 = vcombine.low %v788_v3, %v796_v4  ;;  %v397_v4 = vld [vmem:[#allocation5 + $0x748] sm:$0xff] }
  0xf5   :  { %6994 = vmatprep.subr.bf16.mxu1 %v12955_v48  ;;  %v812_v12 = vld [vmem:[#allocation5 + $0x1440] sm:$0xff]  ;;  %v357_v48 = vld [vmem:[#allocation5 + $0x608] sm:$0xff] }
  0xf6   :  { %6870 = vmatpush1.bf16.msra.mxu0 %v13448_v47  ;;  %v820_v20 = vld [vmem:[#allocation5 + $0x1480] sm:$0xff]  ;;  %v13529_v25 = vcombine.high %v804_v11, %v812_v12  ;;  %v13528_v28 = vcombine.low %v804_v11, %v812_v12  ;;  %v413_v12 = vld [vmem:[#allocation5 + $0x7c8] sm:$0xff] }
  0xf7   :  { %6871 = vmatprep.subr.bf16.mxu0 %v13465_v53  ;;  %v828_v22 = vld [vmem:[#allocation5 + $0x14c0] sm:$0xff]  ;;  %v13083_v53 = vcombine.high %v357_v48, %v365_v50  ;;  %v461_v42 = vld [vmem:[#allocation5 + $0x948] sm:$0xff] }
  0xf8   :  { %6995 = vmatpush1.bf16.msra.mxu1 %v12954_v54  ;;  %v836_v30 = vld [vmem:[#allocation5 + $0x1500] sm:$0xff]  ;;  %v13545_v33 = vcombine.high %v820_v20, %v828_v22  ;;  %v13544_v36 = vcombine.low %v820_v20, %v828_v22  ;;  %v429_v22 = vld [vmem:[#allocation5 + $0x848] sm:$0xff] }
  0xf9   :  { %6996 = vmatprep.subr.bf16.mxu1 %v12971_v56  ;;  %v844_v31 = vld [vmem:[#allocation5 + $0x1540] sm:$0xff]  ;;  %v373_v56 = vld [vmem:[#allocation5 + $0x688] sm:$0xff] }
  0xfa   :  { %6872 = vmatpush1.bf16.msra.mxu0 %v13464_v55  ;;  %v852_v38 = vld [vmem:[#allocation5 + $0x1580] sm:$0xff]  ;;  %v13561_v41 = vcombine.high %v836_v30, %v844_v31  ;;  %v13560_v44 = vcombine.low %v836_v30, %v844_v31  ;;  %v13099_v63 = vcombine.high %v373_v56, %v381_v59  ;;  %v13098_v5 = vcombine.low %v373_v56, %v381_v59  ;;  %v437_v30 = vld [vmem:[#allocation5 + $0x888] sm:$0xff] }
  0xfb   :  { %6873 = vmatprep.subr.bf16.mxu0 %v13481_v60  ;;  %v860_v39 = vld [vmem:[#allocation5 + $0x15c0] sm:$0xff]  ;;  %v13082_v60 = vcombine.low %v357_v48, %v365_v50  ;;  %v445_v31 = vld [vmem:[#allocation5 + $0x8c8] sm:$0xff] }
  0xfc   :  { %6997 = vmatpush1.bf16.msra.mxu1 %v12970_v0  ;;  %v868_v46 = vld [vmem:[#allocation5 + $0x1600] sm:$0xff]  ;;  %v13577_v49 = vcombine.high %v852_v38, %v860_v39  ;;  %v13576_v52 = vcombine.low %v852_v38, %v860_v39 }
  0xfd   :  { %6998 = vmatprep.subr.bf16.mxu1 %v12987_v2  ;;  %v876_v47 = vld [vmem:[#allocation5 + $0x1640] sm:$0xff]  ;;  %v389_v2 = vld [vmem:[#allocation5 + $0x708] sm:$0xff] }
  0xfe   :  { %6874 = vmatpush1.bf16.msra.mxu0 %v13480_v1  ;;  %v884_v54 = vld [vmem:[#allocation5 + $0x1680] sm:$0xff]  ;;  %v13593_v58 = vcombine.high %v868_v46, %v876_v47  ;;  %v13592_v62 = vcombine.low %v868_v46, %v876_v47  ;;  %v13115_v7 = vcombine.high %v389_v2, %v397_v4  ;;  %v13114_v13 = vcombine.low %v389_v2, %v397_v4 }
  0xff   :  { %6875 = vmatprep.subr.bf16.mxu0 %v13497_v6  ;;  %v892_v55 = vld [vmem:[#allocation5 + $0x16c0] sm:$0xff]  ;;  %v13179_v46 = vcombine.high %v453_v40, %v461_v42 }
 0x100   :  { %6999 = vmatpush1.bf16.msra.mxu1 %v12986_v8  ;;  %v900_v0 = vld [vmem:[#allocation5 + $0x1700] sm:$0xff]  ;;  %v13609_v3 = vcombine.high %v884_v54, %v892_v55  ;;  %v13608_v6 = vcombine.low %v884_v54, %v892_v55 }
 0x101   :  { %7000 = vmatprep.subr.bf16.mxu1 %v13003_v10  ;;  %v908_v1 = vld [vmem:[#allocation5 + $0x1740] sm:$0xff]  ;;  %v405_v10 = vld [vmem:[#allocation5 + $0x788] sm:$0xff] }
 0x102   :  { %6876 = vmatpush1.bf16.msra.mxu0 %v13496_v9  ;;  %v916_v8 = vld [vmem:[#allocation5 + $0x1780] sm:$0xff]  ;;  %v13625_v11 = vcombine.high %v900_v0, %v908_v1  ;;  %v13131_v15 = vcombine.high %v405_v10, %v413_v12  ;;  %v13130_v24 = vcombine.low %v405_v10, %v413_v12 }
 0x103   :  { %6877 = vmatprep.subr.bf16.mxu0 %v13513_v14  ;;  %v924_v9 = vld [vmem:[#allocation5 + $0x17c0] sm:$0xff]  ;;  %v13624_v14 = vcombine.low %v900_v0, %v908_v1 }
 0x104   :  { %7001 = vmatpush1.bf16.msra.mxu1 %v13002_v17  ;;  %v932_v17 = vld [vmem:[#allocation5 + $0x1800] sm:$0xff]  ;;  %v13641_v20 = vcombine.high %v916_v8, %v924_v9 }
 0x105   :  { %7002 = vmatprep.subr.bf16.mxu1 %v13019_v19  ;;  %v421_v19 = vld [vmem:[#allocation5 + $0x808] sm:$0xff]  ;;  %v964_v38 = vld [vmem:[#allocation5 + $0x1900] sm:$0xff] }
 0x106   :  { %6878 = vmatpush1.bf16.msra.mxu0 %v13512_v18  ;;  %v940_v18 = vld [vmem:[#allocation5 + $0x1840] sm:$0xff]  ;;  %v13146_v34 = vcombine.low %v421_v19, %v429_v22 }
 0x107   :  { %6879 = vmatprep.subr.bf16.mxu0 %v13529_v25  ;;  %v13640_v25 = vcombine.low %v916_v8, %v924_v9  ;;  %v13657_v32 = vcombine.high %v932_v17, %v940_v18  ;;  %v972_v39 = vld [vmem:[#allocation5 + $0x1940] sm:$0xff] }
 0x108   :  { %7003 = vmatpush1.bf16.msra.mxu1 %v13018_v26  ;;  %v13147_v26 = vcombine.high %v421_v19, %v429_v22  ;;  %v980_v47 = vld [vmem:[#allocation5 + $0x1980] sm:$0xff]  ;;  %v13689_v50 = vcombine.high %v964_v38, %v972_v39  ;;  %v533_v22 = vld [vmem:[#allocation5 + $0xb88] sm:$0xff] }
 0x109   :  { %7004 = vmatprep.subr.bf16.mxu1 %v13035_v29  ;;  %v956_v29 = vld [vmem:[#allocation5 + $0x18c0] sm:$0xff] }
 0x10a   :  { %6880 = vmatpush1.bf16.msra.mxu0 %v13528_v28  ;;  %v948_v28 = vld [vmem:[#allocation5 + $0x1880] sm:$0xff] }
 0x10b   :  { %6881 = vmatprep.subr.bf16.mxu0 %v13545_v33  ;;  %v153_v33 = vld [vmem:[#allocation2 + $0x38] sm:$0xff]  ;;  %v988_v48 = vld [vmem:[#allocation5 + $0x19c0] sm:$0xff] }
 0x10c   :  { %7005 = vmatpush1.bf16.msra.mxu1 %v13034_v35  ;;  %v16156_v35 = vpack.c.bf16 %v150_v23, %v150_v23  ;;  %v996_v55 = vld [vmem:[#allocation5 + $0x1a00] sm:$0xff]  ;;  %v13705_v59 = vcombine.high %v980_v47, %v988_v48  ;;  %v541_v23 = vld [vmem:[#allocation5 + $0xbc8] sm:$0xff] }
 0x10d   :  { %7006 = vmatprep.subr.bf16.mxu1 %v13051_v37  ;;  %v13163_v37 = vcombine.high %v437_v30, %v445_v31  ;;  %v1004_v56 = vld [vmem:[#allocation5 + $0x1a40] sm:$0xff] }
 0x10e   :  { %6882 = vmatpush1.bf16.msra.mxu0 %v13544_v36  ;;  %v13656_v36 = vcombine.low %v932_v17, %v940_v18  ;;  %v1012_v1 = vld [vmem:[#allocation5 + $0x1a80] sm:$0xff]  ;;  %v13721_v4 = vcombine.high %v996_v55, %v1004_v56 }
 0x10f   :  { %6883 = vmatprep.subr.bf16.mxu0 %v13561_v41  ;;  %v13673_v41 = vcombine.high %v948_v28, %v956_v29  ;;  %v1020_v2 = vld [vmem:[#allocation5 + $0x1ac0] sm:$0xff] }
 0x110   :  { %7007 = vmatpush1.bf16.msra.mxu1 %v13050_v43  ;;  %v16158_v43 = vpack.c.bf16 %v153_v33, %v153_v33  ;;  %v1028_v9 = vld [vmem:[#allocation5 + $0x1b00] sm:$0xff]  ;;  %v13737_v12 = vcombine.high %v1012_v1, %v1020_v2  ;;  %v13258_v33 = vcombine.low %v533_v22, %v541_v23 }
 0x111   :  { %7008 = vmatprep.subr.bf16.mxu1 %v13067_v45  ;;  %v13672_v45 = vcombine.low %v948_v28, %v956_v29  ;;  %v1036_v10 = vld [vmem:[#allocation5 + $0x1b40] sm:$0xff] }
 0x112   :  { %6884 = vmatpush1.bf16.msra.mxu0 %v13560_v44  ;;  %v13162_v44 = vcombine.low %v437_v30, %v445_v31  ;;  %v1044_v18 = vld [vmem:[#allocation5 + $0x1b80] sm:$0xff]  ;;  %v549_v30 = vld [vmem:[#allocation5 + $0xc08] sm:$0xff] }
 0x113   :  { %6885 = vmatprep.subr.bf16.mxu0 %v13577_v49  ;;  %v469_v49 = vld [vmem:[#allocation5 + $0x988] sm:$0xff]  ;;  %v1052_v19 = vld [vmem:[#allocation5 + $0x1bc0] sm:$0xff] }
 0x114   :  { %7009 = vmatpush1.bf16.msra.mxu1 %v13066_v51  ;;  %v477_v51 = vld [vmem:[#allocation5 + $0x9c8] sm:$0xff]  ;;  %v1060_v28 = vld [vmem:[#allocation5 + $0x1c00] sm:$0xff]  ;;  %v13769_v31 = vcombine.high %v1044_v18, %v1052_v19 }
 0x115   :  { %7010 = vmatprep.subr.bf16.mxu1 %v13083_v53  ;;  %v13688_v53 = vcombine.low %v964_v38, %v972_v39  ;;  %v13195_v54 = vcombine.high %v469_v49, %v477_v51  ;;  %v1068_v29 = vld [vmem:[#allocation5 + $0x1c40] sm:$0xff]  ;;  %v565_v39 = vld [vmem:[#allocation5 + $0xc88] sm:$0xff] }
 0x116   :  { %6886 = vmatpush1.bf16.msra.mxu0 %v13576_v52  ;;  %v13178_v52 = vcombine.low %v453_v40, %v461_v42  ;;  %v1084_v38 = vld [vmem:[#allocation5 + $0x1cc0] sm:$0xff]  ;;  %v13785_v40 = vcombine.high %v1060_v28, %v1068_v29 }
 0x117   :  { %6887 = vmatprep.subr.bf16.mxu0 %v13593_v58  ;;  %v485_v58 = vld [vmem:[#allocation5 + $0xa08] sm:$0xff] }
 0x118   :  { %7011 = vmatpush1.bf16.msra.mxu1 %v13082_v60  ;;  %v493_v60 = vld [vmem:[#allocation5 + $0xa48] sm:$0xff] }
 0x119   :  { %7012 = vmatprep.subr.bf16.mxu1 %v13099_v63  ;;  %v13704_v63 = vcombine.low %v980_v47, %v988_v48  ;;  %v13211_v0 = vcombine.high %v485_v58, %v493_v60  ;;  %v1100_v47 = vld [vmem:[#allocation5 + $0x1d40] sm:$0xff]  ;;  %v581_v48 = vld [vmem:[#allocation5 + $0xd08] sm:$0xff] }
 0x11a   :  { %6888 = vmatpush1.bf16.msra.mxu0 %v13592_v62  ;;  %v13194_v62 = vcombine.low %v469_v49, %v477_v51 }
 0x11b   :  { %6889 = vmatprep.subr.bf16.mxu0 %v13609_v3  ;;  %v501_v3 = vld [vmem:[#allocation5 + $0xa88] sm:$0xff] }
 0x11c   :  { %7013 = vmatpush1.bf16.msra.mxu1 %v13098_v5  ;;  %v509_v5 = vld [vmem:[#allocation5 + $0xac8] sm:$0xff] }
 0x11d   :  { %7014 = vmatprep.subr.bf16.mxu1 %v13115_v7  ;;  %v13720_v7 = vcombine.low %v996_v55, %v1004_v56  ;;  %v13227_v8 = vcombine.high %v501_v3, %v509_v5  ;;  %v1116_v55 = vld [vmem:[#allocation5 + $0x1dc0] sm:$0xff]  ;;  %v597_v56 = vld [vmem:[#allocation5 + $0xd88] sm:$0xff] }
 0x11e   :  { %6890 = vmatpush1.bf16.msra.mxu0 %v13608_v6  ;;  %v13210_v6 = vcombine.low %v485_v58, %v493_v60 }
 0x11f   :  { %6891 = vmatprep.subr.bf16.mxu0 %v13625_v11  ;;  %v517_v11 = vld [vmem:[#allocation5 + $0xb08] sm:$0xff] }
 0x120   :  { %7015 = vmatpush1.bf16.msra.mxu1 %v13114_v13  ;;  %v525_v13 = vld [vmem:[#allocation5 + $0xb48] sm:$0xff] }
 0x121   :  { %7016 = vmatprep.subr.bf16.mxu1 %v13131_v15  ;;  %v13736_v15 = vcombine.low %v1012_v1, %v1020_v2  ;;  %v13243_v17 = vcombine.high %v517_v11, %v525_v13  ;;  %v1132_v1 = vld [vmem:[#allocation5 + $0x1e40] sm:$0xff]  ;;  %v613_v2 = vld [vmem:[#allocation5 + $0xe08] sm:$0xff] }
 0x122   :  { %6892 = vmatpush1.bf16.msra.mxu0 %v13624_v14  ;;  %v13226_v14 = vcombine.low %v501_v3, %v509_v5 }
 0x123   :  { %6893 = vmatprep.subr.bf16.mxu0 %v13641_v20  ;;  %v13753_v20 = vcombine.high %v1028_v9, %v1036_v10 }
 0x124   :  { %7017 = vmatpush1.bf16.msra.mxu1 %v13130_v24  ;;  %v13242_v24 = vcombine.low %v517_v11, %v525_v13 }
 0x125   :  { %7027 = vmatprep.subr.bf16.mxu1 %v13147_v26  ;;  %v13259_v26 = vcombine.high %v533_v22, %v541_v23  ;;  %v653_v22 = vld [vmem:[#allocation5 + $0xf48] sm:$0xff] }
 0x126   :  { %6894 = vmatpush1.bf16.msra.mxu0 %v13640_v25  ;;  %v13752_v25 = vcombine.low %v1028_v9, %v1036_v10  ;;  %v1148_v9 = vld [vmem:[#allocation5 + $0x1ec0] sm:$0xff]  ;;  %v629_v10 = vld [vmem:[#allocation5 + $0xe88] sm:$0xff] }
 0x127   :  { %6904 = vmatprep.subr.bf16.mxu0 %v13657_v32  ;;  %7019 = vmatmul.mubr.bf16.vlgmr.msra.gmra.mrb[4].mxu1 %v16146_v16  ;;  %v557_v32 = vld [vmem:[#allocation5 + $0xc48] sm:$0xff] }
 0x128   :  { %7028 = vmatpush1.bf16.msra.mxu1 %v13146_v34  ;;  %7059 = vmatprep.mubr.bf16.mxu1 %v16142_v61  ;;  %v13768_v34 = vcombine.low %v1044_v18, %v1052_v19  ;;  %v13274_v42 = vcombine.low %v549_v30, %v557_v32  ;;  %v1164_v18 = vld [vmem:[#allocation5 + $0x1f40] sm:$0xff]  ;;  %v645_v19 = vld [vmem:[#allocation5 + $0xf08] sm:$0xff] }
 0x129   :  { %6896 = vmatmul.mubr.bf16.vlgmr.msra.gmra.mrb[0].mxu0 %v16156_v35  ;;  %7029 = vmatprep.subr.bf16.mxu1 %v13163_v37  ;;  %v1076_v37 = vld [vmem:[#allocation5 + $0x1c80] sm:$0xff] }
 0x12a   :  { %6905 = vmatpush1.bf16.msra.mxu0 %v13656_v36  ;;  %6936 = vmatprep.mubr.bf16.mxu0 %v16158_v43  ;;  %v13275_v36 = vcombine.high %v549_v30, %v557_v32  ;;  %v13801_v49 = vcombine.high %v1076_v37, %v1084_v38  ;;  %v13370_v32 = vcombine.low %v645_v19, %v653_v22 }
 0x12b   :  { %6906 = vmatprep.subr.bf16.mxu0 %v13673_v41  ;;  %v573_v41 = vld [vmem:[#allocation5 + $0xcc8] sm:$0xff] }
 0x12c   :  { %7030 = vmatpush1.bf16.msra.mxu1 %v13162_v44  ;;  %v13784_v44 = vcombine.low %v1060_v28, %v1068_v29  ;;  %v13290_v51 = vcombine.low %v565_v39, %v573_v41  ;;  %v1180_v28 = vld [vmem:[#allocation5 + $0x1fc0] sm:$0xff]  ;;  %v661_v29 = vld [vmem:[#allocation5 + $0xf88] sm:$0xff] }
 0x12d   :  { %7031 = vmatprep.subr.bf16.mxu1 %v13179_v46  ;;  %v1092_v46 = vld [vmem:[#allocation5 + $0x1d00] sm:$0xff] }
 0x12e   :  { %6907 = vmatpush1.bf16.msra.mxu0 %v13672_v45  ;;  %v13291_v45 = vcombine.high %v565_v39, %v573_v41  ;;  %v13817_v58 = vcombine.high %v1092_v46, %v1100_v47  ;;  %v152_v41 = vld [vmem:[#allocation2 + $0x30] sm:$0xff] }
 0x12f   :  { %6908 = vmatprep.subr.bf16.mxu0 %v13689_v50  ;;  %v589_v50 = vld [vmem:[#allocation5 + $0xd48] sm:$0xff] }
 0x130   :  { %7032 = vmatpush1.bf16.msra.mxu1 %v13178_v52  ;;  %v13800_v52 = vcombine.low %v1076_v37, %v1084_v38  ;;  %v13306_v60 = vcombine.low %v581_v48, %v589_v50  ;;  %v1196_v37 = vld [vmem:[#allocation5 + $0x2040] sm:$0xff]  ;;  %v677_v38 = vld [vmem:[#allocation5 + $0x1008] sm:$0xff] }
 0x131   :  { %7033 = vmatprep.subr.bf16.mxu1 %v13195_v54  ;;  %v1108_v54 = vld [vmem:[#allocation5 + $0x1d80] sm:$0xff] }
 0x132   :  { %6909 = vmatpush1.bf16.msra.mxu0 %v13688_v53  ;;  %v13307_v53 = vcombine.high %v581_v48, %v589_v50  ;;  %v13833_v3 = vcombine.high %v1108_v54, %v1116_v55  ;;  %v693_v48 = vld [vmem:[#allocation5 + $0x1088] sm:$0xff] }
 0x133   :  { %6910 = vmatprep.subr.bf16.mxu0 %v13705_v59  ;;  %v605_v59 = vld [vmem:[#allocation5 + $0xdc8] sm:$0xff] }
 0x134   :  { %7034 = vmatpush1.bf16.msra.mxu1 %v13194_v62  ;;  %v13816_v62 = vcombine.low %v1092_v46, %v1100_v47  ;;  %v13322_v5 = vcombine.low %v597_v56, %v605_v59  ;;  %v1204_v46 = vld [vmem:[#allocation5 + $0x2080] sm:$0xff]  ;;  %v701_v50 = vld [vmem:[#allocation5 + $0x10c8] sm:$0xff] }
 0x135   :  { %7035 = vmatprep.subr.bf16.mxu1 %v13211_v0  ;;  %v1124_v0 = vld [vmem:[#allocation5 + $0x1e00] sm:$0xff] }
 0x136   :  { %6911 = vmatpush1.bf16.msra.mxu0 %v13704_v63  ;;  %v13323_v63 = vcombine.high %v597_v56, %v605_v59  ;;  %v13849_v11 = vcombine.high %v1124_v0, %v1132_v1  ;;  %v1212_v47 = vld [vmem:[#allocation5 + $0x20c0] sm:$0xff] }
 0x137   :  { %6912 = vmatprep.subr.bf16.mxu0 %v13721_v4  ;;  %v621_v4 = vld [vmem:[#allocation5 + $0xe48] sm:$0xff]  ;;  %v1228_v56 = vld [vmem:[#allocation5 + $0x2140] sm:$0xff]  ;;  %v13929_v59 = vcombine.high %v1204_v46, %v1212_v47 }
 0x138   :  { %7036 = vmatpush1.bf16.msra.mxu1 %v13210_v6  ;;  %v13832_v6 = vcombine.low %v1108_v54, %v1116_v55  ;;  %v13338_v13 = vcombine.low %v613_v2, %v621_v4  ;;  %v13419_v54 = vcombine.high %v693_v48, %v701_v50  ;;  %v1220_v55 = vld [vmem:[#allocation5 + $0x2100] sm:$0xff] }
 0x139   :  { %7037 = vmatprep.subr.bf16.mxu1 %v13227_v8  ;;  %v1140_v8 = vld [vmem:[#allocation5 + $0x1e80] sm:$0xff] }
 0x13a   :  { %6913 = vmatpush1.bf16.msra.mxu0 %v13720_v7  ;;  %v13339_v7 = vcombine.high %v613_v2, %v621_v4  ;;  %v725_v2 = vld [vmem:[#allocation5 + $0x1188] sm:$0xff] }
 0x13b   :  { %6914 = vmatprep.subr.bf16.mxu0 %v13737_v12  ;;  %v637_v12 = vld [vmem:[#allocation5 + $0xec8] sm:$0xff] }
 0x13c   :  { %7038 = vmatpush1.bf16.msra.mxu1 %v13226_v14  ;;  %v13848_v14 = vcombine.low %v1124_v0, %v1132_v1  ;;  %v13354_v23 = vcombine.low %v629_v10, %v637_v12  ;;  %v1236_v1 = vld [vmem:[#allocation5 + $0x2180] sm:$0xff]  ;;  %v733_v4 = vld [vmem:[#allocation5 + $0x11c8] sm:$0xff] }
 0x13d   :  { %7039 = vmatprep.subr.bf16.mxu1 %v13243_v17  ;;  %v1156_v17 = vld [vmem:[#allocation5 + $0x1f00] sm:$0xff] }
 0x13e   :  { %6915 = vmatpush1.bf16.msra.mxu0 %v13736_v15  ;;  %v13355_v15 = vcombine.high %v629_v10, %v637_v12  ;;  %v13881_v30 = vcombine.high %v1156_v17, %v1164_v18  ;;  %v749_v10 = vld [vmem:[#allocation5 + $0x1248] sm:$0xff]  ;;  %v13961_v12 = vcombine.high %v1236_v1, %v1236_v1 }
 0x13f   :  { %6916 = vmatprep.subr.bf16.mxu0 %v13753_v20  ;;  %v13865_v20 = vcombine.high %v1140_v8, %v1148_v9 }
 0x140   :  { %7040 = vmatpush1.bf16.msra.mxu1 %v13242_v24  ;;  %v13864_v24 = vcombine.low %v1140_v8, %v1148_v9  ;;  %v13451_v8 = vcombine.high %v725_v2, %v733_v4  ;;  %v741_v9 = vld [vmem:[#allocation5 + $0x1208] sm:$0xff] }
 0x141   :  { %7041 = vmatprep.subr.bf16.mxu1 %v13259_v26  ;;  %v1172_v26 = vld [vmem:[#allocation5 + $0x1f80] sm:$0xff] }
 0x142   :  { %6917 = vmatpush1.bf16.msra.mxu0 %v13752_v25  ;;  %v13371_v25 = vcombine.high %v645_v19, %v653_v22  ;;  %v13897_v39 = vcombine.high %v1172_v26, %v1180_v28  ;;  %v757_v19 = vld [vmem:[#allocation5 + $0x1288] sm:$0xff] }
 0x143   :  { %6918 = vmatprep.subr.bf16.mxu0 %v13769_v31  ;;  %v669_v31 = vld [vmem:[#allocation5 + $0xfc8] sm:$0xff] }
 0x144   :  { %7042 = vmatpush1.bf16.msra.mxu1 %v13258_v33  ;;  %v13880_v33 = vcombine.low %v1156_v17, %v1164_v18  ;;  %v13450_v17 = vcombine.low %v725_v2, %v733_v4  ;;  %v13467_v18 = vcombine.high %v741_v9, %v749_v10  ;;  %v1205_v22 = vld [vmem:[#allocation5 + $0x2088] sm:$0xff] }
 0x145   :  { %7043 = vmatprep.subr.bf16.mxu1 %v13275_v36  ;;  %v1188_v36 = vld [vmem:[#allocation5 + $0x2000] sm:$0xff]  ;;  %v837_v4 = vld [vmem:[#allocation5 + $0x1508] sm:$0xff] }
 0x146   :  { %6919 = vmatpush1.bf16.msra.mxu0 %v13768_v34  ;;  %v13387_v34 = vcombine.high %v661_v29, %v669_v31 }
 0x147   :  { %6920 = vmatprep.subr.bf16.mxu0 %v13785_v40  ;;  %v685_v40 = vld [vmem:[#allocation5 + $0x1048] sm:$0xff] }
 0x148   :  { %7044 = vmatpush1.bf16.msra.mxu1 %v13274_v42  ;;  %v13386_v42 = vcombine.low %v661_v29, %v669_v31  ;;  %v773_v31 = vld [vmem:[#allocation5 + $0x1308] sm:$0xff] }
 0x149   :  { %7045 = vmatprep.subr.bf16.mxu1 %v13291_v45  ;;  %v13403_v45 = vcombine.high %v677_v38, %v685_v40 }
 0x14a   :  { %6921 = vmatpush1.bf16.msra.mxu0 %v13784_v44  ;;  %v13896_v44 = vcombine.low %v1172_v26, %v1180_v28  ;;  %v13466_v28 = vcombine.low %v741_v9, %v749_v10  ;;  %v206_v9 = vld [vmem:[#allocation5 + $0x150] sm:$0xff] }
 0x14b   :  { %6922 = vmatprep.subr.bf16.mxu0 %v13801_v49  ;;  %v13913_v49 = vcombine.high %v1188_v36, %v1196_v37 }
 0x14c   :  { %7046 = vmatpush1.bf16.msra.mxu1 %v13290_v51  ;;  %v13402_v51 = vcombine.low %v677_v38, %v685_v40  ;;  %v789_v40 = vld [vmem:[#allocation5 + $0x1388] sm:$0xff] }
 0x14d   :  { %7047 = vmatprep.subr.bf16.mxu1 %v13307_v53  ;;  %v13912_v53 = vcombine.low %v1188_v36, %v1196_v37  ;;  %v1229_v36 = vld [vmem:[#allocation5 + $0x2148] sm:$0xff] }
 0x14e   :  { %6923 = vmatpush1.bf16.msra.mxu0 %v13800_v52  ;;  %v16164_v52 = vpack.c.bf16 %v152_v41, %v152_v41  ;;  %v797_v41 = vld [vmem:[#allocation5 + $0x13c8] sm:$0xff] }
 0x14f   :  { %6924 = vmatprep.subr.bf16.mxu0 %v13817_v58  ;;  %v709_v58 = vld [vmem:[#allocation5 + $0x1108] sm:$0xff] }
 0x150   :  { %7048 = vmatpush1.bf16.msra.mxu1 %v13306_v60  ;;  %v717_v60 = vld [vmem:[#allocation5 + $0x1148] sm:$0xff] }
 0x151   :  { %7049 = vmatprep.subr.bf16.mxu1 %v13323_v63  ;;  %v13928_v63 = vcombine.low %v1204_v46, %v1212_v47  ;;  %v13435_v0 = vcombine.high %v709_v58, %v717_v60  ;;  %v13515_v47 = vcombine.high %v789_v40, %v797_v41 }
 0x152   :  { %6925 = vmatpush1.bf16.msra.mxu0 %v13816_v62  ;;  %v13418_v62 = vcombine.low %v693_v48, %v701_v50  ;;  %v805_v48 = vld [vmem:[#allocation5 + $0x1408] sm:$0xff]  ;;  %v166_v50 = vld [vmem:[#allocation5 + $0x10] sm:$0xff] }
 0x153   :  { %6926 = vmatprep.subr.bf16.mxu0 %v13833_v3  ;;  %v13945_v3 = vcombine.high %v1220_v55, %v1228_v56 }
 0x154   :  { %7050 = vmatpush1.bf16.msra.mxu1 %v13322_v5  ;;  %v15977_v5 = vmov 0  }
 0x155   :  { %7051 = vmatprep.subr.bf16.mxu1 %v13339_v7  ;;  %v13944_v7 = vcombine.low %v1220_v55, %v1228_v56  ;;  %v13514_v55 = vcombine.low %v789_v40, %v797_v41 }
 0x156   :  { %6927 = vmatpush1.bf16.msra.mxu0 %v13832_v6  ;;  %v13434_v6 = vcombine.low %v709_v58, %v717_v60  ;;  %v821_v58 = vld [vmem:[#allocation5 + $0x1488] sm:$0xff]  ;;  %v182_v60 = vld [vmem:[#allocation5 + $0x90] sm:$0xff] }
 0x157   :  { %6928 = vmatprep.subr.bf16.mxu0 %v13849_v11  ;;  %v1189_v11 = vld [vmem:[#allocation5 + $0x2008] sm:$0xff] }
 0x158   :  { %7052 = vmatpush1.bf16.msra.mxu1 %v13338_v13  ;;  %v13960_v13 = vcombine.low %v1236_v1, %v1236_v1 }
 0x159   :  { %7053 = vmatprep.subr.bf16.mxu1 %v13355_v15  ;;  %v154_v15 = vld [vmem:[#allocation2 + $0x40] sm:$0xff] }
 0x15a   :  { %6929 = vmatpush1.bf16.msra.mxu0 %v13848_v14  ;;  %v1197_v14 = vld [vmem:[#allocation5 + $0x2048] sm:$0xff]  ;;  %v16172_v26 = vpack.c.bf16 %v154_v15, %v154_v15  ;;  %v214_v15 = vld [vmem:[#allocation5 + $0x190] sm:$0xff] }
 0x15b   :  { %6930 = vmatprep.subr.bf16.mxu0 %v13865_v20  ;;  %v765_v20 = vld [vmem:[#allocation5 + $0x12c8] sm:$0xff]  ;;  %v13914_v29 = vcombine.low %v1189_v11, %v1197_v14 }
 0x15c   :  { %7054 = vmatpush1.bf16.msra.mxu1 %v13354_v23  ;;  %v6734_v23 = vsel %vm6732_vm0, %v13960_v13, 0  ;;  %v13482_v37 = vcombine.low %v757_v19, %v765_v20  ;;  %v853_v13 = vld [vmem:[#allocation5 + $0x1588] sm:$0xff] }
 0x15d   :  { %7055 = vmatprep.subr.bf16.mxu1 %v13371_v25  ;;  %v1213_v25 = vld [vmem:[#allocation5 + $0x20c8] sm:$0xff] }
 0x15e   :  { %6931 = vmatpush1.bf16.msra.mxu0 %v13864_v24  ;;  %v13915_v24 = vcombine.high %v1189_v11, %v1197_v14  ;;  %v13930_v38 = vcombine.low %v1205_v22, %v1213_v25  ;;  %v861_v14 = vld [vmem:[#allocation5 + $0x15c8] sm:$0xff] }
 0x15f   :  { %6932 = vmatprep.subr.bf16.mxu0 %v13881_v30  ;;  %v13483_v30 = vcombine.high %v757_v19, %v765_v20 }
 0x160   :  { %7056 = vmatpush1.bf16.msra.mxu1 %v13370_v32  ;;  %v781_v32 = vld [vmem:[#allocation5 + $0x1348] sm:$0xff] }
 0x161   :  { %7057 = vmatprep.subr.bf16.mxu1 %v13387_v34  ;;  %v13931_v34 = vcombine.high %v1205_v22, %v1213_v25  ;;  %v13579_v22 = vcombine.high %v853_v13, %v861_v14  ;;  %v230_v25 = vld [vmem:[#allocation5 + $0x210] sm:$0xff] }
 0x162   :  { %6933 = vmatpush1.bf16.msra.mxu0 %v13880_v33  ;;  %v1221_v33 = vld [vmem:[#allocation5 + $0x2108] sm:$0xff] }
 0x163   :  { %6934 = vmatprep.subr.bf16.mxu0 %v13897_v39  ;;  %v13499_v39 = vcombine.high %v773_v31, %v781_v32  ;;  %v13946_v46 = vcombine.low %v1221_v33, %v1229_v36 }
 0x164   :  { %7058 = vmatpush1.bf16.msra.mxu1 %v13386_v42  ;;  %v13947_v42 = vcombine.high %v1221_v33, %v1229_v36  ;;  %v885_v33 = vld [vmem:[#allocation5 + $0x1688] sm:$0xff]  ;;  %v246_v36 = vld [vmem:[#allocation5 + $0x290] sm:$0xff] }
 0x165   :  { %7068 = vmatprep.subr.bf16.mxu1 %v13403_v45  ;;  %v13498_v45 = vcombine.low %v773_v31, %v781_v32 }
 0x166   :  { %6935 = vmatpush1.bf16.msra.mxu0 %v13896_v44  ;;  %v1237_v44 = vld [vmem:[#allocation5 + $0x2188] sm:$0xff] }
 0x167   :  { %6945 = vmatprep.subr.bf16.mxu0 %v13913_v49  ;;  %7060 = vmatmul.mubr.bf16.vlgmr.msra.gmra.mrb[4].mxu1 %v16148_v21  ;;  %v813_v49 = vld [vmem:[#allocation5 + $0x1448] sm:$0xff] }
 0x168   :  { %7069 = vmatpush1.bf16.msra.mxu1 %v13402_v51  ;;  %7100 = vmatprep.mubr.bf16.mxu1 %v16150_v27  ;;  %v13963_v51 = vcombine.high %v1237_v44, %v1237_v44  ;;  %v13531_v56 = vcombine.high %v805_v48, %v813_v49  ;;  %v13530_v1 = vcombine.low %v805_v48, %v813_v49 }
 0x169   :  { %6937 = vmatmul.mubr.bf16.vlgmr.msra.gmra.mrb[0].mxu0 %v16164_v52  ;;  %7070 = vmatprep.subr.bf16.mxu1 %v13419_v54  ;;  %v174_v54 = vld [vmem:[#allocation5 + $0x50] sm:$0xff] }
 0x16a   :  { %6946 = vmatpush1.bf16.msra.mxu0 %v13912_v53  ;;  %6977 = vmatprep.mubr.bf16.mxu0 %v15977_v5  ;;  %v13962_v53 = vcombine.low %v1237_v44, %v1237_v44  ;;  %v12892_v2 = vcombine.low %v166_v50, %v174_v54  ;;  %v909_v44 = vld [vmem:[#allocation5 + $0x1748] sm:$0xff] }
 0x16b   :  { %6947 = vmatprep.subr.bf16.mxu0 %v13929_v59  ;;  %v829_v59 = vld [vmem:[#allocation5 + $0x14c8] sm:$0xff] }
 0x16c   :  { %7071 = vmatpush1.bf16.msra.mxu1 %v13418_v62  ;;  %v6740_v62 = vsel %vm6732_vm0, %v13962_v53, 0  ;;  %v13546_v10 = vcombine.low %v821_v58, %v829_v59  ;;  %v925_v53 = vld [vmem:[#allocation5 + $0x17c8] sm:$0xff] }
 0x16d   :  { %7072 = vmatprep.subr.bf16.mxu1 %v13435_v0  ;;  %v190_v0 = vld [vmem:[#allocation5 + $0xd0] sm:$0xff] }
 0x16e   :  { %6948 = vmatpush1.bf16.msra.mxu0 %v13928_v63  ;;  %v12893_v63 = vcombine.high %v166_v50, %v174_v54  ;;  %v12908_v11 = vcombine.low %v182_v60, %v190_v0  ;;  %v278_v54 = vld [vmem:[#allocation5 + $0x390] sm:$0xff] }
 0x16f   :  { %6949 = vmatprep.subr.bf16.mxu0 %v13945_v3  ;;  %v13547_v3 = vcombine.high %v821_v58, %v829_v59 }
 0x170   :  { %7073 = vmatpush1.bf16.msra.mxu1 %v13434_v6  ;;  %v845_v6 = vld [vmem:[#allocation5 + $0x1548] sm:$0xff] }
 0x171   :  { %7074 = vmatprep.subr.bf16.mxu1 %v13451_v8  ;;  %v12909_v8 = vcombine.high %v182_v60, %v190_v0  ;;  %v13562_v19 = vcombine.low %v837_v4, %v845_v6  ;;  %v294_v0 = vld [vmem:[#allocation5 + $0x410] sm:$0xff] }
 0x172   :  { %6950 = vmatpush1.bf16.msra.mxu0 %v13944_v7  ;;  %v198_v7 = vld [vmem:[#allocation5 + $0x110] sm:$0xff] }
 0x173   :  { %13976 = vmatprep.subr.msk.bf16.mxu0 %vm6732_vm0, %v13961_v12  ;;  %v13563_v12 = vcombine.high %v837_v4, %v845_v6  ;;  %v12924_v20 = vcombine.low %v198_v7, %v206_v9 }
 0x174   :  { %7075 = vmatpush1.bf16.msra.mxu1 %v13450_v17  ;;  %v12925_v17 = vcombine.high %v198_v7, %v206_v9  ;;  %v949_v7 = vld [vmem:[#allocation5 + $0x1888] sm:$0xff]  ;;  %v310_v9 = vld [vmem:[#allocation5 + $0x490] sm:$0xff] }
 0x175   :  { %7076 = vmatprep.subr.bf16.mxu1 %v13467_v18  ;;  %v222_v18 = vld [vmem:[#allocation5 + $0x1d0] sm:$0xff] }
 0x176   :  { %6952 = vmatpush1.bf16.msra.mxu0 %v6734_v23  ;;  %v869_v23 = vld [vmem:[#allocation5 + $0x1608] sm:$0xff]  ;;  %v12940_v31 = vcombine.low %v214_v15, %v222_v18 }
 0x177   :  { %7150 = vmatprep.subr.bf16.mxu0 %v13915_v24  ;;  %v877_v24 = vld [vmem:[#allocation5 + $0x1648] sm:$0xff] }
 0x178   :  { %7077 = vmatpush1.bf16.msra.mxu1 %v13466_v28  ;;  %v12941_v28 = vcombine.high %v214_v15, %v222_v18  ;;  %v13595_v32 = vcombine.high %v869_v23, %v877_v24  ;;  %v965_v15 = vld [vmem:[#allocation5 + $0x1908] sm:$0xff]  ;;  %v326_v18 = vld [vmem:[#allocation5 + $0x510] sm:$0xff] }
 0x179   :  { %13977 = vmatmul.mubr.msk.bf16.vlgmr.msra.gmra.mrb[0].mxu0 %vm6728_vm1, %v16172_v26  ;;  %7078 = vmatprep.subr.bf16.mxu1 %v13483_v30  ;;  %v13578_v30 = vcombine.low %v853_v13, %v861_v14 }
 0x17a   :  { %7151 = vmatpush1.bf16.msra.mxu0 %v13914_v29  ;;  %7182 = vmatprep.mubr.bf16.mxu0 %v15977_v5  ;;  %v238_v29 = vld [vmem:[#allocation5 + $0x250] sm:$0xff] }
 0x17b   :  { %7152 = vmatprep.subr.bf16.mxu0 %v13931_v34  ;;  %v893_v34 = vld [vmem:[#allocation5 + $0x16c8] sm:$0xff]  ;;  %v12956_v40 = vcombine.low %v230_v25, %v238_v29 }
 0x17c   :  { %7079 = vmatpush1.bf16.msra.mxu1 %v13482_v37  ;;  %v12957_v37 = vcombine.high %v230_v25, %v238_v29  ;;  %v13611_v41 = vcombine.high %v885_v33, %v893_v34  ;;  %v13610_v48 = vcombine.low %v885_v33, %v893_v34  ;;  %v981_v25 = vld [vmem:[#allocation5 + $0x1988] sm:$0xff]  ;;  %v342_v29 = vld [vmem:[#allocation5 + $0x590] sm:$0xff] }
 0x17d   :  { %7080 = vmatprep.subr.bf16.mxu1 %v13499_v39  ;;  %v13594_v39 = vcombine.low %v869_v23, %v877_v24 }
 0x17e   :  { %7153 = vmatpush1.bf16.msra.mxu0 %v13930_v38  ;;  %v254_v38 = vld [vmem:[#allocation5 + $0x2d0] sm:$0xff] }
 0x17f   :  { %7154 = vmatprep.subr.bf16.mxu0 %v13947_v42  ;;  %v901_v42 = vld [vmem:[#allocation5 + $0x1708] sm:$0xff]  ;;  %v12972_v49 = vcombine.low %v246_v36, %v254_v38 }
 0x180   :  { %7081 = vmatpush1.bf16.msra.mxu1 %v13498_v45  ;;  %v262_v45 = vld [vmem:[#allocation5 + $0x310] sm:$0xff]  ;;  %v13627_v50 = vcombine.high %v901_v42, %v909_v44  ;;  %v13626_v58 = vcombine.low %v901_v42, %v909_v44 }
 0x181   :  { %7082 = vmatprep.subr.bf16.mxu1 %v13515_v47  ;;  %v270_v47 = vld [vmem:[#allocation5 + $0x350] sm:$0xff] }
 0x182   :  { %7155 = vmatpush1.bf16.msra.mxu0 %v13946_v46  ;;  %v12973_v46 = vcombine.high %v246_v36, %v254_v38  ;;  %v12988_v59 = vcombine.low %v262_v45, %v270_v47  ;;  %v997_v36 = vld [vmem:[#allocation5 + $0x1a08] sm:$0xff]  ;;  %v358_v38 = vld [vmem:[#allocation5 + $0x610] sm:$0xff] }
 0x183   :  { %13978 = vmatprep.subr.msk.bf16.mxu0 %vm6732_vm0, %v13963_v51  ;;  %v917_v51 = vld [vmem:[#allocation5 + $0x1788] sm:$0xff] }
 0x184   :  { %7083 = vmatpush1.bf16.msra.mxu1 %v13514_v55  ;;  %v12989_v55 = vcombine.high %v262_v45, %v270_v47  ;;  %v13643_v60 = vcombine.high %v917_v51, %v925_v53  ;;  %v1013_v45 = vld [vmem:[#allocation5 + $0x1a88] sm:$0xff]  ;;  %v374_v47 = vld [vmem:[#allocation5 + $0x690] sm:$0xff] }
 0x185   :  { %7084 = vmatprep.subr.bf16.mxu1 %v13531_v56  ;;  %v286_v56 = vld [vmem:[#allocation5 + $0x3d0] sm:$0xff] }
 0x186   :  { %7157 = vmatpush1.bf16.msra.mxu0 %v6740_v62  ;;  %v933_v62 = vld [vmem:[#allocation5 + $0x1808] sm:$0xff]  ;;  %v13004_v4 = vcombine.low %v278_v54, %v286_v56 }
 0x187   :  { %7191 = vmatprep.subr.bf16.mxu0 %v12893_v63  ;;  %v941_v63 = vld [vmem:[#allocation5 + $0x1848] sm:$0xff] }
 0x188   :  { %7085 = vmatpush1.bf16.msra.mxu1 %v13530_v1  ;;  %v13005_v1 = vcombine.high %v278_v54, %v286_v56  ;;  %v13659_v6 = vcombine.high %v933_v62, %v941_v63  ;;  %v1029_v54 = vld [vmem:[#allocation5 + $0x1b08] sm:$0xff]  ;;  %v390_v56 = vld [vmem:[#allocation5 + $0x710] sm:$0xff] }
 0x189   :  { %13979 = vmatmul.mubr.msk.bf16.vlgmr.msra.gmra.mrb[4].mxu0 %vm6728_vm1, %v16172_v26  ;;  %7086 = vmatprep.subr.bf16.mxu1 %v13547_v3  ;;  %v13642_v3 = vcombine.low %v917_v51, %v925_v53 }
 0x18a   :  { %7192 = vmatpush1.bf16.msra.mxu0 %v12892_v2  ;;  %7223 = vmatprep.mubr.bf16.mxu0 %v16140_v57  ;;  %v302_v2 = vld [vmem:[#allocation5 + $0x450] sm:$0xff] }
 0x18b   :  { %7193 = vmatprep.subr.bf16.mxu0 %v12909_v8  ;;  %v957_v8 = vld [vmem:[#allocation5 + $0x18c8] sm:$0xff]  ;;  %v13020_v13 = vcombine.low %v294_v0, %v302_v2 }
 0x18c   :  { %7087 = vmatpush1.bf16.msra.mxu1 %v13546_v10  ;;  %v13021_v10 = vcombine.high %v294_v0, %v302_v2  ;;  %v13675_v14 = vcombine.high %v949_v7, %v957_v8  ;;  %v1045_v0 = vld [vmem:[#allocation5 + $0x1b88] sm:$0xff]  ;;  %v406_v2 = vld [vmem:[#allocation5 + $0x790] sm:$0xff] }
 0x18d   :  { %7088 = vmatprep.subr.bf16.mxu1 %v13563_v12  ;;  %v13658_v12 = vcombine.low %v933_v62, %v941_v63 }
 0x18e   :  { %7194 = vmatpush1.bf16.msra.mxu0 %v12908_v11  ;;  %v318_v11 = vld [vmem:[#allocation5 + $0x4d0] sm:$0xff] }
 0x18f   :  { %7195 = vmatprep.subr.bf16.mxu0 %v12925_v17  ;;  %v973_v17 = vld [vmem:[#allocation5 + $0x1948] sm:$0xff]  ;;  %v13036_v23 = vcombine.low %v310_v9, %v318_v11 }
 0x190   :  { %7089 = vmatpush1.bf16.msra.mxu1 %v13562_v19  ;;  %v13037_v19 = vcombine.high %v310_v9, %v318_v11  ;;  %v13691_v24 = vcombine.high %v965_v15, %v973_v17 }
 0x191   :  { %7090 = vmatprep.subr.bf16.mxu1 %v13579_v22  ;;  %v13674_v22 = vcombine.low %v949_v7, %v957_v8 }
 0x192   :  { %7196 = vmatpush1.bf16.msra.mxu0 %v12924_v20  ;;  %v334_v20 = vld [vmem:[#allocation5 + $0x550] sm:$0xff] }
 0x193   :  { %7197 = vmatprep.subr.bf16.mxu0 %v12941_v28  ;;  %v989_v28 = vld [vmem:[#allocation5 + $0x19c8] sm:$0xff]  ;;  %v13052_v33 = vcombine.low %v326_v18, %v334_v20 }
 0x194   :  { %7091 = vmatpush1.bf16.msra.mxu1 %v13578_v30  ;;  %v13053_v30 = vcombine.high %v326_v18, %v334_v20  ;;  %v13707_v34 = vcombine.high %v981_v25, %v989_v28  ;;  %v430_v18 = vld [vmem:[#allocation5 + $0x850] sm:$0xff] }
 0x195   :  { %7092 = vmatprep.subr.bf16.mxu1 %v13595_v32  ;;  %v13690_v32 = vcombine.low %v965_v15, %v973_v17  ;;  %v422_v15 = vld [vmem:[#allocation5 + $0x810] sm:$0xff] }
 0x196   :  { %7198 = vmatpush1.bf16.msra.mxu0 %v12940_v31  ;;  %v350_v31 = vld [vmem:[#allocation5 + $0x5d0] sm:$0xff] }
 0x197   :  { %7199 = vmatprep.subr.bf16.mxu0 %v12957_v37  ;;  %v1005_v37 = vld [vmem:[#allocation5 + $0x1a48] sm:$0xff]  ;;  %v13068_v42 = vcombine.low %v342_v29, %v350_v31 }
 0x198   :  { %7093 = vmatpush1.bf16.msra.mxu1 %v13594_v39  ;;  %v13069_v39 = vcombine.high %v342_v29, %v350_v31  ;;  %v13723_v44 = vcombine.high %v997_v36, %v1005_v37  ;;  %v446_v29 = vld [vmem:[#allocation5 + $0x8d0] sm:$0xff]  ;;  %v13148_v31 = vcombine.low %v422_v15, %v430_v18 }
 0x199   :  { %7094 = vmatprep.subr.bf16.mxu1 %v13611_v41  ;;  %v13706_v41 = vcombine.low %v981_v25, %v989_v28  ;;  %v438_v25 = vld [vmem:[#allocation5 + $0x890] sm:$0xff]  ;;  %v13149_v28 = vcombine.high %v422_v15, %v430_v18  ;;  %v1173_v18 = vld [vmem:[#allocation5 + $0x1f88] sm:$0xff] }
 0x19a   :  { %7200 = vmatpush1.bf16.msra.mxu0 %v12956_v40  ;;  %v366_v40 = vld [vmem:[#allocation5 + $0x650] sm:$0xff] }
 0x19b   :  { %7201 = vmatprep.subr.bf16.mxu0 %v12973_v46  ;;  %v1021_v46 = vld [vmem:[#allocation5 + $0x1ac8] sm:$0xff]  ;;  %v13084_v51 = vcombine.low %v358_v38, %v366_v40 }
 0x19c   :  { %7095 = vmatpush1.bf16.msra.mxu1 %v13610_v48  ;;  %v13085_v48 = vcombine.high %v358_v38, %v366_v40  ;;  %v13739_v53 = vcombine.high %v1013_v45, %v1021_v46  ;;  %v462_v38 = vld [vmem:[#allocation5 + $0x950] sm:$0xff]  ;;  %v13164_v40 = vcombine.low %v438_v25, %v446_v29 }
 0x19d   :  { %7096 = vmatprep.subr.bf16.mxu1 %v13627_v50  ;;  %v13722_v50 = vcombine.low %v997_v36, %v1005_v37  ;;  %v454_v36 = vld [vmem:[#allocation5 + $0x910] sm:$0xff]  ;;  %v13165_v37 = vcombine.high %v438_v25, %v446_v29 }
 0x19e   :  { %7202 = vmatpush1.bf16.msra.mxu0 %v12972_v49  ;;  %v382_v49 = vld [vmem:[#allocation5 + $0x6d0] sm:$0xff] }
 0x19f   :  { %7203 = vmatprep.subr.bf16.mxu0 %v12989_v55  ;;  %v1037_v55 = vld [vmem:[#allocation5 + $0x1b48] sm:$0xff]  ;;  %v13100_v62 = vcombine.low %v374_v47, %v382_v49  ;;  %v550_v29 = vld [vmem:[#allocation5 + $0xc10] sm:$0xff] }
 0x1a0   :  { %7097 = vmatpush1.bf16.msra.mxu1 %v13626_v58  ;;  %v13101_v58 = vcombine.high %v374_v47, %v382_v49  ;;  %v13755_v63 = vcombine.high %v1029_v54, %v1037_v55  ;;  %v13754_v9 = vcombine.low %v1029_v54, %v1037_v55  ;;  %v478_v47 = vld [vmem:[#allocation5 + $0x9d0] sm:$0xff]  ;;  %v13180_v49 = vcombine.low %v454_v36, %v462_v38 }
 0x1a1   :  { %7098 = vmatprep.subr.bf16.mxu1 %v13643_v60  ;;  %v13738_v60 = vcombine.low %v1013_v45, %v1021_v46  ;;  %v470_v45 = vld [vmem:[#allocation5 + $0x990] sm:$0xff]  ;;  %v13181_v46 = vcombine.high %v454_v36, %v462_v38 }
 0x1a2   :  { %7204 = vmatpush1.bf16.msra.mxu0 %v12988_v59  ;;  %v398_v59 = vld [vmem:[#allocation5 + $0x750] sm:$0xff]  ;;  %v13197_v55 = vcombine.high %v470_v45, %v478_v47 }
 0x1a3   :  { %7205 = vmatprep.subr.bf16.mxu0 %v13005_v1  ;;  %v1053_v1 = vld [vmem:[#allocation5 + $0x1bc8] sm:$0xff]  ;;  %v13116_v11 = vcombine.low %v390_v56, %v398_v59  ;;  %v486_v54 = vld [vmem:[#allocation5 + $0xa10] sm:$0xff] }
 0x1a4   :  { %7099 = vmatpush1.bf16.msra.mxu1 %v13642_v3  ;;  %v566_v38 = vld [vmem:[#allocation5 + $0xc90] sm:$0xff] }
 0x1a5   :  { %7109 = vmatprep.subr.bf16.mxu1 %v13659_v6  ;;  %v414_v6 = vld [vmem:[#allocation5 + $0x7d0] sm:$0xff] }
 0x1a6   :  { %7206 = vmatpush1.bf16.msra.mxu0 %v13004_v4  ;;  %v13117_v4 = vcombine.high %v390_v56, %v398_v59  ;;  %v13133_v17 = vcombine.high %v406_v2, %v414_v6  ;;  %v13132_v20 = vcombine.low %v406_v2, %v414_v6  ;;  %v494_v56 = vld [vmem:[#allocation5 + $0xa50] sm:$0xff]  ;;  %v13196_v59 = vcombine.low %v470_v45, %v478_v47 }
 0x1a7   :  { %7207 = vmatprep.subr.bf16.mxu0 %v13021_v10  ;;  %7101 = vmatmul.mubr.bf16.vlgmr.msra.gmra.mrb[4].mxu1 %v16156_v35  ;;  %v510_v2 = vld [vmem:[#allocation5 + $0xad0] sm:$0xff]  ;;  %v13212_v6 = vcombine.low %v486_v54, %v494_v56 }
 0x1a8   :  { %7110 = vmatpush1.bf16.msra.mxu1 %v13658_v12  ;;  %7141 = vmatprep.mubr.bf16.mxu1 %v16158_v43  ;;  %v13771_v12 = vcombine.high %v1045_v0, %v1053_v1  ;;  %v582_v47 = vld [vmem:[#allocation5 + $0xd10] sm:$0xff] }
 0x1a9   :  { %7111 = vmatprep.subr.bf16.mxu1 %v13675_v14  ;;  %v1069_v14 = vld [vmem:[#allocation5 + $0x1c48] sm:$0xff] }
 0x1aa   :  { %7208 = vmatpush1.bf16.msra.mxu0 %v13020_v13  ;;  %v1061_v13 = vld [vmem:[#allocation5 + $0x1c08] sm:$0xff] }
 0x1ab   :  { %7209 = vmatprep.subr.bf16.mxu0 %v13037_v19  ;;  %v13770_v19 = vcombine.low %v1045_v0, %v1053_v1  ;;  %v502_v0 = vld [vmem:[#allocation5 + $0xa90] sm:$0xff]  ;;  %v13213_v1 = vcombine.high %v486_v54, %v494_v56 }
 0x1ac   :  { %7112 = vmatpush1.bf16.msra.mxu1 %v13674_v22  ;;  %v13787_v22 = vcombine.high %v1061_v13, %v1069_v14  ;;  %v13228_v15 = vcombine.low %v502_v0, %v510_v2  ;;  %v598_v56 = vld [vmem:[#allocation5 + $0xd90] sm:$0xff] }
 0x1ad   :  { %7113 = vmatprep.subr.bf16.mxu1 %v13691_v24  ;;  %v1085_v24 = vld [vmem:[#allocation5 + $0x1cc8] sm:$0xff] }
 0x1ae   :  { %7210 = vmatpush1.bf16.msra.mxu0 %v13036_v23  ;;  %v1077_v23 = vld [vmem:[#allocation5 + $0x1c88] sm:$0xff] }
 0x1af   :  { %7211 = vmatprep.subr.bf16.mxu0 %v13053_v30  ;;  %v13786_v30 = vcombine.low %v1061_v13, %v1069_v14  ;;  %v526_v13 = vld [vmem:[#allocation5 + $0xb50] sm:$0xff] }
 0x1b0   :  { %7114 = vmatpush1.bf16.msra.mxu1 %v13690_v32  ;;  %v13803_v32 = vcombine.high %v1077_v23, %v1085_v24 }
 0x1b1   :  { %7115 = vmatprep.subr.bf16.mxu1 %v13707_v34  ;;  %v1101_v34 = vld [vmem:[#allocation5 + $0x1d48] sm:$0xff] }
 0x1b2   :  { %7212 = vmatpush1.bf16.msra.mxu0 %v13052_v33  ;;  %v1093_v33 = vld [vmem:[#allocation5 + $0x1d08] sm:$0xff] }
 0x1b3   :  { %7213 = vmatprep.subr.bf16.mxu0 %v13069_v39  ;;  %v13802_v39 = vcombine.low %v1077_v23, %v1085_v24  ;;  %v542_v23 = vld [vmem:[#allocation5 + $0xbd0] sm:$0xff] }
 0x1b4   :  { %7116 = vmatpush1.bf16.msra.mxu1 %v13706_v41  ;;  %v13819_v41 = vcombine.high %v1093_v33, %v1101_v34 }
 0x1b5   :  { %7117 = vmatprep.subr.bf16.mxu1 %v13723_v44  ;;  %v1117_v44 = vld [vmem:[#allocation5 + $0x1dc8] sm:$0xff] }
 0x1b6   :  { %7214 = vmatpush1.bf16.msra.mxu0 %v13068_v42  ;;  %v1109_v42 = vld [vmem:[#allocation5 + $0x1d88] sm:$0xff] }
 0x1b7   :  { %7215 = vmatprep.subr.bf16.mxu0 %v13085_v48  ;;  %v13818_v48 = vcombine.low %v1093_v33, %v1101_v34  ;;  %v175_v33 = vld [vmem:[#allocation5 + $0x58] sm:$0xff] }
 0x1b8   :  { %7118 = vmatpush1.bf16.msra.mxu1 %v13722_v50  ;;  %v13835_v50 = vcombine.high %v1109_v42, %v1117_v44 }
 0x1b9   :  { %7119 = vmatprep.subr.bf16.mxu1 %v13739_v53  ;;  %v1133_v53 = vld [vmem:[#allocation5 + $0x1e48] sm:$0xff] }
 0x1ba   :  { %7216 = vmatpush1.bf16.msra.mxu0 %v13084_v51  ;;  %v16184_v3 = vpop.f32.mrb[0].mxu1  ;;  %v1125_v51 = vld [vmem:[#allocation5 + $0x1e08] sm:$0xff] }
 0x1bb   :  { %7217 = vmatprep.subr.bf16.mxu0 %v13101_v58  ;;  %v16186_v7 = vpop.f32.mrb[1].mxu1  ;;  %v13834_v58 = vcombine.low %v1109_v42, %v1117_v44  ;;  %v191_v42 = vld [vmem:[#allocation5 + $0xd8] sm:$0xff] }
 0x1bc   :  { %v6819_v8 = vpop.f32.mrb[2].mxu1  ;;  %7120 = vmatpush1.bf16.msra.mxu1 %v13738_v60  ;;  %v13851_v60 = vcombine.high %v1125_v51, %v1133_v53 }
 0x1bd   :  { %v6820_v10 = vpop.f32.mrb[3].mxu1  ;;  %7121 = vmatprep.subr.bf16.mxu1 %v13755_v63  ;;  %v1149_v63 = vld [vmem:[#allocation5 + $0x1ec8] sm:$0xff] }
 0x1be   :  { %7218 = vmatpush1.bf16.msra.mxu0 %v13100_v62  ;;  %v1141_v62 = vld [vmem:[#allocation5 + $0x1e88] sm:$0xff] }
 0x1bf   :  { %7219 = vmatprep.subr.bf16.mxu0 %v13117_v4  ;;  %v13850_v4 = vcombine.low %v1125_v51, %v1133_v53  ;;  %v13867_v8 = vcombine.high %v1141_v62, %v1149_v63  ;;  %v1165_v10 = vld [vmem:[#allocation5 + $0x1f48] sm:$0xff]  ;;  %v13866_v14 = vcombine.low %v1141_v62, %v1149_v63  ;;  %v207_v51 = vld [vmem:[#allocation5 + $0x158] sm:$0xff] }
 0x1c0   :  { %7122 = vmatpush1.bf16.msra.mxu1 %v13754_v9  ;;  %v1157_v9 = vld [vmem:[#allocation5 + $0x1f08] sm:$0xff]  ;;  %v223_v62 = vld [vmem:[#allocation5 + $0x1d8] sm:$0xff] }
 0x1c1   :  { %7123 = vmatprep.subr.bf16.mxu1 %v13771_v12  ;;  %v13229_v12 = vcombine.high %v502_v0, %v510_v2  ;;  %v13882_v24 = vcombine.low %v1157_v9, %v1165_v10  ;;  %v614_v2 = vld [vmem:[#allocation5 + $0xe10] sm:$0xff] }
 0x1c2   :  { %7220 = vmatpush1.bf16.msra.mxu0 %v13116_v11  ;;  %v518_v11 = vld [vmem:[#allocation5 + $0xb10] sm:$0xff] }
 0x1c3   :  { %7221 = vmatprep.subr.bf16.mxu0 %v13133_v17  ;;  %v13883_v17 = vcombine.high %v1157_v9, %v1165_v10  ;;  %v13244_v25 = vcombine.low %v518_v11, %v526_v13  ;;  %v239_v9 = vld [vmem:[#allocation5 + $0x258] sm:$0xff] }
 0x1c4   :  { %7124 = vmatpush1.bf16.msra.mxu1 %v13770_v19  ;;  %v1181_v19 = vld [vmem:[#allocation5 + $0x1fc8] sm:$0xff] }
 0x1c5   :  { %7125 = vmatprep.subr.bf16.mxu1 %v13787_v22  ;;  %v13245_v22 = vcombine.high %v518_v11, %v526_v13  ;;  %v13898_v34 = vcombine.low %v1173_v18, %v1181_v19  ;;  %v630_v13 = vld [vmem:[#allocation5 + $0xe90] sm:$0xff] }
 0x1c6   :  { %7222 = vmatpush1.bf16.msra.mxu0 %v13132_v20  ;;  %v534_v20 = vld [vmem:[#allocation5 + $0xb90] sm:$0xff] }
 0x1c7   :  { %7232 = vmatprep.subr.bf16.mxu0 %v13149_v28  ;;  %v13899_v28 = vcombine.high %v1173_v18, %v1181_v19  ;;  %v13260_v36 = vcombine.low %v534_v20, %v542_v23  ;;  %v255_v18 = vld [vmem:[#allocation5 + $0x2d8] sm:$0xff] }
 0x1c8   :  { %7126 = vmatpush1.bf16.msra.mxu1 %v13786_v30  ;;  %v558_v30 = vld [vmem:[#allocation5 + $0xc50] sm:$0xff] }
 0x1c9   :  { %7224 = vmatmul.mubr.bf16.vlgmr.msra.gmra.mrb[8].mxu0 %v16146_v16  ;;  %7127 = vmatprep.subr.bf16.mxu1 %v13803_v32  ;;  %v13261_v32 = vcombine.high %v534_v20, %v542_v23  ;;  %v13276_v45 = vcombine.low %v550_v29, %v558_v30  ;;  %v646_v23 = vld [vmem:[#allocation5 + $0xf10] sm:$0xff] }
 0x1ca   :  { %7233 = vmatpush1.bf16.msra.mxu0 %v13148_v31  ;;  %7264 = vmatprep.mubr.bf16.mxu0 %v16142_v61  ;;  %v167_v31 = vld [vmem:[#allocation5 + $0x18] sm:$0xff] }
 0x1cb   :  { %7234 = vmatprep.subr.bf16.mxu0 %v13165_v37  ;;  %v12895_v37 = vcombine.high %v167_v31, %v175_v33  ;;  %v12894_v44 = vcombine.low %v167_v31, %v175_v33  ;;  %v662_v33 = vld [vmem:[#allocation5 + $0xf90] sm:$0xff] }
 0x1cc   :  { %7128 = vmatpush1.bf16.msra.mxu1 %v13802_v39  ;;  %v574_v39 = vld [vmem:[#allocation5 + $0xcd0] sm:$0xff] }
 0x1cd   :  { %7129 = vmatprep.subr.bf16.mxu1 %v13819_v41  ;;  %v13277_v41 = vcombine.high %v550_v29, %v558_v30  ;;  %v13292_v54 = vcombine.low %v566_v38, %v574_v39  ;;  %v271_v29 = vld [vmem:[#allocation5 + $0x358] sm:$0xff] }
 0x1ce   :  { %7235 = vmatpush1.bf16.msra.mxu0 %v13164_v40  ;;  %v183_v40 = vld [vmem:[#allocation5 + $0x98] sm:$0xff] }
 0x1cf   :  { %7236 = vmatprep.subr.bf16.mxu0 %v13181_v46  ;;  %v12911_v46 = vcombine.high %v183_v40, %v191_v42  ;;  %v12910_v53 = vcombine.low %v183_v40, %v191_v42  ;;  %v678_v42 = vld [vmem:[#allocation5 + $0x1010] sm:$0xff] }
 0x1d0   :  { %7130 = vmatpush1.bf16.msra.mxu1 %v13818_v48  ;;  %v590_v48 = vld [vmem:[#allocation5 + $0xd50] sm:$0xff] }
 0x1d1   :  { %7131 = vmatprep.subr.bf16.mxu1 %v13835_v50  ;;  %v13293_v50 = vcombine.high %v566_v38, %v574_v39  ;;  %v13308_v0 = vcombine.low %v582_v47, %v590_v48  ;;  %v287_v38 = vld [vmem:[#allocation5 + $0x3d8] sm:$0xff] }
 0x1d2   :  { %7237 = vmatpush1.bf16.msra.mxu0 %v13180_v49  ;;  %v199_v49 = vld [vmem:[#allocation5 + $0x118] sm:$0xff] }
 0x1d3   :  { %7238 = vmatprep.subr.bf16.mxu0 %v13197_v55  ;;  %v12927_v55 = vcombine.high %v199_v49, %v207_v51  ;;  %v12926_v63 = vcombine.low %v199_v49, %v207_v51  ;;  %v694_v51 = vld [vmem:[#allocation5 + $0x1090] sm:$0xff] }
 0x1d4   :  { %7132 = vmatpush1.bf16.msra.mxu1 %v13834_v58  ;;  %v606_v58 = vld [vmem:[#allocation5 + $0xdd0] sm:$0xff] }
 0x1d5   :  { %7133 = vmatprep.subr.bf16.mxu1 %v13851_v60  ;;  %v13309_v60 = vcombine.high %v582_v47, %v590_v48  ;;  %v13324_v11 = vcombine.low %v598_v56, %v606_v58  ;;  %v303_v47 = vld [vmem:[#allocation5 + $0x458] sm:$0xff] }
 0x1d6   :  { %7239 = vmatpush1.bf16.msra.mxu0 %v13196_v59  ;;  %v215_v59 = vld [vmem:[#allocation5 + $0x198] sm:$0xff] }
 0x1d7   :  { %7240 = vmatprep.subr.bf16.mxu0 %v13213_v1  ;;  %v12943_v1 = vcombine.high %v215_v59, %v223_v62  ;;  %v12942_v10 = vcombine.low %v215_v59, %v223_v62  ;;  %v710_v62 = vld [vmem:[#allocation5 + $0x1110] sm:$0xff] }
 0x1d8   :  { %7134 = vmatpush1.bf16.msra.mxu1 %v13850_v4  ;;  %v622_v4 = vld [vmem:[#allocation5 + $0xe50] sm:$0xff] }
 0x1d9   :  { %7135 = vmatprep.subr.bf16.mxu1 %v13867_v8  ;;  %v13325_v8 = vcombine.high %v598_v56, %v606_v58  ;;  %v13340_v20 = vcombine.low %v614_v2, %v622_v4  ;;  %v319_v56 = vld [vmem:[#allocation5 + $0x4d8] sm:$0xff] }
 0x1da   :  { %7241 = vmatpush1.bf16.msra.mxu0 %v13212_v6  ;;  %v231_v6 = vld [vmem:[#allocation5 + $0x218] sm:$0xff] }
 0x1db   :  { %7242 = vmatprep.subr.bf16.mxu0 %v13229_v12  ;;  %v12959_v12 = vcombine.high %v231_v6, %v239_v9  ;;  %v12958_v19 = vcombine.low %v231_v6, %v239_v9  ;;  %v726_v9 = vld [vmem:[#allocation5 + $0x1190] sm:$0xff] }
 0x1dc   :  { %7136 = vmatpush1.bf16.msra.mxu1 %v13866_v14  ;;  %v638_v14 = vld [vmem:[#allocation5 + $0xed0] sm:$0xff] }
 0x1dd   :  { %7137 = vmatprep.subr.bf16.mxu1 %v13883_v17  ;;  %v13341_v17 = vcombine.high %v614_v2, %v622_v4  ;;  %v13356_v31 = vcombine.low %v630_v13, %v638_v14  ;;  %v335_v2 = vld [vmem:[#allocation5 + $0x558] sm:$0xff] }
 0x1de   :  { %7243 = vmatpush1.bf16.msra.mxu0 %v13228_v15  ;;  %v247_v15 = vld [vmem:[#allocation5 + $0x298] sm:$0xff] }
 0x1df   :  { %7244 = vmatprep.subr.bf16.mxu0 %v13245_v22  ;;  %v12975_v22 = vcombine.high %v247_v15, %v255_v18  ;;  %v12974_v30 = vcombine.low %v247_v15, %v255_v18  ;;  %v742_v18 = vld [vmem:[#allocation5 + $0x1210] sm:$0xff] }
 0x1e0   :  { %7138 = vmatpush1.bf16.msra.mxu1 %v13882_v24  ;;  %v654_v24 = vld [vmem:[#allocation5 + $0xf50] sm:$0xff] }
 0x1e1   :  { %7139 = vmatprep.subr.bf16.mxu1 %v13899_v28  ;;  %v13357_v28 = vcombine.high %v630_v13, %v638_v14  ;;  %v13372_v40 = vcombine.low %v646_v23, %v654_v24  ;;  %v351_v13 = vld [vmem:[#allocation5 + $0x5d8] sm:$0xff] }
 0x1e2   :  { %7245 = vmatpush1.bf16.msra.mxu0 %v13244_v25  ;;  %v263_v25 = vld [vmem:[#allocation5 + $0x318] sm:$0xff] }
 0x1e3   :  { %7246 = vmatprep.subr.bf16.mxu0 %v13261_v32  ;;  %v12991_v32 = vcombine.high %v263_v25, %v271_v29  ;;  %v12990_v39 = vcombine.low %v263_v25, %v271_v29  ;;  %v758_v29 = vld [vmem:[#allocation5 + $0x1290] sm:$0xff] }
 0x1e4   :  { %7140 = vmatpush1.bf16.msra.mxu1 %v13898_v34  ;;  %v670_v34 = vld [vmem:[#allocation5 + $0xfd0] sm:$0xff] }
 0x1e5   :  { %7396 = vmatprep.subr.bf16.mxu1 %v12895_v37  ;;  %v13373_v37 = vcombine.high %v646_v23, %v654_v24  ;;  %v13388_v49 = vcombine.low %v662_v33, %v670_v34  ;;  %v367_v23 = vld [vmem:[#allocation5 + $0x658] sm:$0xff] }
 0x1e6   :  { %7247 = vmatpush1.bf16.msra.mxu0 %v13260_v36  ;;  %v279_v36 = vld [vmem:[#allocation5 + $0x398] sm:$0xff] }
 0x1e7   :  { %7248 = vmatprep.subr.bf16.mxu0 %v13277_v41  ;;  %7142 = vmatmul.mubr.bf16.vlgmr.msra.gmra.mrb[4].mxu1 %v16164_v52  ;;  %v13007_v41 = vcombine.high %v279_v36, %v287_v38  ;;  %v13006_v48 = vcombine.low %v279_v36, %v287_v38  ;;  %v774_v38 = vld [vmem:[#allocation5 + $0x1310] sm:$0xff] }
 0x1e8   :  { %7397 = vmatpush1.bf16.msra.mxu1 %v12894_v44  ;;  %7428 = vmatprep.mubr.bf16.mxu1 %v16140_v57  ;;  %v686_v44 = vld [vmem:[#allocation5 + $0x1050] sm:$0xff] }
 0x1e9   :  { %7398 = vmatprep.subr.bf16.mxu1 %v12911_v46  ;;  %v13389_v46 = vcombine.high %v662_v33, %v670_v34  ;;  %v13404_v59 = vcombine.low %v678_v42, %v686_v44 }
 0x1ea   :  { %7249 = vmatpush1.bf16.msra.mxu0 %v13276_v45  ;;  %v295_v45 = vld [vmem:[#allocation5 + $0x418] sm:$0xff] }
 0x1eb   :  { %7250 = vmatprep.subr.bf16.mxu0 %v13293_v50  ;;  %v13023_v50 = vcombine.high %v295_v45, %v303_v47  ;;  %v13022_v58 = vcombine.low %v295_v45, %v303_v47 }
 0x1ec   :  { %7399 = vmatpush1.bf16.msra.mxu1 %v12910_v53  ;;  %v702_v53 = vld [vmem:[#allocation5 + $0x10d0] sm:$0xff] }
 0x1ed   :  { %7400 = vmatprep.subr.bf16.mxu1 %v12927_v55  ;;  %v13405_v55 = vcombine.high %v678_v42, %v686_v44  ;;  %v13420_v6 = vcombine.low %v694_v51, %v702_v53  ;;  %v399_v42 = vld [vmem:[#allocation5 + $0x758] sm:$0xff] }
 0x1ee   :  { %7251 = vmatpush1.bf16.msra.mxu0 %v13292_v54  ;;  %v311_v54 = vld [vmem:[#allocation5 + $0x498] sm:$0xff] }
 0x1ef   :  { %7252 = vmatprep.subr.bf16.mxu0 %v13309_v60  ;;  %v13039_v60 = vcombine.high %v311_v54, %v319_v56  ;;  %v13038_v4 = vcombine.low %v311_v54, %v319_v56 }
 0x1f0   :  { %7401 = vmatpush1.bf16.msra.mxu1 %v12926_v63  ;;  %v718_v63 = vld [vmem:[#allocation5 + $0x1150] sm:$0xff] }
 0x1f1   :  { %7402 = vmatprep.subr.bf16.mxu1 %v12943_v1  ;;  %v13421_v1 = vcombine.high %v694_v51, %v702_v53  ;;  %v13436_v15 = vcombine.low %v710_v62, %v718_v63  ;;  %v798_v51 = vld [vmem:[#allocation5 + $0x13d0] sm:$0xff] }
 0x1f2   :  { %7253 = vmatpush1.bf16.msra.mxu0 %v13308_v0  ;;  %v327_v0 = vld [vmem:[#allocation5 + $0x518] sm:$0xff] }
 0x1f3   :  { %7254 = vmatprep.subr.bf16.mxu0 %v13325_v8  ;;  %v13055_v8 = vcombine.high %v327_v0, %v335_v2  ;;  %v13054_v14 = vcombine.low %v327_v0, %v335_v2 }
 0x1f4   :  { %7403 = vmatpush1.bf16.msra.mxu1 %v12942_v10  ;;  %v734_v10 = vld [vmem:[#allocation5 + $0x11d0] sm:$0xff] }
 0x1f5   :  { %7404 = vmatprep.subr.bf16.mxu1 %v12959_v12  ;;  %v13437_v12 = vcombine.high %v710_v62, %v718_v63  ;;  %v13452_v25 = vcombine.low %v726_v9, %v734_v10  ;;  %v814_v62 = vld [vmem:[#allocation5 + $0x1450] sm:$0xff] }
 0x1f6   :  { %7255 = vmatpush1.bf16.msra.mxu0 %v13324_v11  ;;  %v343_v11 = vld [vmem:[#allocation5 + $0x598] sm:$0xff] }
 0x1f7   :  { %7256 = vmatprep.subr.bf16.mxu0 %v13341_v17  ;;  %v13071_v17 = vcombine.high %v343_v11, %v351_v13  ;;  %v13070_v24 = vcombine.low %v343_v11, %v351_v13 }
 0x1f8   :  { %7405 = vmatpush1.bf16.msra.mxu1 %v12958_v19  ;;  %v750_v19 = vld [vmem:[#allocation5 + $0x1250] sm:$0xff] }
 0x1f9   :  { %7406 = vmatprep.subr.bf16.mxu1 %v12975_v22  ;;  %v13453_v22 = vcombine.high %v726_v9, %v734_v10  ;;  %v13469_v33 = vcombine.high %v742_v18, %v750_v19  ;;  %v13468_v36 = vcombine.low %v742_v18, %v750_v19  ;;  %v830_v9 = vld [vmem:[#allocation5 + $0x14d0] sm:$0xff] }
 0x1fa   :  { %7257 = vmatpush1.bf16.msra.mxu0 %v13340_v20  ;;  %v359_v20 = vld [vmem:[#allocation5 + $0x618] sm:$0xff]  ;;  %v846_v18 = vld [vmem:[#allocation5 + $0x1550] sm:$0xff] }
 0x1fb   :  { %7258 = vmatprep.subr.bf16.mxu0 %v13357_v28  ;;  %v13087_v28 = vcombine.high %v359_v20, %v367_v23  ;;  %v13086_v34 = vcombine.low %v359_v20, %v367_v23 }
 0x1fc   :  { %7407 = vmatpush1.bf16.msra.mxu1 %v12974_v30  ;;  %v766_v30 = vld [vmem:[#allocation5 + $0x12d0] sm:$0xff] }
 0x1fd   :  { %7408 = vmatprep.subr.bf16.mxu1 %v12991_v32  ;;  %v383_v32 = vld [vmem:[#allocation5 + $0x6d8] sm:$0xff]  ;;  %v13484_v45 = vcombine.low %v758_v29, %v766_v30 }
 0x1fe   :  { %7259 = vmatpush1.bf16.msra.mxu0 %v13356_v31  ;;  %v375_v31 = vld [vmem:[#allocation5 + $0x698] sm:$0xff] }
 0x1ff   :  { %7260 = vmatprep.subr.bf16.mxu0 %v13373_v37  ;;  %v13103_v37 = vcombine.high %v375_v31, %v383_v32  ;;  %v13102_v44 = vcombine.low %v375_v31, %v383_v32 }
 0x200   :  { %7409 = vmatpush1.bf16.msra.mxu1 %v12990_v39  ;;  %v782_v39 = vld [vmem:[#allocation5 + $0x1350] sm:$0xff] }
 0x201   :  { %7410 = vmatprep.subr.bf16.mxu1 %v13007_v41  ;;  %v13485_v41 = vcombine.high %v758_v29, %v766_v30  ;;  %v13501_v47 = vcombine.high %v774_v38, %v782_v39  ;;  %v13500_v54 = vcombine.low %v774_v38, %v782_v39  ;;  %v862_v29 = vld [vmem:[#allocation5 + $0x15d0] sm:$0xff] }
 0x202   :  { %7261 = vmatpush1.bf16.msra.mxu0 %v13372_v40  ;;  %v391_v40 = vld [vmem:[#allocation5 + $0x718] sm:$0xff]  ;;  %v878_v38 = vld [vmem:[#allocation5 + $0x1650] sm:$0xff] }
 0x203   :  { %7262 = vmatprep.subr.bf16.mxu0 %v13389_v46  ;;  %v13119_v46 = vcombine.high %v391_v40, %v399_v42  ;;  %v13118_v53 = vcombine.low %v391_v40, %v399_v42 }
 0x204   :  { %7411 = vmatpush1.bf16.msra.mxu1 %v13006_v48  ;;  %v407_v48 = vld [vmem:[#allocation5 + $0x798] sm:$0xff] }
 0x205   :  { %7412 = vmatprep.subr.bf16.mxu1 %v13023_v50  ;;  %v790_v50 = vld [vmem:[#allocation5 + $0x1390] sm:$0xff] }
 0x206   :  { %7263 = vmatpush1.bf16.msra.mxu0 %v13388_v49  ;;  %v415_v49 = vld [vmem:[#allocation5 + $0x7d8] sm:$0xff]  ;;  %v13517_v56 = vcombine.high %v790_v50, %v798_v51  ;;  %v13516_v0 = vcombine.low %v790_v50, %v798_v51 }
 0x207   :  { %7273 = vmatprep.subr.bf16.mxu0 %v13405_v55  ;;  %v13135_v55 = vcombine.high %v407_v48, %v415_v49  ;;  %v13134_v63 = vcombine.low %v407_v48, %v415_v49 }
 0x208   :  { %7413 = vmatpush1.bf16.msra.mxu1 %v13022_v58  ;;  %v423_v58 = vld [vmem:[#allocation5 + $0x818] sm:$0xff] }
 0x209   :  { %7265 = vmatmul.mubr.bf16.vlgmr.msra.gmra.mrb[8].mxu0 %v16148_v21  ;;  %7414 = vmatprep.subr.bf16.mxu1 %v13039_v60  ;;  %v806_v60 = vld [vmem:[#allocation5 + $0x1410] sm:$0xff] }
 0x20a   :  { %7274 = vmatpush1.bf16.msra.mxu0 %v13404_v59  ;;  %7305 = vmatprep.mubr.bf16.mxu0 %v16150_v27  ;;  %v431_v59 = vld [vmem:[#allocation5 + $0x858] sm:$0xff]  ;;  %v13533_v2 = vcombine.high %v806_v60, %v814_v62  ;;  %v13532_v11 = vcombine.low %v806_v60, %v814_v62  ;;  %v1248_v62 = vlaneseq }
 0x20b   :  { %7275 = vmatprep.subr.bf16.mxu0 %v13421_v1  ;;  %v13151_v1 = vcombine.high %v423_v58, %v431_v59  ;;  %v13150_v10 = vcombine.low %v423_v58, %v431_v59 }
 0x20c   :  { %7415 = vmatpush1.bf16.msra.mxu1 %v13038_v4  ;;  %v439_v4 = vld [vmem:[#allocation5 + $0x898] sm:$0xff] }
 0x20d   :  { %7416 = vmatprep.subr.bf16.mxu1 %v13055_v8  ;;  %v822_v8 = vld [vmem:[#allocation5 + $0x1490] sm:$0xff] }
 0x20e   :  { %7276 = vmatpush1.bf16.msra.mxu0 %v13420_v6  ;;  %v447_v6 = vld [vmem:[#allocation5 + $0x8d8] sm:$0xff]  ;;  %v13549_v13 = vcombine.high %v822_v8, %v830_v9  ;;  %v13548_v20 = vcombine.low %v822_v8, %v830_v9 }
 0x20f   :  { %7277 = vmatprep.subr.bf16.mxu0 %v13437_v12  ;;  %v13167_v12 = vcombine.high %v439_v4, %v447_v6  ;;  %v13166_v19 = vcombine.low %v439_v4, %v447_v6  ;;  %v926_v4 = vld [vmem:[#allocation5 + $0x17d0] sm:$0xff] }
 0x210   :  { %7417 = vmatpush1.bf16.msra.mxu1 %v13054_v14  ;;  %v455_v14 = vld [vmem:[#allocation5 + $0x918] sm:$0xff] }
 0x211   :  { %7418 = vmatprep.subr.bf16.mxu1 %v13071_v17  ;;  %v838_v17 = vld [vmem:[#allocation5 + $0x1510] sm:$0xff] }
 0x212   :  { %7278 = vmatpush1.bf16.msra.mxu0 %v13436_v15  ;;  %v463_v15 = vld [vmem:[#allocation5 + $0x958] sm:$0xff]  ;;  %v13565_v23 = vcombine.high %v838_v17, %v846_v18  ;;  %v13564_v31 = vcombine.low %v838_v17, %v846_v18 }
 0x213   :  { %7279 = vmatprep.subr.bf16.mxu0 %v13453_v22  ;;  %v13183_v22 = vcombine.high %v455_v14, %v463_v15  ;;  %v13182_v30 = vcombine.low %v455_v14, %v463_v15  ;;  %v934_v14 = vld [vmem:[#allocation5 + $0x1810] sm:$0xff] }
 0x214   :  { %7419 = vmatpush1.bf16.msra.mxu1 %v13070_v24  ;;  %v471_v24 = vld [vmem:[#allocation5 + $0x998] sm:$0xff]  ;;  %v942_v15 = vld [vmem:[#allocation5 + $0x1850] sm:$0xff] }
 0x215   :  { %7420 = vmatprep.subr.bf16.mxu1 %v13087_v28  ;;  %v854_v28 = vld [vmem:[#allocation5 + $0x1590] sm:$0xff] }
 0x216   :  { %7280 = vmatpush1.bf16.msra.mxu0 %v13452_v25  ;;  %v479_v25 = vld [vmem:[#allocation5 + $0x9d8] sm:$0xff]  ;;  %v13580_v40 = vcombine.low %v854_v28, %v862_v29 }
 0x217   :  { %7281 = vmatprep.subr.bf16.mxu0 %v13469_v33  ;;  %v13199_v32 = vcombine.high %v471_v24, %v479_v25  ;;  %v13581_v33 = vcombine.high %v854_v28, %v862_v29  ;;  %v13198_v39 = vcombine.low %v471_v24, %v479_v25  ;;  %v575_v24 = vld [vmem:[#allocation5 + $0xcd8] sm:$0xff]  ;;  %v16201_v25 = vld [vmem:[#allocation7] sm:$0xff]  ;;  %v950_v29 = vld [vmem:[#allocation5 + $0x1890] sm:$0xff] }
 0x218   :  { %7421 = vmatpush1.bf16.msra.mxu1 %v13086_v34  ;;  %v487_v34 = vld [vmem:[#allocation5 + $0xa18] sm:$0xff] }
 0x219   :  { %7422 = vmatprep.subr.bf16.mxu1 %v13103_v37  ;;  %v870_v37 = vld [vmem:[#allocation5 + $0x1610] sm:$0xff] }
 0x21a   :  { %7282 = vmatpush1.bf16.msra.mxu0 %v13468_v36  ;;  %v495_v36 = vld [vmem:[#allocation5 + $0xa58] sm:$0xff]  ;;  %v13597_v42 = vcombine.high %v870_v37, %v878_v38  ;;  %v13596_v49 = vcombine.low %v870_v37, %v878_v38 }
 0x21b   :  { %7283 = vmatprep.subr.bf16.mxu0 %v13485_v41  ;;  %v13215_v41 = vcombine.high %v487_v34, %v495_v36  ;;  %v13214_v48 = vcombine.low %v487_v34, %v495_v36  ;;  %v583_v37 = vld [vmem:[#allocation5 + $0xd18] sm:$0xff] }
 0x21c   :  { %7423 = vmatpush1.bf16.msra.mxu1 %v13102_v44  ;;  %v503_v44 = vld [vmem:[#allocation5 + $0xa98] sm:$0xff] }
 0x21d   :  { %7424 = vmatprep.subr.bf16.mxu1 %v13119_v46  ;;  %v886_v46 = vld [vmem:[#allocation5 + $0x1690] sm:$0xff]  ;;  %v591_v38 = vld [vmem:[#allocation5 + $0xd58] sm:$0xff] }
 0x21e   :  { %7284 = vmatpush1.bf16.msra.mxu0 %v13484_v45  ;;  %v511_v45 = vld [vmem:[#allocation5 + $0xad8] sm:$0xff] }
 0x21f   :  { %7285 = vmatprep.subr.bf16.mxu0 %v13501_v47  ;;  %v894_v47 = vld [vmem:[#allocation5 + $0x16d0] sm:$0xff]  ;;  %v13231_v50 = vcombine.high %v503_v44, %v511_v45  ;;  %v13230_v58 = vcombine.low %v503_v44, %v511_v45  ;;  %v13311_v45 = vcombine.high %v583_v37, %v591_v38 }
 0x220   :  { %7425 = vmatpush1.bf16.msra.mxu1 %v13118_v53  ;;  %v13613_v51 = vcombine.high %v886_v46, %v894_v47  ;;  %v519_v53 = vld [vmem:[#allocation5 + $0xb18] sm:$0xff]  ;;  %v13612_v59 = vcombine.low %v886_v46, %v894_v47 }
 0x221   :  { %7426 = vmatprep.subr.bf16.mxu1 %v13135_v55  ;;  %v902_v55 = vld [vmem:[#allocation5 + $0x1710] sm:$0xff] }
 0x222   :  { %7286 = vmatpush1.bf16.msra.mxu0 %v13500_v54  ;;  %v527_v54 = vld [vmem:[#allocation5 + $0xb58] sm:$0xff] }
 0x223   :  { %7287 = vmatprep.subr.bf16.mxu0 %v13517_v56  ;;  %v910_v56 = vld [vmem:[#allocation5 + $0x1750] sm:$0xff]  ;;  %v13247_v60 = vcombine.high %v519_v53, %v527_v54  ;;  %v13246_v6 = vcombine.low %v519_v53, %v527_v54 }
 0x224   :  { %7427 = vmatpush1.bf16.msra.mxu1 %v13134_v63  ;;  %v13629_v63 = vcombine.high %v902_v55, %v910_v56  ;;  %v13628_v8 = vcombine.low %v902_v55, %v910_v56  ;;  %v982_v53 = vld [vmem:[#allocation5 + $0x1990] sm:$0xff] }
 0x225   :  { %7437 = vmatprep.subr.bf16.mxu1 %v13151_v1  ;;  %v543_v1 = vld [vmem:[#allocation5 + $0xbd8] sm:$0xff]  ;;  %v990_v54 = vld [vmem:[#allocation5 + $0x19d0] sm:$0xff] }
 0x226   :  { %7288 = vmatpush1.bf16.msra.mxu0 %v13516_v0  ;;  %v535_v0 = vld [vmem:[#allocation5 + $0xb98] sm:$0xff] }
 0x227   :  { %7289 = vmatprep.subr.bf16.mxu0 %v13533_v2  ;;  %7429 = vmatmul.mubr.bf16.vlgmr.msra.gmra.mrb[8].mxu1 %v16146_v16  ;;  %v918_v2 = vld [vmem:[#allocation5 + $0x1790] sm:$0xff]  ;;  %v13263_v9 = vcombine.high %v535_v0, %v543_v1  ;;  %v13262_v17 = vcombine.low %v535_v0, %v543_v1  ;;  %v13709_v0 = vcombine.high %v982_v53, %v990_v54  ;;  %v615_v1 = vld [vmem:[#allocation5 + $0xe18] sm:$0xff] }
 0x228   :  { %7438 = vmatpush1.bf16.msra.mxu1 %v13150_v10  ;;  %7469 = vmatprep.mubr.bf16.mxu1 %v16142_v61  ;;  %v16196_v10 = vshrl.u32 %v1248_v62, 7  ;;  %v13644_v18 = vcombine.low %v918_v2, %v926_v4 }
 0x229   :  { %7439 = vmatprep.subr.bf16.mxu1 %v13167_v12  ;;  %v551_v12 = vld [vmem:[#allocation5 + $0xc18] sm:$0xff] }
 0x22a   :  { %7290 = vmatpush1.bf16.msra.mxu0 %v13532_v11  ;;  %v13645_v11 = vcombine.high %v918_v2, %v926_v4  ;;  %v16204_v28 = vsub.s32 1, %v16196_v10  ;;  %v998_v2 = vld [vmem:[#allocation5 + $0x1a10] sm:$0xff] }
 0x22b   :  { %7291 = vmatprep.subr.bf16.mxu0 %v13549_v13  ;;  %v559_v13 = vld [vmem:[#allocation5 + $0xc58] sm:$0xff]  ;;  %v1006_v4 = vld [vmem:[#allocation5 + $0x1a50] sm:$0xff] }
 0x22c   :  { %7440 = vmatpush1.bf16.msra.mxu1 %v13166_v19  ;;  %v13279_v19 = vcombine.high %v551_v12, %v559_v13 }
 0x22d   :  { %7441 = vmatprep.subr.bf16.mxu1 %v13183_v22  ;;  %v13661_v22 = vcombine.high %v934_v14, %v942_v15 }
 0x22e   :  { %7292 = vmatpush1.bf16.msra.mxu0 %v13548_v20  ;;  %v16199_v20 = vsub.s32 0, %v16196_v10 }
 0x22f   :  { %7293 = vmatprep.subr.bf16.mxu0 %v13565_v23  ;;  %v567_v23 = vld [vmem:[#allocation5 + $0xc98] sm:$0xff] }
 0x230   :  { %7442 = vmatpush1.bf16.msra.mxu1 %v13182_v30  ;;  %v958_v30 = vld [vmem:[#allocation5 + $0x18d0] sm:$0xff]  ;;  %v1251_v34 = vrot.slane %v16201_v25, %v16199_v20 }
 0x231   :  { %7443 = vmatprep.subr.bf16.mxu1 %v13199_v32  ;;  %v13660_v32 = vcombine.low %v934_v14, %v942_v15  ;;  %v13677_v36 = vcombine.high %v950_v29, %v958_v30  ;;  %v13676_v44 = vcombine.low %v950_v29, %v958_v30  ;;  %v1014_v14 = vld [vmem:[#allocation5 + $0x1a90] sm:$0xff] }
 0x232   :  { %7294 = vmatpush1.bf16.msra.mxu0 %v13564_v31  ;;  %v13278_v31 = vcombine.low %v551_v12, %v559_v13  ;;  %v6816_v46 = vadd.f32 %v16184_v3, %v1251_v34  ;;  %v631_v12 = vld [vmem:[#allocation5 + $0xe98] sm:$0xff]  ;;  %v1022_v15 = vld [vmem:[#allocation5 + $0x1ad0] sm:$0xff] }
 0x233   :  { %7295 = vmatprep.subr.bf16.mxu0 %v13581_v33  ;;  %v13295_v33 = vcombine.high %v567_v23, %v575_v24  ;;  %v639_v13 = vld [vmem:[#allocation5 + $0xed8] sm:$0xff]  ;;  %v1030_v29 = vld [vmem:[#allocation5 + $0x1b10] sm:$0xff] }
 0x234   :  { %7444 = vmatpush1.bf16.msra.mxu1 %v13198_v39  ;;  %v1255_v39 = vrot.slane %v16201_v25, %v16204_v28  ;;  %v1038_v30 = vld [vmem:[#allocation5 + $0x1b50] sm:$0xff] }
 0x235   :  { %7445 = vmatprep.subr.bf16.mxu1 %v13215_v41  ;;  %v974_v41 = vld [vmem:[#allocation5 + $0x1950] sm:$0xff]  ;;  %v13757_v34 = vcombine.high %v1030_v29, %v1038_v30 }
 0x236   :  { %7296 = vmatpush1.bf16.msra.mxu0 %v13580_v40  ;;  %v966_v40 = vld [vmem:[#allocation5 + $0x1910] sm:$0xff] }
 0x237   :  { %7297 = vmatprep.subr.bf16.mxu0 %v13597_v42  ;;  %v13294_v42 = vcombine.low %v567_v23, %v575_v24  ;;  %v13693_v47 = vcombine.high %v966_v40, %v974_v41  ;;  %v13692_v3 = vcombine.low %v966_v40, %v974_v41  ;;  %v647_v23 = vld [vmem:[#allocation5 + $0xf18] sm:$0xff] }
 0x238   :  { %7446 = vmatpush1.bf16.msra.mxu1 %v13214_v48  ;;  %v599_v48 = vld [vmem:[#allocation5 + $0xd98] sm:$0xff] }
 0x239   :  { %7447 = vmatprep.subr.bf16.mxu1 %v13231_v50  ;;  %v6818_v50 = vadd.f32 %v16186_v7, %v1255_v39  ;;  %v623_v7 = vld [vmem:[#allocation5 + $0xe58] sm:$0xff]  ;;  %v1054_v39 = vld [vmem:[#allocation5 + $0x1bd0] sm:$0xff] }
 0x23a   :  { %7298 = vmatpush1.bf16.msra.mxu0 %v13596_v49  ;;  %v607_v49 = vld [vmem:[#allocation5 + $0xdd8] sm:$0xff] }
 0x23b   :  { %7299 = vmatprep.subr.bf16.mxu0 %v13613_v51  ;;  %v13327_v62 = vcombine.high %v599_v48, %v607_v49  ;;  %v655_v24 = vld [vmem:[#allocation5 + $0xf58] sm:$0xff] }
 0x23c   :  { %7448 = vmatpush1.bf16.msra.mxu1 %v13230_v58  ;;  %v13310_v58 = vcombine.low %v583_v37, %v591_v38  ;;  %v671_v37 = vld [vmem:[#allocation5 + $0xfd8] sm:$0xff]  ;;  %v1046_v38 = vld [vmem:[#allocation5 + $0x1b90] sm:$0xff]  ;;  %v13374_v41 = vcombine.low %v647_v23, %v655_v24 }
 0x23d   :  { %7449 = vmatprep.subr.bf16.mxu1 %v13247_v60 }
 0x23e   :  { %7300 = vmatpush1.bf16.msra.mxu0 %v13612_v59 }
 0x23f   :  { %7301 = vmatprep.subr.bf16.mxu0 %v13629_v63 }
 0x240   :  { %7450 = vmatpush1.bf16.msra.mxu1 %v13246_v6  ;;  %v13326_v6 = vcombine.low %v599_v48, %v607_v49  ;;  %v679_v48 = vld [vmem:[#allocation5 + $0x1018] sm:$0xff] }
 0x241   :  { %7451 = vmatprep.subr.bf16.mxu1 %v13263_v9  ;;  %v13343_v9 = vcombine.high %v615_v1, %v623_v7  ;;  %v687_v49 = vld [vmem:[#allocation5 + $0x1058] sm:$0xff] }
 0x242   :  { %7302 = vmatpush1.bf16.msra.mxu0 %v13628_v8  ;;  %v13708_v8 = vcombine.low %v982_v53, %v990_v54  ;;  %v1070_v53 = vld [vmem:[#allocation5 + $0x1c50] sm:$0xff] }
 0x243   :  { %7303 = vmatprep.subr.bf16.mxu0 %v13645_v11  ;;  %v13725_v11 = vcombine.high %v998_v2, %v1006_v4 }
 0x244   :  { %7452 = vmatpush1.bf16.msra.mxu1 %v13262_v17  ;;  %v13342_v17 = vcombine.low %v615_v1, %v623_v7  ;;  %v13406_v1 = vcombine.low %v679_v48, %v687_v49 }
 0x245   :  { %7453 = vmatprep.subr.bf16.mxu1 %v13279_v19  ;;  %v13359_v19 = vcombine.high %v631_v12, %v639_v13 }
 0x246   :  { %7304 = vmatpush1.bf16.msra.mxu0 %v13644_v18  ;;  %v13724_v18 = vcombine.low %v998_v2, %v1006_v4 }
 0x247   :  { %7314 = vmatprep.subr.bf16.mxu0 %v13661_v22  ;;  %v13741_v22 = vcombine.high %v1014_v14, %v1022_v15 }
 0x248   :  { %7454 = vmatpush1.bf16.msra.mxu1 %v13278_v31  ;;  %v13358_v31 = vcombine.low %v631_v12, %v639_v13 }
 0x249   :  { %7306 = vmatmul.mubr.bf16.vlgmr.msra.gmra.mrb[8].mxu0 %v16156_v35  ;;  %7455 = vmatprep.subr.bf16.mxu1 %v13295_v33  ;;  %v13375_v33 = vcombine.high %v647_v23, %v655_v24 }
 0x24a   :  { %7315 = vmatpush1.bf16.msra.mxu0 %v13660_v32  ;;  %7346 = vmatprep.mubr.bf16.mxu0 %v16158_v43  ;;  %v13740_v32 = vcombine.low %v1014_v14, %v1022_v15 }
 0x24b   :  { %7316 = vmatprep.subr.bf16.mxu0 %v13677_v36  ;;  %v663_v36 = vld [vmem:[#allocation5 + $0xf98] sm:$0xff] }
 0x24c   :  { %v6979_v51 = vpop.f32.mrb[0].mxu0  ;;  %7456 = vmatpush1.bf16.msra.mxu1 %v13294_v42  ;;  %v13390_v54 = vcombine.low %v663_v36, %v671_v37 }
 0x24d   :  { %v16214_v55 = vadd.f32 %v6979_v51, %v6816_v46  ;;  %v6981_v56 = vpop.f32.mrb[1].mxu0  ;;  %7457 = vmatprep.subr.bf16.mxu1 %v13311_v45  ;;  %v13391_v45 = vcombine.high %v663_v36, %v671_v37  ;;  %v1062_v51 = vld [vmem:[#allocation5 + $0x1c10] sm:$0xff] }
 0x24e   :  { %v16216_v59 = vadd.f32 %v6981_v56, %v6818_v50  ;;  %v6983_v60 = vpop.f32.mrb[2].mxu0  ;;  %7317 = vmatpush1.bf16.msra.mxu0 %v13676_v44  ;;  %v13756_v44 = vcombine.low %v1030_v29, %v1038_v30  ;;  %v13772_v56 = vcombine.low %v1046_v38, %v1054_v39  ;;  %v13788_v7 = vcombine.low %v1062_v51, %v1070_v53 }
 0x24f   :  { %v6984_v63 = vpop.f32.mrb[3].mxu0  ;;  %7318 = vmatprep.subr.bf16.mxu0 %v13693_v47  ;;  %v13773_v47 = vcombine.high %v1046_v38, %v1054_v39  ;;  %v13789_v60 = vcombine.high %v1062_v51, %v1070_v53  ;;  %v775_v51 = vld [vmem:[#allocation5 + $0x1318] sm:$0xff] }
 0x250   :  { %7458 = vmatpush1.bf16.msra.mxu1 %v13310_v58  ;;  %v13407_v58 = vcombine.high %v679_v48, %v687_v49  ;;  %v1078_v63 = vld [vmem:[#allocation5 + $0x1c90] sm:$0xff]  ;;  %v783_v53 = vld [vmem:[#allocation5 + $0x1358] sm:$0xff] }
 0x251   :  { %7459 = vmatprep.subr.bf16.mxu1 %v13327_v62  ;;  %v703_v62 = vld [vmem:[#allocation5 + $0x10d8] sm:$0xff] }
 0x252   :  { %7319 = vmatpush1.bf16.msra.mxu0 %v13692_v3  ;;  %v695_v3 = vld [vmem:[#allocation5 + $0x1098] sm:$0xff] }
 0x253   :  { %7320 = vmatprep.subr.bf16.mxu0 %v13709_v0  ;;  %v1086_v0 = vld [vmem:[#allocation5 + $0x1cd0] sm:$0xff]  ;;  %v13423_v2 = vcombine.high %v695_v3, %v703_v62  ;;  %v13422_v12 = vcombine.low %v695_v3, %v703_v62  ;;  %v13503_v3 = vcombine.high %v775_v51, %v783_v53 }
 0x254   :  { %7460 = vmatpush1.bf16.msra.mxu1 %v13326_v6  ;;  %v13805_v4 = vcombine.high %v1078_v63, %v1086_v0  ;;  %v711_v6 = vld [vmem:[#allocation5 + $0x1118] sm:$0xff]  ;;  %v13804_v13 = vcombine.low %v1078_v63, %v1086_v0 }
 0x255   :  { %7461 = vmatprep.subr.bf16.mxu1 %v13343_v9  ;;  %v1094_v9 = vld [vmem:[#allocation5 + $0x1d10] sm:$0xff]  ;;  %v791_v63 = vld [vmem:[#allocation5 + $0x1398] sm:$0xff] }
 0x256   :  { %7321 = vmatpush1.bf16.msra.mxu0 %v13708_v8  ;;  %v719_v8 = vld [vmem:[#allocation5 + $0x1158] sm:$0xff] }
 0x257   :  { %7322 = vmatprep.subr.bf16.mxu0 %v13725_v11  ;;  %v1102_v11 = vld [vmem:[#allocation5 + $0x1d50] sm:$0xff]  ;;  %v13439_v14 = vcombine.high %v711_v6, %v719_v8  ;;  %v13438_v23 = vcombine.low %v711_v6, %v719_v8  ;;  %v799_v0 = vld [vmem:[#allocation5 + $0x13d8] sm:$0xff] }
 0x258   :  { %7462 = vmatpush1.bf16.msra.mxu1 %v13342_v17  ;;  %v13821_v15 = vcombine.high %v1094_v9, %v1102_v11  ;;  %v727_v17 = vld [vmem:[#allocation5 + $0x1198] sm:$0xff]  ;;  %v13820_v24 = vcombine.low %v1094_v9, %v1102_v11  ;;  %v13519_v6 = vcombine.high %v791_v63, %v799_v0 }
 0x259   :  { %7463 = vmatprep.subr.bf16.mxu1 %v13359_v19  ;;  %v1110_v19 = vld [vmem:[#allocation5 + $0x1d90] sm:$0xff]  ;;  %v807_v9 = vld [vmem:[#allocation5 + $0x1418] sm:$0xff] }
 0x25a   :  { %7323 = vmatpush1.bf16.msra.mxu0 %v13724_v18  ;;  %v735_v18 = vld [vmem:[#allocation5 + $0x11d8] sm:$0xff] }
 0x25b   :  { %7324 = vmatprep.subr.bf16.mxu0 %v13741_v22  ;;  %v1118_v22 = vld [vmem:[#allocation5 + $0x1dd0] sm:$0xff]  ;;  %v13455_v29 = vcombine.high %v727_v17, %v735_v18  ;;  %v13454_v36 = vcombine.low %v727_v17, %v735_v18  ;;  %v815_v11 = vld [vmem:[#allocation5 + $0x1458] sm:$0xff] }
 0x25c   :  { %v16218_v40 = vpop.f32.mrb[4].mxu0  ;;  %7464 = vmatpush1.bf16.msra.mxu1 %v13358_v31  ;;  %v13837_v30 = vcombine.high %v1110_v19, %v1118_v22  ;;  %v743_v31 = vld [vmem:[#allocation5 + $0x1218] sm:$0xff]  ;;  %v13836_v37 = vcombine.low %v1110_v19, %v1118_v22  ;;  %v13535_v17 = vcombine.high %v807_v9, %v815_v11 }
 0x25d   :  { %v16220_v42 = vpop.f32.mrb[5].mxu0  ;;  %7465 = vmatprep.subr.bf16.mxu1 %v13375_v33  ;;  %v1126_v33 = vld [vmem:[#allocation5 + $0x1e10] sm:$0xff]  ;;  %v823_v19 = vld [vmem:[#allocation5 + $0x1498] sm:$0xff] }
 0x25e   :  { %7325 = vmatpush1.bf16.msra.mxu0 %v13740_v32  ;;  %v7188_v46 = vpop.f32.mrb[6].mxu0  ;;  %v751_v32 = vld [vmem:[#allocation5 + $0x1258] sm:$0xff] }
 0x25f   :  { %7326 = vmatprep.subr.bf16.mxu0 %v13757_v34  ;;  %v7189_v50 = vpop.f32.mrb[7].mxu0  ;;  %v1134_v34 = vld [vmem:[#allocation5 + $0x1e50] sm:$0xff]  ;;  %v13471_v38 = vcombine.high %v743_v31, %v751_v32  ;;  %v831_v22 = vld [vmem:[#allocation5 + $0x14d8] sm:$0xff] }
 0x260   :  { %7466 = vmatpush1.bf16.msra.mxu1 %v13374_v41  ;;  %v13853_v39 = vcombine.high %v1126_v33, %v1134_v34  ;;  %v759_v41 = vld [vmem:[#allocation5 + $0x1298] sm:$0xff]  ;;  %v1150_v46 = vld [vmem:[#allocation5 + $0x1ed0] sm:$0xff]  ;;  %v13852_v48 = vcombine.low %v1126_v33, %v1134_v34 }
 0x261   :  { %7467 = vmatprep.subr.bf16.mxu1 %v13391_v45  ;;  %v1142_v45 = vld [vmem:[#allocation5 + $0x1e90] sm:$0xff]  ;;  %v839_v33 = vld [vmem:[#allocation5 + $0x1518] sm:$0xff] }
 0x262   :  { %7327 = vmatpush1.bf16.msra.mxu0 %v13756_v44  ;;  %v767_v44 = vld [vmem:[#allocation5 + $0x12d8] sm:$0xff]  ;;  %v13869_v50 = vcombine.high %v1142_v45, %v1150_v46 }
 0x263   :  { %7328 = vmatprep.subr.bf16.mxu0 %v13773_v47  ;;  %v13470_v47 = vcombine.low %v743_v31, %v751_v32  ;;  %v13487_v49 = vcombine.high %v759_v41, %v767_v44  ;;  %v13551_v31 = vcombine.high %v823_v19, %v831_v22  ;;  %v847_v34 = vld [vmem:[#allocation5 + $0x1558] sm:$0xff] }
 0x264   :  { %7468 = vmatpush1.bf16.msra.mxu1 %v13390_v54  ;;  %v1158_v54 = vld [vmem:[#allocation5 + $0x1f10] sm:$0xff] }
 0x265   :  { %7478 = vmatprep.subr.bf16.mxu1 %v13407_v58  ;;  %v13486_v58 = vcombine.low %v759_v41, %v767_v44  ;;  %v13567_v41 = vcombine.high %v839_v33, %v847_v34 }
 0x266   :  { %7329 = vmatpush1.bf16.msra.mxu0 %v13772_v56  ;;  %v1166_v56 = vld [vmem:[#allocation5 + $0x1f50] sm:$0xff] }
 0x267   :  { %7330 = vmatprep.subr.bf16.mxu0 %v13789_v60  ;;  %7470 = vmatmul.mubr.bf16.vlgmr.msra.gmra.mrb[8].mxu1 %v16148_v21  ;;  %v13868_v60 = vcombine.low %v1142_v45, %v1150_v46  ;;  %v13885_v62 = vcombine.high %v1158_v54, %v1166_v56  ;;  %v855_v45 = vld [vmem:[#allocation5 + $0x1598] sm:$0xff] }
 0x268   :  { %7479 = vmatpush1.bf16.msra.mxu1 %v13406_v1  ;;  %7510 = vmatprep.mubr.bf16.mxu1 %v16150_v27  ;;  %v1174_v1 = vld [vmem:[#allocation5 + $0x1f90] sm:$0xff]  ;;  %v863_v46 = vld [vmem:[#allocation5 + $0x15d8] sm:$0xff] }
 0x269   :  { %7480 = vmatprep.subr.bf16.mxu1 %v13423_v2  ;;  %v13502_v2 = vcombine.low %v775_v51, %v783_v53 }
 0x26a   :  { %7331 = vmatpush1.bf16.msra.mxu0 %v13788_v7  ;;  %v1182_v7 = vld [vmem:[#allocation5 + $0x1fd0] sm:$0xff] }
 0x26b   :  { %7332 = vmatprep.subr.bf16.mxu0 %v13805_v4  ;;  %v13884_v4 = vcombine.low %v1158_v54, %v1166_v56  ;;  %v13901_v8 = vcombine.high %v1174_v1, %v1182_v7  ;;  %v871_v54 = vld [vmem:[#allocation5 + $0x1618] sm:$0xff] }
 0x26c   :  { %7481 = vmatpush1.bf16.msra.mxu1 %v13422_v12  ;;  %v1190_v12 = vld [vmem:[#allocation5 + $0x2010] sm:$0xff]  ;;  %v879_v56 = vld [vmem:[#allocation5 + $0x1658] sm:$0xff] }
 0x26d   :  { %7482 = vmatprep.subr.bf16.mxu1 %v13439_v14  ;;  %v13518_v14 = vcombine.low %v791_v63, %v799_v0 }
 0x26e   :  { %7333 = vmatpush1.bf16.msra.mxu0 %v13804_v13  ;;  %v1198_v13 = vld [vmem:[#allocation5 + $0x2050] sm:$0xff] }
 0x26f   :  { %7334 = vmatprep.subr.bf16.mxu0 %v13821_v15  ;;  %v13900_v15 = vcombine.low %v1174_v1, %v1182_v7  ;;  %v13917_v18 = vcombine.high %v1190_v12, %v1198_v13  ;;  %v887_v1 = vld [vmem:[#allocation5 + $0x1698] sm:$0xff] }
 0x270   :  { %7483 = vmatpush1.bf16.msra.mxu1 %v13438_v23  ;;  %v1206_v23 = vld [vmem:[#allocation5 + $0x2090] sm:$0xff]  ;;  %v895_v7 = vld [vmem:[#allocation5 + $0x16d8] sm:$0xff] }
 0x271   :  { %7484 = vmatprep.subr.bf16.mxu1 %v13455_v29  ;;  %v13534_v29 = vcombine.low %v807_v9, %v815_v11  ;;  %v13615_v9 = vcombine.high %v887_v1, %v895_v7 }
 0x272   :  { %7335 = vmatpush1.bf16.msra.mxu0 %v13820_v24  ;;  %v1214_v24 = vld [vmem:[#allocation5 + $0x20d0] sm:$0xff] }
 0x273   :  { %7336 = vmatprep.subr.bf16.mxu0 %v13837_v30  ;;  %v13916_v30 = vcombine.low %v1190_v12, %v1198_v13  ;;  %v13933_v32 = vcombine.high %v1206_v23, %v1214_v24  ;;  %v903_v12 = vld [vmem:[#allocation5 + $0x1718] sm:$0xff] }
 0x274   :  { %7485 = vmatpush1.bf16.msra.mxu1 %v13454_v36  ;;  %v1222_v36 = vld [vmem:[#allocation5 + $0x2110] sm:$0xff]  ;;  %v911_v13 = vld [vmem:[#allocation5 + $0x1758] sm:$0xff] }
 0x275   :  { %7486 = vmatprep.subr.bf16.mxu1 %v13471_v38  ;;  %v13550_v38 = vcombine.low %v823_v19, %v831_v22  ;;  %v13631_v19 = vcombine.high %v903_v12, %v911_v13 }
 0x276   :  { %7337 = vmatpush1.bf16.msra.mxu0 %v13836_v37  ;;  %v1230_v37 = vld [vmem:[#allocation5 + $0x2150] sm:$0xff] }
 0x277   :  { %7338 = vmatprep.subr.bf16.mxu0 %v13853_v39  ;;  %v13932_v39 = vcombine.low %v1206_v23, %v1214_v24  ;;  %v13949_v44 = vcombine.high %v1222_v36, %v1230_v37  ;;  %v919_v23 = vld [vmem:[#allocation5 + $0x1798] sm:$0xff] }
 0x278   :  { %7487 = vmatpush1.bf16.msra.mxu1 %v13470_v47  ;;  %v1238_v47 = vld [vmem:[#allocation5 + $0x2190] sm:$0xff]  ;;  %v927_v24 = vld [vmem:[#allocation5 + $0x17d8] sm:$0xff] }
 0x279   :  { %7488 = vmatprep.subr.bf16.mxu1 %v13487_v49  ;;  %v13948_v49 = vcombine.low %v1222_v36, %v1230_v37  ;;  %v13965_v51 = vcombine.high %v1238_v47, %v1238_v47  ;;  %v13964_v53 = vcombine.low %v1238_v47, %v1238_v47  ;;  %v935_v36 = vld [vmem:[#allocation5 + $0x1818] sm:$0xff] }
 0x27a   :  { %7339 = vmatpush1.bf16.msra.mxu0 %v13852_v48  ;;  %v13566_v48 = vcombine.low %v839_v33, %v847_v34  ;;  %v13647_v33 = vcombine.high %v919_v23, %v927_v24  ;;  %v943_v37 = vld [vmem:[#allocation5 + $0x1858] sm:$0xff] }
 0x27b   :  { %7340 = vmatprep.subr.bf16.mxu0 %v13869_v50  ;;  %v13583_v50 = vcombine.high %v855_v45, %v863_v46  ;;  %v6746_v63 = vsel %vm6732_vm0, %v13964_v53, 0  ;;  %v951_v47 = vld [vmem:[#allocation5 + $0x1898] sm:$0xff] }
 0x27c   :  { %7489 = vmatpush1.bf16.msra.mxu1 %v13486_v58  ;;  %v168_v58 = vld [vmem:[#allocation5 + $0x20] sm:$0xff] }
 0x27d   :  { %7490 = vmatprep.subr.bf16.mxu1 %v13503_v3  ;;  %v13582_v3 = vcombine.low %v855_v45, %v863_v46  ;;  %v13663_v45 = vcombine.high %v935_v36, %v943_v37 }
 0x27e   :  { %7341 = vmatpush1.bf16.msra.mxu0 %v13868_v60  ;;  %v176_v60 = vld [vmem:[#allocation5 + $0x60] sm:$0xff] }
 0x27f   :  { %7342 = vmatprep.subr.bf16.mxu0 %v13885_v62  ;;  %v13599_v62 = vcombine.high %v871_v54, %v879_v56  ;;  %v12897_v0 = vcombine.high %v168_v58, %v176_v60 }
 0x280   :  { %7491 = vmatpush1.bf16.msra.mxu1 %v13502_v2  ;;  %v184_v2 = vld [vmem:[#allocation5 + $0xa0] sm:$0xff] }
 0x281   :  { %7492 = vmatprep.subr.bf16.mxu1 %v13519_v6  ;;  %v13598_v6 = vcombine.low %v871_v54, %v879_v56 }
 0x282   :  { %7343 = vmatpush1.bf16.msra.mxu0 %v13884_v4  ;;  %v192_v4 = vld [vmem:[#allocation5 + $0xe0] sm:$0xff] }
 0x283   :  { %7344 = vmatprep.subr.bf16.mxu0 %v13901_v8  ;;  %v12896_v8 = vcombine.low %v168_v58, %v176_v60  ;;  %v12913_v11 = vcombine.high %v184_v2, %v192_v4  ;;  %v967_v58 = vld [vmem:[#allocation5 + $0x1918] sm:$0xff] }
 0x284   :  { %7493 = vmatpush1.bf16.msra.mxu1 %v13518_v14  ;;  %v200_v14 = vld [vmem:[#allocation5 + $0x120] sm:$0xff]  ;;  %v975_v60 = vld [vmem:[#allocation5 + $0x1958] sm:$0xff] }
 0x285   :  { %7494 = vmatprep.subr.bf16.mxu1 %v13535_v17  ;;  %v13614_v17 = vcombine.low %v887_v1, %v895_v7  ;;  %v13695_v1 = vcombine.high %v967_v58, %v975_v60 }
 0x286   :  { %7345 = vmatpush1.bf16.msra.mxu0 %v13900_v15  ;;  %v208_v15 = vld [vmem:[#allocation5 + $0x160] sm:$0xff] }
 0x287   :  { %7355 = vmatprep.subr.bf16.mxu0 %v13917_v18  ;;  %v12912_v18 = vcombine.low %v184_v2, %v192_v4  ;;  %v12929_v22 = vcombine.high %v200_v14, %v208_v15  ;;  %v983_v2 = vld [vmem:[#allocation5 + $0x1998] sm:$0xff] }
 0x288   :  { %7495 = vmatpush1.bf16.msra.mxu1 %v13534_v29  ;;  %v216_v29 = vld [vmem:[#allocation5 + $0x1a0] sm:$0xff]  ;;  %v991_v4 = vld [vmem:[#allocation5 + $0x19d8] sm:$0xff] }
 0x289   :  { %7347 = vmatmul.mubr.bf16.vlgmr.msra.gmra.mrb[8].mxu0 %v16164_v52  ;;  %7496 = vmatprep.subr.bf16.mxu1 %v13551_v31  ;;  %v13630_v31 = vcombine.low %v903_v12, %v911_v13  ;;  %v13711_v12 = vcombine.high %v983_v2, %v991_v4 }
 0x28a   :  { %7356 = vmatpush1.bf16.msra.mxu0 %v13916_v30  ;;  %7387 = vmatprep.mubr.bf16.mxu0 %v15977_v5  ;;  %v224_v30 = vld [vmem:[#allocation5 + $0x1e0] sm:$0xff] }
 0x28b   :  { %7357 = vmatprep.subr.bf16.mxu0 %v13933_v32  ;;  %v12928_v32 = vcombine.low %v200_v14, %v208_v15  ;;  %v12945_v34 = vcombine.high %v216_v29, %v224_v30  ;;  %v999_v14 = vld [vmem:[#allocation5 + $0x1a18] sm:$0xff] }
 0x28c   :  { %7497 = vmatpush1.bf16.msra.mxu1 %v13550_v38  ;;  %v232_v38 = vld [vmem:[#allocation5 + $0x220] sm:$0xff]  ;;  %v1007_v15 = vld [vmem:[#allocation5 + $0x1a58] sm:$0xff] }
 0x28d   :  { %7498 = vmatprep.subr.bf16.mxu1 %v13567_v41  ;;  %v13646_v41 = vcombine.low %v919_v23, %v927_v24  ;;  %v13727_v23 = vcombine.high %v999_v14, %v1007_v15 }
 0x28e   :  { %7358 = vmatpush1.bf16.msra.mxu0 %v13932_v39  ;;  %v240_v39 = vld [vmem:[#allocation5 + $0x260] sm:$0xff] }
 0x28f   :  { %7359 = vmatprep.subr.bf16.mxu0 %v13949_v44  ;;  %v12944_v44 = vcombine.low %v216_v29, %v224_v30  ;;  %v12961_v46 = vcombine.high %v232_v38, %v240_v39  ;;  %v12960_v53 = vcombine.low %v232_v38, %v240_v39  ;;  %v1015_v29 = vld [vmem:[#allocation5 + $0x1a98] sm:$0xff] }
 0x290   :  { %7499 = vmatpush1.bf16.msra.mxu1 %v13566_v48  ;;  %v959_v48 = vld [vmem:[#allocation5 + $0x18d8] sm:$0xff] }
 0x291   :  { %7500 = vmatprep.subr.bf16.mxu1 %v13583_v50  ;;  %v256_v50 = vld [vmem:[#allocation5 + $0x2e0] sm:$0xff]  ;;  %v13679_v54 = vcombine.high %v951_v47, %v959_v48  ;;  %v1023_v30 = vld [vmem:[#allocation5 + $0x1ad8] sm:$0xff] }
 0x292   :  { %7360 = vmatpush1.bf16.msra.mxu0 %v13948_v49  ;;  %v248_v49 = vld [vmem:[#allocation5 + $0x2a0] sm:$0xff]  ;;  %v13743_v38 = vcombine.high %v1015_v29, %v1023_v30 }
 0x293   :  { %13980 = vmatprep.subr.msk.bf16.mxu0 %vm6732_vm0, %v13965_v51  ;;  %v13662_v51 = vcombine.low %v935_v36, %v943_v37  ;;  %v12977_v56 = vcombine.high %v248_v49, %v256_v50  ;;  %v16237_v36 = vsub.s32 3, %v16196_v10 }
 0x294   :  { %7501 = vmatpush1.bf16.msra.mxu1 %v13582_v3  ;;  %v264_v3 = vld [vmem:[#allocation5 + $0x320] sm:$0xff] }
 0x295   :  { %7502 = vmatprep.subr.bf16.mxu1 %v13599_v62  ;;  %v272_v62 = vld [vmem:[#allocation5 + $0x360] sm:$0xff] }
 0x296   :  { %7362 = vmatpush1.bf16.msra.mxu0 %v6746_v63  ;;  %v13678_v63 = vcombine.low %v951_v47, %v959_v48  ;;  %v12993_v7 = vcombine.high %v264_v3, %v272_v62  ;;  %v336_v47 = vld [vmem:[#allocation5 + $0x560] sm:$0xff]  ;;  %v1263_v48 = vrot.slane %v16201_v25, %v16237_v36 }
 0x297   :  { %7601 = vmatprep.subr.bf16.mxu0 %v12897_v0  ;;  %v12976_v0 = vcombine.low %v248_v49, %v256_v50  ;;  %v13742_v49 = vcombine.low %v1015_v29, %v1023_v30 }
 0x298   :  { %7503 = vmatpush1.bf16.msra.mxu1 %v13598_v6  ;;  %v280_v6 = vld [vmem:[#allocation5 + $0x3a0] sm:$0xff] }
 0x299   :  { %13981 = vmatmul.mubr.msk.bf16.vlgmr.msra.gmra.mrb[8].mxu0 %vm6728_vm1, %v16172_v26  ;;  %7504 = vmatprep.subr.bf16.mxu1 %v13615_v9  ;;  %v13694_v9 = vcombine.low %v967_v58, %v975_v60  ;;  %v1055_v58 = vld [vmem:[#allocation5 + $0x1bd8] sm:$0xff] }
 0x29a   :  { %7602 = vmatpush1.bf16.msra.mxu0 %v12896_v8  ;;  %7633 = vmatprep.mubr.bf16.mxu0 %v16140_v57  ;;  %v288_v8 = vld [vmem:[#allocation5 + $0x3e0] sm:$0xff] }
 0x29b   :  { %7603 = vmatprep.subr.bf16.mxu0 %v12913_v11  ;;  %v12992_v11 = vcombine.low %v264_v3, %v272_v62  ;;  %v13009_v13 = vcombine.high %v280_v6, %v288_v8  ;;  %v344_v62 = vld [vmem:[#allocation5 + $0x5a0] sm:$0xff] }
 0x29c   :  { %7505 = vmatpush1.bf16.msra.mxu1 %v13614_v17  ;;  %v296_v17 = vld [vmem:[#allocation5 + $0x420] sm:$0xff] }
 0x29d   :  { %7506 = vmatprep.subr.bf16.mxu1 %v13631_v19  ;;  %v13710_v19 = vcombine.low %v983_v2, %v991_v4 }
 0x29e   :  { %7604 = vmatpush1.bf16.msra.mxu0 %v12912_v18  ;;  %v304_v18 = vld [vmem:[#allocation5 + $0x460] sm:$0xff] }
 0x29f   :  { %7605 = vmatprep.subr.bf16.mxu0 %v12929_v22  ;;  %v13008_v22 = vcombine.low %v280_v6, %v288_v8  ;;  %v13025_v24 = vcombine.high %v296_v17, %v304_v18  ;;  %v13024_v37 = vcombine.low %v296_v17, %v304_v18 }
 0x2a0   :  { %7507 = vmatpush1.bf16.msra.mxu1 %v13630_v31  ;;  %v16234_v31 = vsub.s32 2, %v16196_v10 }
 0x2a1   :  { %7508 = vmatprep.subr.bf16.mxu1 %v13647_v33  ;;  %v320_v33 = vld [vmem:[#allocation5 + $0x4e0] sm:$0xff] }
 0x2a2   :  { %7606 = vmatpush1.bf16.msra.mxu0 %v12928_v32  ;;  %v312_v32 = vld [vmem:[#allocation5 + $0x4a0] sm:$0xff] }
 0x2a3   :  { %7607 = vmatprep.subr.bf16.mxu0 %v12945_v34  ;;  %v13726_v34 = vcombine.low %v999_v14, %v1007_v15  ;;  %v13041_v39 = vcombine.high %v312_v32, %v320_v33  ;;  %v13040_v50 = vcombine.low %v312_v32, %v320_v33  ;;  %v368_v14 = vld [vmem:[#allocation5 + $0x660] sm:$0xff]  ;;  %v1095_v33 = vld [vmem:[#allocation5 + $0x1d18] sm:$0xff] }
 0x2a4   :  { %7509 = vmatpush1.bf16.msra.mxu1 %v13646_v41  ;;  %v1031_v41 = vld [vmem:[#allocation5 + $0x1b18] sm:$0xff] }
 0x2a5   :  { %7519 = vmatprep.subr.bf16.mxu1 %v13663_v45  ;;  %v1259_v45 = vrot.slane %v16201_v25, %v16234_v31 }
 0x2a6   :  { %7608 = vmatpush1.bf16.msra.mxu0 %v12944_v44  ;;  %v1039_v44 = vld [vmem:[#allocation5 + $0x1b58] sm:$0xff] }
 0x2a7   :  { %7609 = vmatprep.subr.bf16.mxu0 %v12961_v46  ;;  %7511 = vmatmul.mubr.bf16.vlgmr.msra.gmra.mrb[8].mxu1 %v16156_v35  ;;  %v328_v46 = vld [vmem:[#allocation5 + $0x520] sm:$0xff] }
 0x2a8   :  { %7520 = vmatpush1.bf16.msra.mxu1 %v13662_v51  ;;  %7551 = vmatprep.mubr.bf16.mxu1 %v16158_v43  ;;  %v13759_v51 = vcombine.high %v1031_v41, %v1039_v44  ;;  %v13056_v4 = vcombine.low %v328_v46, %v336_v47 }
 0x2a9   :  { %7521 = vmatprep.subr.bf16.mxu1 %v13679_v54  ;;  %v13057_v54 = vcombine.high %v328_v46, %v336_v47  ;;  %v1111_v46 = vld [vmem:[#allocation5 + $0x1d98] sm:$0xff] }
 0x2aa   :  { %7610 = vmatpush1.bf16.msra.mxu0 %v12960_v53  ;;  %v1119_v47 = vld [vmem:[#allocation5 + $0x1dd8] sm:$0xff] }
 0x2ab   :  { %7611 = vmatprep.subr.bf16.mxu0 %v12977_v56  ;;  %v1047_v56 = vld [vmem:[#allocation5 + $0x1b98] sm:$0xff] }
 0x2ac   :  { %7522 = vmatpush1.bf16.msra.mxu1 %v13678_v63  ;;  %v352_v63 = vld [vmem:[#allocation5 + $0x5e0] sm:$0xff]  ;;  %v13775_v6 = vcombine.high %v1047_v56, %v1055_v58  ;;  %v13774_v15 = vcombine.low %v1047_v56, %v1055_v58  ;;  %v1127_v56 = vld [vmem:[#allocation5 + $0x1e18] sm:$0xff] }
 0x2ad   :  { %7523 = vmatprep.subr.bf16.mxu1 %v13695_v1  ;;  %v1135_v58 = vld [vmem:[#allocation5 + $0x1e58] sm:$0xff] }
 0x2ae   :  { %7612 = vmatpush1.bf16.msra.mxu0 %v12976_v0 }
 0x2af   :  { %7613 = vmatprep.subr.bf16.mxu0 %v12993_v7  ;;  %v13758_v7 = vcombine.low %v1031_v41, %v1039_v44 }
 0x2b0   :  { %7524 = vmatpush1.bf16.msra.mxu1 %v13694_v9  ;;  %v13073_v9 = vcombine.high %v344_v62, %v352_v63 }
 0x2b1   :  { %7525 = vmatprep.subr.bf16.mxu1 %v13711_v12  ;;  %v1071_v12 = vld [vmem:[#allocation5 + $0x1c58] sm:$0xff] }
 0x2b2   :  { %7614 = vmatpush1.bf16.msra.mxu0 %v12992_v11  ;;  %v1063_v11 = vld [vmem:[#allocation5 + $0x1c18] sm:$0xff] }
 0x2b3   :  { %7615 = vmatprep.subr.bf16.mxu0 %v13009_v13  ;;  %v360_v13 = vld [vmem:[#allocation5 + $0x620] sm:$0xff]  ;;  %v13791_v17 = vcombine.high %v1063_v11, %v1071_v12 }
 0x2b4   :  { %7526 = vmatpush1.bf16.msra.mxu1 %v13710_v19  ;;  %v13089_v18 = vcombine.high %v360_v13, %v368_v14  ;;  %v1079_v19 = vld [vmem:[#allocation5 + $0x1c98] sm:$0xff]  ;;  %v13088_v29 = vcombine.low %v360_v13, %v368_v14 }
 0x2b5   :  { %7527 = vmatprep.subr.bf16.mxu1 %v13727_v23  ;;  %v376_v23 = vld [vmem:[#allocation5 + $0x6a0] sm:$0xff]  ;;  %v1159_v14 = vld [vmem:[#allocation5 + $0x1f18] sm:$0xff] }
 0x2b6   :  { %7616 = vmatpush1.bf16.msra.mxu0 %v13008_v22  ;;  %v1087_v22 = vld [vmem:[#allocation5 + $0x1cd8] sm:$0xff] }
 0x2b7   :  { %7617 = vmatprep.subr.bf16.mxu0 %v13025_v24  ;;  %v384_v24 = vld [vmem:[#allocation5 + $0x6e0] sm:$0xff]  ;;  %v13807_v30 = vcombine.high %v1079_v19, %v1087_v22 }
 0x2b8   :  { %7528 = vmatpush1.bf16.msra.mxu1 %v13726_v34  ;;  %v13105_v32 = vcombine.high %v376_v23, %v384_v24  ;;  %v1103_v34 = vld [vmem:[#allocation5 + $0x1d58] sm:$0xff]  ;;  %v13104_v41 = vcombine.low %v376_v23, %v384_v24 }
 0x2b9   :  { %7529 = vmatprep.subr.bf16.mxu1 %v13743_v38  ;;  %v400_v38 = vld [vmem:[#allocation5 + $0x760] sm:$0xff]  ;;  %v13823_v44 = vcombine.high %v1095_v33, %v1103_v34  ;;  %v1175_v24 = vld [vmem:[#allocation5 + $0x1f98] sm:$0xff] }
 0x2ba   :  { %7618 = vmatpush1.bf16.msra.mxu0 %v13024_v37  ;;  %v7143_v53 = vpop.f32.mrb[4].mxu1  ;;  %v392_v37 = vld [vmem:[#allocation5 + $0x720] sm:$0xff] }
 0x2bb   :  { %7619 = vmatprep.subr.bf16.mxu0 %v13041_v39  ;;  %v14611_v60 = vadd.f32 %v7143_v53, %v1259_v45  ;;  %v7145_v3 = vpop.f32.mrb[5].mxu1  ;;  %v13806_v39 = vcombine.low %v1079_v19, %v1087_v22  ;;  %v13121_v45 = vcombine.high %v392_v37, %v400_v38  ;;  %v13839_v53 = vcombine.high %v1111_v46, %v1119_v47 }
 0x2bc   :  { %v14613_v0 = vadd.f32 %v7145_v3, %v1263_v48  ;;  %v7147_v1 = vpop.f32.mrb[6].mxu1  ;;  %7530 = vmatpush1.bf16.msra.mxu1 %v13742_v49  ;;  %v408_v48 = vld [vmem:[#allocation5 + $0x7a0] sm:$0xff] }
 0x2bd   :  { %v16244_v25 = vadd.f32 %v14611_v60, %v16218_v40  ;;  %v7148_v2 = vpop.f32.mrb[7].mxu1  ;;  %7531 = vmatprep.subr.bf16.mxu1 %v13759_v51  ;;  %v13072_v40 = vcombine.low %v344_v62, %v352_v63  ;;  %v416_v49 = vld [vmem:[#allocation5 + $0x7e0] sm:$0xff]  ;;  %v13120_v51 = vcombine.low %v392_v37, %v400_v38  ;;  %v13838_v62 = vcombine.low %v1111_v46, %v1119_v47  ;;  %v1191_v38 = vld [vmem:[#allocation5 + $0x2018] sm:$0xff] }
 0x2be   :  { %7620 = vmatpush1.bf16.msra.mxu0 %v13040_v50  ;;  %v16247_v8 = vadd.f32 %v14613_v0, %v16220_v42  ;;  %v13790_v42 = vcombine.low %v1063_v11, %v1071_v12  ;;  %v13822_v50 = vcombine.low %v1095_v33, %v1103_v34  ;;  %v424_v60 = vld [vmem:[#allocation5 + $0x820] sm:$0xff]  ;;  %v13136_v63 = vcombine.low %v408_v48, %v416_v49  ;;  %v1151_v2 = vld [vmem:[#allocation5 + $0x1ed8] sm:$0xff] }
 0x2bf   :  { %7621 = vmatprep.subr.bf16.mxu0 %v13057_v54  ;;  %v13137_v54 = vcombine.high %v408_v48, %v416_v49  ;;  %v432_v3 = vld [vmem:[#allocation5 + $0x860] sm:$0xff]  ;;  %v13855_v0 = vcombine.high %v1127_v56, %v1135_v58  ;;  %v1207_v49 = vld [vmem:[#allocation5 + $0x2098] sm:$0xff] }
 0x2c0   :  { %7532 = vmatpush1.bf16.msra.mxu1 %v13758_v7  ;;  %v13153_v1 = vcombine.high %v424_v60, %v432_v3  ;;  %v1143_v7 = vld [vmem:[#allocation5 + $0x1e98] sm:$0xff]  ;;  %v13152_v11 = vcombine.low %v424_v60, %v432_v3 }
 0x2c1   :  { %7533 = vmatprep.subr.bf16.mxu1 %v13775_v6  ;;  %v448_v6 = vld [vmem:[#allocation5 + $0x8e0] sm:$0xff]  ;;  %v13871_v12 = vcombine.high %v1143_v7, %v1151_v2  ;;  %v1223_v3 = vld [vmem:[#allocation5 + $0x2118] sm:$0xff] }
 0x2c2   :  { %7622 = vmatpush1.bf16.msra.mxu0 %v13056_v4  ;;  %v440_v4 = vld [vmem:[#allocation5 + $0x8a0] sm:$0xff] }
 0x2c3   :  { %7623 = vmatprep.subr.bf16.mxu0 %v13073_v9  ;;  %v13854_v9 = vcombine.low %v1127_v56, %v1135_v58  ;;  %v13169_v13 = vcombine.high %v440_v4, %v448_v6  ;;  %v13168_v19 = vcombine.low %v440_v4, %v448_v6  ;;  %v1239_v6 = vld [vmem:[#allocation5 + $0x2198] sm:$0xff] }
 0x2c4   :  { %7534 = vmatpush1.bf16.msra.mxu1 %v13774_v15  ;;  %v1167_v15 = vld [vmem:[#allocation5 + $0x1f58] sm:$0xff] }
 0x2c5   :  { %7535 = vmatprep.subr.bf16.mxu1 %v13791_v17  ;;  %v464_v17 = vld [vmem:[#allocation5 + $0x960] sm:$0xff]  ;;  %v13887_v22 = vcombine.high %v1159_v14, %v1167_v15 }
 0x2c6   :  { %7624 = vmatpush1.bf16.msra.mxu0 %v13072_v40  ;;  %v456_v40 = vld [vmem:[#allocation5 + $0x920] sm:$0xff] }
 0x2c7   :  { %7625 = vmatprep.subr.bf16.mxu0 %v13089_v18  ;;  %v13870_v18 = vcombine.low %v1143_v7, %v1151_v2  ;;  %v13185_v23 = vcombine.high %v456_v40, %v464_v17  ;;  %v13184_v33 = vcombine.low %v456_v40, %v464_v17  ;;  %v169_v17 = vld [vmem:[#allocation5 + $0x28] sm:$0xff] }
 0x2c8   :  { %7536 = vmatpush1.bf16.msra.mxu1 %v13790_v42  ;;  %v1183_v42 = vld [vmem:[#allocation5 + $0x1fd8] sm:$0xff] }
 0x2c9   :  { %7537 = vmatprep.subr.bf16.mxu1 %v13807_v30  ;;  %v480_v30 = vld [vmem:[#allocation5 + $0x9e0] sm:$0xff]  ;;  %v13903_v34 = vcombine.high %v1175_v24, %v1183_v42 }
 0x2ca   :  { %7626 = vmatpush1.bf16.msra.mxu0 %v13088_v29  ;;  %v472_v29 = vld [vmem:[#allocation5 + $0x9a0] sm:$0xff] }
 0x2cb   :  { %7627 = vmatprep.subr.bf16.mxu0 %v13105_v32  ;;  %v13886_v32 = vcombine.low %v1159_v14, %v1167_v15  ;;  %v13201_v37 = vcombine.high %v472_v29, %v480_v30  ;;  %v13200_v46 = vcombine.low %v472_v29, %v480_v30  ;;  %v13967_v14 = vcombine.high %v1239_v6, %v1239_v6  ;;  %v185_v30 = vld [vmem:[#allocation5 + $0xa8] sm:$0xff] }
 0x2cc   :  { %7538 = vmatpush1.bf16.msra.mxu1 %v13806_v39  ;;  %v1199_v39 = vld [vmem:[#allocation5 + $0x2058] sm:$0xff]  ;;  %v13966_v15 = vcombine.low %v1239_v6, %v1239_v6 }
 0x2cd   :  { %7539 = vmatprep.subr.bf16.mxu1 %v13823_v44  ;;  %v496_v44 = vld [vmem:[#allocation5 + $0xa60] sm:$0xff]  ;;  %v13919_v47 = vcombine.high %v1191_v38, %v1199_v39 }
 0x2ce   :  { %7628 = vmatpush1.bf16.msra.mxu0 %v13104_v41  ;;  %v488_v41 = vld [vmem:[#allocation5 + $0xa20] sm:$0xff] }
 0x2cf   :  { %7629 = vmatprep.subr.bf16.mxu0 %v13121_v45  ;;  %v13902_v45 = vcombine.low %v1175_v24, %v1183_v42  ;;  %v13217_v48 = vcombine.high %v488_v41, %v496_v44  ;;  %v13216_v56 = vcombine.low %v488_v41, %v496_v44  ;;  %v6752_v24 = vsel %vm6732_vm0, %v13966_v15, 0  ;;  %v201_v44 = vld [vmem:[#allocation5 + $0x128] sm:$0xff]  ;;  %v640_v15 = vld [vmem:[#allocation5 + $0xee0] sm:$0xff] }
 0x2d0   :  { %7540 = vmatpush1.bf16.msra.mxu1 %v13822_v50  ;;  %v1215_v50 = vld [vmem:[#allocation5 + $0x20d8] sm:$0xff] }
 0x2d1   :  { %7541 = vmatprep.subr.bf16.mxu1 %v13839_v53  ;;  %v512_v53 = vld [vmem:[#allocation5 + $0xae0] sm:$0xff]  ;;  %v13935_v58 = vcombine.high %v1207_v49, %v1215_v50 }
 0x2d2   :  { %7630 = vmatpush1.bf16.msra.mxu0 %v13120_v51  ;;  %v504_v51 = vld [vmem:[#allocation5 + $0xaa0] sm:$0xff] }
 0x2d3   :  { %7631 = vmatprep.subr.bf16.mxu0 %v13137_v54  ;;  %v13918_v54 = vcombine.low %v1191_v38, %v1199_v39  ;;  %v13233_v60 = vcombine.high %v504_v51, %v512_v53  ;;  %v13232_v7 = vcombine.low %v504_v51, %v512_v53  ;;  %v217_v53 = vld [vmem:[#allocation5 + $0x1a8] sm:$0xff] }
 0x2d4   :  { %7542 = vmatpush1.bf16.msra.mxu1 %v13838_v62  ;;  %v1231_v62 = vld [vmem:[#allocation5 + $0x2158] sm:$0xff] }
 0x2d5   :  { %7543 = vmatprep.subr.bf16.mxu1 %v13855_v0  ;;  %v528_v0 = vld [vmem:[#allocation5 + $0xb60] sm:$0xff]  ;;  %v13951_v2 = vcombine.high %v1223_v3, %v1231_v62 }
 0x2d6   :  { %7632 = vmatpush1.bf16.msra.mxu0 %v13136_v63  ;;  %v520_v63 = vld [vmem:[#allocation5 + $0xb20] sm:$0xff] }
 0x2d7   :  { %7642 = vmatprep.subr.bf16.mxu0 %v13153_v1  ;;  %v13934_v1 = vcombine.low %v1207_v49, %v1215_v50  ;;  %v13249_v4 = vcombine.high %v520_v63, %v528_v0 }
 0x2d8   :  { %7544 = vmatpush1.bf16.msra.mxu1 %v13854_v9  ;;  %v536_v9 = vld [vmem:[#allocation5 + $0xba0] sm:$0xff] }
 0x2d9   :  { %7634 = vmatmul.mubr.bf16.vlgmr.msra.gmra.mrb[12].mxu0 %v16146_v16  ;;  %7545 = vmatprep.subr.bf16.mxu1 %v13871_v12  ;;  %v13950_v12 = vcombine.low %v1223_v3, %v1231_v62 }
 0x2da   :  { %7643 = vmatpush1.bf16.msra.mxu0 %v13152_v11  ;;  %7674 = vmatprep.mubr.bf16.mxu0 %v16142_v61  ;;  %v544_v11 = vld [vmem:[#allocation5 + $0xbe0] sm:$0xff] }
 0x2db   :  { %7644 = vmatprep.subr.bf16.mxu0 %v13169_v13  ;;  %v13248_v13 = vcombine.low %v520_v63, %v528_v0  ;;  %v13265_v40 = vcombine.high %v536_v9, %v544_v11  ;;  %v233_v0 = vld [vmem:[#allocation5 + $0x228] sm:$0xff] }
 0x2dc   :  { %7546 = vmatpush1.bf16.msra.mxu1 %v13870_v18  ;;  %v177_v18 = vld [vmem:[#allocation5 + $0x68] sm:$0xff] }
 0x2dd   :  { %7547 = vmatprep.subr.bf16.mxu1 %v13887_v22  ;;  %v560_v22 = vld [vmem:[#allocation5 + $0xc60] sm:$0xff]  ;;  %v12899_v42 = vcombine.high %v169_v17, %v177_v18 }
 0x2de   :  { %7645 = vmatpush1.bf16.msra.mxu0 %v13168_v19  ;;  %v552_v19 = vld [vmem:[#allocation5 + $0xc20] sm:$0xff] }
 0x2df   :  { %7646 = vmatprep.subr.bf16.mxu0 %v13185_v23  ;;  %v13264_v23 = vcombine.low %v536_v9, %v544_v11  ;;  %v13281_v29 = vcombine.high %v552_v19, %v560_v22  ;;  %v13280_v38 = vcombine.low %v552_v19, %v560_v22  ;;  %v265_v22 = vld [vmem:[#allocation5 + $0x328] sm:$0xff] }
 0x2e0   :  { %7548 = vmatpush1.bf16.msra.mxu1 %v13886_v32  ;;  %v193_v32 = vld [vmem:[#allocation5 + $0xe8] sm:$0xff] }
 0x2e1   :  { %7549 = vmatprep.subr.bf16.mxu1 %v13903_v34  ;;  %v576_v34 = vld [vmem:[#allocation5 + $0xce0] sm:$0xff]  ;;  %v12915_v39 = vcombine.high %v185_v30, %v193_v32 }
 0x2e2   :  { %7647 = vmatpush1.bf16.msra.mxu0 %v13184_v33  ;;  %v568_v33 = vld [vmem:[#allocation5 + $0xca0] sm:$0xff] }
 0x2e3   :  { %7648 = vmatprep.subr.bf16.mxu0 %v13201_v37  ;;  %v12898_v37 = vcombine.low %v169_v17, %v177_v18  ;;  %v13297_v41 = vcombine.high %v568_v33, %v576_v34  ;;  %v13296_v49 = vcombine.low %v568_v33, %v576_v34  ;;  %v281_v34 = vld [vmem:[#allocation5 + $0x3a8] sm:$0xff] }
 0x2e4   :  { %7550 = vmatpush1.bf16.msra.mxu1 %v13902_v45  ;;  %v209_v45 = vld [vmem:[#allocation5 + $0x168] sm:$0xff] }
 0x2e5   :  { %7560 = vmatprep.subr.bf16.mxu1 %v13919_v47  ;;  %v592_v47 = vld [vmem:[#allocation5 + $0xd60] sm:$0xff]  ;;  %v12931_v50 = vcombine.high %v201_v44, %v209_v45 }
 0x2e6   :  { %7649 = vmatpush1.bf16.msra.mxu0 %v13200_v46  ;;  %v584_v46 = vld [vmem:[#allocation5 + $0xd20] sm:$0xff] }
 0x2e7   :  { %7650 = vmatprep.subr.bf16.mxu0 %v13217_v48  ;;  %7552 = vmatmul.mubr.bf16.vlgmr.msra.gmra.mrb[8].mxu1 %v16164_v52  ;;  %v12914_v48 = vcombine.low %v185_v30, %v193_v32  ;;  %v13313_v51 = vcombine.high %v584_v46, %v592_v47  ;;  %v13312_v3 = vcombine.low %v584_v46, %v592_v47  ;;  %v297_v47 = vld [vmem:[#allocation5 + $0x428] sm:$0xff] }
 0x2e8   :  { %7561 = vmatpush1.bf16.msra.mxu1 %v13918_v54  ;;  %7592 = vmatprep.mubr.bf16.mxu1 %v15977_v5  ;;  %v225_v54 = vld [vmem:[#allocation5 + $0x1e8] sm:$0xff] }
 0x2e9   :  { %7562 = vmatprep.subr.bf16.mxu1 %v13935_v58  ;;  %v608_v58 = vld [vmem:[#allocation5 + $0xde0] sm:$0xff]  ;;  %v12947_v62 = vcombine.high %v217_v53, %v225_v54 }
 0x2ea   :  { %7651 = vmatpush1.bf16.msra.mxu0 %v13216_v56  ;;  %v600_v56 = vld [vmem:[#allocation5 + $0xda0] sm:$0xff] }
 0x2eb   :  { %7652 = vmatprep.subr.bf16.mxu0 %v13233_v60  ;;  %v12930_v60 = vcombine.low %v201_v44, %v209_v45  ;;  %v13329_v63 = vcombine.high %v600_v56, %v608_v58  ;;  %v13328_v6 = vcombine.low %v600_v56, %v608_v58  ;;  %v313_v58 = vld [vmem:[#allocation5 + $0x4a8] sm:$0xff] }
 0x2ec   :  { %7563 = vmatpush1.bf16.msra.mxu1 %v13934_v1  ;;  %v241_v1 = vld [vmem:[#allocation5 + $0x268] sm:$0xff] }
 0x2ed   :  { %7564 = vmatprep.subr.bf16.mxu1 %v13951_v2  ;;  %v624_v2 = vld [vmem:[#allocation5 + $0xe60] sm:$0xff]  ;;  %v12963_v9 = vcombine.high %v233_v0, %v241_v1 }
 0x2ee   :  { %7653 = vmatpush1.bf16.msra.mxu0 %v13232_v7  ;;  %v616_v7 = vld [vmem:[#allocation5 + $0xe20] sm:$0xff] }
 0x2ef   :  { %7654 = vmatprep.subr.bf16.mxu0 %v13249_v4  ;;  %v12946_v4 = vcombine.low %v217_v53, %v225_v54  ;;  %v13345_v11 = vcombine.high %v616_v7, %v624_v2  ;;  %v13344_v17 = vcombine.low %v616_v7, %v624_v2  ;;  %v329_v2 = vld [vmem:[#allocation5 + $0x528] sm:$0xff] }
 0x2f0   :  { %7565 = vmatpush1.bf16.msra.mxu1 %v13950_v12  ;;  %v249_v12 = vld [vmem:[#allocation5 + $0x2a8] sm:$0xff] }
 0x2f1   :  { %13982 = vmatprep.subr.msk.bf16.mxu1 %vm6732_vm0, %v13967_v14  ;;  %v632_v14 = vld [vmem:[#allocation5 + $0xea0] sm:$0xff] }
 0x2f2   :  { %7655 = vmatpush1.bf16.msra.mxu0 %v13248_v13  ;;  %v257_v13 = vld [vmem:[#allocation5 + $0x2e8] sm:$0xff]  ;;  %v13361_v19 = vcombine.high %v632_v14, %v640_v15  ;;  %v13360_v30 = vcombine.low %v632_v14, %v640_v15 }
 0x2f3   :  { %7656 = vmatprep.subr.bf16.mxu0 %v13265_v40  ;;  %v12962_v40 = vcombine.low %v233_v0, %v241_v1  ;;  %v12979_v18 = vcombine.high %v249_v12, %v257_v13  ;;  %v345_v15 = vld [vmem:[#allocation5 + $0x5a8] sm:$0xff] }
 0x2f4   :  { %7567 = vmatpush1.bf16.msra.mxu1 %v6752_v24  ;;  %v648_v24 = vld [vmem:[#allocation5 + $0xf20] sm:$0xff] }
 0x2f5   :  { %7806 = vmatprep.subr.bf16.mxu1 %v12899_v42  ;;  %v656_v42 = vld [vmem:[#allocation5 + $0xf60] sm:$0xff] }
 0x2f6   :  { %7657 = vmatpush1.bf16.msra.mxu0 %v13264_v23  ;;  %v273_v23 = vld [vmem:[#allocation5 + $0x368] sm:$0xff]  ;;  %v13377_v33 = vcombine.high %v648_v24, %v656_v42  ;;  %v13376_v44 = vcombine.low %v648_v24, %v656_v42 }
 0x2f7   :  { %7658 = vmatprep.subr.bf16.mxu0 %v13281_v29  ;;  %13983 = vmatmul.mubr.msk.bf16.vlgmr.msra.gmra.mrb[8].mxu1 %vm6728_vm1, %v16172_v26  ;;  %v12978_v29 = vcombine.low %v249_v12, %v257_v13  ;;  %v12995_v32 = vcombine.high %v265_v22, %v273_v23  ;;  %v361_v42 = vld [vmem:[#allocation5 + $0x628] sm:$0xff] }
 0x2f8   :  { %7807 = vmatpush1.bf16.msra.mxu1 %v12898_v37  ;;  %7838 = vmatprep.mubr.bf16.mxu1 %v16140_v57  ;;  %v289_v37 = vld [vmem:[#allocation5 + $0x3e8] sm:$0xff] }
 0x2f9   :  { %7808 = vmatprep.subr.bf16.mxu1 %v12915_v39  ;;  %v672_v39 = vld [vmem:[#allocation5 + $0xfe0] sm:$0xff]  ;;  %v13011_v45 = vcombine.high %v281_v34, %v289_v37 }
 0x2fa   :  { %7659 = vmatpush1.bf16.msra.mxu0 %v13280_v38  ;;  %v664_v38 = vld [vmem:[#allocation5 + $0xfa0] sm:$0xff] }
 0x2fb   :  { %7660 = vmatprep.subr.bf16.mxu0 %v13297_v41  ;;  %v12994_v41 = vcombine.low %v265_v22, %v273_v23  ;;  %v13393_v46 = vcombine.high %v664_v38, %v672_v39  ;;  %v13392_v53 = vcombine.low %v664_v38, %v672_v39  ;;  %v377_v39 = vld [vmem:[#allocation5 + $0x6a8] sm:$0xff] }
 0x2fc   :  { %7809 = vmatpush1.bf16.msra.mxu1 %v12914_v48  ;;  %v305_v48 = vld [vmem:[#allocation5 + $0x468] sm:$0xff] }
 0x2fd   :  { %7810 = vmatprep.subr.bf16.mxu1 %v12931_v50  ;;  %v688_v50 = vld [vmem:[#allocation5 + $0x1060] sm:$0xff]  ;;  %v13027_v54 = vcombine.high %v297_v47, %v305_v48 }
 0x2fe   :  { %7661 = vmatpush1.bf16.msra.mxu0 %v13296_v49  ;;  %v680_v49 = vld [vmem:[#allocation5 + $0x1020] sm:$0xff] }
 0x2ff   :  { %7662 = vmatprep.subr.bf16.mxu0 %v13313_v51  ;;  %v13010_v51 = vcombine.low %v281_v34, %v289_v37  ;;  %v13409_v56 = vcombine.high %v680_v49, %v688_v50  ;;  %v13408_v0 = vcombine.low %v680_v49, %v688_v50  ;;  %v393_v50 = vld [vmem:[#allocation5 + $0x728] sm:$0xff] }
 0x300   :  { %7811 = vmatpush1.bf16.msra.mxu1 %v12930_v60  ;;  %v321_v60 = vld [vmem:[#allocation5 + $0x4e8] sm:$0xff] }
 0x301   :  { %7812 = vmatprep.subr.bf16.mxu1 %v12947_v62  ;;  %v704_v62 = vld [vmem:[#allocation5 + $0x10e0] sm:$0xff]  ;;  %v13043_v1 = vcombine.high %v313_v58, %v321_v60 }
 0x302   :  { %7663 = vmatpush1.bf16.msra.mxu0 %v13312_v3  ;;  %v696_v3 = vld [vmem:[#allocation5 + $0x10a0] sm:$0xff] }
 0x303   :  { %7664 = vmatprep.subr.bf16.mxu0 %v13329_v63  ;;  %v13026_v63 = vcombine.low %v297_v47, %v305_v48  ;;  %v13425_v7 = vcombine.high %v696_v3, %v704_v62  ;;  %v13424_v12 = vcombine.low %v696_v3, %v704_v62  ;;  %v409_v62 = vld [vmem:[#allocation5 + $0x7a8] sm:$0xff] }
 0x304   :  { %7813 = vmatpush1.bf16.msra.mxu1 %v12946_v4  ;;  %v337_v4 = vld [vmem:[#allocation5 + $0x568] sm:$0xff] }
 0x305   :  { %7814 = vmatprep.subr.bf16.mxu1 %v12963_v9  ;;  %v720_v9 = vld [vmem:[#allocation5 + $0x1160] sm:$0xff]  ;;  %v13059_v13 = vcombine.high %v329_v2, %v337_v4 }
 0x306   :  { %7665 = vmatpush1.bf16.msra.mxu0 %v13328_v6  ;;  %v712_v6 = vld [vmem:[#allocation5 + $0x1120] sm:$0xff] }
 0x307   :  { %7666 = vmatprep.subr.bf16.mxu0 %v13345_v11  ;;  %v13042_v11 = vcombine.low %v313_v58, %v321_v60  ;;  %v13441_v14 = vcombine.high %v712_v6, %v720_v9  ;;  %v13440_v22 = vcombine.low %v712_v6, %v720_v9  ;;  %v425_v9 = vld [vmem:[#allocation5 + $0x828] sm:$0xff] }
 0x308   :  { %7815 = vmatpush1.bf16.msra.mxu1 %v12962_v40  ;;  %v353_v40 = vld [vmem:[#allocation5 + $0x5e8] sm:$0xff] }
 0x309   :  { %7816 = vmatprep.subr.bf16.mxu1 %v12979_v18  ;;  %v736_v18 = vld [vmem:[#allocation5 + $0x11e0] sm:$0xff]  ;;  %v13075_v23 = vcombine.high %v345_v15, %v353_v40 }
 0x30a   :  { %7667 = vmatpush1.bf16.msra.mxu0 %v13344_v17  ;;  %v728_v17 = vld [vmem:[#allocation5 + $0x11a0] sm:$0xff] }
 0x30b   :  { %7668 = vmatprep.subr.bf16.mxu0 %v13361_v19  ;;  %v13058_v19 = vcombine.low %v329_v2, %v337_v4  ;;  %v13457_v24 = vcombine.high %v728_v17, %v736_v18  ;;  %v13456_v34 = vcombine.low %v728_v17, %v736_v18  ;;  %v441_v18 = vld [vmem:[#allocation5 + $0x8a8] sm:$0xff] }
 0x30c   :  { %7817 = vmatpush1.bf16.msra.mxu1 %v12978_v29  ;;  %v369_v29 = vld [vmem:[#allocation5 + $0x668] sm:$0xff] }
 0x30d   :  { %7818 = vmatprep.subr.bf16.mxu1 %v12995_v32  ;;  %v752_v32 = vld [vmem:[#allocation5 + $0x1260] sm:$0xff]  ;;  %v13091_v37 = vcombine.high %v361_v42, %v369_v29 }
 0x30e   :  { %7669 = vmatpush1.bf16.msra.mxu0 %v13360_v30  ;;  %v744_v30 = vld [vmem:[#allocation5 + $0x1220] sm:$0xff] }
 0x30f   :  { %7670 = vmatprep.subr.bf16.mxu0 %v13377_v33  ;;  %v13074_v33 = vcombine.low %v345_v15, %v353_v40  ;;  %v13473_v38 = vcombine.high %v744_v30, %v752_v32  ;;  %v13472_v47 = vcombine.low %v744_v30, %v752_v32  ;;  %v457_v32 = vld [vmem:[#allocation5 + $0x928] sm:$0xff] }
 0x310   :  { %7819 = vmatpush1.bf16.msra.mxu1 %v12994_v41  ;;  %v385_v41 = vld [vmem:[#allocation5 + $0x6e8] sm:$0xff] }
 0x311   :  { %7820 = vmatprep.subr.bf16.mxu1 %v13011_v45  ;;  %v768_v45 = vld [vmem:[#allocation5 + $0x12e0] sm:$0xff]  ;;  %v13107_v48 = vcombine.high %v377_v39, %v385_v41 }
 0x312   :  { %7671 = vmatpush1.bf16.msra.mxu0 %v13376_v44  ;;  %v760_v44 = vld [vmem:[#allocation5 + $0x12a0] sm:$0xff] }
 0x313   :  { %7672 = vmatprep.subr.bf16.mxu0 %v13393_v46  ;;  %v13090_v46 = vcombine.low %v361_v42, %v369_v29  ;;  %v13489_v49 = vcombine.high %v760_v44, %v768_v45  ;;  %v13488_v58 = vcombine.low %v760_v44, %v768_v45  ;;  %v473_v45 = vld [vmem:[#allocation5 + $0x9a8] sm:$0xff] }
 0x314   :  { %7821 = vmatpush1.bf16.msra.mxu1 %v13010_v51  ;;  %v401_v51 = vld [vmem:[#allocation5 + $0x768] sm:$0xff] }
 0x315   :  { %7822 = vmatprep.subr.bf16.mxu1 %v13027_v54  ;;  %v784_v54 = vld [vmem:[#allocation5 + $0x1360] sm:$0xff]  ;;  %v13123_v60 = vcombine.high %v393_v50, %v401_v51 }
 0x316   :  { %7673 = vmatpush1.bf16.msra.mxu0 %v13392_v53  ;;  %v776_v53 = vld [vmem:[#allocation5 + $0x1320] sm:$0xff] }
 0x317   :  { %7683 = vmatprep.subr.bf16.mxu0 %v13409_v56  ;;  %v13106_v56 = vcombine.low %v377_v39, %v385_v41  ;;  %v13505_v3 = vcombine.high %v776_v53, %v784_v54  ;;  %v13504_v2 = vcombine.low %v776_v53, %v784_v54  ;;  %v489_v54 = vld [vmem:[#allocation5 + $0xa28] sm:$0xff] }
 0x318   :  { %7823 = vmatpush1.bf16.msra.mxu1 %v13026_v63  ;;  %v417_v63 = vld [vmem:[#allocation5 + $0x7e8] sm:$0xff] }
 0x319   :  { %7675 = vmatmul.mubr.bf16.vlgmr.msra.gmra.mrb[12].mxu0 %v16148_v21  ;;  %7824 = vmatprep.subr.bf16.mxu1 %v13043_v1  ;;  %v800_v1 = vld [vmem:[#allocation5 + $0x13e0] sm:$0xff]  ;;  %v13139_v4 = vcombine.high %v409_v62, %v417_v63 }
 0x31a   :  { %7684 = vmatpush1.bf16.msra.mxu0 %v13408_v0  ;;  %7715 = vmatprep.mubr.bf16.mxu0 %v16150_v27  ;;  %v792_v0 = vld [vmem:[#allocation5 + $0x13a0] sm:$0xff] }
 0x31b   :  { %7685 = vmatprep.subr.bf16.mxu0 %v13425_v7  ;;  %v13122_v7 = vcombine.low %v393_v50, %v401_v51  ;;  %v13521_v6 = vcombine.high %v792_v0, %v800_v1  ;;  %v13520_v15 = vcombine.low %v792_v0, %v800_v1  ;;  %v505_v1 = vld [vmem:[#allocation5 + $0xaa8] sm:$0xff] }
 0x31c   :  { %7825 = vmatpush1.bf16.msra.mxu1 %v13042_v11  ;;  %v433_v11 = vld [vmem:[#allocation5 + $0x868] sm:$0xff] }
 0x31d   :  { %7826 = vmatprep.subr.bf16.mxu1 %v13059_v13  ;;  %v816_v13 = vld [vmem:[#allocation5 + $0x1460] sm:$0xff]  ;;  %v13155_v40 = vcombine.high %v425_v9, %v433_v11 }
 0x31e   :  { %7686 = vmatpush1.bf16.msra.mxu0 %v13424_v12  ;;  %v808_v12 = vld [vmem:[#allocation5 + $0x1420] sm:$0xff] }
 0x31f   :  { %7687 = vmatprep.subr.bf16.mxu0 %v13441_v14  ;;  %v13138_v14 = vcombine.low %v409_v62, %v417_v63  ;;  %v13537_v17 = vcombine.high %v808_v12, %v816_v13  ;;  %v13536_v42 = vcombine.low %v808_v12, %v816_v13  ;;  %v521_v13 = vld [vmem:[#allocation5 + $0xb28] sm:$0xff] }
 0x320   :  { %7827 = vmatpush1.bf16.msra.mxu1 %v13058_v19  ;;  %v449_v19 = vld [vmem:[#allocation5 + $0x8e8] sm:$0xff] }
 0x321   :  { %7828 = vmatprep.subr.bf16.mxu1 %v13075_v23  ;;  %v832_v23 = vld [vmem:[#allocation5 + $0x14e0] sm:$0xff]  ;;  %v13171_v29 = vcombine.high %v441_v18, %v449_v19 }
 0x322   :  { %7688 = vmatpush1.bf16.msra.mxu0 %v13440_v22  ;;  %v824_v22 = vld [vmem:[#allocation5 + $0x14a0] sm:$0xff] }
 0x323   :  { %7689 = vmatprep.subr.bf16.mxu0 %v13457_v24  ;;  %v13154_v24 = vcombine.low %v425_v9, %v433_v11  ;;  %v13553_v30 = vcombine.high %v824_v22, %v832_v23  ;;  %v13552_v39 = vcombine.low %v824_v22, %v832_v23  ;;  %v537_v23 = vld [vmem:[#allocation5 + $0xba8] sm:$0xff] }
 0x324   :  { %7829 = vmatpush1.bf16.msra.mxu1 %v13074_v33  ;;  %v465_v33 = vld [vmem:[#allocation5 + $0x968] sm:$0xff] }
 0x325   :  { %7830 = vmatprep.subr.bf16.mxu1 %v13091_v37  ;;  %v848_v37 = vld [vmem:[#allocation5 + $0x1560] sm:$0xff]  ;;  %v13187_v41 = vcombine.high %v457_v32, %v465_v33 }
 0x326   :  { %7690 = vmatpush1.bf16.msra.mxu0 %v13456_v34  ;;  %v840_v34 = vld [vmem:[#allocation5 + $0x1520] sm:$0xff] }
 0x327   :  { %7691 = vmatprep.subr.bf16.mxu0 %v13473_v38  ;;  %v13170_v38 = vcombine.low %v441_v18, %v449_v19  ;;  %v13569_v44 = vcombine.high %v840_v34, %v848_v37  ;;  %v13568_v50 = vcombine.low %v840_v34, %v848_v37  ;;  %v553_v37 = vld [vmem:[#allocation5 + $0xc28] sm:$0xff] }
 0x328   :  { %7831 = vmatpush1.bf16.msra.mxu1 %v13090_v46  ;;  %v481_v46 = vld [vmem:[#allocation5 + $0x9e8] sm:$0xff] }
 0x329   :  { %7832 = vmatprep.subr.bf16.mxu1 %v13107_v48  ;;  %v864_v48 = vld [vmem:[#allocation5 + $0x15e0] sm:$0xff]  ;;  %v13203_v51 = vcombine.high %v473_v45, %v481_v46 }
 0x32a   :  { %7692 = vmatpush1.bf16.msra.mxu0 %v13472_v47  ;;  %v856_v47 = vld [vmem:[#allocation5 + $0x15a0] sm:$0xff] }
 0x32b   :  { %7693 = vmatprep.subr.bf16.mxu0 %v13489_v49  ;;  %v13186_v49 = vcombine.low %v457_v32, %v465_v33  ;;  %v13585_v53 = vcombine.high %v856_v47, %v864_v48  ;;  %v13584_v62 = vcombine.low %v856_v47, %v864_v48  ;;  %v569_v48 = vld [vmem:[#allocation5 + $0xca8] sm:$0xff] }
 0x32c   :  { %7833 = vmatpush1.bf16.msra.mxu1 %v13106_v56  ;;  %v497_v56 = vld [vmem:[#allocation5 + $0xa68] sm:$0xff] }
 0x32d   :  { %7834 = vmatprep.subr.bf16.mxu1 %v13123_v60  ;;  %v880_v60 = vld [vmem:[#allocation5 + $0x1660] sm:$0xff]  ;;  %v13219_v63 = vcombine.high %v489_v54, %v497_v56 }
 0x32e   :  { %7694 = vmatpush1.bf16.msra.mxu0 %v13488_v58  ;;  %v872_v58 = vld [vmem:[#allocation5 + $0x1620] sm:$0xff] }
 0x32f   :  { %7695 = vmatprep.subr.bf16.mxu0 %v13505_v3  ;;  %v13202_v3 = vcombine.low %v473_v45, %v481_v46  ;;  %v13601_v0 = vcombine.high %v872_v58, %v880_v60  ;;  %v13600_v9 = vcombine.low %v872_v58, %v880_v60  ;;  %v585_v60 = vld [vmem:[#allocation5 + $0xd28] sm:$0xff] }
 0x330   :  { %7835 = vmatpush1.bf16.msra.mxu1 %v13122_v7  ;;  %v513_v7 = vld [vmem:[#allocation5 + $0xae8] sm:$0xff] }
 0x331   :  { %7836 = vmatprep.subr.bf16.mxu1 %v13139_v4  ;;  %v896_v4 = vld [vmem:[#allocation5 + $0x16e0] sm:$0xff]  ;;  %v13235_v11 = vcombine.high %v505_v1, %v513_v7 }
 0x332   :  { %7696 = vmatpush1.bf16.msra.mxu0 %v13504_v2  ;;  %v888_v2 = vld [vmem:[#allocation5 + $0x16a0] sm:$0xff] }
 0x333   :  { %7697 = vmatprep.subr.bf16.mxu0 %v13521_v6  ;;  %v13218_v6 = vcombine.low %v489_v54, %v497_v56  ;;  %v13617_v12 = vcombine.high %v888_v2, %v896_v4  ;;  %v13616_v18 = vcombine.low %v888_v2, %v896_v4  ;;  %v601_v4 = vld [vmem:[#allocation5 + $0xda8] sm:$0xff] }
 0x334   :  { %7837 = vmatpush1.bf16.msra.mxu1 %v13138_v14  ;;  %v529_v14 = vld [vmem:[#allocation5 + $0xb68] sm:$0xff] }
 0x335   :  { %7847 = vmatprep.subr.bf16.mxu1 %v13155_v40  ;;  %v912_v40 = vld [vmem:[#allocation5 + $0x1760] sm:$0xff]  ;;  %v13251_v19 = vcombine.high %v521_v13, %v529_v14 }
 0x336   :  { %7698 = vmatpush1.bf16.msra.mxu0 %v13520_v15  ;;  %v904_v15 = vld [vmem:[#allocation5 + $0x1720] sm:$0xff] }
 0x337   :  { %7699 = vmatprep.subr.bf16.mxu0 %v13537_v17  ;;  %7839 = vmatmul.mubr.bf16.vlgmr.msra.gmra.mrb[12].mxu1 %v16146_v16  ;;  %v13234_v17 = vcombine.low %v505_v1, %v513_v7  ;;  %v13633_v22 = vcombine.high %v904_v15, %v912_v40  ;;  %v13632_v32 = vcombine.low %v904_v15, %v912_v40  ;;  %v617_v40 = vld [vmem:[#allocation5 + $0xe28] sm:$0xff] }
 0x338   :  { %7848 = vmatpush1.bf16.msra.mxu1 %v13154_v24  ;;  %7879 = vmatprep.mubr.bf16.mxu1 %v16142_v61  ;;  %v545_v24 = vld [vmem:[#allocation5 + $0xbe8] sm:$0xff] }
 0x339   :  { %7849 = vmatprep.subr.bf16.mxu1 %v13171_v29  ;;  %v928_v29 = vld [vmem:[#allocation5 + $0x17e0] sm:$0xff]  ;;  %v13267_v33 = vcombine.high %v537_v23, %v545_v24 }
 0x33a   :  { %7700 = vmatpush1.bf16.msra.mxu0 %v13536_v42  ;;  %v920_v42 = vld [vmem:[#allocation5 + $0x17a0] sm:$0xff] }
 0x33b   :  { %7701 = vmatprep.subr.bf16.mxu0 %v13553_v30  ;;  %v13250_v30 = vcombine.low %v521_v13, %v529_v14  ;;  %v13649_v34 = vcombine.high %v920_v42, %v928_v29  ;;  %v13648_v45 = vcombine.low %v920_v42, %v928_v29  ;;  %v633_v29 = vld [vmem:[#allocation5 + $0xea8] sm:$0xff] }
 0x33c   :  { %7850 = vmatpush1.bf16.msra.mxu1 %v13170_v38  ;;  %v561_v38 = vld [vmem:[#allocation5 + $0xc68] sm:$0xff] }
 0x33d   :  { %7851 = vmatprep.subr.bf16.mxu1 %v13187_v41  ;;  %v944_v41 = vld [vmem:[#allocation5 + $0x1860] sm:$0xff]  ;;  %v13283_v46 = vcombine.high %v553_v37, %v561_v38 }
 0x33e   :  { %7702 = vmatpush1.bf16.msra.mxu0 %v13552_v39  ;;  %v936_v39 = vld [vmem:[#allocation5 + $0x1820] sm:$0xff] }
 0x33f   :  { %7703 = vmatprep.subr.bf16.mxu0 %v13569_v44  ;;  %v13266_v44 = vcombine.low %v537_v23, %v545_v24  ;;  %v13665_v47 = vcombine.high %v936_v39, %v944_v41  ;;  %v13664_v54 = vcombine.low %v936_v39, %v944_v41  ;;  %v649_v41 = vld [vmem:[#allocation5 + $0xf28] sm:$0xff] }
 0x340   :  { %7852 = vmatpush1.bf16.msra.mxu1 %v13186_v49  ;;  %v577_v49 = vld [vmem:[#allocation5 + $0xce8] sm:$0xff] }
 0x341   :  { %7853 = vmatprep.subr.bf16.mxu1 %v13203_v51  ;;  %v960_v51 = vld [vmem:[#allocation5 + $0x18e0] sm:$0xff]  ;;  %v13299_v56 = vcombine.high %v569_v48, %v577_v49 }
 0x342   :  { %7704 = vmatpush1.bf16.msra.mxu0 %v13568_v50  ;;  %v952_v50 = vld [vmem:[#allocation5 + $0x18a0] sm:$0xff] }
 0x343   :  { %7705 = vmatprep.subr.bf16.mxu0 %v13585_v53  ;;  %v13282_v53 = vcombine.low %v553_v37, %v561_v38  ;;  %v13681_v58 = vcombine.high %v952_v50, %v960_v51  ;;  %v13680_v1 = vcombine.low %v952_v50, %v960_v51  ;;  %v665_v51 = vld [vmem:[#allocation5 + $0xfa8] sm:$0xff] }
 0x344   :  { %7854 = vmatpush1.bf16.msra.mxu1 %v13202_v3  ;;  %v593_v3 = vld [vmem:[#allocation5 + $0xd68] sm:$0xff] }
 0x345   :  { %7855 = vmatprep.subr.bf16.mxu1 %v13219_v63  ;;  %v976_v63 = vld [vmem:[#allocation5 + $0x1960] sm:$0xff]  ;;  %v13315_v7 = vcombine.high %v585_v60, %v593_v3 }
 0x346   :  { %7706 = vmatpush1.bf16.msra.mxu0 %v13584_v62  ;;  %v968_v62 = vld [vmem:[#allocation5 + $0x1920] sm:$0xff] }
 0x347   :  { %7707 = vmatprep.subr.bf16.mxu0 %v13601_v0  ;;  %v13298_v0 = vcombine.low %v569_v48, %v577_v49  ;;  %v13697_v2 = vcombine.high %v968_v62, %v976_v63  ;;  %v13696_v13 = vcombine.low %v968_v62, %v976_v63 }
 0x348   :  { %7856 = vmatpush1.bf16.msra.mxu1 %v13218_v6  ;;  %v609_v6 = vld [vmem:[#allocation5 + $0xde8] sm:$0xff] }
 0x349   :  { %7857 = vmatprep.subr.bf16.mxu1 %v13235_v11  ;;  %v992_v11 = vld [vmem:[#allocation5 + $0x19e0] sm:$0xff]  ;;  %v13331_v14 = vcombine.high %v601_v4, %v609_v6 }
 0x34a   :  { %7708 = vmatpush1.bf16.msra.mxu0 %v13600_v9  ;;  %v984_v9 = vld [vmem:[#allocation5 + $0x19a0] sm:$0xff] }
 0x34b   :  { %7709 = vmatprep.subr.bf16.mxu0 %v13617_v12  ;;  %v13314_v12 = vcombine.low %v585_v60, %v593_v3  ;;  %v13713_v15 = vcombine.high %v984_v9, %v992_v11  ;;  %v13712_v23 = vcombine.low %v984_v9, %v992_v11  ;;  %v1072_v9 = vld [vmem:[#allocation5 + $0x1c60] sm:$0xff] }
 0x34c   :  { %7858 = vmatpush1.bf16.msra.mxu1 %v13234_v17  ;;  %v625_v17 = vld [vmem:[#allocation5 + $0xe68] sm:$0xff] }
 0x34d   :  { %7859 = vmatprep.subr.bf16.mxu1 %v13251_v19  ;;  %v1008_v19 = vld [vmem:[#allocation5 + $0x1a60] sm:$0xff]  ;;  %v13347_v24 = vcombine.high %v617_v40, %v625_v17 }
 0x34e   :  { %7710 = vmatpush1.bf16.msra.mxu0 %v13616_v18  ;;  %v1000_v18 = vld [vmem:[#allocation5 + $0x1a20] sm:$0xff] }
 0x34f   :  { %7711 = vmatprep.subr.bf16.mxu0 %v13633_v22  ;;  %v13330_v22 = vcombine.low %v601_v4, %v609_v6  ;;  %v13729_v42 = vcombine.high %v1000_v18, %v1008_v19  ;;  %v13728_v37 = vcombine.low %v1000_v18, %v1008_v19  ;;  %v689_v4 = vld [vmem:[#allocation5 + $0x1068] sm:$0xff]  ;;  %v1064_v6 = vld [vmem:[#allocation5 + $0x1c20] sm:$0xff] }
 0x350   :  { %7860 = vmatpush1.bf16.msra.mxu1 %v13250_v30  ;;  %v641_v30 = vld [vmem:[#allocation5 + $0xee8] sm:$0xff]  ;;  %v1088_v18 = vld [vmem:[#allocation5 + $0x1ce0] sm:$0xff] }
 0x351   :  { %7861 = vmatprep.subr.bf16.mxu1 %v13267_v33  ;;  %v1024_v33 = vld [vmem:[#allocation5 + $0x1ae0] sm:$0xff]  ;;  %v13363_v38 = vcombine.high %v633_v29, %v641_v30 }
 0x352   :  { %7712 = vmatpush1.bf16.msra.mxu0 %v13632_v32  ;;  %v1016_v32 = vld [vmem:[#allocation5 + $0x1aa0] sm:$0xff] }
 0x353   :  { %7713 = vmatprep.subr.bf16.mxu0 %v13649_v34  ;;  %v13346_v34 = vcombine.low %v617_v40, %v625_v17  ;;  %v13745_v39 = vcombine.high %v1016_v32, %v1024_v33  ;;  %v13744_v48 = vcombine.low %v1016_v32, %v1024_v33  ;;  %v705_v40 = vld [vmem:[#allocation5 + $0x10e8] sm:$0xff]  ;;  %v1080_v17 = vld [vmem:[#allocation5 + $0x1ca0] sm:$0xff] }
 0x354   :  { %7862 = vmatpush1.bf16.msra.mxu1 %v13266_v44  ;;  %v657_v44 = vld [vmem:[#allocation5 + $0xf68] sm:$0xff]  ;;  %v1104_v32 = vld [vmem:[#allocation5 + $0x1d60] sm:$0xff] }
 0x355   :  { %7863 = vmatprep.subr.bf16.mxu1 %v13283_v46  ;;  %v1040_v46 = vld [vmem:[#allocation5 + $0x1b60] sm:$0xff]  ;;  %v13379_v49 = vcombine.high %v649_v41, %v657_v44  ;;  %v13378_v3 = vcombine.low %v649_v41, %v657_v44  ;;  %v737_v41 = vld [vmem:[#allocation5 + $0x11e8] sm:$0xff] }
 0x356   :  { %7714 = vmatpush1.bf16.msra.mxu0 %v13648_v45  ;;  %v1032_v45 = vld [vmem:[#allocation5 + $0x1b20] sm:$0xff] }
 0x357   :  { %7724 = vmatprep.subr.bf16.mxu0 %v13665_v47  ;;  %v13362_v47 = vcombine.low %v633_v29, %v641_v30  ;;  %v13761_v50 = vcombine.high %v1032_v45, %v1040_v46  ;;  %v13760_v63 = vcombine.low %v1032_v45, %v1040_v46  ;;  %v721_v29 = vld [vmem:[#allocation5 + $0x1168] sm:$0xff]  ;;  %v1096_v30 = vld [vmem:[#allocation5 + $0x1d20] sm:$0xff] }
 0x358   :  { %7864 = vmatpush1.bf16.msra.mxu1 %v13282_v53  ;;  %v673_v53 = vld [vmem:[#allocation5 + $0xfe8] sm:$0xff]  ;;  %v1112_v44 = vld [vmem:[#allocation5 + $0x1da0] sm:$0xff] }
 0x359   :  { %7716 = vmatmul.mubr.bf16.vlgmr.msra.gmra.mrb[12].mxu0 %v16156_v35  ;;  %7865 = vmatprep.subr.bf16.mxu1 %v13299_v56  ;;  %v1048_v56 = vld [vmem:[#allocation5 + $0x1ba0] sm:$0xff]  ;;  %v13394_v11 = vcombine.low %v665_v51, %v673_v53 }
 0x35a   :  { %7725 = vmatpush1.bf16.msra.mxu0 %v13664_v54  ;;  %7756 = vmatprep.mubr.bf16.mxu0 %v16158_v43  ;;  %v1120_v45 = vld [vmem:[#allocation5 + $0x1de0] sm:$0xff] }
 0x35b   :  { %7726 = vmatprep.subr.bf16.mxu0 %v13681_v58  ;;  %v1056_v58 = vld [vmem:[#allocation5 + $0x1be0] sm:$0xff] }
 0x35c   :  { %7866 = vmatpush1.bf16.msra.mxu1 %v13298_v0  ;;  %v13395_v0 = vcombine.high %v665_v51, %v673_v53  ;;  %v753_v51 = vld [vmem:[#allocation5 + $0x1268] sm:$0xff]  ;;  %v1128_v53 = vld [vmem:[#allocation5 + $0x1e20] sm:$0xff] }
 0x35d   :  { %7867 = vmatprep.subr.bf16.mxu1 %v13315_v7  ;;  %v13777_v7 = vcombine.high %v1048_v56, %v1056_v58 }
 0x35e   :  { %7727 = vmatpush1.bf16.msra.mxu0 %v13680_v1 }
 0x35f   :  { %7728 = vmatprep.subr.bf16.mxu0 %v13697_v2  ;;  %v681_v2 = vld [vmem:[#allocation5 + $0x1028] sm:$0xff] }
 0x360   :  { %7868 = vmatpush1.bf16.msra.mxu1 %v13314_v12  ;;  %v13776_v12 = vcombine.low %v1048_v56, %v1056_v58  ;;  %v13410_v19 = vcombine.low %v681_v2, %v689_v4  ;;  %v1136_v56 = vld [vmem:[#allocation5 + $0x1e60] sm:$0xff] }
 0x361   :  { %7869 = vmatprep.subr.bf16.mxu1 %v13331_v14  ;;  %v13793_v14 = vcombine.high %v1064_v6, %v1072_v9 }
 0x362   :  { %7729 = vmatpush1.bf16.msra.mxu0 %v13696_v13  ;;  %v13411_v13 = vcombine.high %v681_v2, %v689_v4  ;;  %v1152_v2 = vld [vmem:[#allocation5 + $0x1ee0] sm:$0xff] }
 0x363   :  { %7730 = vmatprep.subr.bf16.mxu0 %v13713_v15  ;;  %v697_v15 = vld [vmem:[#allocation5 + $0x10a8] sm:$0xff] }
 0x364   :  { %7870 = vmatpush1.bf16.msra.mxu1 %v13330_v22  ;;  %v13792_v22 = vcombine.low %v1064_v6, %v1072_v9  ;;  %v13426_v33 = vcombine.low %v697_v15, %v705_v40  ;;  %v13856_v6 = vcombine.low %v1128_v53, %v1136_v56 }
 0x365   :  { %7871 = vmatprep.subr.bf16.mxu1 %v13347_v24  ;;  %v13809_v24 = vcombine.high %v1080_v17, %v1088_v18 }
 0x366   :  { %7731 = vmatpush1.bf16.msra.mxu0 %v13712_v23  ;;  %v13427_v23 = vcombine.high %v697_v15, %v705_v40  ;;  %v1168_v15 = vld [vmem:[#allocation5 + $0x1f60] sm:$0xff] }
 0x367   :  { %7732 = vmatprep.subr.bf16.mxu0 %v13729_v42  ;;  %v713_v42 = vld [vmem:[#allocation5 + $0x1128] sm:$0xff] }
 0x368   :  { %7872 = vmatpush1.bf16.msra.mxu1 %v13346_v34  ;;  %v13808_v34 = vcombine.low %v1080_v17, %v1088_v18  ;;  %v13442_v46 = vcombine.low %v713_v42, %v721_v29 }
 0x369   :  { %7873 = vmatprep.subr.bf16.mxu1 %v13363_v38  ;;  %v13825_v38 = vcombine.high %v1096_v30, %v1104_v32 }
 0x36a   :  { %7733 = vmatpush1.bf16.msra.mxu0 %v13728_v37  ;;  %v13443_v37 = vcombine.high %v713_v42, %v721_v29  ;;  %v1184_v42 = vld [vmem:[#allocation5 + $0x1fe0] sm:$0xff] }
 0x36b   :  { %7734 = vmatprep.subr.bf16.mxu0 %v13745_v39  ;;  %v729_v39 = vld [vmem:[#allocation5 + $0x11a8] sm:$0xff] }
 0x36c   :  { %v16264_v54 = vpop.f32.mrb[8].mxu0  ;;  %7874 = vmatpush1.bf16.msra.mxu1 %v13362_v47  ;;  %v13824_v47 = vcombine.low %v1096_v30, %v1104_v32  ;;  %v13458_v58 = vcombine.low %v729_v39, %v737_v41 }
 0x36d   :  { %v16266_v60 = vpop.f32.mrb[9].mxu0  ;;  %7875 = vmatprep.subr.bf16.mxu1 %v13379_v49  ;;  %v13841_v49 = vcombine.high %v1112_v44, %v1120_v45 }
 0x36e   :  { %v7393_v62 = vpop.f32.mrb[10].mxu0  ;;  %7735 = vmatpush1.bf16.msra.mxu0 %v13744_v48  ;;  %v13459_v48 = vcombine.high %v729_v39, %v737_v41  ;;  %v1200_v39 = vld [vmem:[#allocation5 + $0x2060] sm:$0xff] }
 0x36f   :  { %v7394_v1 = vpop.f32.mrb[11].mxu0  ;;  %7736 = vmatprep.subr.bf16.mxu0 %v13761_v50  ;;  %v745_v50 = vld [vmem:[#allocation5 + $0x1228] sm:$0xff] }
 0x370   :  { %7876 = vmatpush1.bf16.msra.mxu1 %v13378_v3  ;;  %v13840_v3 = vcombine.low %v1112_v44, %v1120_v45  ;;  %v13475_v62 = vcombine.high %v745_v50, %v753_v51  ;;  %v769_v1 = vld [vmem:[#allocation5 + $0x12e8] sm:$0xff]  ;;  %v13474_v4 = vcombine.low %v745_v50, %v753_v51  ;;  %v1216_v50 = vld [vmem:[#allocation5 + $0x20e0] sm:$0xff] }
 0x371   :  { %7877 = vmatprep.subr.bf16.mxu1 %v13395_v0  ;;  %v761_v0 = vld [vmem:[#allocation5 + $0x12a8] sm:$0xff] }
 0x372   :  { %7737 = vmatpush1.bf16.msra.mxu0 %v13760_v63  ;;  %v13857_v63 = vcombine.high %v1128_v53, %v1136_v56  ;;  %v13491_v9 = vcombine.high %v761_v0, %v769_v1  ;;  %v13490_v40 = vcombine.low %v761_v0, %v769_v1  ;;  %v1232_v0 = vld [vmem:[#allocation5 + $0x2160] sm:$0xff] }
 0x373   :  { %7738 = vmatprep.subr.bf16.mxu0 %v13777_v7  ;;  %v1144_v7 = vld [vmem:[#allocation5 + $0x1ea0] sm:$0xff] }
 0x374   :  { %7878 = vmatpush1.bf16.msra.mxu1 %v13394_v11  ;;  %v13873_v11 = vcombine.high %v1144_v7, %v1152_v2  ;;  %v13872_v17 = vcombine.low %v1144_v7, %v1152_v2 }
 0x375   :  { %7888 = vmatprep.subr.bf16.mxu1 %v13411_v13  ;;  %v785_v13 = vld [vmem:[#allocation5 + $0x1368] sm:$0xff] }
 0x376   :  { %7739 = vmatpush1.bf16.msra.mxu0 %v13776_v12  ;;  %v777_v12 = vld [vmem:[#allocation5 + $0x1328] sm:$0xff] }
 0x377   :  { %7740 = vmatprep.subr.bf16.mxu0 %v13793_v14  ;;  %7880 = vmatmul.mubr.bf16.vlgmr.msra.gmra.mrb[12].mxu1 %v16148_v21  ;;  %v1160_v14 = vld [vmem:[#allocation5 + $0x1f20] sm:$0xff]  ;;  %v13507_v18 = vcombine.high %v777_v12, %v785_v13  ;;  %v13506_v29 = vcombine.low %v777_v12, %v785_v13 }
 0x378   :  { %7889 = vmatpush1.bf16.msra.mxu1 %v13410_v19  ;;  %7920 = vmatprep.mubr.bf16.mxu1 %v16150_v27  ;;  %v13889_v19 = vcombine.high %v1160_v14, %v1168_v15  ;;  %v13888_v30 = vcombine.low %v1160_v14, %v1168_v15 }
 0x379   :  { %7890 = vmatprep.subr.bf16.mxu1 %v13427_v23  ;;  %v801_v23 = vld [vmem:[#allocation5 + $0x13e8] sm:$0xff] }
 0x37a   :  { %7741 = vmatpush1.bf16.msra.mxu0 %v13792_v22  ;;  %v793_v22 = vld [vmem:[#allocation5 + $0x13a8] sm:$0xff] }
 0x37b   :  { %7742 = vmatprep.subr.bf16.mxu0 %v13809_v24  ;;  %v1176_v24 = vld [vmem:[#allocation5 + $0x1fa0] sm:$0xff]  ;;  %v13523_v32 = vcombine.high %v793_v22, %v801_v23  ;;  %v13522_v41 = vcombine.low %v793_v22, %v801_v23  ;;  %v178_v22 = vld [vmem:[#allocation5 + $0x70] sm:$0xff] }
 0x37c   :  { %7891 = vmatpush1.bf16.msra.mxu1 %v13426_v33  ;;  %v13905_v33 = vcombine.high %v1176_v24, %v1184_v42  ;;  %v13904_v44 = vcombine.low %v1176_v24, %v1184_v42 }
 0x37d   :  { %7892 = vmatprep.subr.bf16.mxu1 %v13443_v37  ;;  %v817_v37 = vld [vmem:[#allocation5 + $0x1468] sm:$0xff] }
 0x37e   :  { %7743 = vmatpush1.bf16.msra.mxu0 %v13808_v34  ;;  %v809_v34 = vld [vmem:[#allocation5 + $0x1428] sm:$0xff] }
 0x37f   :  { %7744 = vmatprep.subr.bf16.mxu0 %v13825_v38  ;;  %v1192_v38 = vld [vmem:[#allocation5 + $0x2020] sm:$0xff]  ;;  %v13539_v45 = vcombine.high %v809_v34, %v817_v37  ;;  %v13538_v51 = vcombine.low %v809_v34, %v817_v37  ;;  %v194_v34 = vld [vmem:[#allocation5 + $0xf0] sm:$0xff] }
 0x380   :  { %7893 = vmatpush1.bf16.msra.mxu1 %v13442_v46  ;;  %v13921_v46 = vcombine.high %v1192_v38, %v1200_v39  ;;  %v13920_v53 = vcombine.low %v1192_v38, %v1200_v39 }
 0x381   :  { %7894 = vmatprep.subr.bf16.mxu1 %v13459_v48  ;;  %v833_v48 = vld [vmem:[#allocation5 + $0x14e8] sm:$0xff] }
 0x382   :  { %7745 = vmatpush1.bf16.msra.mxu0 %v13824_v47  ;;  %v825_v47 = vld [vmem:[#allocation5 + $0x14a8] sm:$0xff] }
 0x383   :  { %7746 = vmatprep.subr.bf16.mxu0 %v13841_v49  ;;  %v1208_v49 = vld [vmem:[#allocation5 + $0x20a0] sm:$0xff]  ;;  %v13555_v56 = vcombine.high %v825_v47, %v833_v48  ;;  %v13554_v1 = vcombine.low %v825_v47, %v833_v48  ;;  %v210_v47 = vld [vmem:[#allocation5 + $0x170] sm:$0xff] }
 0x384   :  { %7895 = vmatpush1.bf16.msra.mxu1 %v13458_v58  ;;  %v13937_v58 = vcombine.high %v1208_v49, %v1216_v50  ;;  %v13936_v7 = vcombine.low %v1208_v49, %v1216_v50 }
 0x385   :  { %7896 = vmatprep.subr.bf16.mxu1 %v13475_v62  ;;  %v849_v62 = vld [vmem:[#allocation5 + $0x1568] sm:$0xff] }
 0x386   :  { %7747 = vmatpush1.bf16.msra.mxu0 %v13840_v3  ;;  %v841_v3 = vld [vmem:[#allocation5 + $0x1528] sm:$0xff] }
 0x387   :  { %7748 = vmatprep.subr.bf16.mxu0 %v13857_v63  ;;  %v1224_v63 = vld [vmem:[#allocation5 + $0x2120] sm:$0xff]  ;;  %v13571_v2 = vcombine.high %v841_v3, %v849_v62  ;;  %v13570_v12 = vcombine.low %v841_v3, %v849_v62  ;;  %v226_v3 = vld [vmem:[#allocation5 + $0x1f0] sm:$0xff] }
 0x388   :  { %7897 = vmatpush1.bf16.msra.mxu1 %v13474_v4  ;;  %v13953_v4 = vcombine.high %v1224_v63, %v1232_v0  ;;  %v13952_v13 = vcombine.low %v1224_v63, %v1232_v0 }
 0x389   :  { %7898 = vmatprep.subr.bf16.mxu1 %v13491_v9  ;;  %v865_v9 = vld [vmem:[#allocation5 + $0x15e8] sm:$0xff] }
 0x38a   :  { %7749 = vmatpush1.bf16.msra.mxu0 %v13856_v6  ;;  %v857_v6 = vld [vmem:[#allocation5 + $0x15a8] sm:$0xff] }
 0x38b   :  { %7750 = vmatprep.subr.bf16.mxu0 %v13873_v11  ;;  %v1240_v11 = vld [vmem:[#allocation5 + $0x21a0] sm:$0xff]  ;;  %v13587_v14 = vcombine.high %v857_v6, %v865_v9  ;;  %v13586_v23 = vcombine.low %v857_v6, %v865_v9  ;;  %v242_v6 = vld [vmem:[#allocation5 + $0x270] sm:$0xff] }
 0x38c   :  { %7899 = vmatpush1.bf16.msra.mxu1 %v13490_v40  ;;  %v13969_v15 = vcombine.high %v1240_v11, %v1240_v11  ;;  %v13968_v40 = vcombine.low %v1240_v11, %v1240_v11 }
 0x38d   :  { %7900 = vmatprep.subr.bf16.mxu1 %v13507_v18  ;;  %v881_v18 = vld [vmem:[#allocation5 + $0x1668] sm:$0xff] }
 0x38e   :  { %7751 = vmatpush1.bf16.msra.mxu0 %v13872_v17  ;;  %v873_v17 = vld [vmem:[#allocation5 + $0x1628] sm:$0xff]  ;;  %v6758_v42 = vsel %vm6732_vm0, %v13968_v40, 0  ;;  %v250_v40 = vld [vmem:[#allocation5 + $0x2b0] sm:$0xff] }
 0x38f   :  { %7752 = vmatprep.subr.bf16.mxu0 %v13889_v19  ;;  %v170_v19 = vld [vmem:[#allocation5 + $0x30] sm:$0xff]  ;;  %v13603_v24 = vcombine.high %v873_v17, %v881_v18  ;;  %v13602_v37 = vcombine.low %v873_v17, %v881_v18 }
 0x390   :  { %7901 = vmatpush1.bf16.msra.mxu1 %v13506_v29  ;;  %v12901_v29 = vcombine.high %v170_v19, %v178_v22  ;;  %v12900_v38 = vcombine.low %v170_v19, %v178_v22  ;;  %v258_v17 = vld [vmem:[#allocation5 + $0x2f0] sm:$0xff] }
 0x391   :  { %7902 = vmatprep.subr.bf16.mxu1 %v13523_v32  ;;  %v897_v32 = vld [vmem:[#allocation5 + $0x16e8] sm:$0xff] }
 0x392   :  { %7753 = vmatpush1.bf16.msra.mxu0 %v13888_v30  ;;  %v889_v30 = vld [vmem:[#allocation5 + $0x16a8] sm:$0xff] }
 0x393   :  { %7754 = vmatprep.subr.bf16.mxu0 %v13905_v33  ;;  %v186_v33 = vld [vmem:[#allocation5 + $0xb0] sm:$0xff]  ;;  %v13619_v39 = vcombine.high %v889_v30, %v897_v32  ;;  %v13618_v48 = vcombine.low %v889_v30, %v897_v32 }
 0x394   :  { %7903 = vmatpush1.bf16.msra.mxu1 %v13522_v41  ;;  %v12917_v41 = vcombine.high %v186_v33, %v194_v34  ;;  %v12916_v49 = vcombine.low %v186_v33, %v194_v34  ;;  %v274_v30 = vld [vmem:[#allocation5 + $0x370] sm:$0xff]  ;;  %v12980_v33 = vcombine.low %v250_v40, %v258_v17 }
 0x395   :  { %7904 = vmatprep.subr.bf16.mxu1 %v13539_v45  ;;  %v913_v45 = vld [vmem:[#allocation5 + $0x1768] sm:$0xff] }
 0x396   :  { %7755 = vmatpush1.bf16.msra.mxu0 %v13904_v44  ;;  %v905_v44 = vld [vmem:[#allocation5 + $0x1728] sm:$0xff] }
 0x397   :  { %7765 = vmatprep.subr.bf16.mxu0 %v13921_v46  ;;  %v202_v46 = vld [vmem:[#allocation5 + $0x130] sm:$0xff]  ;;  %v13635_v50 = vcombine.high %v905_v44, %v913_v45  ;;  %v13634_v62 = vcombine.low %v905_v44, %v913_v45 }
 0x398   :  { %7905 = vmatpush1.bf16.msra.mxu1 %v13538_v51  ;;  %v12933_v51 = vcombine.high %v202_v46, %v210_v47  ;;  %v12932_v63 = vcombine.low %v202_v46, %v210_v47  ;;  %v290_v44 = vld [vmem:[#allocation5 + $0x3f0] sm:$0xff] }
 0x399   :  { %7757 = vmatmul.mubr.bf16.vlgmr.msra.gmra.mrb[12].mxu0 %v16164_v52  ;;  %7906 = vmatprep.subr.bf16.mxu1 %v13555_v56  ;;  %v929_v56 = vld [vmem:[#allocation5 + $0x17e8] sm:$0xff] }
 0x39a   :  { %7766 = vmatpush1.bf16.msra.mxu0 %v13920_v53  ;;  %7797 = vmatprep.mubr.bf16.mxu0 %v15977_v5  ;;  %v921_v53 = vld [vmem:[#allocation5 + $0x17a8] sm:$0xff] }
 0x39b   :  { %7767 = vmatprep.subr.bf16.mxu0 %v13937_v58  ;;  %v218_v58 = vld [vmem:[#allocation5 + $0x1b0] sm:$0xff]  ;;  %v13651_v0 = vcombine.high %v921_v53, %v929_v56  ;;  %v13650_v9 = vcombine.low %v921_v53, %v929_v56 }
 0x39c   :  { %7907 = vmatpush1.bf16.msra.mxu1 %v13554_v1  ;;  %v12949_v1 = vcombine.high %v218_v58, %v226_v3  ;;  %v12948_v11 = vcombine.low %v218_v58, %v226_v3  ;;  %v306_v53 = vld [vmem:[#allocation5 + $0x470] sm:$0xff] }
 0x39d   :  { %7908 = vmatprep.subr.bf16.mxu1 %v13571_v2  ;;  %v945_v2 = vld [vmem:[#allocation5 + $0x1868] sm:$0xff] }
 0x39e   :  { %7768 = vmatpush1.bf16.msra.mxu0 %v13936_v7  ;;  %v937_v7 = vld [vmem:[#allocation5 + $0x1828] sm:$0xff] }
 0x39f   :  { %7769 = vmatprep.subr.bf16.mxu0 %v13953_v4  ;;  %v234_v4 = vld [vmem:[#allocation5 + $0x230] sm:$0xff]  ;;  %v13666_v18 = vcombine.low %v937_v7, %v945_v2 }
 0x3a0   :  { %7909 = vmatpush1.bf16.msra.mxu1 %v13570_v12  ;;  %v13667_v12 = vcombine.high %v937_v7, %v945_v2  ;;  %v12964_v19 = vcombine.low %v234_v4, %v242_v6  ;;  %v322_v7 = vld [vmem:[#allocation5 + $0x4f0] sm:$0xff] }
 0x3a1   :  { %7910 = vmatprep.subr.bf16.mxu1 %v13587_v14  ;;  %v953_v14 = vld [vmem:[#allocation5 + $0x18a8] sm:$0xff] }
 0x3a2   :  { %7770 = vmatpush1.bf16.msra.mxu0 %v13952_v13  ;;  %v12965_v13 = vcombine.high %v234_v4, %v242_v6 }
 0x3a3   :  { %13984 = vmatprep.subr.msk.bf16.mxu0 %vm6732_vm0, %v13969_v15  ;;  %v961_v15 = vld [vmem:[#allocation5 + $0x18e8] sm:$0xff] }
 0x3a4   :  { %7911 = vmatpush1.bf16.msra.mxu1 %v13586_v23  ;;  %v13683_v22 = vcombine.high %v953_v14, %v961_v15  ;;  %v12981_v23 = vcombine.high %v250_v40, %v258_v17  ;;  %v13682_v32 = vcombine.low %v953_v14, %v961_v15  ;;  %v338_v14 = vld [vmem:[#allocation5 + $0x570] sm:$0xff] }
 0x3a5   :  { %7912 = vmatprep.subr.bf16.mxu1 %v13603_v24  ;;  %v969_v24 = vld [vmem:[#allocation5 + $0x1928] sm:$0xff] }
 0x3a6   :  { %7772 = vmatpush1.bf16.msra.mxu0 %v6758_v42  ;;  %v977_v42 = vld [vmem:[#allocation5 + $0x1968] sm:$0xff] }
 0x3a7   :  { %8011 = vmatprep.subr.bf16.mxu0 %v12901_v29  ;;  %v266_v29 = vld [vmem:[#allocation5 + $0x330] sm:$0xff]  ;;  %v13699_v34 = vcombine.high %v969_v24, %v977_v42  ;;  %v13698_v45 = vcombine.low %v969_v24, %v977_v42 }
 0x3a8   :  { %7913 = vmatpush1.bf16.msra.mxu1 %v13602_v37  ;;  %v12997_v37 = vcombine.high %v266_v29, %v274_v30  ;;  %v12996_v46 = vcombine.low %v266_v29, %v274_v30  ;;  %v346_v42 = vld [vmem:[#allocation5 + $0x5b0] sm:$0xff] }
 0x3a9   :  { %13985 = vmatmul.mubr.msk.bf16.vlgmr.msra.gmra.mrb[12].mxu0 %vm6728_vm1, %v16172_v26  ;;  %7914 = vmatprep.subr.bf16.mxu1 %v13619_v39  ;;  %v993_v39 = vld [vmem:[#allocation5 + $0x19e8] sm:$0xff]  ;;  %v354_v29 = vld [vmem:[#allocation5 + $0x5f0] sm:$0xff] }
 0x3aa   :  { %8012 = vmatpush1.bf16.msra.mxu0 %v12900_v38  ;;  %8043 = vmatprep.mubr.bf16.mxu0 %v16140_v57  ;;  %v985_v38 = vld [vmem:[#allocation5 + $0x19a8] sm:$0xff] }
 0x3ab   :  { %8013 = vmatprep.subr.bf16.mxu0 %v12917_v41  ;;  %v282_v41 = vld [vmem:[#allocation5 + $0x3b0] sm:$0xff]  ;;  %v13715_v47 = vcombine.high %v985_v38, %v993_v39  ;;  %v13714_v56 = vcombine.low %v985_v38, %v993_v39  ;;  %v13077_v38 = vcombine.high %v346_v42, %v354_v29  ;;  %v1065_v39 = vld [vmem:[#allocation5 + $0x1c28] sm:$0xff] }
 0x3ac   :  { %7915 = vmatpush1.bf16.msra.mxu1 %v13618_v48  ;;  %v13013_v48 = vcombine.high %v282_v41, %v290_v44  ;;  %v13012_v58 = vcombine.low %v282_v41, %v290_v44  ;;  %v1073_v41 = vld [vmem:[#allocation5 + $0x1c68] sm:$0xff]  ;;  %v362_v44 = vld [vmem:[#allocation5 + $0x630] sm:$0xff] }
 0x3ad   :  { %7916 = vmatprep.subr.bf16.mxu1 %v13635_v50  ;;  %v1009_v50 = vld [vmem:[#allocation5 + $0x1a68] sm:$0xff] }
 0x3ae   :  { %8014 = vmatpush1.bf16.msra.mxu0 %v12916_v49  ;;  %v1001_v49 = vld [vmem:[#allocation5 + $0x1a28] sm:$0xff] }
 0x3af   :  { %8015 = vmatprep.subr.bf16.mxu0 %v12933_v51  ;;  %v298_v51 = vld [vmem:[#allocation5 + $0x430] sm:$0xff]  ;;  %v13731_v3 = vcombine.high %v1001_v49, %v1009_v50  ;;  %v13730_v2 = vcombine.low %v1001_v49, %v1009_v50  ;;  %v1081_v50 = vld [vmem:[#allocation5 + $0x1ca8] sm:$0xff] }
 0x3b0   :  { %7917 = vmatpush1.bf16.msra.mxu1 %v13634_v62  ;;  %v13029_v62 = vcombine.high %v298_v51, %v306_v53  ;;  %v13028_v4 = vcombine.low %v298_v51, %v306_v53  ;;  %v1089_v51 = vld [vmem:[#allocation5 + $0x1ce8] sm:$0xff]  ;;  %v378_v53 = vld [vmem:[#allocation5 + $0x6b0] sm:$0xff] }
 0x3b1   :  { %7918 = vmatprep.subr.bf16.mxu1 %v13651_v0  ;;  %v1025_v0 = vld [vmem:[#allocation5 + $0x1ae8] sm:$0xff] }
 0x3b2   :  { %8016 = vmatpush1.bf16.msra.mxu0 %v12932_v63  ;;  %v1017_v63 = vld [vmem:[#allocation5 + $0x1aa8] sm:$0xff] }
 0x3b3   :  { %8017 = vmatprep.subr.bf16.mxu0 %v12949_v1  ;;  %v314_v1 = vld [vmem:[#allocation5 + $0x4b0] sm:$0xff]  ;;  %v13747_v6 = vcombine.high %v1017_v63, %v1025_v0  ;;  %v13746_v15 = vcombine.low %v1017_v63, %v1025_v0  ;;  %v1097_v0 = vld [vmem:[#allocation5 + $0x1d28] sm:$0xff] }
 0x3b4   :  { %7919 = vmatpush1.bf16.msra.mxu1 %v13650_v9  ;;  %v13045_v9 = vcombine.high %v314_v1, %v322_v7  ;;  %v13044_v40 = vcombine.low %v314_v1, %v322_v7  ;;  %v1105_v1 = vld [vmem:[#allocation5 + $0x1d68] sm:$0xff]  ;;  %v394_v7 = vld [vmem:[#allocation5 + $0x730] sm:$0xff] }
 0x3b5   :  { %7929 = vmatprep.subr.bf16.mxu1 %v13667_v12  ;;  %v1041_v12 = vld [vmem:[#allocation5 + $0x1b68] sm:$0xff] }
 0x3b6   :  { %8018 = vmatpush1.bf16.msra.mxu0 %v12948_v11  ;;  %v1033_v11 = vld [vmem:[#allocation5 + $0x1b28] sm:$0xff] }
 0x3b7   :  { %8019 = vmatprep.subr.bf16.mxu0 %v12965_v13  ;;  %7921 = vmatmul.mubr.bf16.vlgmr.msra.gmra.mrb[12].mxu1 %v16156_v35  ;;  %v330_v13 = vld [vmem:[#allocation5 + $0x530] sm:$0xff]  ;;  %v13763_v17 = vcombine.high %v1033_v11, %v1041_v12 }
 0x3b8   :  { %7930 = vmatpush1.bf16.msra.mxu1 %v13666_v18  ;;  %7961 = vmatprep.mubr.bf16.mxu1 %v16158_v43 }
 0x3b9   :  { %7931 = vmatprep.subr.bf16.mxu1 %v13683_v22  ;;  %v1049_v22 = vld [vmem:[#allocation5 + $0x1ba8] sm:$0xff] }
 0x3ba   :  { %8020 = vmatpush1.bf16.msra.mxu0 %v12964_v19  ;;  %v13061_v19 = vcombine.high %v330_v13, %v338_v14 }
 0x3bb   :  { %8021 = vmatprep.subr.bf16.mxu0 %v12981_v23  ;;  %v1057_v23 = vld [vmem:[#allocation5 + $0x1be8] sm:$0xff] }
 0x3bc   :  { %7932 = vmatpush1.bf16.msra.mxu1 %v13682_v32  ;;  %v13762_v32 = vcombine.low %v1033_v11, %v1041_v12  ;;  %v1113_v12 = vld [vmem:[#allocation5 + $0x1da8] sm:$0xff] }
 0x3bd   :  { %7933 = vmatprep.subr.bf16.mxu1 %v13699_v34  ;;  %v13060_v34 = vcombine.low %v330_v13, %v338_v14  ;;  %v1121_v13 = vld [vmem:[#allocation5 + $0x1de8] sm:$0xff]  ;;  %v410_v14 = vld [vmem:[#allocation5 + $0x7b0] sm:$0xff] }
 0x3be   :  { %8022 = vmatpush1.bf16.msra.mxu0 %v12980_v33 }
 0x3bf   :  { %8023 = vmatprep.subr.bf16.mxu0 %v12997_v37  ;;  %v13779_v37 = vcombine.high %v1049_v22, %v1057_v23 }
 0x3c0   :  { %7934 = vmatpush1.bf16.msra.mxu1 %v13698_v45  ;;  %v370_v45 = vld [vmem:[#allocation5 + $0x670] sm:$0xff] }
 0x3c1   :  { %7935 = vmatprep.subr.bf16.mxu1 %v13715_v47  ;;  %v13076_v47 = vcombine.low %v346_v42, %v354_v29  ;;  %v13093_v49 = vcombine.high %v362_v44, %v370_v45  ;;  %v1137_v42 = vld [vmem:[#allocation5 + $0x1e68] sm:$0xff]  ;;  %v426_v29 = vld [vmem:[#allocation5 + $0x830] sm:$0xff] }
 0x3c2   :  { %8024 = vmatpush1.bf16.msra.mxu0 %v12996_v46  ;;  %v13778_v46 = vcombine.low %v1049_v22, %v1057_v23  ;;  %v1129_v23 = vld [vmem:[#allocation5 + $0x1e28] sm:$0xff] }
 0x3c3   :  { %8025 = vmatprep.subr.bf16.mxu0 %v13013_v48  ;;  %v13795_v48 = vcombine.high %v1065_v39, %v1073_v41 }
 0x3c4   :  { %7936 = vmatpush1.bf16.msra.mxu1 %v13714_v56  ;;  %v386_v56 = vld [vmem:[#allocation5 + $0x6f0] sm:$0xff] }
 0x3c5   :  { %7937 = vmatprep.subr.bf16.mxu1 %v13731_v3  ;;  %v13092_v3 = vcombine.low %v362_v44, %v370_v45  ;;  %v13109_v63 = vcombine.high %v378_v53, %v386_v56  ;;  %v450_v44 = vld [vmem:[#allocation5 + $0x8f0] sm:$0xff]  ;;  %v13858_v45 = vcombine.low %v1129_v23, %v1137_v42 }
 0x3c6   :  { %8026 = vmatpush1.bf16.msra.mxu0 %v13012_v58  ;;  %v13794_v58 = vcombine.low %v1065_v39, %v1073_v41  ;;  %v1153_v39 = vld [vmem:[#allocation5 + $0x1ee8] sm:$0xff]  ;;  %v442_v41 = vld [vmem:[#allocation5 + $0x8b0] sm:$0xff] }
 0x3c7   :  { %8027 = vmatprep.subr.bf16.mxu0 %v13029_v62  ;;  %v13811_v62 = vcombine.high %v1081_v50, %v1089_v51 }
 0x3c8   :  { %7938 = vmatpush1.bf16.msra.mxu1 %v13730_v2  ;;  %v402_v2 = vld [vmem:[#allocation5 + $0x770] sm:$0xff] }
 0x3c9   :  { %7939 = vmatprep.subr.bf16.mxu1 %v13747_v6  ;;  %v13108_v6 = vcombine.low %v378_v53, %v386_v56  ;;  %v13125_v11 = vcombine.high %v394_v7, %v402_v2  ;;  %v466_v53 = vld [vmem:[#allocation5 + $0x970] sm:$0xff] }
 0x3ca   :  { %8028 = vmatpush1.bf16.msra.mxu0 %v13028_v4  ;;  %v16279_v18 = vpop.f32.mrb[8].mxu1  ;;  %v13810_v4 = vcombine.low %v1081_v50, %v1089_v51  ;;  %v1169_v50 = vld [vmem:[#allocation5 + $0x1f68] sm:$0xff]  ;;  %v458_v51 = vld [vmem:[#allocation5 + $0x930] sm:$0xff] }
 0x3cb   :  { %8029 = vmatprep.subr.bf16.mxu0 %v13045_v9  ;;  %v16281_v24 = vpop.f32.mrb[9].mxu1  ;;  %v13827_v9 = vcombine.high %v1097_v0, %v1105_v1 }
 0x3cc   :  { %v7598_v30 = vpop.f32.mrb[10].mxu1  ;;  %7940 = vmatpush1.bf16.msra.mxu1 %v13746_v15  ;;  %v418_v15 = vld [vmem:[#allocation5 + $0x7f0] sm:$0xff] }
 0x3cd   :  { %v7599_v33 = vpop.f32.mrb[11].mxu1  ;;  %7941 = vmatprep.subr.bf16.mxu1 %v13763_v17  ;;  %v13124_v17 = vcombine.low %v394_v7, %v402_v2  ;;  %v13141_v22 = vcombine.high %v410_v14, %v418_v15  ;;  %v434_v30 = vld [vmem:[#allocation5 + $0x870] sm:$0xff] }
 0x3ce   :  { %8030 = vmatpush1.bf16.msra.mxu0 %v13044_v40  ;;  %v13826_v40 = vcombine.low %v1097_v0, %v1105_v1  ;;  %v13140_v33 = vcombine.low %v410_v14, %v418_v15  ;;  %v1185_v0 = vld [vmem:[#allocation5 + $0x1fe8] sm:$0xff]  ;;  %v474_v1 = vld [vmem:[#allocation5 + $0x9b0] sm:$0xff] }
 0x3cf   :  { %8031 = vmatprep.subr.bf16.mxu0 %v13061_v19  ;;  %v13843_v19 = vcombine.high %v1113_v12, %v1121_v13  ;;  %v482_v7 = vld [vmem:[#allocation5 + $0x9f0] sm:$0xff] }
 0x3d0   :  { %7942 = vmatpush1.bf16.msra.mxu1 %v13762_v32  ;;  %v13842_v32 = vcombine.low %v1113_v12, %v1121_v13  ;;  %v1201_v12 = vld [vmem:[#allocation5 + $0x2068] sm:$0xff]  ;;  %v490_v13 = vld [vmem:[#allocation5 + $0xa30] sm:$0xff] }
 0x3d1   :  { %7943 = vmatprep.subr.bf16.mxu1 %v13779_v37  ;;  %v13157_v37 = vcombine.high %v426_v29, %v434_v30  ;;  %v498_v14 = vld [vmem:[#allocation5 + $0xa70] sm:$0xff] }
 0x3d2   :  { %8032 = vmatpush1.bf16.msra.mxu0 %v13060_v34  ;;  %v13859_v34 = vcombine.high %v1129_v23, %v1137_v42  ;;  %v1217_v23 = vld [vmem:[#allocation5 + $0x20e8] sm:$0xff]  ;;  %v506_v42 = vld [vmem:[#allocation5 + $0xab0] sm:$0xff] }
 0x3d3   :  { %8033 = vmatprep.subr.bf16.mxu0 %v13077_v38  ;;  %v1145_v38 = vld [vmem:[#allocation5 + $0x1ea8] sm:$0xff] }
 0x3d4   :  { %7944 = vmatpush1.bf16.msra.mxu1 %v13778_v46  ;;  %v13156_v46 = vcombine.low %v426_v29, %v434_v30  ;;  %v13874_v56 = vcombine.low %v1145_v38, %v1153_v39  ;;  %v514_v29 = vld [vmem:[#allocation5 + $0xaf0] sm:$0xff] }
 0x3d5   :  { %7945 = vmatprep.subr.bf16.mxu1 %v13795_v48  ;;  %v13173_v48 = vcombine.high %v442_v41, %v450_v44 }
 0x3d6   :  { %8034 = vmatpush1.bf16.msra.mxu0 %v13076_v47  ;;  %v13875_v47 = vcombine.high %v1145_v38, %v1153_v39  ;;  %v1233_v38 = vld [vmem:[#allocation5 + $0x2168] sm:$0xff]  ;;  %v522_v39 = vld [vmem:[#allocation5 + $0xb30] sm:$0xff] }
 0x3d7   :  { %8035 = vmatprep.subr.bf16.mxu0 %v13093_v49  ;;  %v1161_v49 = vld [vmem:[#allocation5 + $0x1f28] sm:$0xff] }
 0x3d8   :  { %7946 = vmatpush1.bf16.msra.mxu1 %v13794_v58  ;;  %v13172_v58 = vcombine.low %v442_v41, %v450_v44  ;;  %v13890_v2 = vcombine.low %v1161_v49, %v1169_v50  ;;  %v530_v41 = vld [vmem:[#allocation5 + $0xb70] sm:$0xff] }
 0x3d9   :  { %7947 = vmatprep.subr.bf16.mxu1 %v13811_v62  ;;  %v13189_v62 = vcombine.high %v458_v51, %v466_v53 }
 0x3da   :  { %8036 = vmatpush1.bf16.msra.mxu0 %v13092_v3  ;;  %v13891_v3 = vcombine.high %v1161_v49, %v1169_v50  ;;  %v538_v49 = vld [vmem:[#allocation5 + $0xbb0] sm:$0xff] }
 0x3db   :  { %8037 = vmatprep.subr.bf16.mxu0 %v13109_v63  ;;  %v1177_v63 = vld [vmem:[#allocation5 + $0x1fa8] sm:$0xff]  ;;  %v546_v50 = vld [vmem:[#allocation5 + $0xbf0] sm:$0xff] }
 0x3dc   :  { %7948 = vmatpush1.bf16.msra.mxu1 %v13810_v4  ;;  %v13188_v4 = vcombine.low %v458_v51, %v466_v53  ;;  %v13906_v15 = vcombine.low %v1177_v63, %v1185_v0  ;;  %v13252_v53 = vcombine.low %v522_v39, %v530_v41 }
 0x3dd   :  { %7949 = vmatprep.subr.bf16.mxu1 %v13827_v9  ;;  %v13205_v9 = vcombine.high %v474_v1, %v482_v7 }
 0x3de   :  { %8038 = vmatpush1.bf16.msra.mxu0 %v13108_v6  ;;  %v13907_v6 = vcombine.high %v1177_v63, %v1185_v0  ;;  %v179_v63 = vld [vmem:[#allocation5 + $0x78] sm:$0xff]  ;;  %v554_v0 = vld [vmem:[#allocation5 + $0xc30] sm:$0xff] }
 0x3df   :  { %8039 = vmatprep.subr.bf16.mxu0 %v13125_v11  ;;  %v1193_v11 = vld [vmem:[#allocation5 + $0x2028] sm:$0xff] }
 0x3e0   :  { %7950 = vmatpush1.bf16.msra.mxu1 %v13826_v40  ;;  %v13204_v40 = vcombine.low %v474_v1, %v482_v7  ;;  %v13922_v30 = vcombine.low %v1193_v11, %v1201_v12  ;;  %v562_v1 = vld [vmem:[#allocation5 + $0xc70] sm:$0xff]  ;;  %v13268_v7 = vcombine.low %v538_v49, %v546_v50 }
 0x3e1   :  { %7951 = vmatprep.subr.bf16.mxu1 %v13843_v19  ;;  %v13221_v19 = vcombine.high %v490_v13, %v498_v14 }
 0x3e2   :  { %8040 = vmatpush1.bf16.msra.mxu0 %v13124_v17  ;;  %v13923_v17 = vcombine.high %v1193_v11, %v1201_v12  ;;  %v195_v11 = vld [vmem:[#allocation5 + $0xf8] sm:$0xff]  ;;  %v570_v12 = vld [vmem:[#allocation5 + $0xcb0] sm:$0xff] }
 0x3e3   :  { %8041 = vmatprep.subr.bf16.mxu0 %v13141_v22  ;;  %v1209_v22 = vld [vmem:[#allocation5 + $0x20a8] sm:$0xff] }
 0x3e4   :  { %7952 = vmatpush1.bf16.msra.mxu1 %v13842_v32  ;;  %v13220_v32 = vcombine.low %v490_v13, %v498_v14  ;;  %v13938_v44 = vcombine.low %v1209_v22, %v1217_v23  ;;  %v578_v13 = vld [vmem:[#allocation5 + $0xcf0] sm:$0xff] }
 0x3e5   :  { %7953 = vmatprep.subr.bf16.mxu1 %v13859_v34  ;;  %v13237_v34 = vcombine.high %v506_v42, %v514_v29 }
 0x3e6   :  { %8042 = vmatpush1.bf16.msra.mxu0 %v13140_v33  ;;  %v13939_v33 = vcombine.high %v1209_v22, %v1217_v23  ;;  %v211_v22 = vld [vmem:[#allocation5 + $0x178] sm:$0xff]  ;;  %v586_v23 = vld [vmem:[#allocation5 + $0xd30] sm:$0xff] }
 0x3e7   :  { %8052 = vmatprep.subr.bf16.mxu0 %v13157_v37  ;;  %v1225_v37 = vld [vmem:[#allocation5 + $0x2128] sm:$0xff] }
 0x3e8   :  { %7954 = vmatpush1.bf16.msra.mxu1 %v13858_v45  ;;  %v13236_v45 = vcombine.low %v506_v42, %v514_v29  ;;  %v13954_v51 = vcombine.low %v1225_v37, %v1233_v38  ;;  %v594_v42 = vld [vmem:[#allocation5 + $0xd70] sm:$0xff] }
 0x3e9   :  { %8044 = vmatmul.mubr.bf16.vlgmr.msra.gmra.mrb[16].mxu0 %v16146_v16  ;;  %7955 = vmatprep.subr.bf16.mxu1 %v13875_v47  ;;  %v13253_v47 = vcombine.high %v522_v39, %v530_v41  ;;  %v610_v39 = vld [vmem:[#allocation5 + $0xdf0] sm:$0xff] }
 0x3ea   :  { %8053 = vmatpush1.bf16.msra.mxu0 %v13156_v46  ;;  %8084 = vmatprep.mubr.bf16.mxu0 %v16142_v61  ;;  %v13955_v46 = vcombine.high %v1225_v37, %v1233_v38  ;;  %v227_v37 = vld [vmem:[#allocation5 + $0x1f8] sm:$0xff]  ;;  %v602_v38 = vld [vmem:[#allocation5 + $0xdb0] sm:$0xff] }
 0x3eb   :  { %8054 = vmatprep.subr.bf16.mxu0 %v13173_v48  ;;  %v1241_v48 = vld [vmem:[#allocation5 + $0x21a8] sm:$0xff] }
 0x3ec   :  { %7956 = vmatpush1.bf16.msra.mxu1 %v13874_v56  ;;  %v13971_v56 = vcombine.high %v1241_v48, %v1241_v48 }
 0x3ed   :  { %7957 = vmatprep.subr.bf16.mxu1 %v13891_v3  ;;  %v13269_v3 = vcombine.high %v538_v49, %v546_v50  ;;  %v626_v49 = vld [vmem:[#allocation5 + $0xe70] sm:$0xff] }
 0x3ee   :  { %8055 = vmatpush1.bf16.msra.mxu0 %v13172_v58  ;;  %v13970_v58 = vcombine.low %v1241_v48, %v1241_v48  ;;  %v618_v48 = vld [vmem:[#allocation5 + $0xe30] sm:$0xff] }
 0x3ef   :  { %8056 = vmatprep.subr.bf16.mxu0 %v13189_v62  ;;  %v171_v62 = vld [vmem:[#allocation5 + $0x38] sm:$0xff] }
 0x3f0   :  { %7958 = vmatpush1.bf16.msra.mxu1 %v13890_v2  ;;  %v6764_v2 = vsel %vm6732_vm0, %v13970_v58, 0  ;;  %v12902_v14 = vcombine.low %v171_v62, %v179_v63  ;;  %v251_v58 = vld [vmem:[#allocation5 + $0x2b8] sm:$0xff] }
 0x3f1   :  { %7959 = vmatprep.subr.bf16.mxu1 %v13907_v6  ;;  %v13285_v6 = vcombine.high %v554_v0, %v562_v1 }
 0x3f2   :  { %8057 = vmatpush1.bf16.msra.mxu0 %v13188_v4  ;;  %v12903_v4 = vcombine.high %v171_v62, %v179_v63  ;;  %v634_v62 = vld [vmem:[#allocation5 + $0xeb0] sm:$0xff] }
 0x3f3   :  { %8058 = vmatprep.subr.bf16.mxu0 %v13205_v9  ;;  %v187_v9 = vld [vmem:[#allocation5 + $0xb8] sm:$0xff]  ;;  %v642_v63 = vld [vmem:[#allocation5 + $0xef0] sm:$0xff] }
 0x3f4   :  { %7960 = vmatpush1.bf16.msra.mxu1 %v13906_v15  ;;  %v13284_v15 = vcombine.low %v554_v0, %v562_v1  ;;  %v12918_v29 = vcombine.low %v187_v9, %v195_v11  ;;  %v13348_v1 = vcombine.low %v618_v48, %v626_v49 }
 0x3f5   :  { %7970 = vmatprep.subr.bf16.mxu1 %v13923_v17  ;;  %v13301_v17 = vcombine.high %v570_v12, %v578_v13 }
 0x3f6   :  { %8059 = vmatpush1.bf16.msra.mxu0 %v13204_v40  ;;  %v12919_v40 = vcombine.high %v187_v9, %v195_v11  ;;  %v650_v9 = vld [vmem:[#allocation5 + $0xf30] sm:$0xff] }
 0x3f7   :  { %8060 = vmatprep.subr.bf16.mxu0 %v13221_v19  ;;  %7962 = vmatmul.mubr.bf16.vlgmr.msra.gmra.mrb[12].mxu1 %v16164_v52  ;;  %v203_v19 = vld [vmem:[#allocation5 + $0x138] sm:$0xff]  ;;  %v658_v11 = vld [vmem:[#allocation5 + $0xf70] sm:$0xff] }
 0x3f8   :  { %7971 = vmatpush1.bf16.msra.mxu1 %v13922_v30  ;;  %8002 = vmatprep.mubr.bf16.mxu1 %v15977_v5  ;;  %v13300_v30 = vcombine.low %v570_v12, %v578_v13  ;;  %v12934_v41 = vcombine.low %v203_v19, %v211_v22  ;;  %v13364_v13 = vcombine.low %v634_v62, %v642_v63 }
 0x3f9   :  { %7972 = vmatprep.subr.bf16.mxu1 %v13939_v33  ;;  %v13317_v33 = vcombine.high %v586_v23, %v594_v42 }
 0x3fa   :  { %8061 = vmatpush1.bf16.msra.mxu0 %v13220_v32  ;;  %v12935_v32 = vcombine.high %v203_v19, %v211_v22  ;;  %v666_v19 = vld [vmem:[#allocation5 + $0xfb0] sm:$0xff] }
 0x3fb   :  { %8062 = vmatprep.subr.bf16.mxu0 %v13237_v34  ;;  %v219_v34 = vld [vmem:[#allocation5 + $0x1b8] sm:$0xff]  ;;  %v674_v22 = vld [vmem:[#allocation5 + $0xff0] sm:$0xff] }
 0x3fc   :  { %7973 = vmatpush1.bf16.msra.mxu1 %v13938_v44  ;;  %v13316_v44 = vcombine.low %v586_v23, %v594_v42  ;;  %v12950_v50 = vcombine.low %v219_v34, %v227_v37  ;;  %v13380_v42 = vcombine.low %v650_v9, %v658_v11 }
 0x3fd   :  { %7974 = vmatprep.subr.bf16.mxu1 %v13955_v46  ;;  %v13333_v46 = vcombine.high %v602_v38, %v610_v39 }
 0x3fe   :  { %8063 = vmatpush1.bf16.msra.mxu0 %v13236_v45  ;;  %v12951_v45 = vcombine.high %v219_v34, %v227_v37  ;;  %v682_v34 = vld [vmem:[#allocation5 + $0x1030] sm:$0xff] }
 0x3ff   :  { %8064 = vmatprep.subr.bf16.mxu0 %v13253_v47  ;;  %v235_v47 = vld [vmem:[#allocation5 + $0x238] sm:$0xff]  ;;  %v690_v37 = vld [vmem:[#allocation5 + $0x1070] sm:$0xff] }
 0x400   :  { %7975 = vmatpush1.bf16.msra.mxu1 %v13954_v51  ;;  %v13332_v51 = vcombine.low %v602_v38, %v610_v39  ;;  %v13396_v39 = vcombine.low %v666_v19, %v674_v22 }
 0x401   :  { %13986 = vmatprep.subr.msk.bf16.mxu1 %vm6732_vm0, %v13971_v56  ;;  %v13349_v56 = vcombine.high %v618_v48, %v626_v49  ;;  %v13412_v49 = vcombine.low %v682_v34, %v690_v37 }
 0x402   :  { %8065 = vmatpush1.bf16.msra.mxu0 %v13252_v53 }
 0x403   :  { %8066 = vmatprep.subr.bf16.mxu0 %v13269_v3  ;;  %v259_v3 = vld [vmem:[#allocation5 + $0x2f8] sm:$0xff] }
 0x404   :  { %7977 = vmatpush1.bf16.msra.mxu1 %v6764_v2  ;;  %v13365_v2 = vcombine.high %v634_v62, %v642_v63  ;;  %v12982_v12 = vcombine.low %v251_v58, %v259_v3 }
 0x405   :  { %8216 = vmatprep.subr.bf16.mxu1 %v12903_v4  ;;  %v267_v4 = vld [vmem:[#allocation5 + $0x338] sm:$0xff] }
 0x406   :  { %8067 = vmatpush1.bf16.msra.mxu0 %v13268_v7  ;;  %v12983_v7 = vcombine.high %v251_v58, %v259_v3  ;;  %v714_v58 = vld [vmem:[#allocation5 + $0x1130] sm:$0xff] }
 0x407   :  { %8068 = vmatprep.subr.bf16.mxu0 %v13285_v6  ;;  %13987 = vmatmul.mubr.msk.bf16.vlgmr.msra.gmra.mrb[12].mxu1 %vm6728_vm1, %v16172_v26  ;;  %v275_v6 = vld [vmem:[#allocation5 + $0x378] sm:$0xff]  ;;  %v722_v3 = vld [vmem:[#allocation5 + $0x1170] sm:$0xff] }
 0x408   :  { %8217 = vmatpush1.bf16.msra.mxu1 %v12902_v14  ;;  %8248 = vmatprep.mubr.bf16.mxu1 %v16140_v57  ;;  %v243_v57 = vld [vmem:[#allocation5 + $0x278] sm:$0xff]  ;;  %v12999_v14 = vcombine.high %v267_v4, %v275_v6  ;;  %v12998_v23 = vcombine.low %v267_v4, %v275_v6  ;;  %v730_v4 = vld [vmem:[#allocation5 + $0x11b0] sm:$0xff] }
 0x409   :  { %8218 = vmatprep.subr.bf16.mxu1 %v12919_v40  ;;  %v12967_v53 = vcombine.high %v235_v47, %v243_v57  ;;  %v12966_v0 = vcombine.low %v235_v47, %v243_v57  ;;  %v283_v40 = vld [vmem:[#allocation5 + $0x3b8] sm:$0xff]  ;;  %v698_v47 = vld [vmem:[#allocation5 + $0x10b0] sm:$0xff] }
 0x40a   :  { %8069 = vmatpush1.bf16.msra.mxu0 %v13284_v15  ;;  %v13381_v15 = vcombine.high %v650_v9, %v658_v11  ;;  %v706_v57 = vld [vmem:[#allocation5 + $0x10f0] sm:$0xff]  ;;  %v13444_v11 = vcombine.low %v714_v58, %v722_v3 }
 0x40b   :  { %8070 = vmatprep.subr.bf16.mxu0 %v13301_v17  ;;  %v291_v17 = vld [vmem:[#allocation5 + $0x3f8] sm:$0xff]  ;;  %v13428_v63 = vcombine.low %v698_v47, %v706_v57  ;;  %v738_v6 = vld [vmem:[#allocation5 + $0x11f0] sm:$0xff] }
 0x40c   :  { %8219 = vmatpush1.bf16.msra.mxu1 %v12918_v29  ;;  %v13015_v29 = vcombine.high %v283_v40, %v291_v17  ;;  %v13014_v38 = vcombine.low %v283_v40, %v291_v17  ;;  %v746_v40 = vld [vmem:[#allocation5 + $0x1230] sm:$0xff] }
 0x40d   :  { %8220 = vmatprep.subr.bf16.mxu1 %v12935_v32  ;;  %v299_v32 = vld [vmem:[#allocation5 + $0x438] sm:$0xff]  ;;  %v754_v17 = vld [vmem:[#allocation5 + $0x1270] sm:$0xff] }
 0x40e   :  { %8071 = vmatpush1.bf16.msra.mxu0 %v13300_v30  ;;  %v13397_v30 = vcombine.high %v666_v19, %v674_v22  ;;  %v13460_v22 = vcombine.low %v730_v4, %v738_v6 }
 0x40f   :  { %8072 = vmatprep.subr.bf16.mxu0 %v13317_v33  ;;  %v307_v33 = vld [vmem:[#allocation5 + $0x478] sm:$0xff] }
 0x410   :  { %8221 = vmatpush1.bf16.msra.mxu1 %v12934_v41  ;;  %v13031_v41 = vcombine.high %v299_v32, %v307_v33  ;;  %v13030_v48 = vcombine.low %v299_v32, %v307_v33  ;;  %v762_v32 = vld [vmem:[#allocation5 + $0x12b0] sm:$0xff] }
 0x411   :  { %8222 = vmatprep.subr.bf16.mxu1 %v12951_v45  ;;  %v315_v45 = vld [vmem:[#allocation5 + $0x4b8] sm:$0xff]  ;;  %v770_v33 = vld [vmem:[#allocation5 + $0x12f0] sm:$0xff] }
 0x412   :  { %8073 = vmatpush1.bf16.msra.mxu0 %v13316_v44  ;;  %v13413_v44 = vcombine.high %v682_v34, %v690_v37  ;;  %v13476_v37 = vcombine.low %v746_v40, %v754_v17 }
 0x413   :  { %8074 = vmatprep.subr.bf16.mxu0 %v13333_v46  ;;  %v323_v46 = vld [vmem:[#allocation5 + $0x4f8] sm:$0xff] }
 0x414   :  { %8223 = vmatpush1.bf16.msra.mxu1 %v12950_v50  ;;  %v13047_v50 = vcombine.high %v315_v45, %v323_v46  ;;  %v13046_v62 = vcombine.low %v315_v45, %v323_v46  ;;  %v778_v45 = vld [vmem:[#allocation5 + $0x1330] sm:$0xff] }
 0x415   :  { %8224 = vmatprep.subr.bf16.mxu1 %v12967_v53  ;;  %v331_v53 = vld [vmem:[#allocation5 + $0x538] sm:$0xff]  ;;  %v786_v46 = vld [vmem:[#allocation5 + $0x1370] sm:$0xff] }
 0x416   :  { %8075 = vmatpush1.bf16.msra.mxu0 %v13332_v51  ;;  %v13429_v51 = vcombine.high %v698_v47, %v706_v57  ;;  %v13492_v57 = vcombine.low %v762_v32, %v770_v33 }
 0x417   :  { %8076 = vmatprep.subr.bf16.mxu0 %v13349_v56  ;;  %v339_v56 = vld [vmem:[#allocation5 + $0x578] sm:$0xff] }
 0x418   :  { %8225 = vmatpush1.bf16.msra.mxu1 %v12966_v0  ;;  %v13063_v0 = vcombine.high %v331_v53, %v339_v56  ;;  %v13062_v9 = vcombine.low %v331_v53, %v339_v56  ;;  %v794_v53 = vld [vmem:[#allocation5 + $0x13b0] sm:$0xff] }
 0x419   :  { %8226 = vmatprep.subr.bf16.mxu1 %v12983_v7  ;;  %v347_v7 = vld [vmem:[#allocation5 + $0x5b8] sm:$0xff]  ;;  %v802_v56 = vld [vmem:[#allocation5 + $0x13f0] sm:$0xff] }
 0x41a   :  { %8077 = vmatpush1.bf16.msra.mxu0 %v13348_v1  ;;  %v13445_v1 = vcombine.high %v714_v58, %v722_v3  ;;  %v13508_v3 = vcombine.low %v778_v45, %v786_v46 }
 0x41b   :  { %8078 = vmatprep.subr.bf16.mxu0 %v13365_v2  ;;  %v355_v2 = vld [vmem:[#allocation5 + $0x5f8] sm:$0xff] }
 0x41c   :  { %8227 = vmatpush1.bf16.msra.mxu1 %v12982_v12  ;;  %v13079_v12 = vcombine.high %v347_v7, %v355_v2  ;;  %v13078_v19 = vcombine.low %v347_v7, %v355_v2  ;;  %v810_v7 = vld [vmem:[#allocation5 + $0x1430] sm:$0xff] }
 0x41d   :  { %8228 = vmatprep.subr.bf16.mxu1 %v12999_v14  ;;  %v363_v14 = vld [vmem:[#allocation5 + $0x638] sm:$0xff]  ;;  %v818_v2 = vld [vmem:[#allocation5 + $0x1470] sm:$0xff] }
 0x41e   :  { %8079 = vmatpush1.bf16.msra.mxu0 %v13364_v13  ;;  %v13461_v13 = vcombine.high %v730_v4, %v738_v6  ;;  %v13524_v6 = vcombine.low %v794_v53, %v802_v56 }
 0x41f   :  { %8080 = vmatprep.subr.bf16.mxu0 %v13381_v15  ;;  %v371_v15 = vld [vmem:[#allocation5 + $0x678] sm:$0xff] }
 0x420   :  { %8229 = vmatpush1.bf16.msra.mxu1 %v12998_v23  ;;  %v13095_v23 = vcombine.high %v363_v14, %v371_v15  ;;  %v13094_v34 = vcombine.low %v363_v14, %v371_v15  ;;  %v826_v14 = vld [vmem:[#allocation5 + $0x14b0] sm:$0xff] }
 0x421   :  { %8230 = vmatprep.subr.bf16.mxu1 %v13015_v29  ;;  %v379_v29 = vld [vmem:[#allocation5 + $0x6b8] sm:$0xff]  ;;  %v834_v15 = vld [vmem:[#allocation5 + $0x14f0] sm:$0xff] }
 0x422   :  { %8081 = vmatpush1.bf16.msra.mxu0 %v13380_v42  ;;  %v13477_v42 = vcombine.high %v746_v40, %v754_v17  ;;  %v13540_v17 = vcombine.low %v810_v7, %v818_v2 }
 0x423   :  { %8082 = vmatprep.subr.bf16.mxu0 %v13397_v30  ;;  %v387_v30 = vld [vmem:[#allocation5 + $0x6f8] sm:$0xff] }
 0x424   :  { %8231 = vmatpush1.bf16.msra.mxu1 %v13014_v38  ;;  %v13111_v38 = vcombine.high %v379_v29, %v387_v30  ;;  %v13110_v47 = vcombine.low %v379_v29, %v387_v30  ;;  %v842_v29 = vld [vmem:[#allocation5 + $0x1530] sm:$0xff] }
 0x425   :  { %8232 = vmatprep.subr.bf16.mxu1 %v13031_v41  ;;  %v395_v41 = vld [vmem:[#allocation5 + $0x738] sm:$0xff]  ;;  %v850_v30 = vld [vmem:[#allocation5 + $0x1570] sm:$0xff] }
 0x426   :  { %8083 = vmatpush1.bf16.msra.mxu0 %v13396_v39  ;;  %v13493_v39 = vcombine.high %v762_v32, %v770_v33  ;;  %v13556_v33 = vcombine.low %v826_v14, %v834_v15 }
 0x427   :  { %8093 = vmatprep.subr.bf16.mxu0 %v13413_v44  ;;  %v403_v44 = vld [vmem:[#allocation5 + $0x778] sm:$0xff] }
 0x428   :  { %8233 = vmatpush1.bf16.msra.mxu1 %v13030_v48  ;;  %v13127_v48 = vcombine.high %v395_v41, %v403_v44  ;;  %v13126_v58 = vcombine.low %v395_v41, %v403_v44  ;;  %v858_v41 = vld [vmem:[#allocation5 + $0x15b0] sm:$0xff] }
 0x429   :  { %8085 = vmatmul.mubr.bf16.vlgmr.msra.gmra.mrb[16].mxu0 %v16148_v21  ;;  %8234 = vmatprep.subr.bf16.mxu1 %v13047_v50  ;;  %v411_v50 = vld [vmem:[#allocation5 + $0x7b8] sm:$0xff]  ;;  %v866_v44 = vld [vmem:[#allocation5 + $0x15f0] sm:$0xff] }
 0x42a   :  { %8094 = vmatpush1.bf16.msra.mxu0 %v13412_v49  ;;  %8125 = vmatprep.mubr.bf16.mxu0 %v16150_v27  ;;  %v13509_v49 = vcombine.high %v778_v45, %v786_v46 }
 0x42b   :  { %8095 = vmatprep.subr.bf16.mxu0 %v13429_v51  ;;  %v419_v51 = vld [vmem:[#allocation5 + $0x7f8] sm:$0xff] }
 0x42c   :  { %8235 = vmatpush1.bf16.msra.mxu1 %v13046_v62  ;;  %v13143_v62 = vcombine.high %v411_v50, %v419_v51  ;;  %v13142_v4 = vcombine.low %v411_v50, %v419_v51  ;;  %v13588_v51 = vcombine.low %v858_v41, %v866_v44 }
 0x42d   :  { %8236 = vmatprep.subr.bf16.mxu1 %v13063_v0  ;;  %v427_v0 = vld [vmem:[#allocation5 + $0x838] sm:$0xff] }
 0x42e   :  { %8096 = vmatpush1.bf16.msra.mxu0 %v13428_v63  ;;  %v13525_v63 = vcombine.high %v794_v53, %v802_v56 }
 0x42f   :  { %8097 = vmatprep.subr.bf16.mxu0 %v13445_v1  ;;  %v435_v1 = vld [vmem:[#allocation5 + $0x878] sm:$0xff] }
 0x430   :  { %8237 = vmatpush1.bf16.msra.mxu1 %v13062_v9  ;;  %v13159_v9 = vcombine.high %v427_v0, %v435_v1  ;;  %v13158_v40 = vcombine.low %v427_v0, %v435_v1 }
 0x431   :  { %8238 = vmatprep.subr.bf16.mxu1 %v13079_v12  ;;  %v443_v12 = vld [vmem:[#allocation5 + $0x8b8] sm:$0xff] }
 0x432   :  { %8098 = vmatpush1.bf16.msra.mxu0 %v13444_v11  ;;  %v13541_v11 = vcombine.high %v810_v7, %v818_v2 }
 0x433   :  { %8099 = vmatprep.subr.bf16.mxu0 %v13461_v13  ;;  %v451_v13 = vld [vmem:[#allocation5 + $0x8f8] sm:$0xff] }
 0x434   :  { %8239 = vmatpush1.bf16.msra.mxu1 %v13078_v19  ;;  %v13175_v19 = vcombine.high %v443_v12, %v451_v13  ;;  %v13174_v32 = vcombine.low %v443_v12, %v451_v13 }
 0x435   :  { %8240 = vmatprep.subr.bf16.mxu1 %v13095_v23  ;;  %v459_v23 = vld [vmem:[#allocation5 + $0x938] sm:$0xff] }
 0x436   :  { %8100 = vmatpush1.bf16.msra.mxu0 %v13460_v22  ;;  %v13557_v22 = vcombine.high %v826_v14, %v834_v15 }
 0x437   :  { %8101 = vmatprep.subr.bf16.mxu0 %v13477_v42  ;;  %v467_v42 = vld [vmem:[#allocation5 + $0x978] sm:$0xff] }
 0x438   :  { %8241 = vmatpush1.bf16.msra.mxu1 %v13094_v34  ;;  %v13191_v34 = vcombine.high %v459_v23, %v467_v42  ;;  %v13190_v45 = vcombine.low %v459_v23, %v467_v42 }
 0x439   :  { %8242 = vmatprep.subr.bf16.mxu1 %v13111_v38  ;;  %v475_v38 = vld [vmem:[#allocation5 + $0x9b8] sm:$0xff] }
 0x43a   :  { %8102 = vmatpush1.bf16.msra.mxu0 %v13476_v37  ;;  %v13573_v37 = vcombine.high %v842_v29, %v850_v30 }
 0x43b   :  { %8103 = vmatprep.subr.bf16.mxu0 %v13493_v39  ;;  %v483_v39 = vld [vmem:[#allocation5 + $0x9f8] sm:$0xff] }
 0x43c   :  { %8243 = vmatpush1.bf16.msra.mxu1 %v13110_v47  ;;  %v13207_v46 = vcombine.high %v475_v38, %v483_v39  ;;  %v13589_v47 = vcombine.high %v858_v41, %v866_v44  ;;  %v13206_v50 = vcombine.low %v475_v38, %v483_v39 }
 0x43d   :  { %8244 = vmatprep.subr.bf16.mxu1 %v13127_v48  ;;  %v874_v48 = vld [vmem:[#allocation5 + $0x1630] sm:$0xff] }
 0x43e   :  { %8104 = vmatpush1.bf16.msra.mxu0 %v13492_v57  ;;  %v491_v57 = vld [vmem:[#allocation5 + $0xa38] sm:$0xff] }
 0x43f   :  { %8105 = vmatprep.subr.bf16.mxu0 %v13509_v49  ;;  %v882_v49 = vld [vmem:[#allocation5 + $0x1670] sm:$0xff] }
 0x440   :  { %8245 = vmatpush1.bf16.msra.mxu1 %v13126_v58  ;;  %v13605_v56 = vcombine.high %v874_v48, %v882_v49  ;;  %v507_v58 = vld [vmem:[#allocation5 + $0xab8] sm:$0xff]  ;;  %v13604_v1 = vcombine.low %v874_v48, %v882_v49 }
 0x441   :  { %8246 = vmatprep.subr.bf16.mxu1 %v13143_v62  ;;  %v890_v62 = vld [vmem:[#allocation5 + $0x16b0] sm:$0xff] }
 0x442   :  { %8106 = vmatpush1.bf16.msra.mxu0 %v13508_v3  ;;  %v515_v3 = vld [vmem:[#allocation5 + $0xaf8] sm:$0xff] }
 0x443   :  { %8107 = vmatprep.subr.bf16.mxu0 %v13525_v63  ;;  %v898_v63 = vld [vmem:[#allocation5 + $0x16f0] sm:$0xff]  ;;  %v13239_v7 = vcombine.high %v507_v58, %v515_v3  ;;  %v13238_v12 = vcombine.low %v507_v58, %v515_v3 }
 0x444   :  { %8247 = vmatpush1.bf16.msra.mxu1 %v13142_v4  ;;  %v13621_v2 = vcombine.high %v890_v62, %v898_v63  ;;  %v523_v4 = vld [vmem:[#allocation5 + $0xb38] sm:$0xff]  ;;  %v13620_v13 = vcombine.low %v890_v62, %v898_v63 }
 0x445   :  { %8257 = vmatprep.subr.bf16.mxu1 %v13159_v9  ;;  %v906_v9 = vld [vmem:[#allocation5 + $0x1730] sm:$0xff] }
 0x446   :  { %8108 = vmatpush1.bf16.msra.mxu0 %v13524_v6  ;;  %v531_v6 = vld [vmem:[#allocation5 + $0xb78] sm:$0xff] }
 0x447   :  { %8109 = vmatprep.subr.bf16.mxu0 %v13541_v11  ;;  %8249 = vmatmul.mubr.bf16.vlgmr.msra.gmra.mrb[16].mxu1 %v16146_v16  ;;  %v13572_v16 = vcombine.low %v842_v29, %v850_v30  ;;  %v914_v11 = vld [vmem:[#allocation5 + $0x1770] sm:$0xff]  ;;  %v13255_v14 = vcombine.high %v523_v4, %v531_v6  ;;  %v13254_v23 = vcombine.low %v523_v4, %v531_v6 }
 0x448   :  { %8258 = vmatpush1.bf16.msra.mxu1 %v13158_v40  ;;  %8289 = vmatprep.mubr.bf16.mxu1 %v16142_v61  ;;  %v499_v61 = vld [vmem:[#allocation5 + $0xa78] sm:$0xff]  ;;  %v13637_v15 = vcombine.high %v906_v9, %v914_v11  ;;  %v13636_v42 = vcombine.low %v906_v9, %v914_v11 }
 0x449   :  { %8259 = vmatprep.subr.bf16.mxu1 %v13175_v19  ;;  %v13223_v53 = vcombine.high %v491_v57, %v499_v61  ;;  %v13222_v0 = vcombine.low %v491_v57, %v499_v61  ;;  %v539_v40 = vld [vmem:[#allocation5 + $0xbb8] sm:$0xff]  ;;  %v922_v19 = vld [vmem:[#allocation5 + $0x17b0] sm:$0xff] }
 0x44a   :  { %8110 = vmatpush1.bf16.msra.mxu0 %v13540_v17  ;;  %v547_v17 = vld [vmem:[#allocation5 + $0xbf8] sm:$0xff] }
 0x44b   :  { %8111 = vmatprep.subr.bf16.mxu0 %v13557_v22  ;;  %v930_v22 = vld [vmem:[#allocation5 + $0x17f0] sm:$0xff]  ;;  %v13271_v29 = vcombine.high %v539_v40, %v547_v17  ;;  %v13270_v38 = vcombine.low %v539_v40, %v547_v17 }
 0x44c   :  { %8260 = vmatpush1.bf16.msra.mxu1 %v13174_v32  ;;  %v13653_v30 = vcombine.high %v922_v19, %v930_v22  ;;  %v555_v32 = vld [vmem:[#allocation5 + $0xc38] sm:$0xff]  ;;  %v13652_v39 = vcombine.low %v922_v19, %v930_v22 }
 0x44d   :  { %8261 = vmatprep.subr.bf16.mxu1 %v13191_v34  ;;  %v938_v34 = vld [vmem:[#allocation5 + $0x1830] sm:$0xff] }
 0x44e   :  { %8112 = vmatpush1.bf16.msra.mxu0 %v13556_v33  ;;  %v563_v33 = vld [vmem:[#allocation5 + $0xc78] sm:$0xff] }
 0x44f   :  { %8113 = vmatprep.subr.bf16.mxu0 %v13573_v37  ;;  %v946_v37 = vld [vmem:[#allocation5 + $0x1870] sm:$0xff]  ;;  %v13287_v41 = vcombine.high %v555_v32, %v563_v33  ;;  %v13286_v57 = vcombine.low %v555_v32, %v563_v33 }
 0x450   :  { %8262 = vmatpush1.bf16.msra.mxu1 %v13190_v45  ;;  %v13669_v44 = vcombine.high %v938_v34, %v946_v37  ;;  %v571_v45 = vld [vmem:[#allocation5 + $0xcb8] sm:$0xff]  ;;  %v13668_v61 = vcombine.low %v938_v34, %v946_v37 }
 0x451   :  { %8263 = vmatprep.subr.bf16.mxu1 %v13207_v46  ;;  %v954_v46 = vld [vmem:[#allocation5 + $0x18b0] sm:$0xff] }
 0x452   :  { %8114 = vmatpush1.bf16.msra.mxu0 %v13572_v16  ;;  %v579_v16 = vld [vmem:[#allocation5 + $0xcf8] sm:$0xff] }
 0x453   :  { %8115 = vmatprep.subr.bf16.mxu0 %v13589_v47  ;;  %v962_v47 = vld [vmem:[#allocation5 + $0x18f0] sm:$0xff]  ;;  %v13303_v48 = vcombine.high %v571_v45, %v579_v16  ;;  %v13302_v58 = vcombine.low %v571_v45, %v579_v16 }
 0x454   :  { %8264 = vmatpush1.bf16.msra.mxu1 %v13206_v50  ;;  %v13685_v49 = vcombine.high %v954_v46, %v962_v47  ;;  %v587_v50 = vld [vmem:[#allocation5 + $0xd38] sm:$0xff]  ;;  %v13684_v3 = vcombine.low %v954_v46, %v962_v47 }
 0x455   :  { %8265 = vmatprep.subr.bf16.mxu1 %v13223_v53  ;;  %v970_v53 = vld [vmem:[#allocation5 + $0x1930] sm:$0xff] }
 0x456   :  { %8116 = vmatpush1.bf16.msra.mxu0 %v13588_v51  ;;  %v595_v51 = vld [vmem:[#allocation5 + $0xd78] sm:$0xff] }
 0x457   :  { %8117 = vmatprep.subr.bf16.mxu0 %v13605_v56  ;;  %v978_v56 = vld [vmem:[#allocation5 + $0x1970] sm:$0xff]  ;;  %v13319_v62 = vcombine.high %v587_v50, %v595_v51  ;;  %v13318_v4 = vcombine.low %v587_v50, %v595_v51 }
 0x458   :  { %8266 = vmatpush1.bf16.msra.mxu1 %v13222_v0  ;;  %v13701_v63 = vcombine.high %v970_v53, %v978_v56  ;;  %v603_v0 = vld [vmem:[#allocation5 + $0xdb8] sm:$0xff]  ;;  %v13700_v6 = vcombine.low %v970_v53, %v978_v56  ;;  %v1058_v50 = vld [vmem:[#allocation5 + $0x1bf0] sm:$0xff] }
 0x459   :  { %8267 = vmatprep.subr.bf16.mxu1 %v13239_v7  ;;  %v986_v7 = vld [vmem:[#allocation5 + $0x19b0] sm:$0xff] }
 0x45a   :  { %8118 = vmatpush1.bf16.msra.mxu0 %v13604_v1  ;;  %v611_v1 = vld [vmem:[#allocation5 + $0xdf8] sm:$0xff] }
 0x45b   :  { %8119 = vmatprep.subr.bf16.mxu0 %v13621_v2  ;;  %v994_v2 = vld [vmem:[#allocation5 + $0x19f0] sm:$0xff]  ;;  %v13335_v9 = vcombine.high %v603_v0, %v611_v1  ;;  %v13334_v40 = vcombine.low %v603_v0, %v611_v1  ;;  %v683_v0 = vld [vmem:[#allocation5 + $0x1038] sm:$0xff] }
 0x45c   :  { %8268 = vmatpush1.bf16.msra.mxu1 %v13238_v12  ;;  %v13717_v11 = vcombine.high %v986_v7, %v994_v2  ;;  %v619_v12 = vld [vmem:[#allocation5 + $0xe38] sm:$0xff]  ;;  %v13716_v17 = vcombine.low %v986_v7, %v994_v2  ;;  %v1066_v7 = vld [vmem:[#allocation5 + $0x1c30] sm:$0xff] }
 0x45d   :  { %8269 = vmatprep.subr.bf16.mxu1 %v13255_v14  ;;  %v1002_v14 = vld [vmem:[#allocation5 + $0x1a30] sm:$0xff]  ;;  %v691_v1 = vld [vmem:[#allocation5 + $0x1078] sm:$0xff] }
 0x45e   :  { %8120 = vmatpush1.bf16.msra.mxu0 %v13620_v13  ;;  %v627_v13 = vld [vmem:[#allocation5 + $0xe78] sm:$0xff]  ;;  %v1074_v2 = vld [vmem:[#allocation5 + $0x1c70] sm:$0xff] }
 0x45f   :  { %8121 = vmatprep.subr.bf16.mxu0 %v13637_v15  ;;  %v1010_v15 = vld [vmem:[#allocation5 + $0x1a70] sm:$0xff]  ;;  %v13351_v19 = vcombine.high %v619_v12, %v627_v13  ;;  %v13350_v32 = vcombine.low %v619_v12, %v627_v13  ;;  %v699_v12 = vld [vmem:[#allocation5 + $0x10b8] sm:$0xff] }
 0x460   :  { %8270 = vmatpush1.bf16.msra.mxu1 %v13254_v23  ;;  %v13733_v22 = vcombine.high %v1002_v14, %v1010_v15  ;;  %v635_v23 = vld [vmem:[#allocation5 + $0xeb8] sm:$0xff]  ;;  %v13732_v33 = vcombine.low %v1002_v14, %v1010_v15  ;;  %v1082_v14 = vld [vmem:[#allocation5 + $0x1cb0] sm:$0xff] }
 0x461   :  { %8271 = vmatprep.subr.bf16.mxu1 %v13271_v29  ;;  %v1018_v29 = vld [vmem:[#allocation5 + $0x1ab0] sm:$0xff]  ;;  %v707_v13 = vld [vmem:[#allocation5 + $0x10f8] sm:$0xff] }
 0x462   :  { %8122 = vmatpush1.bf16.msra.mxu0 %v13636_v42  ;;  %v643_v42 = vld [vmem:[#allocation5 + $0xef8] sm:$0xff]  ;;  %v1090_v15 = vld [vmem:[#allocation5 + $0x1cf0] sm:$0xff] }
 0x463   :  { %8123 = vmatprep.subr.bf16.mxu0 %v13653_v30  ;;  %v1026_v30 = vld [vmem:[#allocation5 + $0x1af0] sm:$0xff]  ;;  %v13367_v34 = vcombine.high %v635_v23, %v643_v42  ;;  %v13366_v45 = vcombine.low %v635_v23, %v643_v42  ;;  %v715_v23 = vld [vmem:[#allocation5 + $0x1138] sm:$0xff] }
 0x464   :  { %8272 = vmatpush1.bf16.msra.mxu1 %v13270_v38  ;;  %v13749_v37 = vcombine.high %v1018_v29, %v1026_v30  ;;  %v651_v38 = vld [vmem:[#allocation5 + $0xf38] sm:$0xff]  ;;  %v13748_v16 = vcombine.low %v1018_v29, %v1026_v30  ;;  %v1098_v29 = vld [vmem:[#allocation5 + $0x1d30] sm:$0xff] }
 0x465   :  { %8273 = vmatprep.subr.bf16.mxu1 %v13287_v41  ;;  %v1034_v41 = vld [vmem:[#allocation5 + $0x1b30] sm:$0xff]  ;;  %v723_v42 = vld [vmem:[#allocation5 + $0x1178] sm:$0xff] }
 0x466   :  { %8124 = vmatpush1.bf16.msra.mxu0 %v13652_v39  ;;  %v659_v39 = vld [vmem:[#allocation5 + $0xf78] sm:$0xff]  ;;  %v1106_v30 = vld [vmem:[#allocation5 + $0x1d70] sm:$0xff] }
 0x467   :  { %8134 = vmatprep.subr.bf16.mxu0 %v13669_v44  ;;  %v1042_v44 = vld [vmem:[#allocation5 + $0x1b70] sm:$0xff]  ;;  %v13383_v46 = vcombine.high %v651_v38, %v659_v39  ;;  %v13382_v53 = vcombine.low %v651_v38, %v659_v39  ;;  %v731_v38 = vld [vmem:[#allocation5 + $0x11b8] sm:$0xff] }
 0x468   :  { %8274 = vmatpush1.bf16.msra.mxu1 %v13286_v57  ;;  %v13765_v47 = vcombine.high %v1034_v41, %v1042_v44  ;;  %v667_v57 = vld [vmem:[#allocation5 + $0xfb8] sm:$0xff] }
 0x469   :  { %8126 = vmatmul.mubr.bf16.vlgmr.msra.gmra.mrb[16].mxu0 %v16156_v35  ;;  %8275 = vmatprep.subr.bf16.mxu1 %v13303_v48  ;;  %v739_v39 = vld [vmem:[#allocation5 + $0x11f8] sm:$0xff] }
 0x46a   :  { %8135 = vmatpush1.bf16.msra.mxu0 %v13668_v61  ;;  %8166 = vmatprep.mubr.bf16.mxu0 %v16158_v43  ;;  %v675_v61 = vld [vmem:[#allocation5 + $0xff8] sm:$0xff] }
 0x46b   :  { %8136 = vmatprep.subr.bf16.mxu0 %v13685_v49  ;;  %v1050_v49 = vld [vmem:[#allocation5 + $0x1bb0] sm:$0xff] }
 0x46c   :  { %8276 = vmatpush1.bf16.msra.mxu1 %v13302_v58  ;;  %v13764_v58 = vcombine.low %v1034_v41, %v1042_v44  ;;  %v1114_v41 = vld [vmem:[#allocation5 + $0x1db0] sm:$0xff] }
 0x46d   :  { %8277 = vmatprep.subr.bf16.mxu1 %v13319_v62  ;;  %v1122_v44 = vld [vmem:[#allocation5 + $0x1df0] sm:$0xff] }
 0x46e   :  { %8137 = vmatpush1.bf16.msra.mxu0 %v13684_v3  ;;  %v13399_v3 = vcombine.high %v667_v57, %v675_v61 }
 0x46f   :  { %8138 = vmatprep.subr.bf16.mxu0 %v13701_v63  ;;  %v13781_v63 = vcombine.high %v1050_v49, %v1058_v50 }
 0x470   :  { %8278 = vmatpush1.bf16.msra.mxu1 %v13318_v4  ;;  %v13398_v4 = vcombine.low %v667_v57, %v675_v61  ;;  %v1130_v57 = vld [vmem:[#allocation5 + $0x1e30] sm:$0xff] }
 0x471   :  { %8279 = vmatprep.subr.bf16.mxu1 %v13335_v9  ;;  %v13415_v9 = vcombine.high %v683_v0, %v691_v1  ;;  %v1138_v61 = vld [vmem:[#allocation5 + $0x1e70] sm:$0xff] }
 0x472   :  { %8139 = vmatpush1.bf16.msra.mxu0 %v13700_v6  ;;  %v13780_v6 = vcombine.low %v1050_v49, %v1058_v50  ;;  %v13462_v49 = vcombine.low %v731_v38, %v739_v39  ;;  %v13844_v50 = vcombine.low %v1114_v41, %v1122_v44 }
 0x473   :  { %8140 = vmatprep.subr.bf16.mxu0 %v13717_v11  ;;  %v13797_v11 = vcombine.high %v1066_v7, %v1074_v2 }
 0x474   :  { %8280 = vmatpush1.bf16.msra.mxu1 %v13334_v40  ;;  %v13414_v40 = vcombine.low %v683_v0, %v691_v1  ;;  %v13860_v1 = vcombine.low %v1130_v57, %v1138_v61 }
 0x475   :  { %8281 = vmatprep.subr.bf16.mxu1 %v13351_v19  ;;  %v13431_v19 = vcombine.high %v699_v12, %v707_v13 }
 0x476   :  { %8141 = vmatpush1.bf16.msra.mxu0 %v13716_v17  ;;  %v13796_v17 = vcombine.low %v1066_v7, %v1074_v2 }
 0x477   :  { %8142 = vmatprep.subr.bf16.mxu0 %v13733_v22  ;;  %v13813_v22 = vcombine.high %v1082_v14, %v1090_v15 }
 0x478   :  { %8282 = vmatpush1.bf16.msra.mxu1 %v13350_v32  ;;  %v13430_v32 = vcombine.low %v699_v12, %v707_v13 }
 0x479   :  { %8283 = vmatprep.subr.bf16.mxu1 %v13367_v34  ;;  %v13447_v34 = vcombine.high %v715_v23, %v723_v42 }
 0x47a   :  { %8143 = vmatpush1.bf16.msra.mxu0 %v13732_v33  ;;  %v13812_v33 = vcombine.low %v1082_v14, %v1090_v15 }
 0x47b   :  { %8144 = vmatprep.subr.bf16.mxu0 %v13749_v37  ;;  %v13829_v37 = vcombine.high %v1098_v29, %v1106_v30 }
 0x47c   :  { %v16298_v48 = vpop.f32.mrb[12].mxu0  ;;  %8284 = vmatpush1.bf16.msra.mxu1 %v13366_v45  ;;  %v13446_v45 = vcombine.low %v715_v23, %v723_v42 }
 0x47d   :  { %v16300_v51 = vpop.f32.mrb[13].mxu0  ;;  %8285 = vmatprep.subr.bf16.mxu1 %v13383_v46  ;;  %v13845_v46 = vcombine.high %v1114_v41, %v1122_v44 }
 0x47e   :  { %v7803_v56 = vpop.f32.mrb[14].mxu0  ;;  %8145 = vmatpush1.bf16.msra.mxu0 %v13748_v16  ;;  %v13463_v16 = vcombine.high %v731_v38, %v739_v39 }
 0x47f   :  { %v7804_v62 = vpop.f32.mrb[15].mxu0  ;;  %8146 = vmatprep.subr.bf16.mxu0 %v13765_v47  ;;  %v747_v47 = vld [vmem:[#allocation5 + $0x1238] sm:$0xff]  ;;  %v13861_v56 = vcombine.high %v1130_v57, %v1138_v61 }
 0x480   :  { %8286 = vmatpush1.bf16.msra.mxu1 %v13382_v53  ;;  %v1146_v62 = vld [vmem:[#allocation5 + $0x1eb0] sm:$0xff] }
 0x481   :  { %8287 = vmatprep.subr.bf16.mxu1 %v13399_v3  ;;  %v771_v3 = vld [vmem:[#allocation5 + $0x12f8] sm:$0xff] }
 0x482   :  { %8147 = vmatpush1.bf16.msra.mxu0 %v13764_v58  ;;  %v763_v58 = vld [vmem:[#allocation5 + $0x12b8] sm:$0xff] }
 0x483   :  { %8148 = vmatprep.subr.bf16.mxu0 %v13781_v63  ;;  %v1154_v63 = vld [vmem:[#allocation5 + $0x1ef0] sm:$0xff]  ;;  %v13495_v7 = vcombine.high %v763_v58, %v771_v3  ;;  %v13494_v12 = vcombine.low %v763_v58, %v771_v3 }
 0x484   :  { %8288 = vmatpush1.bf16.msra.mxu1 %v13398_v4  ;;  %v13877_v2 = vcombine.high %v1146_v62, %v1154_v63  ;;  %v779_v4 = vld [vmem:[#allocation5 + $0x1338] sm:$0xff]  ;;  %v13876_v13 = vcombine.low %v1146_v62, %v1154_v63 }
 0x485   :  { %8298 = vmatprep.subr.bf16.mxu1 %v13415_v9  ;;  %v1162_v9 = vld [vmem:[#allocation5 + $0x1f30] sm:$0xff] }
 0x486   :  { %8149 = vmatpush1.bf16.msra.mxu0 %v13780_v6  ;;  %v787_v6 = vld [vmem:[#allocation5 + $0x1378] sm:$0xff] }
 0x487   :  { %8150 = vmatprep.subr.bf16.mxu0 %v13797_v11  ;;  %8290 = vmatmul.mubr.bf16.vlgmr.msra.gmra.mrb[16].mxu1 %v16148_v21  ;;  %v13828_v21 = vcombine.low %v1098_v29, %v1106_v30  ;;  %v1170_v11 = vld [vmem:[#allocation5 + $0x1f70] sm:$0xff]  ;;  %v13511_v14 = vcombine.high %v779_v4, %v787_v6  ;;  %v13510_v23 = vcombine.low %v779_v4, %v787_v6 }
 0x488   :  { %8299 = vmatpush1.bf16.msra.mxu1 %v13414_v40  ;;  %8330 = vmatprep.mubr.bf16.mxu1 %v16150_v27  ;;  %v755_v27 = vld [vmem:[#allocation5 + $0x1278] sm:$0xff]  ;;  %v13893_v15 = vcombine.high %v1162_v9, %v1170_v11  ;;  %v13892_v42 = vcombine.low %v1162_v9, %v1170_v11 }
 0x489   :  { %8300 = vmatprep.subr.bf16.mxu1 %v13431_v19  ;;  %v13479_v53 = vcombine.high %v747_v47, %v755_v27  ;;  %v13478_v0 = vcombine.low %v747_v47, %v755_v27  ;;  %v795_v40 = vld [vmem:[#allocation5 + $0x13b8] sm:$0xff]  ;;  %v1178_v19 = vld [vmem:[#allocation5 + $0x1fb0] sm:$0xff] }
 0x48a   :  { %8151 = vmatpush1.bf16.msra.mxu0 %v13796_v17  ;;  %v803_v17 = vld [vmem:[#allocation5 + $0x13f8] sm:$0xff] }
 0x48b   :  { %8152 = vmatprep.subr.bf16.mxu0 %v13813_v22  ;;  %v1186_v22 = vld [vmem:[#allocation5 + $0x1ff0] sm:$0xff]  ;;  %v13527_v29 = vcombine.high %v795_v40, %v803_v17  ;;  %v13526_v38 = vcombine.low %v795_v40, %v803_v17 }
 0x48c   :  { %8301 = vmatpush1.bf16.msra.mxu1 %v13430_v32  ;;  %v13909_v30 = vcombine.high %v1178_v19, %v1186_v22  ;;  %v811_v32 = vld [vmem:[#allocation5 + $0x1438] sm:$0xff]  ;;  %v13908_v39 = vcombine.low %v1178_v19, %v1186_v22  ;;  %v14847_v17 = vld [vmem:[#allocation8 + $0x4] ss:$16 sps:$4 sm:$0xff]   ;;  %v8422_v19 = vmax.f32 %v16216_v59, 0.0  ;;  %v14848_v59 = vld [vmem:[#allocation8 + $0x20] ss:$16 sps:$4 sm:$0xff]  }
 0x48d   :  { %8302 = vmatprep.subr.bf16.mxu1 %v13447_v34  ;;  %v1194_v34 = vld [vmem:[#allocation5 + $0x2030] sm:$0xff]  ;;  %v891_v22 = vld [vmem:[#allocation5 + $0x16b8] sm:$0xff] }
 0x48e   :  { %8153 = vmatpush1.bf16.msra.mxu0 %v13812_v33  ;;  %v819_v33 = vld [vmem:[#allocation5 + $0x1478] sm:$0xff] }
 0x48f   :  { %8154 = vmatprep.subr.bf16.mxu0 %v13829_v37  ;;  %v1202_v37 = vld [vmem:[#allocation5 + $0x2070] sm:$0xff]  ;;  %v13543_v41 = vcombine.high %v811_v32, %v819_v33  ;;  %v13542_v47 = vcombine.low %v811_v32, %v819_v33  ;;  %v907_v33 = vld [vmem:[#allocation5 + $0x1738] sm:$0xff] }
 0x490   :  { %8303 = vmatpush1.bf16.msra.mxu1 %v13446_v45  ;;  %v13925_v44 = vcombine.high %v1194_v34, %v1202_v37  ;;  %v827_v45 = vld [vmem:[#allocation5 + $0x14b8] sm:$0xff]  ;;  %v13924_v27 = vcombine.low %v1194_v34, %v1202_v37  ;;  %v14850_v32 = vld [vmem:[#allocation8 + $0x24] ss:$16 sps:$4 sm:$0xff]   ;;  %v16309_v37 = vpack.c.bf16 %v8422_v19, %v8422_v19  ;;  %v14866_v19 = vld [vmem:[#allocation8 + $0xe0] ss:$16 sps:$4 sm:$0xff]  }
 0x491   :  { %8304 = vmatprep.subr.bf16.mxu1 %v13463_v16  ;;  %v1210_v16 = vld [vmem:[#allocation5 + $0x20b0] sm:$0xff]  ;;  %v915_v34 = vld [vmem:[#allocation5 + $0x1778] sm:$0xff] }
 0x492   :  { %8155 = vmatpush1.bf16.msra.mxu0 %v13828_v21  ;;  %v835_v21 = vld [vmem:[#allocation5 + $0x14f8] sm:$0xff] }
 0x493   :  { %8156 = vmatprep.subr.bf16.mxu0 %v13845_v46  ;;  %v1218_v46 = vld [vmem:[#allocation5 + $0x20f0] sm:$0xff]  ;;  %v13559_v57 = vcombine.high %v827_v45, %v835_v21  ;;  %v13558_v58 = vcombine.low %v827_v45, %v835_v21  ;;  %v931_v45 = vld [vmem:[#allocation5 + $0x17f8] sm:$0xff]  ;;  %v13638_v21 = vcombine.low %v907_v33, %v915_v34 }
 0x494   :  { %8305 = vmatpush1.bf16.msra.mxu1 %v13462_v49  ;;  %v13941_v61 = vcombine.high %v1210_v16, %v1218_v46  ;;  %v843_v49 = vld [vmem:[#allocation5 + $0x1538] sm:$0xff]  ;;  %v13940_v3 = vcombine.low %v1210_v16, %v1218_v46  ;;  %v14851_v16 = vld [vmem:[#allocation8 + $0x40] ss:$16 sps:$4 sm:$0xff]  }
 0x495   :  { %8306 = vmatprep.subr.bf16.mxu1 %v13479_v53  ;;  %v1226_v53 = vld [vmem:[#allocation5 + $0x2130] sm:$0xff] }
 0x496   :  { %8157 = vmatpush1.bf16.msra.mxu0 %v13844_v50  ;;  %v851_v50 = vld [vmem:[#allocation5 + $0x1578] sm:$0xff] }
 0x497   :  { %8158 = vmatprep.subr.bf16.mxu0 %v13861_v56  ;;  %v1234_v56 = vld [vmem:[#allocation5 + $0x2170] sm:$0xff]  ;;  %v13575_v62 = vcombine.high %v843_v49, %v851_v50 }
 0x498   :  { %8307 = vmatpush1.bf16.msra.mxu1 %v13478_v0  ;;  %v13957_v63 = vcombine.high %v1226_v53, %v1234_v56  ;;  %v859_v0 = vld [vmem:[#allocation5 + $0x15b8] sm:$0xff]  ;;  %v13956_v4 = vcombine.low %v1226_v53, %v1234_v56  ;;  %v14859_v53 = vld [vmem:[#allocation8 + $0x84] ss:$16 sps:$4 sm:$0xff]  }
 0x499   :  { %8308 = vmatprep.subr.bf16.mxu1 %v13495_v7  ;;  %v1242_v7 = vld [vmem:[#allocation5 + $0x21b0] sm:$0xff]  ;;  %v955_v56 = vld [vmem:[#allocation5 + $0x18b8] sm:$0xff] }
 0x49a   :  { %8159 = vmatpush1.bf16.msra.mxu0 %v13860_v1  ;;  %v867_v1 = vld [vmem:[#allocation5 + $0x15f8] sm:$0xff]  ;;  %v13973_v9 = vcombine.high %v1242_v7, %v1242_v7  ;;  %v13972_v11 = vcombine.low %v1242_v7, %v1242_v7 }
 0x49b   :  { %8160 = vmatprep.subr.bf16.mxu0 %v13877_v2  ;;  %v13574_v2 = vcombine.low %v843_v49, %v851_v50  ;;  %v13591_v6 = vcombine.high %v859_v0, %v867_v1  ;;  %v14854_v49 = vld [vmem:[#allocation8 + $0x60] ss:$16 sps:$4 sm:$0xff]   ;;  %v979_v7 = vld [vmem:[#allocation5 + $0x1978] sm:$0xff] }
 0x49c   :  { %8309 = vmatpush1.bf16.msra.mxu1 %v13494_v12  ;;  %v875_v12 = vld [vmem:[#allocation5 + $0x1638] sm:$0xff]  ;;  %v6770_v40 = vsel %vm6732_vm0, %v13972_v11, 0 }
 0x49d   :  { %8310 = vmatprep.subr.bf16.mxu1 %v13511_v14  ;;  %v13590_v14 = vcombine.low %v859_v0, %v867_v1  ;;  %v14862_v0 = vld [vmem:[#allocation8 + $0xa4] ss:$16 sps:$4 sm:$0xff]   ;;  %v971_v1 = vld [vmem:[#allocation5 + $0x1938] sm:$0xff] }
 0x49e   :  { %8161 = vmatpush1.bf16.msra.mxu0 %v13876_v13  ;;  %v883_v13 = vld [vmem:[#allocation5 + $0x1678] sm:$0xff] }
 0x49f   :  { %8162 = vmatprep.subr.bf16.mxu0 %v13893_v15  ;;  %v13607_v15 = vcombine.high %v875_v12, %v883_v13  ;;  %v987_v11 = vld [vmem:[#allocation5 + $0x19b8] sm:$0xff] }
 0x4a0   :  { %8311 = vmatpush1.bf16.msra.mxu1 %v13510_v23  ;;  %v899_v23 = vld [vmem:[#allocation5 + $0x16f8] sm:$0xff] }
 0x4a1   :  { %8312 = vmatprep.subr.bf16.mxu1 %v13527_v29  ;;  %v14845_v29 = vld [vmem:[#allocation8] ss:$16 sps:$4 sm:$0xff]  }
 0x4a2   :  { %8163 = vmatpush1.bf16.msra.mxu0 %v13892_v42  ;;  %v13606_v42 = vcombine.low %v875_v12, %v883_v13  ;;  %v995_v12 = vld [vmem:[#allocation5 + $0x19f8] sm:$0xff]  ;;  %v13702_v13 = vcombine.low %v971_v1, %v979_v7 }
 0x4a3   :  { %8164 = vmatprep.subr.bf16.mxu0 %v13909_v30  ;;  %v13623_v30 = vcombine.high %v891_v22, %v899_v23 }
 0x4a4   :  { %8313 = vmatpush1.bf16.msra.mxu1 %v13526_v38  ;;  %v13622_v38 = vcombine.low %v891_v22, %v899_v23  ;;  %v14871_v23 = vld [vmem:[#allocation8 + $0x104] ss:$16 sps:$4 sm:$0xff]  }
 0x4a5   :  { %8314 = vmatprep.subr.bf16.mxu1 %v13543_v41  ;;  %v14853_v41 = vld [vmem:[#allocation8 + $0x44] ss:$16 sps:$4 sm:$0xff]  }
 0x4a6   :  { %8165 = vmatpush1.bf16.msra.mxu0 %v13908_v39  ;;  %v13639_v39 = vcombine.high %v907_v33, %v915_v34  ;;  %v14874_v34 = vld [vmem:[#allocation8 + $0x124] ss:$16 sps:$4 sm:$0xff]  }
 0x4a7   :  { %8175 = vmatprep.subr.bf16.mxu0 %v13925_v44  ;;  %v923_v44 = vld [vmem:[#allocation5 + $0x17b8] sm:$0xff] }
 0x4a8   :  { %8315 = vmatpush1.bf16.msra.mxu1 %v13542_v47  ;;  %v13655_v46 = vcombine.high %v923_v44, %v931_v45  ;;  %v14856_v47 = vld [vmem:[#allocation8 + $0x64] ss:$16 sps:$4 sm:$0xff]  }
 0x4a9   :  { %8167 = vmatmul.mubr.bf16.vlgmr.msra.gmra.mrb[16].mxu0 %v16164_v52  ;;  %8316 = vmatprep.subr.bf16.mxu1 %v13559_v57  ;;  %v947_v57 = vld [vmem:[#allocation5 + $0x1878] sm:$0xff] }
 0x4aa   :  { %8176 = vmatpush1.bf16.msra.mxu0 %v13924_v27  ;;  %8207 = vmatprep.mubr.bf16.mxu0 %v15977_v5  ;;  %v939_v27 = vld [vmem:[#allocation5 + $0x1838] sm:$0xff] }
 0x4ab   :  { %8177 = vmatprep.subr.bf16.mxu0 %v13941_v61  ;;  %v13654_v61 = vcombine.low %v923_v44, %v931_v45  ;;  %v13671_v50 = vcombine.high %v939_v27, %v947_v57 }
 0x4ac   :  { %8317 = vmatpush1.bf16.msra.mxu1 %v13558_v58  ;;  %v963_v58 = vld [vmem:[#allocation5 + $0x18f8] sm:$0xff] }
 0x4ad   :  { %8318 = vmatprep.subr.bf16.mxu1 %v13575_v62  ;;  %v14857_v62 = vld [vmem:[#allocation8 + $0x80] ss:$16 sps:$4 sm:$0xff]  }
 0x4ae   :  { %8178 = vmatpush1.bf16.msra.mxu0 %v13940_v3  ;;  %v13670_v3 = vcombine.low %v939_v27, %v947_v57 }
 0x4af   :  { %8179 = vmatprep.subr.bf16.mxu0 %v13957_v63  ;;  %v13687_v63 = vcombine.high %v955_v56, %v963_v58 }
 0x4b0   :  { %8319 = vmatpush1.bf16.msra.mxu1 %v13574_v2  ;;  %v13686_v2 = vcombine.low %v955_v56, %v963_v58  ;;  %v1067_v56 = vld [vmem:[#allocation5 + $0x1c38] sm:$0xff] }
 0x4b1   :  { %8320 = vmatprep.subr.bf16.mxu1 %v13591_v6  ;;  %v13703_v6 = vcombine.high %v971_v1, %v979_v7  ;;  %v1075_v58 = vld [vmem:[#allocation5 + $0x1c78] sm:$0xff] }
 0x4b2   :  { %8180 = vmatpush1.bf16.msra.mxu0 %v13956_v4  ;;  %v14860_v4 = vld [vmem:[#allocation8 + $0xa0] ss:$16 sps:$4 sm:$0xff]   ;;  %v1083_v1 = vld [vmem:[#allocation5 + $0x1cb8] sm:$0xff] }
 0x4b3   :  { %13988 = vmatprep.subr.msk.bf16.mxu0 %vm6732_vm0, %v13973_v9  ;;  %v14865_v9 = vld [vmem:[#allocation8 + $0xc4] ss:$16 sps:$4 sm:$0xff]   ;;  %v1091_v7 = vld [vmem:[#allocation5 + $0x1cf8] sm:$0xff] }
 0x4b4   :  { %8321 = vmatpush1.bf16.msra.mxu1 %v13590_v14  ;;  %v14863_v14 = vld [vmem:[#allocation8 + $0xc0] ss:$16 sps:$4 sm:$0xff]  }
 0x4b5   :  { %8322 = vmatprep.subr.bf16.mxu1 %v13607_v15  ;;  %v13719_v15 = vcombine.high %v987_v11, %v995_v12 }
 0x4b6   :  { %8182 = vmatpush1.bf16.msra.mxu0 %v6770_v40  ;;  %v1003_v40 = vld [vmem:[#allocation5 + $0x1a38] sm:$0xff] }
 0x4b7   :  { %11547 = vmatprep.subr.bf16.mxu0 %v14847_v17  ;;  %v1011_v17 = vld [vmem:[#allocation5 + $0x1a78] sm:$0xff] }
 0x4b8   :  { %8323 = vmatpush1.bf16.msra.mxu1 %v13606_v42  ;;  %v13735_v22 = vcombine.high %v1003_v40, %v1011_v17  ;;  %v1019_v42 = vld [vmem:[#allocation5 + $0x1ab8] sm:$0xff] }
 0x4b9   :  { %13989 = vmatmul.mubr.msk.bf16.vlgmr.msra.gmra.mrb[16].mxu0 %vm6728_vm1, %v16172_v26  ;;  %8324 = vmatprep.subr.bf16.mxu1 %v13623_v30  ;;  %v13734_v30 = vcombine.low %v1003_v40, %v1011_v17  ;;  %v1115_v40 = vld [vmem:[#allocation5 + $0x1db8] sm:$0xff] }
 0x4ba   :  { %11548 = vmatpush1.bf16.msra.mxu0 %v14845_v29  ;;  %11579 = vmatprep.mubr.bf16.mxu0 %v16309_v37  ;;  %v1027_v29 = vld [vmem:[#allocation5 + $0x1af8] sm:$0xff] }
 0x4bb   :  { %11549 = vmatprep.subr.bf16.mxu0 %v14850_v32  ;;  %v14869_v32 = vld [vmem:[#allocation8 + $0x100] ss:$16 sps:$4 sm:$0xff]   ;;  %v13751_v33 = vcombine.high %v1019_v42, %v1027_v29  ;;  %v1123_v17 = vld [vmem:[#allocation5 + $0x1df8] sm:$0xff] }
 0x4bc   :  { %8325 = vmatpush1.bf16.msra.mxu1 %v13622_v38  ;;  %v1035_v38 = vld [vmem:[#allocation5 + $0x1b38] sm:$0xff] }
 0x4bd   :  { %8326 = vmatprep.subr.bf16.mxu1 %v13639_v39  ;;  %v13750_v39 = vcombine.low %v1019_v42, %v1027_v29  ;;  %v1131_v42 = vld [vmem:[#allocation5 + $0x1e38] sm:$0xff] }
 0x4be   :  { %11550 = vmatpush1.bf16.msra.mxu0 %v14848_v59  ;;  %v1043_v59 = vld [vmem:[#allocation5 + $0x1b78] sm:$0xff] }
 0x4bf   :  { %11551 = vmatprep.subr.bf16.mxu0 %v14853_v41  ;;  %v14872_v41 = vld [vmem:[#allocation8 + $0x120] ss:$16 sps:$4 sm:$0xff]   ;;  %v13767_v44 = vcombine.high %v1035_v38, %v1043_v59  ;;  %v13766_v57 = vcombine.low %v1035_v38, %v1043_v59  ;;  %v1139_v29 = vld [vmem:[#allocation5 + $0x1e78] sm:$0xff]  ;;  %v14895_v38 = vld [vmem:[#allocation8 + $0x204] ss:$16 sps:$4 sm:$0xff]   ;;  %v8424_v59 = vmax.f32 %v16247_v8, 0.0 }
 0x4c0   :  { %8327 = vmatpush1.bf16.msra.mxu1 %v13638_v21  ;;  %v14877_v21 = vld [vmem:[#allocation8 + $0x144] ss:$16 sps:$4 sm:$0xff]   ;;  %v14896_v8 = vld [vmem:[#allocation8 + $0x220] ss:$16 sps:$4 sm:$0xff]  }
 0x4c1   :  { %8328 = vmatprep.subr.bf16.mxu1 %v13655_v46  ;;  %v1059_v46 = vld [vmem:[#allocation5 + $0x1bf8] sm:$0xff] }
 0x4c2   :  { %11552 = vmatpush1.bf16.msra.mxu0 %v14851_v16  ;;  %v1051_v16 = vld [vmem:[#allocation5 + $0x1bb8] sm:$0xff] }
 0x4c3   :  { %11553 = vmatprep.subr.bf16.mxu0 %v14856_v47 }
 0x4c4   :  { %8329 = vmatpush1.bf16.msra.mxu1 %v13654_v61 }
 0x4c5   :  { %8339 = vmatprep.subr.bf16.mxu1 %v13671_v50  ;;  %v13783_v50 = vcombine.high %v1051_v16, %v1059_v46 }
 0x4c6   :  { %11554 = vmatpush1.bf16.msra.mxu0 %v14854_v49  ;;  %v14875_v49 = vld [vmem:[#allocation8 + $0x140] ss:$16 sps:$4 sm:$0xff]  }
 0x4c7   :  { %11555 = vmatprep.subr.bf16.mxu0 %v14859_v53  ;;  %8331 = vmatmul.mubr.bf16.vlgmr.msra.gmra.mrb[16].mxu1 %v16156_v35  ;;  %v14868_v35 = vld [vmem:[#allocation8 + $0xe4] ss:$16 sps:$4 sm:$0xff]  }
 0x4c8   :  { %8340 = vmatpush1.bf16.msra.mxu1 %v13670_v3  ;;  %8371 = vmatprep.mubr.bf16.mxu1 %v16158_v43  ;;  %v13718_v43 = vcombine.low %v987_v11, %v995_v12  ;;  %v14880_v53 = vld [vmem:[#allocation8 + $0x164] ss:$16 sps:$4 sm:$0xff]   ;;  %v13782_v3 = vcombine.low %v1051_v16, %v1059_v46  ;;  %v1099_v11 = vld [vmem:[#allocation5 + $0x1d38] sm:$0xff] }
 0x4c9   :  { %8341 = vmatprep.subr.bf16.mxu1 %v13687_v63  ;;  %v13799_v63 = vcombine.high %v1067_v56, %v1075_v58  ;;  %v1107_v12 = vld [vmem:[#allocation5 + $0x1d78] sm:$0xff] }
 0x4ca   :  { %11556 = vmatpush1.bf16.msra.mxu0 %v14857_v62  ;;  %v14878_v62 = vld [vmem:[#allocation8 + $0x160] ss:$16 sps:$4 sm:$0xff]  }
 0x4cb   :  { %11557 = vmatprep.subr.bf16.mxu0 %v14862_v0  ;;  %v14883_v0 = vld [vmem:[#allocation8 + $0x184] ss:$16 sps:$4 sm:$0xff]  }
 0x4cc   :  { %8342 = vmatpush1.bf16.msra.mxu1 %v13686_v2  ;;  %v13798_v2 = vcombine.low %v1067_v56, %v1075_v58  ;;  %v1179_v56 = vld [vmem:[#allocation5 + $0x1fb8] sm:$0xff] }
 0x4cd   :  { %8343 = vmatprep.subr.bf16.mxu1 %v13703_v6  ;;  %v13815_v6 = vcombine.high %v1083_v1, %v1091_v7  ;;  %v1187_v58 = vld [vmem:[#allocation5 + $0x1ff8] sm:$0xff] }
 0x4ce   :  { %11558 = vmatpush1.bf16.msra.mxu0 %v14860_v4  ;;  %v14881_v4 = vld [vmem:[#allocation8 + $0x180] ss:$16 sps:$4 sm:$0xff]  }
 0x4cf   :  { %11559 = vmatprep.subr.bf16.mxu0 %v14865_v9  ;;  %v14886_v9 = vld [vmem:[#allocation8 + $0x1a4] ss:$16 sps:$4 sm:$0xff]  }
 0x4d0   :  { %8344 = vmatpush1.bf16.msra.mxu1 %v13702_v13  ;;  %v13814_v13 = vcombine.low %v1083_v1, %v1091_v7  ;;  %v1195_v1 = vld [vmem:[#allocation5 + $0x2038] sm:$0xff] }
 0x4d1   :  { %8345 = vmatprep.subr.bf16.mxu1 %v13719_v15  ;;  %v13831_v15 = vcombine.high %v1099_v11, %v1107_v12  ;;  %v1203_v7 = vld [vmem:[#allocation5 + $0x2078] sm:$0xff] }
 0x4d2   :  { %11560 = vmatpush1.bf16.msra.mxu0 %v14863_v14  ;;  %v14884_v14 = vld [vmem:[#allocation8 + $0x1a0] ss:$16 sps:$4 sm:$0xff]  }
 0x4d3   :  { %11561 = vmatprep.subr.bf16.mxu0 %v14868_v35  ;;  %v14889_v35 = vld [vmem:[#allocation8 + $0x1c4] ss:$16 sps:$4 sm:$0xff]  }
 0x4d4   :  { %8346 = vmatpush1.bf16.msra.mxu1 %v13718_v43  ;;  %v13830_v43 = vcombine.low %v1099_v11, %v1107_v12  ;;  %v1211_v11 = vld [vmem:[#allocation5 + $0x20b8] sm:$0xff] }
 0x4d5   :  { %8347 = vmatprep.subr.bf16.mxu1 %v13735_v22  ;;  %v13847_v22 = vcombine.high %v1115_v40, %v1123_v17  ;;  %v1219_v12 = vld [vmem:[#allocation5 + $0x20f8] sm:$0xff] }
 0x4d6   :  { %11562 = vmatpush1.bf16.msra.mxu0 %v14866_v19  ;;  %v14887_v19 = vld [vmem:[#allocation8 + $0x1c0] ss:$16 sps:$4 sm:$0xff]  }
 0x4d7   :  { %11563 = vmatprep.subr.bf16.mxu0 %v14871_v23  ;;  %v14892_v23 = vld [vmem:[#allocation8 + $0x1e4] ss:$16 sps:$4 sm:$0xff]  }
 0x4d8   :  { %8348 = vmatpush1.bf16.msra.mxu1 %v13734_v30  ;;  %v13846_v30 = vcombine.low %v1115_v40, %v1123_v17  ;;  %v1227_v40 = vld [vmem:[#allocation5 + $0x2138] sm:$0xff] }
 0x4d9   :  { %8349 = vmatprep.subr.bf16.mxu1 %v13751_v33  ;;  %v13863_v33 = vcombine.high %v1131_v42, %v1139_v29  ;;  %v1235_v17 = vld [vmem:[#allocation5 + $0x2178] sm:$0xff] }
 0x4da   :  { %11564 = vmatpush1.bf16.msra.mxu0 %v14869_v32  ;;  %v16316_v45 = vpop.f32.mrb[12].mxu1  ;;  %v14890_v32 = vld [vmem:[#allocation8 + $0x1e0] ss:$16 sps:$4 sm:$0xff]  }
 0x4db   :  { %11565 = vmatprep.subr.bf16.mxu0 %v14874_v34  ;;  %v16318_v47 = vpop.f32.mrb[13].mxu1  ;;  %v8421_v34 = vmax.f32 %v16214_v55, 0.0 }
 0x4dc   :  { %v8008_v27 = vpop.f32.mrb[14].mxu1  ;;  %8350 = vmatpush1.bf16.msra.mxu1 %v13750_v39  ;;  %v1147_v39 = vld [vmem:[#allocation5 + $0x1eb8] sm:$0xff] }
 0x4dd   :  { %v8009_v61 = vpop.f32.mrb[15].mxu1  ;;  %8351 = vmatprep.subr.bf16.mxu1 %v13767_v44  ;;  %v13862_v44 = vcombine.low %v1131_v42, %v1139_v29  ;;  %v16322_v16 = vpack.c.bf16 %v8421_v34, %v8421_v34  ;;  %v14898_v27 = vld [vmem:[#allocation8 + $0x224] ss:$16 sps:$4 sm:$0xff]   ;;  %v1243_v42 = vld [vmem:[#allocation5 + $0x21b8] sm:$0xff]  ;;  %v13958_v29 = vcombine.low %v1227_v40, %v1235_v17 }
 0x4de   :  { %11566 = vmatpush1.bf16.msra.mxu0 %v14872_v41  ;;  %v1155_v41 = vld [vmem:[#allocation5 + $0x1ef8] sm:$0xff] }
 0x4df   :  { %11567 = vmatprep.subr.bf16.mxu0 %v14877_v21  ;;  %v14893_v21 = vld [vmem:[#allocation8 + $0x200] ss:$16 sps:$4 sm:$0xff]   ;;  %v13879_v46 = vcombine.high %v1147_v39, %v1155_v41  ;;  %v1171_v61 = vld [vmem:[#allocation5 + $0x1f78] sm:$0xff]  ;;  %v13878_v55 = vcombine.low %v1147_v39, %v1155_v41 }
 0x4e0   :  { %8352 = vmatpush1.bf16.msra.mxu1 %v13766_v57  ;;  %v1163_v57 = vld [vmem:[#allocation5 + $0x1f38] sm:$0xff]  ;;  %v14919_v41 = vld [vmem:[#allocation8 + $0x300] ss:$16 sps:$4 sm:$0xff]  }
 0x4e1   :  { %8353 = vmatprep.subr.bf16.mxu1 %v13783_v50  ;;  %v13895_v50 = vcombine.high %v1163_v57, %v1171_v61  ;;  %v14922_v39 = vld [vmem:[#allocation8 + $0x8] ss:$16 sps:$4 sm:$0xff]  }
 0x4e2   :  { %11568 = vmatpush1.bf16.msra.mxu0 %v14875_v49  ;;  %v16324_v49 = vpack.c.bf16 %v8424_v59, %v8424_v59  ;;  %v14921_v59 = vld [vmem:[#allocation8 + $0x304] ss:$16 sps:$4 sm:$0xff]  }
 0x4e3   :  { %11569 = vmatprep.subr.bf16.mxu0 %v14880_v53  ;;  %v14901_v53 = vld [vmem:[#allocation8 + $0x244] ss:$16 sps:$4 sm:$0xff]  }
 0x4e4   :  { %8354 = vmatpush1.bf16.msra.mxu1 %v13782_v3  ;;  %v13894_v3 = vcombine.low %v1163_v57, %v1171_v61  ;;  %v14936_v57 = vld [vmem:[#allocation8 + $0x4c] ss:$16 sps:$4 sm:$0xff]   ;;  %v14933_v61 = vld [vmem:[#allocation8 + $0x344] ss:$16 sps:$4 sm:$0xff]  }
 0x4e5   :  { %8355 = vmatprep.subr.bf16.mxu1 %v13799_v63  ;;  %v13911_v63 = vcombine.high %v1179_v56, %v1187_v58 }
 0x4e6   :  { %11570 = vmatpush1.bf16.msra.mxu0 %v14878_v62  ;;  %v14899_v62 = vld [vmem:[#allocation8 + $0x240] ss:$16 sps:$4 sm:$0xff]  }
 0x4e7   :  { %11571 = vmatprep.subr.bf16.mxu0 %v14883_v0  ;;  %v14904_v0 = vld [vmem:[#allocation8 + $0x264] ss:$16 sps:$4 sm:$0xff]  }
 0x4e8   :  { %8356 = vmatpush1.bf16.msra.mxu1 %v13798_v2  ;;  %v13910_v2 = vcombine.low %v1179_v56, %v1187_v58  ;;  %v14937_v56 = vld [vmem:[#allocation8 + $0x360] ss:$16 sps:$4 sm:$0xff]   ;;  %v14945_v58 = vld [vmem:[#allocation8 + $0x384] ss:$16 sps:$4 sm:$0xff]  }
 0x4e9   :  { %8357 = vmatprep.subr.bf16.mxu1 %v13815_v6  ;;  %v13927_v6 = vcombine.high %v1195_v1, %v1203_v7 }
 0x4ea   :  { %11572 = vmatpush1.bf16.msra.mxu0 %v14881_v4  ;;  %v14902_v4 = vld [vmem:[#allocation8 + $0x260] ss:$16 sps:$4 sm:$0xff]  }
 0x4eb   :  { %11573 = vmatprep.subr.bf16.mxu0 %v14886_v9  ;;  %v14907_v9 = vld [vmem:[#allocation8 + $0x284] ss:$16 sps:$4 sm:$0xff]  }
 0x4ec   :  { %8358 = vmatpush1.bf16.msra.mxu1 %v13814_v13  ;;  %v13926_v13 = vcombine.low %v1195_v1, %v1203_v7  ;;  %v1270_v1 = vsub.s32 5, %v16196_v10  ;;  %v14952_v7 = vld [vmem:[#allocation8 + $0xa8] ss:$16 sps:$4 sm:$0xff]  }
 0x4ed   :  { %8359 = vmatprep.subr.bf16.mxu1 %v13831_v15  ;;  %v13943_v15 = vcombine.high %v1211_v11, %v1219_v12 }
 0x4ee   :  { %11574 = vmatpush1.bf16.msra.mxu0 %v14884_v14  ;;  %v14905_v14 = vld [vmem:[#allocation8 + $0x280] ss:$16 sps:$4 sm:$0xff]  }
 0x4ef   :  { %11575 = vmatprep.subr.bf16.mxu0 %v14889_v35  ;;  %v14910_v35 = vld [vmem:[#allocation8 + $0x2a4] ss:$16 sps:$4 sm:$0xff]  }
 0x4f0   :  { %8360 = vmatpush1.bf16.msra.mxu1 %v13830_v43  ;;  %v13942_v43 = vcombine.low %v1211_v11, %v1219_v12  ;;  %v14958_v12 = vld [vmem:[#allocation8 + $0xc8] ss:$16 sps:$4 sm:$0xff]  }
 0x4f1   :  { %8361 = vmatprep.subr.bf16.mxu1 %v13847_v22  ;;  %v13959_v22 = vcombine.high %v1227_v40, %v1235_v17  ;;  %v14964_v40 = vld [vmem:[#allocation8 + $0xe8] ss:$16 sps:$4 sm:$0xff]   ;;  %v14961_v17 = vld [vmem:[#allocation8 + $0x3e0] ss:$16 sps:$4 sm:$0xff]  }
 0x4f2   :  { %11576 = vmatpush1.bf16.msra.mxu0 %v14887_v19  ;;  %v14908_v19 = vld [vmem:[#allocation8 + $0x2a0] ss:$16 sps:$4 sm:$0xff]  }
 0x4f3   :  { %11577 = vmatprep.subr.bf16.mxu0 %v14892_v23  ;;  %v14913_v23 = vld [vmem:[#allocation8 + $0x2c4] ss:$16 sps:$4 sm:$0xff]  }
 0x4f4   :  { %8362 = vmatpush1.bf16.msra.mxu1 %v13846_v30  ;;  %v14911_v30 = vld [vmem:[#allocation8 + $0x2c0] ss:$16 sps:$4 sm:$0xff]  }
 0x4f5   :  { %8363 = vmatprep.subr.bf16.mxu1 %v13863_v33  ;;  %v13974_v33 = vcombine.low %v1243_v42, %v1243_v42 }
 0x4f6   :  { %11578 = vmatpush1.bf16.msra.mxu0 %v14890_v32  ;;  %v13975_v32 = vcombine.high %v1243_v42, %v1243_v42  ;;  %v14970_v42 = vld [vmem:[#allocation8 + $0x108] ss:$16 sps:$4 sm:$0xff]  }
 0x4f7   :  { %11588 = vmatprep.subr.bf16.mxu0 %v14895_v38  ;;  %v6776_v34 = vsel %vm6732_vm0, %v13974_v33, 0  ;;  %v14924_v38 = vld [vmem:[#allocation8 + $0xc] ss:$16 sps:$4 sm:$0xff]  }
 0x4f8   :  { %8364 = vmatpush1.bf16.msra.mxu1 %v13862_v44  ;;  %v14930_v44 = vld [vmem:[#allocation8 + $0x2c] ss:$16 sps:$4 sm:$0xff]  }
 0x4f9   :  { %11580 = vmatmul.mubr.bf16.vlgmr.msra.gmra.mrb[20].mxu0 %v16322_v16  ;;  %8365 = vmatprep.subr.bf16.mxu1 %v13879_v46  ;;  %v14928_v46 = vld [vmem:[#allocation8 + $0x28] ss:$16 sps:$4 sm:$0xff]  }
 0x4fa   :  { %11589 = vmatpush1.bf16.msra.mxu0 %v14893_v21  ;;  %11620 = vmatprep.mubr.bf16.mxu0 %v16324_v49  ;;  %v14927_v21 = vld [vmem:[#allocation8 + $0x324] ss:$16 sps:$4 sm:$0xff]  }
 0x4fb   :  { %11590 = vmatprep.subr.bf16.mxu0 %v14898_v27  ;;  %v14925_v27 = vld [vmem:[#allocation8 + $0x320] ss:$16 sps:$4 sm:$0xff]  }
 0x4fc   :  { %8366 = vmatpush1.bf16.msra.mxu1 %v13878_v55  ;;  %v14934_v55 = vld [vmem:[#allocation8 + $0x48] ss:$16 sps:$4 sm:$0xff]  }
 0x4fd   :  { %8367 = vmatprep.subr.bf16.mxu1 %v13895_v50  ;;  %v14942_v50 = vld [vmem:[#allocation8 + $0x6c] ss:$16 sps:$4 sm:$0xff]  }
 0x4fe   :  { %11591 = vmatpush1.bf16.msra.mxu0 %v14896_v8  ;;  %v14931_v8 = vld [vmem:[#allocation8 + $0x340] ss:$16 sps:$4 sm:$0xff]  }
 0x4ff   :  { %11592 = vmatprep.subr.bf16.mxu0 %v14901_v53  ;;  %v14939_v53 = vld [vmem:[#allocation8 + $0x364] ss:$16 sps:$4 sm:$0xff]  }
 0x500   :  { %8368 = vmatpush1.bf16.msra.mxu1 %v13894_v3  ;;  %v14946_v3 = vld [vmem:[#allocation8 + $0x88] ss:$16 sps:$4 sm:$0xff]  }
 0x501   :  { %8369 = vmatprep.subr.bf16.mxu1 %v13911_v63  ;;  %v14954_v63 = vld [vmem:[#allocation8 + $0xac] ss:$16 sps:$4 sm:$0xff]  }
 0x502   :  { %11593 = vmatpush1.bf16.msra.mxu0 %v14899_v62  ;;  %v14943_v62 = vld [vmem:[#allocation8 + $0x380] ss:$16 sps:$4 sm:$0xff]  }
 0x503   :  { %11594 = vmatprep.subr.bf16.mxu0 %v14904_v0  ;;  %v14951_v0 = vld [vmem:[#allocation8 + $0x3a4] ss:$16 sps:$4 sm:$0xff]  }
 0x504   :  { %8370 = vmatpush1.bf16.msra.mxu1 %v13910_v2  ;;  %v14949_v2 = vld [vmem:[#allocation8 + $0x3a0] ss:$16 sps:$4 sm:$0xff]  }
 0x505   :  { %8380 = vmatprep.subr.bf16.mxu1 %v13927_v6  ;;  %v14957_v6 = vld [vmem:[#allocation8 + $0x3c4] ss:$16 sps:$4 sm:$0xff]  }
 0x506   :  { %11595 = vmatpush1.bf16.msra.mxu0 %v14902_v4  ;;  %v14960_v4 = vld [vmem:[#allocation8 + $0xcc] ss:$16 sps:$4 sm:$0xff]  }
 0x507   :  { %11596 = vmatprep.subr.bf16.mxu0 %v14907_v9  ;;  %8372 = vmatmul.mubr.bf16.vlgmr.msra.gmra.mrb[16].mxu1 %v16164_v52  ;;  %v14917_v52 = vld [vmem:[#allocation8 + $0x2e4] ss:$16 sps:$4 sm:$0xff]  }
 0x508   :  { %8381 = vmatpush1.bf16.msra.mxu1 %v13926_v13  ;;  %8412 = vmatprep.mubr.bf16.mxu1 %v15977_v5  ;;  %v14915_v5 = vld [vmem:[#allocation8 + $0x2e0] ss:$16 sps:$4 sm:$0xff]  }
 0x509   :  { %8382 = vmatprep.subr.bf16.mxu1 %v13943_v15  ;;  %v16336_v9 = vld [vmem:[#allocation7] sm:$0xff] }
 0x50a   :  { %11597 = vmatpush1.bf16.msra.mxu0 %v14905_v14  ;;  %v1271_v11 = vrot.slane %v16336_v9, %v1270_v1  ;;  %v14955_v13 = vld [vmem:[#allocation8 + $0x3c0] ss:$16 sps:$4 sm:$0xff]   ;;  %v14966_v14 = vld [vmem:[#allocation8 + $0xec] ss:$16 sps:$4 sm:$0xff]   ;;  %v14963_v15 = vld [vmem:[#allocation8 + $0x3e4] ss:$16 sps:$4 sm:$0xff]  }
 0x50b   :  { %11598 = vmatprep.subr.bf16.mxu0 %v14910_v35 }
 0x50c   :  { %8383 = vmatpush1.bf16.msra.mxu1 %v13942_v43  ;;  %v14616_v35 = vadd.f32 %v16266_v60, %v1271_v11  ;;  %v14972_v43 = vld [vmem:[#allocation8 + $0x10c] ss:$16 sps:$4 sm:$0xff]   ;;  %v14975_v60 = vld [vmem:[#allocation8 + $0x424] ss:$16 sps:$4 sm:$0xff]  }
 0x50d   :  { %8384 = vmatprep.subr.bf16.mxu1 %v13959_v22  ;;  %v14969_v22 = vld [vmem:[#allocation8 + $0x404] ss:$16 sps:$4 sm:$0xff]   ;;  %v15026_v11 = vld [vmem:[#allocation8 + $0x22c] ss:$16 sps:$4 sm:$0xff]  }
 0x50e   :  { %11599 = vmatpush1.bf16.msra.mxu0 %v14908_v19  ;;  %v8423_v19 = vmax.f32 %v16244_v25, 0.0  ;;  %v14973_v25 = vld [vmem:[#allocation8 + $0x420] ss:$16 sps:$4 sm:$0xff]  }
 0x50f   :  { %11600 = vmatprep.subr.bf16.mxu0 %v14913_v23  ;;  %v8426_v23 = vmax.f32 %v14616_v35, 0.0  ;;  %v15029_v35 = vld [vmem:[#allocation8 + $0x544] ss:$16 sps:$4 sm:$0xff]  }
 0x510   :  { %8385 = vmatpush1.bf16.msra.mxu1 %v13958_v29  ;;  %v14967_v29 = vld [vmem:[#allocation8 + $0x400] ss:$16 sps:$4 sm:$0xff]  }
 0x511   :  { %13990 = vmatprep.subr.msk.bf16.mxu1 %vm6732_vm0, %v13975_v32  ;;  %v14978_v32 = vld [vmem:[#allocation8 + $0x12c] ss:$16 sps:$4 sm:$0xff]   ;;  %v16345_v33 = vpack.c.bf16 %v8426_v23, %v8426_v23  ;;  %v15041_v23 = vld [vmem:[#allocation8 + $0x584] ss:$16 sps:$4 sm:$0xff]  }
 0x512   :  { %11601 = vmatpush1.bf16.msra.mxu0 %v14911_v30  ;;  %v16343_v30 = vpack.c.bf16 %v8423_v19, %v8423_v19  ;;  %v15035_v19 = vld [vmem:[#allocation8 + $0x564] ss:$16 sps:$4 sm:$0xff]  }
 0x513   :  { %11602 = vmatprep.subr.bf16.mxu0 %v14917_v52  ;;  %v14976_v52 = vld [vmem:[#allocation8 + $0x128] ss:$16 sps:$4 sm:$0xff]  }
 0x514   :  { %8387 = vmatpush1.bf16.msra.mxu1 %v6776_v34  ;;  %v14981_v34 = vld [vmem:[#allocation8 + $0x444] ss:$16 sps:$4 sm:$0xff]  }
 0x515   :  { %11875 = vmatprep.subr.bf16.mxu1 %v14924_v38  ;;  %v14982_v38 = vld [vmem:[#allocation8 + $0x148] ss:$16 sps:$4 sm:$0xff]  }
 0x516   :  { %11603 = vmatpush1.bf16.msra.mxu0 %v14915_v5  ;;  %v14984_v5 = vld [vmem:[#allocation8 + $0x14c] ss:$16 sps:$4 sm:$0xff]  }
 0x517   :  { %11604 = vmatprep.subr.bf16.mxu0 %v14921_v59  ;;  %13991 = vmatmul.mubr.msk.bf16.vlgmr.msra.gmra.mrb[16].mxu1 %vm6728_vm1, %v16172_v26  ;;  %v14940_v26 = vld [vmem:[#allocation8 + $0x68] ss:$16 sps:$4 sm:$0xff]   ;;  %v14979_v59 = vld [vmem:[#allocation8 + $0x440] ss:$16 sps:$4 sm:$0xff]  }
 0x518   :  { %11876 = vmatpush1.bf16.msra.mxu1 %v14922_v39  ;;  %11907 = vmatprep.mubr.bf16.mxu1 %v16309_v37  ;;  %v14948_v37 = vld [vmem:[#allocation8 + $0x8c] ss:$16 sps:$4 sm:$0xff]  }
 0x519   :  { %11877 = vmatprep.subr.bf16.mxu1 %v14930_v44  ;;  %v14990_v39 = vld [vmem:[#allocation8 + $0x16c] ss:$16 sps:$4 sm:$0xff]   ;;  %v14988_v44 = vld [vmem:[#allocation8 + $0x168] ss:$16 sps:$4 sm:$0xff]  }
 0x51a   :  { %11605 = vmatpush1.bf16.msra.mxu0 %v14919_v41  ;;  %v14987_v41 = vld [vmem:[#allocation8 + $0x464] ss:$16 sps:$4 sm:$0xff]  }
 0x51b   :  { %11606 = vmatprep.subr.bf16.mxu0 %v14927_v21  ;;  %v14985_v21 = vld [vmem:[#allocation8 + $0x460] ss:$16 sps:$4 sm:$0xff]  }
 0x51c   :  { %11878 = vmatpush1.bf16.msra.mxu1 %v14928_v46  ;;  %v14996_v46 = vld [vmem:[#allocation8 + $0x18c] ss:$16 sps:$4 sm:$0xff]  }
 0x51d   :  { %11879 = vmatprep.subr.bf16.mxu1 %v14936_v57  ;;  %v14994_v57 = vld [vmem:[#allocation8 + $0x188] ss:$16 sps:$4 sm:$0xff]  }
 0x51e   :  { %11607 = vmatpush1.bf16.msra.mxu0 %v14925_v27  ;;  %v14993_v27 = vld [vmem:[#allocation8 + $0x484] ss:$16 sps:$4 sm:$0xff]  }
 0x51f   :  { %11608 = vmatprep.subr.bf16.mxu0 %v14933_v61  ;;  %v14991_v61 = vld [vmem:[#allocation8 + $0x480] ss:$16 sps:$4 sm:$0xff]  }
 0x520   :  { %11880 = vmatpush1.bf16.msra.mxu1 %v14934_v55  ;;  %v15002_v55 = vld [vmem:[#allocation8 + $0x1ac] ss:$16 sps:$4 sm:$0xff]  }
 0x521   :  { %11881 = vmatprep.subr.bf16.mxu1 %v14942_v50  ;;  %v15000_v50 = vld [vmem:[#allocation8 + $0x1a8] ss:$16 sps:$4 sm:$0xff]  }
 0x522   :  { %11609 = vmatpush1.bf16.msra.mxu0 %v14931_v8  ;;  %v14999_v8 = vld [vmem:[#allocation8 + $0x4a4] ss:$16 sps:$4 sm:$0xff]  }
 0x523   :  { %11610 = vmatprep.subr.bf16.mxu0 %v14939_v53  ;;  %v14997_v53 = vld [vmem:[#allocation8 + $0x4a0] ss:$16 sps:$4 sm:$0xff]  }
 0x524   :  { %11882 = vmatpush1.bf16.msra.mxu1 %v14940_v26  ;;  %v15008_v26 = vld [vmem:[#allocation8 + $0x1cc] ss:$16 sps:$4 sm:$0xff]  }
 0x525   :  { %11883 = vmatprep.subr.bf16.mxu1 %v14948_v37  ;;  %v15006_v37 = vld [vmem:[#allocation8 + $0x1c8] ss:$16 sps:$4 sm:$0xff]  }
 0x526   :  { %11611 = vmatpush1.bf16.msra.mxu0 %v14937_v56  ;;  %v15005_v56 = vld [vmem:[#allocation8 + $0x4c4] ss:$16 sps:$4 sm:$0xff]  }
 0x527   :  { %11612 = vmatprep.subr.bf16.mxu0 %v14945_v58  ;;  %v15003_v58 = vld [vmem:[#allocation8 + $0x4c0] ss:$16 sps:$4 sm:$0xff]  }
 0x528   :  { %11884 = vmatpush1.bf16.msra.mxu1 %v14946_v3  ;;  %v15014_v3 = vld [vmem:[#allocation8 + $0x1ec] ss:$16 sps:$4 sm:$0xff]  }
 0x529   :  { %11885 = vmatprep.subr.bf16.mxu1 %v14954_v63  ;;  %v15012_v63 = vld [vmem:[#allocation8 + $0x1e8] ss:$16 sps:$4 sm:$0xff]  }
 0x52a   :  { %11613 = vmatpush1.bf16.msra.mxu0 %v14943_v62  ;;  %v15011_v62 = vld [vmem:[#allocation8 + $0x4e4] ss:$16 sps:$4 sm:$0xff]  }
 0x52b   :  { %11614 = vmatprep.subr.bf16.mxu0 %v14951_v0  ;;  %v15009_v0 = vld [vmem:[#allocation8 + $0x4e0] ss:$16 sps:$4 sm:$0xff]  }
 0x52c   :  { %11886 = vmatpush1.bf16.msra.mxu1 %v14952_v7  ;;  %v15020_v7 = vld [vmem:[#allocation8 + $0x20c] ss:$16 sps:$4 sm:$0xff]  }
 0x52d   :  { %11887 = vmatprep.subr.bf16.mxu1 %v14960_v4  ;;  %v15018_v4 = vld [vmem:[#allocation8 + $0x208] ss:$16 sps:$4 sm:$0xff]  }
 0x52e   :  { %11615 = vmatpush1.bf16.msra.mxu0 %v14949_v2  ;;  %v15017_v2 = vld [vmem:[#allocation8 + $0x504] ss:$16 sps:$4 sm:$0xff]  }
 0x52f   :  { %11616 = vmatprep.subr.bf16.mxu0 %v14957_v6  ;;  %v15015_v6 = vld [vmem:[#allocation8 + $0x500] ss:$16 sps:$4 sm:$0xff]  }
 0x530   :  { %11888 = vmatpush1.bf16.msra.mxu1 %v14958_v12  ;;  %v15023_v12 = vld [vmem:[#allocation8 + $0x524] ss:$16 sps:$4 sm:$0xff]  }
 0x531   :  { %11889 = vmatprep.subr.bf16.mxu1 %v14966_v14  ;;  %v15021_v14 = vld [vmem:[#allocation8 + $0x520] ss:$16 sps:$4 sm:$0xff]  }
 0x532   :  { %11617 = vmatpush1.bf16.msra.mxu0 %v14955_v13  ;;  %v15024_v13 = vld [vmem:[#allocation8 + $0x228] ss:$16 sps:$4 sm:$0xff]  }
 0x533   :  { %11618 = vmatprep.subr.bf16.mxu0 %v14963_v15  ;;  %v15032_v15 = vld [vmem:[#allocation8 + $0x24c] ss:$16 sps:$4 sm:$0xff]  }
 0x534   :  { %11890 = vmatpush1.bf16.msra.mxu1 %v14964_v40  ;;  %v15030_v40 = vld [vmem:[#allocation8 + $0x248] ss:$16 sps:$4 sm:$0xff]  }
 0x535   :  { %11891 = vmatprep.subr.bf16.mxu1 %v14972_v43  ;;  %v15038_v43 = vld [vmem:[#allocation8 + $0x26c] ss:$16 sps:$4 sm:$0xff]  }
 0x536   :  { %11619 = vmatpush1.bf16.msra.mxu0 %v14961_v17  ;;  %v15027_v17 = vld [vmem:[#allocation8 + $0x540] ss:$16 sps:$4 sm:$0xff]  }
 0x537   :  { %11629 = vmatprep.subr.bf16.mxu0 %v14969_v22  ;;  %v15033_v22 = vld [vmem:[#allocation8 + $0x560] ss:$16 sps:$4 sm:$0xff]  }
 0x538   :  { %11892 = vmatpush1.bf16.msra.mxu1 %v14970_v42  ;;  %v15042_v42 = vld [vmem:[#allocation8 + $0x288] ss:$16 sps:$4 sm:$0xff]  }
 0x539   :  { %11621 = vmatmul.mubr.bf16.vlgmr.msra.gmra.mrb[20].mxu0 %v16343_v30  ;;  %11893 = vmatprep.subr.bf16.mxu1 %v14978_v32  ;;  %v1266_v32 = vsub.s32 4, %v16196_v10 }
 0x53a   :  { %11630 = vmatpush1.bf16.msra.mxu0 %v14967_v29  ;;  %11661 = vmatprep.mubr.bf16.mxu0 %v16345_v33  ;;  %v15039_v29 = vld [vmem:[#allocation8 + $0x580] ss:$16 sps:$4 sm:$0xff]  }
 0x53b   :  { %11631 = vmatprep.subr.bf16.mxu0 %v14975_v60  ;;  %v15050_v60 = vld [vmem:[#allocation8 + $0x2ac] ss:$16 sps:$4 sm:$0xff]  }
 0x53c   :  { %11894 = vmatpush1.bf16.msra.mxu1 %v14976_v52  ;;  %v15047_v52 = vld [vmem:[#allocation8 + $0x5a4] ss:$16 sps:$4 sm:$0xff]  }
 0x53d   :  { %11895 = vmatprep.subr.bf16.mxu1 %v14984_v5  ;;  %v15048_v5 = vld [vmem:[#allocation8 + $0x2a8] ss:$16 sps:$4 sm:$0xff]  }
 0x53e   :  { %11632 = vmatpush1.bf16.msra.mxu0 %v14973_v25  ;;  %v1278_v25 = vsub.s32 7, %v16196_v10 }
 0x53f   :  { %11633 = vmatprep.subr.bf16.mxu0 %v14981_v34  ;;  %v15045_v34 = vld [vmem:[#allocation8 + $0x5a0] ss:$16 sps:$4 sm:$0xff]  }
 0x540   :  { %11896 = vmatpush1.bf16.msra.mxu1 %v14982_v38  ;;  %v15056_v38 = vld [vmem:[#allocation8 + $0x2cc] ss:$16 sps:$4 sm:$0xff]  }
 0x541   :  { %11897 = vmatprep.subr.bf16.mxu1 %v14990_v39  ;;  %v15053_v39 = vld [vmem:[#allocation8 + $0x5c4] ss:$16 sps:$4 sm:$0xff]  }
 0x542   :  { %11634 = vmatpush1.bf16.msra.mxu0 %v14979_v59  ;;  %v1267_v59 = vrot.slane %v16336_v9, %v1266_v32 }
 0x543   :  { %11635 = vmatprep.subr.bf16.mxu0 %v14987_v41  ;;  %v1279_v41 = vrot.slane %v16336_v9, %v1278_v25 }
 0x544   :  { %11898 = vmatpush1.bf16.msra.mxu1 %v14988_v44  ;;  %v15054_v44 = vld [vmem:[#allocation8 + $0x2c8] ss:$16 sps:$4 sm:$0xff]  }
 0x545   :  { %11899 = vmatprep.subr.bf16.mxu1 %v14996_v46  ;;  %v15062_v46 = vld [vmem:[#allocation8 + $0x2ec] ss:$16 sps:$4 sm:$0xff]  }
 0x546   :  { %11636 = vmatpush1.bf16.msra.mxu0 %v14985_v21  ;;  %v15051_v21 = vld [vmem:[#allocation8 + $0x5c0] ss:$16 sps:$4 sm:$0xff]  }
 0x547   :  { %11637 = vmatprep.subr.bf16.mxu0 %v14993_v27  ;;  %v14615_v27 = vadd.f32 %v16264_v54, %v1267_v59  ;;  %v15107_v59 = vld [vmem:[#allocation8 + $0x6e4] ss:$16 sps:$4 sm:$0xff]  }
 0x548   :  { %11900 = vmatpush1.bf16.msra.mxu1 %v14994_v57  ;;  %v15059_v57 = vld [vmem:[#allocation8 + $0x5e4] ss:$16 sps:$4 sm:$0xff]  }
 0x549   :  { %11901 = vmatprep.subr.bf16.mxu1 %v15002_v55  ;;  %v15060_v55 = vld [vmem:[#allocation8 + $0x2e8] ss:$16 sps:$4 sm:$0xff]  }
 0x54a   :  { %11638 = vmatpush1.bf16.msra.mxu0 %v14991_v61  ;;  %v14618_v61 = vadd.f32 %v16281_v24, %v1279_v41  ;;  %v15074_v24 = vld [vmem:[#allocation8 + $0x32c] ss:$16 sps:$4 sm:$0xff]   ;;  %v15105_v41 = vld [vmem:[#allocation8 + $0x6e0] ss:$16 sps:$4 sm:$0xff]  }
 0x54b   :  { %11639 = vmatprep.subr.bf16.mxu0 %v14999_v8  ;;  %v15057_v8 = vld [vmem:[#allocation8 + $0x5e0] ss:$16 sps:$4 sm:$0xff]  }
 0x54c   :  { %11902 = vmatpush1.bf16.msra.mxu1 %v15000_v50  ;;  %v15068_v50 = vld [vmem:[#allocation8 + $0x30c] ss:$16 sps:$4 sm:$0xff]  }
 0x54d   :  { %11903 = vmatprep.subr.bf16.mxu1 %v15008_v26  ;;  %v15065_v26 = vld [vmem:[#allocation8 + $0x604] ss:$16 sps:$4 sm:$0xff]  }
 0x54e   :  { %11640 = vmatpush1.bf16.msra.mxu0 %v14997_v53  ;;  %v8425_v53 = vmax.f32 %v14615_v27, 0.0  ;;  %v15111_v27 = vld [vmem:[#allocation8 + $0x700] ss:$16 sps:$4 sm:$0xff]  }
 0x54f   :  { %11641 = vmatprep.subr.bf16.mxu0 %v15005_v56  ;;  %v8428_v56 = vmax.f32 %v14618_v61, 0.0  ;;  %v15119_v61 = vld [vmem:[#allocation8 + $0x724] ss:$16 sps:$4 sm:$0xff]  }
 0x550   :  { %11904 = vmatpush1.bf16.msra.mxu1 %v15006_v37  ;;  %v15066_v37 = vld [vmem:[#allocation8 + $0x308] ss:$16 sps:$4 sm:$0xff]   ;;  %v16361_v54 = vpack.c.bf16 %v8425_v53, %v8425_v53  ;;  %v15125_v53 = vld [vmem:[#allocation8 + $0x744] ss:$16 sps:$4 sm:$0xff]  }
 0x551   :  { %11905 = vmatprep.subr.bf16.mxu1 %v15014_v3  ;;  %v15071_v3 = vld [vmem:[#allocation8 + $0x624] ss:$16 sps:$4 sm:$0xff]  }
 0x552   :  { %11642 = vmatpush1.bf16.msra.mxu0 %v15003_v58  ;;  %v15063_v58 = vld [vmem:[#allocation8 + $0x600] ss:$16 sps:$4 sm:$0xff]  }
 0x553   :  { %11643 = vmatprep.subr.bf16.mxu0 %v15011_v62  ;;  %v16363_v62 = vpack.c.bf16 %v8428_v56, %v8428_v56  ;;  %v15123_v56 = vld [vmem:[#allocation8 + $0x740] ss:$16 sps:$4 sm:$0xff]  }
 0x554   :  { %11906 = vmatpush1.bf16.msra.mxu1 %v15012_v63  ;;  %v15072_v63 = vld [vmem:[#allocation8 + $0x328] ss:$16 sps:$4 sm:$0xff]  }
 0x555   :  { %11916 = vmatprep.subr.bf16.mxu1 %v15020_v7  ;;  %v15080_v7 = vld [vmem:[#allocation8 + $0x34c] ss:$16 sps:$4 sm:$0xff]  }
 0x556   :  { %11644 = vmatpush1.bf16.msra.mxu0 %v15009_v0  ;;  %v15069_v0 = vld [vmem:[#allocation8 + $0x620] ss:$16 sps:$4 sm:$0xff]  }
 0x557   :  { %11645 = vmatprep.subr.bf16.mxu0 %v15017_v2  ;;  %11908 = vmatmul.mubr.bf16.vlgmr.msra.gmra.mrb[20].mxu1 %v16322_v16  ;;  %v15036_v16 = vld [vmem:[#allocation8 + $0x268] ss:$16 sps:$4 sm:$0xff]   ;;  %v15077_v2 = vld [vmem:[#allocation8 + $0x644] ss:$16 sps:$4 sm:$0xff]  }
 0x558   :  { %11917 = vmatpush1.bf16.msra.mxu1 %v15018_v4  ;;  %11948 = vmatprep.mubr.bf16.mxu1 %v16324_v49  ;;  %v15044_v49 = vld [vmem:[#allocation8 + $0x28c] ss:$16 sps:$4 sm:$0xff]   ;;  %v15078_v4 = vld [vmem:[#allocation8 + $0x348] ss:$16 sps:$4 sm:$0xff]  }
 0x559   :  { %11918 = vmatprep.subr.bf16.mxu1 %v15026_v11  ;;  %v15086_v11 = vld [vmem:[#allocation8 + $0x36c] ss:$16 sps:$4 sm:$0xff]  }
 0x55a   :  { %11646 = vmatpush1.bf16.msra.mxu0 %v15015_v6  ;;  %v15075_v6 = vld [vmem:[#allocation8 + $0x640] ss:$16 sps:$4 sm:$0xff]  }
 0x55b   :  { %11647 = vmatprep.subr.bf16.mxu0 %v15023_v12  ;;  %v15083_v12 = vld [vmem:[#allocation8 + $0x664] ss:$16 sps:$4 sm:$0xff]  }
 0x55c   :  { %11919 = vmatpush1.bf16.msra.mxu1 %v15024_v13  ;;  %v15084_v13 = vld [vmem:[#allocation8 + $0x368] ss:$16 sps:$4 sm:$0xff]  }
 0x55d   :  { %11920 = vmatprep.subr.bf16.mxu1 %v15032_v15  ;;  %v15092_v15 = vld [vmem:[#allocation8 + $0x38c] ss:$16 sps:$4 sm:$0xff]  }
 0x55e   :  { %11648 = vmatpush1.bf16.msra.mxu0 %v15021_v14  ;;  %v15081_v14 = vld [vmem:[#allocation8 + $0x660] ss:$16 sps:$4 sm:$0xff]  }
 0x55f   :  { %11649 = vmatprep.subr.bf16.mxu0 %v15029_v35  ;;  %v15089_v35 = vld [vmem:[#allocation8 + $0x684] ss:$16 sps:$4 sm:$0xff]  }
 0x560   :  { %11921 = vmatpush1.bf16.msra.mxu1 %v15030_v40  ;;  %v15090_v40 = vld [vmem:[#allocation8 + $0x388] ss:$16 sps:$4 sm:$0xff]  }
 0x561   :  { %11922 = vmatprep.subr.bf16.mxu1 %v15038_v43  ;;  %v15098_v43 = vld [vmem:[#allocation8 + $0x3ac] ss:$16 sps:$4 sm:$0xff]  }
 0x562   :  { %11650 = vmatpush1.bf16.msra.mxu0 %v15027_v17  ;;  %v15087_v17 = vld [vmem:[#allocation8 + $0x680] ss:$16 sps:$4 sm:$0xff]  }
 0x563   :  { %11651 = vmatprep.subr.bf16.mxu0 %v15035_v19  ;;  %v15095_v19 = vld [vmem:[#allocation8 + $0x6a4] ss:$16 sps:$4 sm:$0xff]  }
 0x564   :  { %11923 = vmatpush1.bf16.msra.mxu1 %v15036_v16  ;;  %v15096_v16 = vld [vmem:[#allocation8 + $0x3a8] ss:$16 sps:$4 sm:$0xff]  }
 0x565   :  { %11924 = vmatprep.subr.bf16.mxu1 %v15044_v49  ;;  %v15104_v49 = vld [vmem:[#allocation8 + $0x3cc] ss:$16 sps:$4 sm:$0xff]  }
 0x566   :  { %11652 = vmatpush1.bf16.msra.mxu0 %v15033_v22  ;;  %v15093_v22 = vld [vmem:[#allocation8 + $0x6a0] ss:$16 sps:$4 sm:$0xff]  }
 0x567   :  { %11653 = vmatprep.subr.bf16.mxu0 %v15041_v23  ;;  %v15101_v23 = vld [vmem:[#allocation8 + $0x6c4] ss:$16 sps:$4 sm:$0xff]  }
 0x568   :  { %11925 = vmatpush1.bf16.msra.mxu1 %v15042_v42 }
 0x569   :  { %11926 = vmatprep.subr.bf16.mxu1 %v15050_v60  ;;  %v15102_v60 = vld [vmem:[#allocation8 + $0x3c8] ss:$16 sps:$4 sm:$0xff]  }
 0x56a   :  { %11654 = vmatpush1.bf16.msra.mxu0 %v15039_v29 }
 0x56b   :  { %11655 = vmatprep.subr.bf16.mxu0 %v15047_v52 }
 0x56c   :  { %11927 = vmatpush1.bf16.msra.mxu1 %v15048_v5  ;;  %v15099_v5 = vld [vmem:[#allocation8 + $0x6c0] ss:$16 sps:$4 sm:$0xff]  }
 0x56d   :  { %11928 = vmatprep.subr.bf16.mxu1 %v15056_v38 }
 0x56e   :  { %11656 = vmatpush1.bf16.msra.mxu0 %v15045_v34  ;;  %v15110_v34 = vld [vmem:[#allocation8 + $0x3ec] ss:$16 sps:$4 sm:$0xff]  }
 0x56f   :  { %11657 = vmatprep.subr.bf16.mxu0 %v15053_v39  ;;  %v15108_v39 = vld [vmem:[#allocation8 + $0x3e8] ss:$16 sps:$4 sm:$0xff]  }
 0x570   :  { %11929 = vmatpush1.bf16.msra.mxu1 %v15054_v44  ;;  %v15116_v44 = vld [vmem:[#allocation8 + $0x40c] ss:$16 sps:$4 sm:$0xff]  }
 0x571   :  { %11930 = vmatprep.subr.bf16.mxu1 %v15062_v46  ;;  %v15114_v46 = vld [vmem:[#allocation8 + $0x408] ss:$16 sps:$4 sm:$0xff]  }
 0x572   :  { %11658 = vmatpush1.bf16.msra.mxu0 %v15051_v21  ;;  %v15113_v21 = vld [vmem:[#allocation8 + $0x704] ss:$16 sps:$4 sm:$0xff]  }
 0x573   :  { %11659 = vmatprep.subr.bf16.mxu0 %v15059_v57  ;;  %v15122_v57 = vld [vmem:[#allocation8 + $0x42c] ss:$16 sps:$4 sm:$0xff]  }
 0x574   :  { %11931 = vmatpush1.bf16.msra.mxu1 %v15060_v55  ;;  %v15120_v55 = vld [vmem:[#allocation8 + $0x428] ss:$16 sps:$4 sm:$0xff]  }
 0x575   :  { %11932 = vmatprep.subr.bf16.mxu1 %v15068_v50  ;;  %v15128_v50 = vld [vmem:[#allocation8 + $0x44c] ss:$16 sps:$4 sm:$0xff]  }
 0x576   :  { %11660 = vmatpush1.bf16.msra.mxu0 %v15057_v8  ;;  %v15117_v8 = vld [vmem:[#allocation8 + $0x720] ss:$16 sps:$4 sm:$0xff]  }
 0x577   :  { %11670 = vmatprep.subr.bf16.mxu0 %v15065_v26  ;;  %v15126_v26 = vld [vmem:[#allocation8 + $0x448] ss:$16 sps:$4 sm:$0xff]  }
 0x578   :  { %11933 = vmatpush1.bf16.msra.mxu1 %v15066_v37  ;;  %v15134_v37 = vld [vmem:[#allocation8 + $0x46c] ss:$16 sps:$4 sm:$0xff]  }
 0x579   :  { %11662 = vmatmul.mubr.bf16.vlgmr.msra.gmra.mrb[20].mxu0 %v16361_v54  ;;  %11934 = vmatprep.subr.bf16.mxu1 %v15074_v24  ;;  %v15137_v24 = vld [vmem:[#allocation8 + $0x784] ss:$16 sps:$4 sm:$0xff]  }
 0x57a   :  { %11671 = vmatpush1.bf16.msra.mxu0 %v15063_v58  ;;  %11702 = vmatprep.mubr.bf16.mxu0 %v16363_v62  ;;  %v15131_v58 = vld [vmem:[#allocation8 + $0x764] ss:$16 sps:$4 sm:$0xff]  }
 0x57b   :  { %11672 = vmatprep.subr.bf16.mxu0 %v15071_v3  ;;  %v15129_v3 = vld [vmem:[#allocation8 + $0x760] ss:$16 sps:$4 sm:$0xff]  }
 0x57c   :  { %11935 = vmatpush1.bf16.msra.mxu1 %v15072_v63  ;;  %v15138_v63 = vld [vmem:[#allocation8 + $0x488] ss:$16 sps:$4 sm:$0xff]  }
 0x57d   :  { %11936 = vmatprep.subr.bf16.mxu1 %v15080_v7  ;;  %v15146_v7 = vld [vmem:[#allocation8 + $0x4ac] ss:$16 sps:$4 sm:$0xff]  }
 0x57e   :  { %11673 = vmatpush1.bf16.msra.mxu0 %v15069_v0  ;;  %v15135_v0 = vld [vmem:[#allocation8 + $0x780] ss:$16 sps:$4 sm:$0xff]  }
 0x57f   :  { %11674 = vmatprep.subr.bf16.mxu0 %v15077_v2  ;;  %v1274_v2 = vsub.s32 6, %v16196_v10 }
 0x580   :  { %11937 = vmatpush1.bf16.msra.mxu1 %v15078_v4  ;;  %v15143_v4 = vld [vmem:[#allocation8 + $0x7a4] ss:$16 sps:$4 sm:$0xff]  }
 0x581   :  { %11938 = vmatprep.subr.bf16.mxu1 %v15086_v11  ;;  %v15144_v11 = vld [vmem:[#allocation8 + $0x4a8] ss:$16 sps:$4 sm:$0xff]  }
 0x582   :  { %11675 = vmatpush1.bf16.msra.mxu0 %v15075_v6  ;;  %v16374_v6 = vld [vmem:[#allocation7 + $0x8] sm:$0xff] }
 0x583   :  { %11676 = vmatprep.subr.bf16.mxu0 %v15083_v12  ;;  %v15141_v12 = vld [vmem:[#allocation8 + $0x7a0] ss:$16 sps:$4 sm:$0xff]  }
 0x584   :  { %11939 = vmatpush1.bf16.msra.mxu1 %v15084_v13  ;;  %v15152_v13 = vld [vmem:[#allocation8 + $0x4cc] ss:$16 sps:$4 sm:$0xff]  }
 0x585   :  { %11940 = vmatprep.subr.bf16.mxu1 %v15092_v15  ;;  %v15149_v15 = vld [vmem:[#allocation8 + $0x7c4] ss:$16 sps:$4 sm:$0xff]  }
 0x586   :  { %11677 = vmatpush1.bf16.msra.mxu0 %v15081_v14  ;;  %v1275_v14 = vrot.slane %v16336_v9, %v1274_v2  ;;  %v15153_v9 = vld [vmem:[#allocation8 + $0x7e0] ss:$16 sps:$4 sm:$0xff]  }
 0x587   :  { %11678 = vmatprep.subr.bf16.mxu0 %v15089_v35  ;;  %v1287_v35 = vrot.slane %v16374_v6, %v16204_v28 }
 0x588   :  { %11941 = vmatpush1.bf16.msra.mxu1 %v15090_v40  ;;  %v15150_v40 = vld [vmem:[#allocation8 + $0x4c8] ss:$16 sps:$4 sm:$0xff]  }
 0x589   :  { %11942 = vmatprep.subr.bf16.mxu1 %v15098_v43  ;;  %v15158_v43 = vld [vmem:[#allocation8 + $0x4ec] ss:$16 sps:$4 sm:$0xff]  }
 0x58a   :  { %11679 = vmatpush1.bf16.msra.mxu0 %v15087_v17  ;;  %v15147_v17 = vld [vmem:[#allocation8 + $0x7c0] ss:$16 sps:$4 sm:$0xff]  }
 0x58b   :  { %11680 = vmatprep.subr.bf16.mxu0 %v15095_v19  ;;  %v14617_v19 = vadd.f32 %v16279_v18, %v1275_v14  ;;  %v15212_v14 = vld [vmem:[#allocation8 + $0x60c] ss:$16 sps:$4 sm:$0xff]  }
 0x58c   :  { %v16367_v42 = vpop.f32.mrb[16].mxu0  ;;  %11943 = vmatpush1.bf16.msra.mxu1 %v15096_v16  ;;  %v15155_v16 = vld [vmem:[#allocation8 + $0x7e4] ss:$16 sps:$4 sm:$0xff]  }
 0x58d   :  { %v16369_v29 = vpop.f32.mrb[17].mxu0  ;;  %11944 = vmatprep.subr.bf16.mxu1 %v15104_v49  ;;  %v15156_v49 = vld [vmem:[#allocation8 + $0x4e8] ss:$16 sps:$4 sm:$0xff]  }
 0x58e   :  { %v8213_v52 = vpop.f32.mrb[18].mxu0  ;;  %11681 = vmatpush1.bf16.msra.mxu0 %v15093_v22  ;;  %v14620_v22 = vadd.f32 %v16300_v51, %v1287_v35  ;;  %v15170_v51 = vld [vmem:[#allocation8 + $0x52c] ss:$16 sps:$4 sm:$0xff]   ;;  %v15210_v35 = vld [vmem:[#allocation8 + $0x608] ss:$16 sps:$4 sm:$0xff]  }
 0x58f   :  { %v8214_v38 = vpop.f32.mrb[19].mxu0  ;;  %11682 = vmatprep.subr.bf16.mxu0 %v15101_v23  ;;  %v15164_v23 = vld [vmem:[#allocation8 + $0x50c] ss:$16 sps:$4 sm:$0xff]   ;;  %v15161_v52 = vld [vmem:[#allocation8 + $0x804] ss:$16 sps:$4 sm:$0xff]  }
 0x590   :  { %11945 = vmatpush1.bf16.msra.mxu1 %v15102_v60  ;;  %v8427_v60 = vmax.f32 %v14617_v19, 0.0  ;;  %v15159_v38 = vld [vmem:[#allocation8 + $0x800] ss:$16 sps:$4 sm:$0xff]   ;;  %v15216_v19 = vld [vmem:[#allocation8 + $0x628] ss:$16 sps:$4 sm:$0xff]  }
 0x591   :  { %11946 = vmatprep.subr.bf16.mxu1 %v15110_v34  ;;  %v15162_v34 = vld [vmem:[#allocation8 + $0x508] ss:$16 sps:$4 sm:$0xff]  }
 0x592   :  { %11683 = vmatpush1.bf16.msra.mxu0 %v15099_v5  ;;  %v8430_v5 = vmax.f32 %v14620_v22, 0.0  ;;  %v16383_v18 = vpack.c.bf16 %v8427_v60, %v8427_v60  ;;  %v15224_v22 = vld [vmem:[#allocation8 + $0x64c] ss:$16 sps:$4 sm:$0xff]  }
 0x593   :  { %11684 = vmatprep.subr.bf16.mxu0 %v15107_v59  ;;  %v15167_v59 = vld [vmem:[#allocation8 + $0x824] ss:$16 sps:$4 sm:$0xff]   ;;  %v15230_v60 = vld [vmem:[#allocation8 + $0x66c] ss:$16 sps:$4 sm:$0xff]  }
 0x594   :  { %11947 = vmatpush1.bf16.msra.mxu1 %v15108_v39  ;;  %v16385_v39 = vpack.c.bf16 %v8430_v5, %v8430_v5  ;;  %v15225_v5 = vld [vmem:[#allocation8 + $0x960] ss:$16 sps:$4 sm:$0xff]  }
 0x595   :  { %11957 = vmatprep.subr.bf16.mxu1 %v15116_v44  ;;  %v15165_v44 = vld [vmem:[#allocation8 + $0x820] ss:$16 sps:$4 sm:$0xff]  }
 0x596   :  { %11685 = vmatpush1.bf16.msra.mxu0 %v15105_v41  ;;  %v15168_v41 = vld [vmem:[#allocation8 + $0x528] ss:$16 sps:$4 sm:$0xff]  }
 0x597   :  { %11686 = vmatprep.subr.bf16.mxu0 %v15113_v21  ;;  %11949 = vmatmul.mubr.bf16.vlgmr.msra.gmra.mrb[20].mxu1 %v16343_v30  ;;  %v15132_v30 = vld [vmem:[#allocation8 + $0x468] ss:$16 sps:$4 sm:$0xff]   ;;  %v15176_v21 = vld [vmem:[#allocation8 + $0x54c] ss:$16 sps:$4 sm:$0xff]  }
 0x598   :  { %11958 = vmatpush1.bf16.msra.mxu1 %v15114_v46  ;;  %11989 = vmatprep.mubr.bf16.mxu1 %v16345_v33  ;;  %v15140_v33 = vld [vmem:[#allocation8 + $0x48c] ss:$16 sps:$4 sm:$0xff]   ;;  %v15173_v46 = vld [vmem:[#allocation8 + $0x844] ss:$16 sps:$4 sm:$0xff]  }
 0x599   :  { %11959 = vmatprep.subr.bf16.mxu1 %v15122_v57  ;;  %v15171_v57 = vld [vmem:[#allocation8 + $0x840] ss:$16 sps:$4 sm:$0xff]  }
 0x59a   :  { %11687 = vmatpush1.bf16.msra.mxu0 %v15111_v27  ;;  %v15174_v27 = vld [vmem:[#allocation8 + $0x548] ss:$16 sps:$4 sm:$0xff]  }
 0x59b   :  { %11688 = vmatprep.subr.bf16.mxu0 %v15119_v61  ;;  %v15182_v61 = vld [vmem:[#allocation8 + $0x56c] ss:$16 sps:$4 sm:$0xff]  }
 0x59c   :  { %11960 = vmatpush1.bf16.msra.mxu1 %v15120_v55  ;;  %v15179_v55 = vld [vmem:[#allocation8 + $0x864] ss:$16 sps:$4 sm:$0xff]  }
 0x59d   :  { %11961 = vmatprep.subr.bf16.mxu1 %v15128_v50  ;;  %v15177_v50 = vld [vmem:[#allocation8 + $0x860] ss:$16 sps:$4 sm:$0xff]  }
 0x59e   :  { %11689 = vmatpush1.bf16.msra.mxu0 %v15117_v8  ;;  %v15180_v8 = vld [vmem:[#allocation8 + $0x568] ss:$16 sps:$4 sm:$0xff]  }
 0x59f   :  { %11690 = vmatprep.subr.bf16.mxu0 %v15125_v53  ;;  %v15188_v53 = vld [vmem:[#allocation8 + $0x58c] ss:$16 sps:$4 sm:$0xff]  }
 0x5a0   :  { %11962 = vmatpush1.bf16.msra.mxu1 %v15126_v26  ;;  %v15185_v26 = vld [vmem:[#allocation8 + $0x884] ss:$16 sps:$4 sm:$0xff]  }
 0x5a1   :  { %11963 = vmatprep.subr.bf16.mxu1 %v15134_v37  ;;  %v15183_v37 = vld [vmem:[#allocation8 + $0x880] ss:$16 sps:$4 sm:$0xff]  }
 0x5a2   :  { %11691 = vmatpush1.bf16.msra.mxu0 %v15123_v56  ;;  %v15186_v56 = vld [vmem:[#allocation8 + $0x588] ss:$16 sps:$4 sm:$0xff]  }
 0x5a3   :  { %11692 = vmatprep.subr.bf16.mxu0 %v15131_v58  ;;  %v15194_v58 = vld [vmem:[#allocation8 + $0x5ac] ss:$16 sps:$4 sm:$0xff]  }
 0x5a4   :  { %11964 = vmatpush1.bf16.msra.mxu1 %v15132_v30  ;;  %v15191_v30 = vld [vmem:[#allocation8 + $0x8a4] ss:$16 sps:$4 sm:$0xff]  }
 0x5a5   :  { %11965 = vmatprep.subr.bf16.mxu1 %v15140_v33  ;;  %v15189_v33 = vld [vmem:[#allocation8 + $0x8a0] ss:$16 sps:$4 sm:$0xff]  }
 0x5a6   :  { %11693 = vmatpush1.bf16.msra.mxu0 %v15129_v3  ;;  %v15192_v3 = vld [vmem:[#allocation8 + $0x5a8] ss:$16 sps:$4 sm:$0xff]  }
 0x5a7   :  { %11694 = vmatprep.subr.bf16.mxu0 %v15137_v24  ;;  %v15200_v24 = vld [vmem:[#allocation8 + $0x5cc] ss:$16 sps:$4 sm:$0xff]  }
 0x5a8   :  { %11966 = vmatpush1.bf16.msra.mxu1 %v15138_v63  ;;  %v15197_v63 = vld [vmem:[#allocation8 + $0x8c4] ss:$16 sps:$4 sm:$0xff]  }
 0x5a9   :  { %11967 = vmatprep.subr.bf16.mxu1 %v15146_v7  ;;  %v15195_v7 = vld [vmem:[#allocation8 + $0x8c0] ss:$16 sps:$4 sm:$0xff]  }
 0x5aa   :  { %11695 = vmatpush1.bf16.msra.mxu0 %v15135_v0  ;;  %v15198_v0 = vld [vmem:[#allocation8 + $0x5c8] ss:$16 sps:$4 sm:$0xff]  }
 0x5ab   :  { %11696 = vmatprep.subr.bf16.mxu0 %v15143_v4  ;;  %v15206_v4 = vld [vmem:[#allocation8 + $0x5ec] ss:$16 sps:$4 sm:$0xff]  }
 0x5ac   :  { %11968 = vmatpush1.bf16.msra.mxu1 %v15144_v11  ;;  %v15203_v11 = vld [vmem:[#allocation8 + $0x8e4] ss:$16 sps:$4 sm:$0xff]  }
 0x5ad   :  { %11969 = vmatprep.subr.bf16.mxu1 %v15152_v13  ;;  %v15201_v13 = vld [vmem:[#allocation8 + $0x8e0] ss:$16 sps:$4 sm:$0xff]  }
 0x5ae   :  { %11697 = vmatpush1.bf16.msra.mxu0 %v15141_v12  ;;  %v15204_v12 = vld [vmem:[#allocation8 + $0x5e8] ss:$16 sps:$4 sm:$0xff]  }
 0x5af   :  { %11698 = vmatprep.subr.bf16.mxu0 %v15149_v15  ;;  %v15209_v15 = vld [vmem:[#allocation8 + $0x904] ss:$16 sps:$4 sm:$0xff]  }
 0x5b0   :  { %11970 = vmatpush1.bf16.msra.mxu1 %v15150_v40  ;;  %v15207_v40 = vld [vmem:[#allocation8 + $0x900] ss:$16 sps:$4 sm:$0xff]  }
 0x5b1   :  { %11971 = vmatprep.subr.bf16.mxu1 %v15158_v43  ;;  %v15215_v43 = vld [vmem:[#allocation8 + $0x924] ss:$16 sps:$4 sm:$0xff]  }
 0x5b2   :  { %11699 = vmatpush1.bf16.msra.mxu0 %v15147_v17  ;;  %v15218_v17 = vld [vmem:[#allocation8 + $0x62c] ss:$16 sps:$4 sm:$0xff]  }
 0x5b3   :  { %11700 = vmatprep.subr.bf16.mxu0 %v15155_v16  ;;  %v15213_v16 = vld [vmem:[#allocation8 + $0x920] ss:$16 sps:$4 sm:$0xff]  }
 0x5b4   :  { %11972 = vmatpush1.bf16.msra.mxu1 %v15156_v49  ;;  %v15221_v49 = vld [vmem:[#allocation8 + $0x944] ss:$16 sps:$4 sm:$0xff]  }
 0x5b5   :  { %11973 = vmatprep.subr.bf16.mxu1 %v15164_v23  ;;  %v15219_v23 = vld [vmem:[#allocation8 + $0x940] ss:$16 sps:$4 sm:$0xff]  }
 0x5b6   :  { %11701 = vmatpush1.bf16.msra.mxu0 %v15153_v9  ;;  %v15222_v9 = vld [vmem:[#allocation8 + $0x648] ss:$16 sps:$4 sm:$0xff]  }
 0x5b7   :  { %11711 = vmatprep.subr.bf16.mxu0 %v15161_v52  ;;  %v15227_v52 = vld [vmem:[#allocation8 + $0x964] ss:$16 sps:$4 sm:$0xff]  }
 0x5b8   :  { %11974 = vmatpush1.bf16.msra.mxu1 %v15162_v34  ;;  %v15233_v34 = vld [vmem:[#allocation8 + $0x984] ss:$16 sps:$4 sm:$0xff]  }
 0x5b9   :  { %11703 = vmatmul.mubr.bf16.vlgmr.msra.gmra.mrb[20].mxu0 %v16383_v18  ;;  %11975 = vmatprep.subr.bf16.mxu1 %v15170_v51  ;;  %v15242_v51 = vld [vmem:[#allocation8 + $0x6ac] ss:$16 sps:$4 sm:$0xff]  }
 0x5ba   :  { %11712 = vmatpush1.bf16.msra.mxu0 %v15159_v38  ;;  %11743 = vmatprep.mubr.bf16.mxu0 %v16385_v39  ;;  %v15234_v38 = vld [vmem:[#allocation8 + $0x688] ss:$16 sps:$4 sm:$0xff]  }
 0x5bb   :  { %11713 = vmatprep.subr.bf16.mxu0 %v15167_v59  ;;  %v15231_v59 = vld [vmem:[#allocation8 + $0x980] ss:$16 sps:$4 sm:$0xff]  }
 0x5bc   :  { %11976 = vmatpush1.bf16.msra.mxu1 %v15168_v41  ;;  %v15239_v41 = vld [vmem:[#allocation8 + $0x9a4] ss:$16 sps:$4 sm:$0xff]  }
 0x5bd   :  { %11977 = vmatprep.subr.bf16.mxu1 %v15176_v21  ;;  %v15237_v21 = vld [vmem:[#allocation8 + $0x9a0] ss:$16 sps:$4 sm:$0xff]  }
 0x5be   :  { %11714 = vmatpush1.bf16.msra.mxu0 %v15165_v44  ;;  %v15240_v44 = vld [vmem:[#allocation8 + $0x6a8] ss:$16 sps:$4 sm:$0xff]  }
 0x5bf   :  { %11715 = vmatprep.subr.bf16.mxu0 %v15173_v46  ;;  %v15248_v46 = vld [vmem:[#allocation8 + $0x6cc] ss:$16 sps:$4 sm:$0xff]  }
 0x5c0   :  { %11978 = vmatpush1.bf16.msra.mxu1 %v15174_v27  ;;  %v1283_v27 = vrot.slane %v16374_v6, %v16199_v20 }
 0x5c1   :  { %11979 = vmatprep.subr.bf16.mxu1 %v15182_v61  ;;  %v15245_v61 = vld [vmem:[#allocation8 + $0x9c4] ss:$16 sps:$4 sm:$0xff]  }
 0x5c2   :  { %11716 = vmatpush1.bf16.msra.mxu0 %v15171_v57 }
 0x5c3   :  { %11717 = vmatprep.subr.bf16.mxu0 %v15179_v55  ;;  %v1295_v55 = vrot.slane %v16374_v6, %v16237_v36 }
 0x5c4   :  { %11980 = vmatpush1.bf16.msra.mxu1 %v15180_v8 }
 0x5c5   :  { %11981 = vmatprep.subr.bf16.mxu1 %v15188_v53  ;;  %v15246_v53 = vld [vmem:[#allocation8 + $0x6c8] ss:$16 sps:$4 sm:$0xff]  }
 0x5c6   :  { %11718 = vmatpush1.bf16.msra.mxu0 %v15177_v50 }
 0x5c7   :  { %11719 = vmatprep.subr.bf16.mxu0 %v15185_v26 }
 0x5c8   :  { %11982 = vmatpush1.bf16.msra.mxu1 %v15186_v56  ;;  %v15243_v56 = vld [vmem:[#allocation8 + $0x9c0] ss:$16 sps:$4 sm:$0xff]  }
 0x5c9   :  { %11983 = vmatprep.subr.bf16.mxu1 %v15194_v58  ;;  %v14619_v58 = vadd.f32 %v16298_v48, %v1283_v27  ;;  %v15300_v27 = vld [vmem:[#allocation8 + $0x7e8] ss:$16 sps:$4 sm:$0xff]  }
 0x5ca   :  { %11720 = vmatpush1.bf16.msra.mxu0 %v15183_v37  ;;  %v15254_v37 = vld [vmem:[#allocation8 + $0x6ec] ss:$16 sps:$4 sm:$0xff]  }
 0x5cb   :  { %11721 = vmatprep.subr.bf16.mxu0 %v15191_v30  ;;  %v15251_v30 = vld [vmem:[#allocation8 + $0x9e4] ss:$16 sps:$4 sm:$0xff]  }
 0x5cc   :  { %11984 = vmatpush1.bf16.msra.mxu1 %v15192_v3  ;;  %v14622_v3 = vadd.f32 %v16318_v47, %v1295_v55  ;;  %v15266_v47 = vld [vmem:[#allocation8 + $0x72c] ss:$16 sps:$4 sm:$0xff]  }
 0x5cd   :  { %11985 = vmatprep.subr.bf16.mxu1 %v15200_v24  ;;  %v15249_v24 = vld [vmem:[#allocation8 + $0x9e0] ss:$16 sps:$4 sm:$0xff]   ;;  %v15308_v55 = vld [vmem:[#allocation8 + $0x80c] ss:$16 sps:$4 sm:$0xff]  }
 0x5ce   :  { %11722 = vmatpush1.bf16.msra.mxu0 %v15189_v33  ;;  %v15252_v33 = vld [vmem:[#allocation8 + $0x6e8] ss:$16 sps:$4 sm:$0xff]  }
 0x5cf   :  { %11723 = vmatprep.subr.bf16.mxu0 %v15197_v63  ;;  %v15260_v63 = vld [vmem:[#allocation8 + $0x70c] ss:$16 sps:$4 sm:$0xff]  }
 0x5d0   :  { %11986 = vmatpush1.bf16.msra.mxu1 %v15198_v0  ;;  %v8429_v0 = vmax.f32 %v14619_v58, 0.0  ;;  %v15312_v58 = vld [vmem:[#allocation8 + $0x828] ss:$16 sps:$4 sm:$0xff]  }
 0x5d1   :  { %11987 = vmatprep.subr.bf16.mxu1 %v15206_v4  ;;  %v8432_v4 = vmax.f32 %v14622_v3, 0.0  ;;  %v15320_v3 = vld [vmem:[#allocation8 + $0x84c] ss:$16 sps:$4 sm:$0xff]  }
 0x5d2   :  { %11724 = vmatpush1.bf16.msra.mxu0 %v15195_v7  ;;  %v15257_v7 = vld [vmem:[#allocation8 + $0xa04] ss:$16 sps:$4 sm:$0xff]   ;;  %v16401_v48 = vpack.c.bf16 %v8429_v0, %v8429_v0  ;;  %v15326_v0 = vld [vmem:[#allocation8 + $0x86c] ss:$16 sps:$4 sm:$0xff]  }
 0x5d3   :  { %11725 = vmatprep.subr.bf16.mxu0 %v15203_v11  ;;  %v15258_v11 = vld [vmem:[#allocation8 + $0x708] ss:$16 sps:$4 sm:$0xff]  }
 0x5d4   :  { %11988 = vmatpush1.bf16.msra.mxu1 %v15204_v12  ;;  %v15255_v12 = vld [vmem:[#allocation8 + $0xa00] ss:$16 sps:$4 sm:$0xff]  }
 0x5d5   :  { %11998 = vmatprep.subr.bf16.mxu1 %v15212_v14  ;;  %v16403_v14 = vpack.c.bf16 %v8432_v4, %v8432_v4  ;;  %v15321_v4 = vld [vmem:[#allocation8 + $0xb60] ss:$16 sps:$4 sm:$0xff]  }
 0x5d6   :  { %11726 = vmatpush1.bf16.msra.mxu0 %v15201_v13  ;;  %v15263_v13 = vld [vmem:[#allocation8 + $0xa24] ss:$16 sps:$4 sm:$0xff]  }
 0x5d7   :  { %11727 = vmatprep.subr.bf16.mxu0 %v15209_v15  ;;  %11990 = vmatmul.mubr.bf16.vlgmr.msra.gmra.mrb[20].mxu1 %v16361_v54  ;;  %v15228_v54 = vld [vmem:[#allocation8 + $0x668] ss:$16 sps:$4 sm:$0xff]  }
 0x5d8   :  { %11999 = vmatpush1.bf16.msra.mxu1 %v15210_v35  ;;  %12030 = vmatprep.mubr.bf16.mxu1 %v16363_v62  ;;  %v15236_v62 = vld [vmem:[#allocation8 + $0x68c] ss:$16 sps:$4 sm:$0xff]   ;;  %v15264_v15 = vld [vmem:[#allocation8 + $0x728] ss:$16 sps:$4 sm:$0xff]   ;;  %v15261_v35 = vld [vmem:[#allocation8 + $0xa20] ss:$16 sps:$4 sm:$0xff]  }
 0x5d9   :  { %12000 = vmatprep.subr.bf16.mxu1 %v15218_v17  ;;  %v15269_v17 = vld [vmem:[#allocation8 + $0xa44] ss:$16 sps:$4 sm:$0xff]  }
 0x5da   :  { %11728 = vmatpush1.bf16.msra.mxu0 %v15207_v40  ;;  %v15272_v40 = vld [vmem:[#allocation8 + $0x74c] ss:$16 sps:$4 sm:$0xff]  }
 0x5db   :  { %11729 = vmatprep.subr.bf16.mxu0 %v15215_v43  ;;  %v15270_v43 = vld [vmem:[#allocation8 + $0x748] ss:$16 sps:$4 sm:$0xff]  }
 0x5dc   :  { %12001 = vmatpush1.bf16.msra.mxu1 %v15216_v19  ;;  %v15267_v19 = vld [vmem:[#allocation8 + $0xa40] ss:$16 sps:$4 sm:$0xff]  }
 0x5dd   :  { %12002 = vmatprep.subr.bf16.mxu1 %v15224_v22  ;;  %v15275_v22 = vld [vmem:[#allocation8 + $0xa64] ss:$16 sps:$4 sm:$0xff]  }
 0x5de   :  { %11730 = vmatpush1.bf16.msra.mxu0 %v15213_v16  ;;  %v15278_v16 = vld [vmem:[#allocation8 + $0x76c] ss:$16 sps:$4 sm:$0xff]  }
 0x5df   :  { %11731 = vmatprep.subr.bf16.mxu0 %v15221_v49  ;;  %v15276_v49 = vld [vmem:[#allocation8 + $0x768] ss:$16 sps:$4 sm:$0xff]  }
 0x5e0   :  { %12003 = vmatpush1.bf16.msra.mxu1 %v15222_v9  ;;  %v15273_v9 = vld [vmem:[#allocation8 + $0xa60] ss:$16 sps:$4 sm:$0xff]  }
 0x5e1   :  { %12004 = vmatprep.subr.bf16.mxu1 %v15230_v60  ;;  %v15281_v60 = vld [vmem:[#allocation8 + $0xa84] ss:$16 sps:$4 sm:$0xff]  }
 0x5e2   :  { %11732 = vmatpush1.bf16.msra.mxu0 %v15219_v23  ;;  %v15284_v23 = vld [vmem:[#allocation8 + $0x78c] ss:$16 sps:$4 sm:$0xff]  }
 0x5e3   :  { %11733 = vmatprep.subr.bf16.mxu0 %v15227_v52  ;;  %v15282_v52 = vld [vmem:[#allocation8 + $0x788] ss:$16 sps:$4 sm:$0xff]  }
 0x5e4   :  { %12005 = vmatpush1.bf16.msra.mxu1 %v15228_v54  ;;  %v15279_v54 = vld [vmem:[#allocation8 + $0xa80] ss:$16 sps:$4 sm:$0xff]  }
 0x5e5   :  { %12006 = vmatprep.subr.bf16.mxu1 %v15236_v62  ;;  %v15287_v62 = vld [vmem:[#allocation8 + $0xaa4] ss:$16 sps:$4 sm:$0xff]  }
 0x5e6   :  { %11734 = vmatpush1.bf16.msra.mxu0 %v15225_v5  ;;  %v15290_v5 = vld [vmem:[#allocation8 + $0x7ac] ss:$16 sps:$4 sm:$0xff]  }
 0x5e7   :  { %11735 = vmatprep.subr.bf16.mxu0 %v15233_v34  ;;  %v15288_v34 = vld [vmem:[#allocation8 + $0x7a8] ss:$16 sps:$4 sm:$0xff]  }
 0x5e8   :  { %12007 = vmatpush1.bf16.msra.mxu1 %v15234_v38  ;;  %v15285_v38 = vld [vmem:[#allocation8 + $0xaa0] ss:$16 sps:$4 sm:$0xff]  }
 0x5e9   :  { %12008 = vmatprep.subr.bf16.mxu1 %v15242_v51  ;;  %v15293_v51 = vld [vmem:[#allocation8 + $0xac4] ss:$16 sps:$4 sm:$0xff]  }
 0x5ea   :  { %11736 = vmatpush1.bf16.msra.mxu0 %v15231_v59  ;;  %v16393_v57 = vpop.f32.mrb[16].mxu1  ;;  %v15296_v59 = vld [vmem:[#allocation8 + $0x7cc] ss:$16 sps:$4 sm:$0xff]  }
 0x5eb   :  { %11737 = vmatprep.subr.bf16.mxu0 %v15239_v41  ;;  %v16397_v8 = vpop.f32.mrb[17].mxu1  ;;  %v15294_v41 = vld [vmem:[#allocation8 + $0x7c8] ss:$16 sps:$4 sm:$0xff]  }
 0x5ec   :  { %v8418_v50 = vpop.f32.mrb[18].mxu1  ;;  %12009 = vmatpush1.bf16.msra.mxu1 %v15240_v44  ;;  %v15291_v44 = vld [vmem:[#allocation8 + $0xac0] ss:$16 sps:$4 sm:$0xff]  }
 0x5ed   :  { %v8419_v26 = vpop.f32.mrb[19].mxu1  ;;  %12010 = vmatprep.subr.bf16.mxu1 %v15248_v46  ;;  %v15299_v46 = vld [vmem:[#allocation8 + $0xae4] ss:$16 sps:$4 sm:$0xff]  }
 0x5ee   :  { %11738 = vmatpush1.bf16.msra.mxu0 %v15237_v21  ;;  %v15302_v21 = vld [vmem:[#allocation8 + $0x7ec] ss:$16 sps:$4 sm:$0xff]   ;;  %v15305_v50 = vld [vmem:[#allocation8 + $0xb04] ss:$16 sps:$4 sm:$0xff]   ;;  %v15303_v26 = vld [vmem:[#allocation8 + $0xb00] ss:$16 sps:$4 sm:$0xff]  }
 0x5ef   :  { %11739 = vmatprep.subr.bf16.mxu0 %v15245_v61  ;;  %v15297_v61 = vld [vmem:[#allocation8 + $0xae0] ss:$16 sps:$4 sm:$0xff]  }
 0x5f0   :  { %12011 = vmatpush1.bf16.msra.mxu1 %v15246_v53  ;;  %v15306_v53 = vld [vmem:[#allocation8 + $0x808] ss:$16 sps:$4 sm:$0xff]  }
 0x5f1   :  { %12012 = vmatprep.subr.bf16.mxu1 %v15254_v37  ;;  %v15311_v37 = vld [vmem:[#allocation8 + $0xb24] ss:$16 sps:$4 sm:$0xff]  }
 0x5f2   :  { %11740 = vmatpush1.bf16.msra.mxu0 %v15243_v56  ;;  %v15314_v56 = vld [vmem:[#allocation8 + $0x82c] ss:$16 sps:$4 sm:$0xff]  }
 0x5f3   :  { %11741 = vmatprep.subr.bf16.mxu0 %v15251_v30  ;;  %v15309_v30 = vld [vmem:[#allocation8 + $0xb20] ss:$16 sps:$4 sm:$0xff]  }
 0x5f4   :  { %12013 = vmatpush1.bf16.msra.mxu1 %v15252_v33  ;;  %v15317_v33 = vld [vmem:[#allocation8 + $0xb44] ss:$16 sps:$4 sm:$0xff]  }
 0x5f5   :  { %12014 = vmatprep.subr.bf16.mxu1 %v15260_v63  ;;  %v15315_v63 = vld [vmem:[#allocation8 + $0xb40] ss:$16 sps:$4 sm:$0xff]  }
 0x5f6   :  { %11742 = vmatpush1.bf16.msra.mxu0 %v15249_v24  ;;  %v15318_v24 = vld [vmem:[#allocation8 + $0x848] ss:$16 sps:$4 sm:$0xff]  }
 0x5f7   :  { %11752 = vmatprep.subr.bf16.mxu0 %v15257_v7  ;;  %v15323_v7 = vld [vmem:[#allocation8 + $0xb64] ss:$16 sps:$4 sm:$0xff]  }
 0x5f8   :  { %12015 = vmatpush1.bf16.msra.mxu1 %v15258_v11  ;;  %v15329_v11 = vld [vmem:[#allocation8 + $0xb84] ss:$16 sps:$4 sm:$0xff]  }
 0x5f9   :  { %11744 = vmatmul.mubr.bf16.vlgmr.msra.gmra.mrb[20].mxu0 %v16401_v48  ;;  %12016 = vmatprep.subr.bf16.mxu1 %v15266_v47  ;;  %v15338_v47 = vld [vmem:[#allocation8 + $0x8ac] ss:$16 sps:$4 sm:$0xff]  }
 0x5fa   :  { %11753 = vmatpush1.bf16.msra.mxu0 %v15255_v12  ;;  %11784 = vmatprep.mubr.bf16.mxu0 %v16403_v14  ;;  %v15330_v12 = vld [vmem:[#allocation8 + $0x888] ss:$16 sps:$4 sm:$0xff]  }
 0x5fb   :  { %11754 = vmatprep.subr.bf16.mxu0 %v15263_v13  ;;  %v15327_v13 = vld [vmem:[#allocation8 + $0xb80] ss:$16 sps:$4 sm:$0xff]  }
 0x5fc   :  { %12017 = vmatpush1.bf16.msra.mxu1 %v15264_v15  ;;  %v15335_v15 = vld [vmem:[#allocation8 + $0xba4] ss:$16 sps:$4 sm:$0xff]  }
 0x5fd   :  { %12018 = vmatprep.subr.bf16.mxu1 %v15272_v40  ;;  %v15333_v40 = vld [vmem:[#allocation8 + $0xba0] ss:$16 sps:$4 sm:$0xff]  }
 0x5fe   :  { %11755 = vmatpush1.bf16.msra.mxu0 %v15261_v35  ;;  %v15336_v35 = vld [vmem:[#allocation8 + $0x8a8] ss:$16 sps:$4 sm:$0xff]  }
 0x5ff   :  { %11756 = vmatprep.subr.bf16.mxu0 %v15269_v17  ;;  %v15344_v17 = vld [vmem:[#allocation8 + $0x8cc] ss:$16 sps:$4 sm:$0xff]  }
 0x600   :  { %12019 = vmatpush1.bf16.msra.mxu1 %v15270_v43  ;;  %v1291_v43 = vrot.slane %v16374_v6, %v16234_v31 }
 0x601   :  { %12020 = vmatprep.subr.bf16.mxu1 %v15278_v16  ;;  %v1303_v16 = vrot.slane %v16374_v6, %v1270_v1  ;;  %v15353_v1 = vld [vmem:[#allocation8 + $0xc04] ss:$16 sps:$4 sm:$0xff]  }
 0x602   :  { %11757 = vmatpush1.bf16.msra.mxu0 %v15267_v19  ;;  %v15341_v19 = vld [vmem:[#allocation8 + $0xbc4] ss:$16 sps:$4 sm:$0xff]  }
 0x603   :  { %11758 = vmatprep.subr.bf16.mxu0 %v15275_v22  ;;  %v15342_v22 = vld [vmem:[#allocation8 + $0x8c8] ss:$16 sps:$4 sm:$0xff]  }
 0x604   :  { %12021 = vmatpush1.bf16.msra.mxu1 %v15276_v49  ;;  %v15339_v49 = vld [vmem:[#allocation8 + $0xbc0] ss:$16 sps:$4 sm:$0xff]  }
 0x605   :  { %12022 = vmatprep.subr.bf16.mxu1 %v15284_v23  ;;  %v14621_v23 = vadd.f32 %v16316_v45, %v1291_v43  ;;  %v15399_v43 = vld [vmem:[#allocation8 + $0xd00] ss:$16 sps:$4 sm:$0xff]  }
 0x606   :  { %11759 = vmatpush1.bf16.msra.mxu0 %v15273_v9  ;;  %v15350_v9 = vld [vmem:[#allocation8 + $0x8ec] ss:$16 sps:$4 sm:$0xff]  }
 0x607   :  { %11760 = vmatprep.subr.bf16.mxu0 %v15281_v60  ;;  %v15347_v60 = vld [vmem:[#allocation8 + $0xbe4] ss:$16 sps:$4 sm:$0xff]  }
 0x608   :  { %12023 = vmatpush1.bf16.msra.mxu1 %v15282_v52  ;;  %v14624_v52 = vadd.f32 %v16369_v29, %v1303_v16  ;;  %v15362_v29 = vld [vmem:[#allocation8 + $0x92c] ss:$16 sps:$4 sm:$0xff]   ;;  %v15407_v16 = vld [vmem:[#allocation8 + $0xd24] ss:$16 sps:$4 sm:$0xff]  }
 0x609   :  { %12024 = vmatprep.subr.bf16.mxu1 %v15290_v5  ;;  %v15345_v5 = vld [vmem:[#allocation8 + $0xbe0] ss:$16 sps:$4 sm:$0xff]  }
 0x60a   :  { %11761 = vmatpush1.bf16.msra.mxu0 %v15279_v54  ;;  %v15348_v54 = vld [vmem:[#allocation8 + $0x8e8] ss:$16 sps:$4 sm:$0xff]  }
 0x60b   :  { %11762 = vmatprep.subr.bf16.mxu0 %v15287_v62  ;;  %v15356_v62 = vld [vmem:[#allocation8 + $0x90c] ss:$16 sps:$4 sm:$0xff]  }
 0x60c   :  { %12025 = vmatpush1.bf16.msra.mxu1 %v15288_v34  ;;  %v8431_v34 = vmax.f32 %v14621_v23, 0.0  ;;  %v15413_v23 = vld [vmem:[#allocation8 + $0xd44] ss:$16 sps:$4 sm:$0xff]  }
 0x60d   :  { %12026 = vmatprep.subr.bf16.mxu1 %v15296_v59  ;;  %v15354_v59 = vld [vmem:[#allocation8 + $0x908] ss:$16 sps:$4 sm:$0xff]  }
 0x60e   :  { %11763 = vmatpush1.bf16.msra.mxu0 %v15285_v38  ;;  %v8434_v38 = vmax.f32 %v14624_v52, 0.0  ;;  %v16416_v45 = vpack.c.bf16 %v8431_v34, %v8431_v34  ;;  %v15411_v52 = vld [vmem:[#allocation8 + $0xd40] ss:$16 sps:$4 sm:$0xff]   ;;  %v15425_v34 = vld [vmem:[#allocation8 + $0xd84] ss:$16 sps:$4 sm:$0xff]  }
 0x60f   :  { %11764 = vmatprep.subr.bf16.mxu0 %v15293_v51  ;;  %v15351_v51 = vld [vmem:[#allocation8 + $0xc00] ss:$16 sps:$4 sm:$0xff]  }
 0x610   :  { %12027 = vmatpush1.bf16.msra.mxu1 %v15294_v41  ;;  %v15359_v41 = vld [vmem:[#allocation8 + $0xc24] ss:$16 sps:$4 sm:$0xff]  }
 0x611   :  { %12028 = vmatprep.subr.bf16.mxu1 %v15302_v21  ;;  %v15360_v21 = vld [vmem:[#allocation8 + $0x928] ss:$16 sps:$4 sm:$0xff]  }
 0x612   :  { %11765 = vmatpush1.bf16.msra.mxu0 %v15291_v44  ;;  %v16418_v44 = vpack.c.bf16 %v8434_v38, %v8434_v38  ;;  %v15423_v38 = vld [vmem:[#allocation8 + $0xd80] ss:$16 sps:$4 sm:$0xff]  }
 0x613   :  { %11766 = vmatprep.subr.bf16.mxu0 %v15299_v46  ;;  %v15357_v46 = vld [vmem:[#allocation8 + $0xc20] ss:$16 sps:$4 sm:$0xff]  }
 0x614   :  { %12029 = vmatpush1.bf16.msra.mxu1 %v15300_v27  ;;  %v15368_v27 = vld [vmem:[#allocation8 + $0x94c] ss:$16 sps:$4 sm:$0xff]  }
 0x615   :  { %12039 = vmatprep.subr.bf16.mxu1 %v15308_v55  ;;  %v15366_v55 = vld [vmem:[#allocation8 + $0x948] ss:$16 sps:$4 sm:$0xff]  }
 0x616   :  { %11767 = vmatpush1.bf16.msra.mxu0 %v15297_v61  ;;  %v15365_v61 = vld [vmem:[#allocation8 + $0xc44] ss:$16 sps:$4 sm:$0xff]  }
 0x617   :  { %11768 = vmatprep.subr.bf16.mxu0 %v15305_v50  ;;  %12031 = vmatmul.mubr.bf16.vlgmr.msra.gmra.mrb[20].mxu1 %v16383_v18  ;;  %v15324_v18 = vld [vmem:[#allocation8 + $0x868] ss:$16 sps:$4 sm:$0xff]   ;;  %v15363_v50 = vld [vmem:[#allocation8 + $0xc40] ss:$16 sps:$4 sm:$0xff]  }
 0x618   :  { %12040 = vmatpush1.bf16.msra.mxu1 %v15306_v53  ;;  %12071 = vmatprep.mubr.bf16.mxu1 %v16385_v39  ;;  %v15332_v39 = vld [vmem:[#allocation8 + $0x88c] ss:$16 sps:$4 sm:$0xff]  }
 0x619   :  { %12041 = vmatprep.subr.bf16.mxu1 %v15314_v56  ;;  %v15374_v53 = vld [vmem:[#allocation8 + $0x96c] ss:$16 sps:$4 sm:$0xff]   ;;  %v15372_v56 = vld [vmem:[#allocation8 + $0x968] ss:$16 sps:$4 sm:$0xff]  }
 0x61a   :  { %11769 = vmatpush1.bf16.msra.mxu0 %v15303_v26  ;;  %v15371_v26 = vld [vmem:[#allocation8 + $0xc64] ss:$16 sps:$4 sm:$0xff]  }
 0x61b   :  { %11770 = vmatprep.subr.bf16.mxu0 %v15311_v37  ;;  %v15369_v37 = vld [vmem:[#allocation8 + $0xc60] ss:$16 sps:$4 sm:$0xff]  }
 0x61c   :  { %12042 = vmatpush1.bf16.msra.mxu1 %v15312_v58  ;;  %v15380_v58 = vld [vmem:[#allocation8 + $0x98c] ss:$16 sps:$4 sm:$0xff]  }
 0x61d   :  { %12043 = vmatprep.subr.bf16.mxu1 %v15320_v3  ;;  %v15378_v3 = vld [vmem:[#allocation8 + $0x988] ss:$16 sps:$4 sm:$0xff]  }
 0x61e   :  { %11771 = vmatpush1.bf16.msra.mxu0 %v15309_v30  ;;  %v15377_v30 = vld [vmem:[#allocation8 + $0xc84] ss:$16 sps:$4 sm:$0xff]  }
 0x61f   :  { %11772 = vmatprep.subr.bf16.mxu0 %v15317_v33  ;;  %v15375_v33 = vld [vmem:[#allocation8 + $0xc80] ss:$16 sps:$4 sm:$0xff]  }
 0x620   :  { %12044 = vmatpush1.bf16.msra.mxu1 %v15318_v24  ;;  %v15386_v24 = vld [vmem:[#allocation8 + $0x9ac] ss:$16 sps:$4 sm:$0xff]  }
 0x621   :  { %12045 = vmatprep.subr.bf16.mxu1 %v15326_v0  ;;  %v15384_v0 = vld [vmem:[#allocation8 + $0x9a8] ss:$16 sps:$4 sm:$0xff]  }
 0x622   :  { %11773 = vmatpush1.bf16.msra.mxu0 %v15315_v63  ;;  %v15383_v63 = vld [vmem:[#allocation8 + $0xca4] ss:$16 sps:$4 sm:$0xff]  }
 0x623   :  { %11774 = vmatprep.subr.bf16.mxu0 %v15323_v7  ;;  %v15381_v7 = vld [vmem:[#allocation8 + $0xca0] ss:$16 sps:$4 sm:$0xff]  }
 0x624   :  { %12046 = vmatpush1.bf16.msra.mxu1 %v15324_v18  ;;  %v15392_v18 = vld [vmem:[#allocation8 + $0x9cc] ss:$16 sps:$4 sm:$0xff]  }
 0x625   :  { %12047 = vmatprep.subr.bf16.mxu1 %v15332_v39  ;;  %v15390_v39 = vld [vmem:[#allocation8 + $0x9c8] ss:$16 sps:$4 sm:$0xff]  }
 0x626   :  { %11775 = vmatpush1.bf16.msra.mxu0 %v15321_v4  ;;  %v15389_v4 = vld [vmem:[#allocation8 + $0xcc4] ss:$16 sps:$4 sm:$0xff]  }
 0x627   :  { %11776 = vmatprep.subr.bf16.mxu0 %v15329_v11  ;;  %v15387_v11 = vld [vmem:[#allocation8 + $0xcc0] ss:$16 sps:$4 sm:$0xff]  }
 0x628   :  { %12048 = vmatpush1.bf16.msra.mxu1 %v15330_v12  ;;  %v15398_v12 = vld [vmem:[#allocation8 + $0x9ec] ss:$16 sps:$4 sm:$0xff]  }
 0x629   :  { %12049 = vmatprep.subr.bf16.mxu1 %v15338_v47  ;;  %v15396_v47 = vld [vmem:[#allocation8 + $0x9e8] ss:$16 sps:$4 sm:$0xff]  }
 0x62a   :  { %11777 = vmatpush1.bf16.msra.mxu0 %v15327_v13  ;;  %v15395_v13 = vld [vmem:[#allocation8 + $0xce4] ss:$16 sps:$4 sm:$0xff]  }
 0x62b   :  { %11778 = vmatprep.subr.bf16.mxu0 %v15335_v15  ;;  %v15393_v15 = vld [vmem:[#allocation8 + $0xce0] ss:$16 sps:$4 sm:$0xff]  }
 0x62c   :  { %12050 = vmatpush1.bf16.msra.mxu1 %v15336_v35  ;;  %v15404_v35 = vld [vmem:[#allocation8 + $0xa0c] ss:$16 sps:$4 sm:$0xff]  }
 0x62d   :  { %12051 = vmatprep.subr.bf16.mxu1 %v15344_v17  ;;  %v15402_v17 = vld [vmem:[#allocation8 + $0xa08] ss:$16 sps:$4 sm:$0xff]  }
 0x62e   :  { %11779 = vmatpush1.bf16.msra.mxu0 %v15333_v40  ;;  %v15401_v40 = vld [vmem:[#allocation8 + $0xd04] ss:$16 sps:$4 sm:$0xff]  }
 0x62f   :  { %11780 = vmatprep.subr.bf16.mxu0 %v15341_v19  ;;  %v15410_v19 = vld [vmem:[#allocation8 + $0xa2c] ss:$16 sps:$4 sm:$0xff]  }
 0x630   :  { %12052 = vmatpush1.bf16.msra.mxu1 %v15342_v22  ;;  %v15408_v22 = vld [vmem:[#allocation8 + $0xa28] ss:$16 sps:$4 sm:$0xff]  }
 0x631   :  { %12053 = vmatprep.subr.bf16.mxu1 %v15350_v9  ;;  %v15416_v9 = vld [vmem:[#allocation8 + $0xa4c] ss:$16 sps:$4 sm:$0xff]  }
 0x632   :  { %11781 = vmatpush1.bf16.msra.mxu0 %v15339_v49  ;;  %v15405_v49 = vld [vmem:[#allocation8 + $0xd20] ss:$16 sps:$4 sm:$0xff]  }
 0x633   :  { %11782 = vmatprep.subr.bf16.mxu0 %v15347_v60  ;;  %v15414_v60 = vld [vmem:[#allocation8 + $0xa48] ss:$16 sps:$4 sm:$0xff]  }
 0x634   :  { %12054 = vmatpush1.bf16.msra.mxu1 %v15348_v54  ;;  %v15422_v54 = vld [vmem:[#allocation8 + $0xa6c] ss:$16 sps:$4 sm:$0xff]  }
 0x635   :  { %12055 = vmatprep.subr.bf16.mxu1 %v15356_v62  ;;  %v15417_v62 = vld [vmem:[#allocation8 + $0xd60] ss:$16 sps:$4 sm:$0xff]  }
 0x636   :  { %11783 = vmatpush1.bf16.msra.mxu0 %v15345_v5  ;;  %v15419_v5 = vld [vmem:[#allocation8 + $0xd64] ss:$16 sps:$4 sm:$0xff]  }
 0x637   :  { %11793 = vmatprep.subr.bf16.mxu0 %v15353_v1  ;;  %v15426_v1 = vld [vmem:[#allocation8 + $0xa88] ss:$16 sps:$4 sm:$0xff]  }
 0x638   :  { %12056 = vmatpush1.bf16.msra.mxu1 %v15354_v59  ;;  %v15434_v59 = vld [vmem:[#allocation8 + $0xaac] ss:$16 sps:$4 sm:$0xff]  }
 0x639   :  { %11785 = vmatmul.mubr.bf16.vlgmr.msra.gmra.mrb[20].mxu0 %v16416_v45  ;;  %12057 = vmatprep.subr.bf16.mxu1 %v15362_v29  ;;  %v15429_v29 = vld [vmem:[#allocation8 + $0xda0] ss:$16 sps:$4 sm:$0xff]  }
 0x63a   :  { %11794 = vmatpush1.bf16.msra.mxu0 %v15351_v51  ;;  %11825 = vmatprep.mubr.bf16.mxu0 %v16418_v44  ;;  %v15431_v51 = vld [vmem:[#allocation8 + $0xda4] ss:$16 sps:$4 sm:$0xff]  }
 0x63b   :  { %11795 = vmatprep.subr.bf16.mxu0 %v15359_v41  ;;  %v15432_v41 = vld [vmem:[#allocation8 + $0xaa8] ss:$16 sps:$4 sm:$0xff]  }
 0x63c   :  { %12058 = vmatpush1.bf16.msra.mxu1 %v15360_v21  ;;  %v15440_v21 = vld [vmem:[#allocation8 + $0xacc] ss:$16 sps:$4 sm:$0xff]  }
 0x63d   :  { %12059 = vmatprep.subr.bf16.mxu1 %v15368_v27  ;;  %v15437_v27 = vld [vmem:[#allocation8 + $0xdc4] ss:$16 sps:$4 sm:$0xff]  }
 0x63e   :  { %11796 = vmatpush1.bf16.msra.mxu0 %v15357_v46  ;;  %v1299_v46 = vrot.slane %v16374_v6, %v1266_v32  ;;  %v15444_v32 = vld [vmem:[#allocation8 + $0xae8] ss:$16 sps:$4 sm:$0xff]  }
 0x63f   :  { %11797 = vmatprep.subr.bf16.mxu0 %v15365_v61  ;;  %v1311_v61 = vrot.slane %v16374_v6, %v1278_v25  ;;  %v15449_v25 = vld [vmem:[#allocation8 + $0xe04] ss:$16 sps:$4 sm:$0xff]  }
 0x640   :  { %12060 = vmatpush1.bf16.msra.mxu1 %v15366_v55  ;;  %v15438_v55 = vld [vmem:[#allocation8 + $0xac8] ss:$16 sps:$4 sm:$0xff]  }
 0x641   :  { %12061 = vmatprep.subr.bf16.mxu1 %v15374_v53  ;;  %v15446_v53 = vld [vmem:[#allocation8 + $0xaec] ss:$16 sps:$4 sm:$0xff]  }
 0x642   :  { %11798 = vmatpush1.bf16.msra.mxu0 %v15363_v50  ;;  %v15435_v50 = vld [vmem:[#allocation8 + $0xdc0] ss:$16 sps:$4 sm:$0xff]  }
 0x643   :  { %11799 = vmatprep.subr.bf16.mxu0 %v15371_v26  ;;  %v14623_v26 = vadd.f32 %v16367_v42, %v1299_v46  ;;  %v15512_v46 = vld [vmem:[#allocation8 + $0xc4c] ss:$16 sps:$4 sm:$0xff]  }
 0x644   :  { %12062 = vmatpush1.bf16.msra.mxu1 %v15372_v56  ;;  %v15443_v56 = vld [vmem:[#allocation8 + $0xde4] ss:$16 sps:$4 sm:$0xff]  }
 0x645   :  { %12063 = vmatprep.subr.bf16.mxu1 %v15380_v58  ;;  %v15441_v58 = vld [vmem:[#allocation8 + $0xde0] ss:$16 sps:$4 sm:$0xff]  }
 0x646   :  { %11800 = vmatpush1.bf16.msra.mxu0 %v15369_v37  ;;  %v14626_v37 = vadd.f32 %v16397_v8, %v1311_v61  ;;  %v15458_v8 = vld [vmem:[#allocation8 + $0xb2c] ss:$16 sps:$4 sm:$0xff]   ;;  %v15510_v61 = vld [vmem:[#allocation8 + $0xc48] ss:$16 sps:$4 sm:$0xff]  }
 0x647   :  { %11801 = vmatprep.subr.bf16.mxu0 %v15377_v30  ;;  %v15452_v30 = vld [vmem:[#allocation8 + $0xb0c] ss:$16 sps:$4 sm:$0xff]  }
 0x648   :  { %12064 = vmatpush1.bf16.msra.mxu1 %v15378_v3  ;;  %v8433_v3 = vmax.f32 %v14623_v26, 0.0  ;;  %v8436_v6 = vmax.f32 %v14626_v37, 0.0  ;;  %v15513_v26 = vld [vmem:[#allocation8 + $0xf60] ss:$16 sps:$4 sm:$0xff]   ;;  %v15522_v37 = vld [vmem:[#allocation8 + $0xc88] ss:$16 sps:$4 sm:$0xff]  }
 0x649   :  { %12065 = vmatprep.subr.bf16.mxu1 %v15386_v24  ;;  %v15447_v24 = vld [vmem:[#allocation8 + $0xe00] ss:$16 sps:$4 sm:$0xff]  }
 0x64a   :  { %11802 = vmatpush1.bf16.msra.mxu0 %v15375_v33  ;;  %v15450_v33 = vld [vmem:[#allocation8 + $0xb08] ss:$16 sps:$4 sm:$0xff]   ;;  %v16432_v42 = vpack.c.bf16 %v8433_v3, %v8433_v3 }
 0x64b   :  { %11803 = vmatprep.subr.bf16.mxu0 %v15383_v63  ;;  %v15455_v63 = vld [vmem:[#allocation8 + $0xe24] ss:$16 sps:$4 sm:$0xff]   ;;  %v15528_v3 = vld [vmem:[#allocation8 + $0xca8] ss:$16 sps:$4 sm:$0xff]  }
 0x64c   :  { %12066 = vmatpush1.bf16.msra.mxu1 %v15384_v0  ;;  %v16434_v0 = vpack.c.bf16 %v8436_v6, %v8436_v6  ;;  %v15536_v6 = vld [vmem:[#allocation8 + $0xccc] ss:$16 sps:$4 sm:$0xff]  }
 0x64d   :  { %12067 = vmatprep.subr.bf16.mxu1 %v15392_v18  ;;  %v15453_v18 = vld [vmem:[#allocation8 + $0xe20] ss:$16 sps:$4 sm:$0xff]  }
 0x64e   :  { %11804 = vmatpush1.bf16.msra.mxu0 %v15381_v7  ;;  %v15456_v7 = vld [vmem:[#allocation8 + $0xb28] ss:$16 sps:$4 sm:$0xff]  }
 0x64f   :  { %11805 = vmatprep.subr.bf16.mxu0 %v15389_v4  ;;  %v15464_v4 = vld [vmem:[#allocation8 + $0xb4c] ss:$16 sps:$4 sm:$0xff]  }
 0x650   :  { %12068 = vmatpush1.bf16.msra.mxu1 %v15390_v39  ;;  %v15461_v39 = vld [vmem:[#allocation8 + $0xe44] ss:$16 sps:$4 sm:$0xff]  }
 0x651   :  { %12069 = vmatprep.subr.bf16.mxu1 %v15398_v12  ;;  %v15459_v12 = vld [vmem:[#allocation8 + $0xe40] ss:$16 sps:$4 sm:$0xff]  }
 0x652   :  { %11806 = vmatpush1.bf16.msra.mxu0 %v15387_v11  ;;  %v15462_v11 = vld [vmem:[#allocation8 + $0xb48] ss:$16 sps:$4 sm:$0xff]  }
 0x653   :  { %11807 = vmatprep.subr.bf16.mxu0 %v15395_v13  ;;  %v15470_v13 = vld [vmem:[#allocation8 + $0xb6c] ss:$16 sps:$4 sm:$0xff]  }
 0x654   :  { %12070 = vmatpush1.bf16.msra.mxu1 %v15396_v47  ;;  %v15467_v47 = vld [vmem:[#allocation8 + $0xe64] ss:$16 sps:$4 sm:$0xff]  }
 0x655   :  { %12080 = vmatprep.subr.bf16.mxu1 %v15404_v35  ;;  %v15465_v35 = vld [vmem:[#allocation8 + $0xe60] ss:$16 sps:$4 sm:$0xff]  }
 0x656   :  { %11808 = vmatpush1.bf16.msra.mxu0 %v15393_v15  ;;  %v15468_v15 = vld [vmem:[#allocation8 + $0xb68] ss:$16 sps:$4 sm:$0xff]  }
 0x657   :  { %11809 = vmatprep.subr.bf16.mxu0 %v15401_v40  ;;  %12072 = vmatmul.mubr.bf16.vlgmr.msra.gmra.mrb[20].mxu1 %v16401_v48  ;;  %v15420_v48 = vld [vmem:[#allocation8 + $0xa68] ss:$16 sps:$4 sm:$0xff]   ;;  %v15476_v40 = vld [vmem:[#allocation8 + $0xb8c] ss:$16 sps:$4 sm:$0xff]  }
 0x658   :  { %12081 = vmatpush1.bf16.msra.mxu1 %v15402_v17  ;;  %12112 = vmatprep.mubr.bf16.mxu1 %v16403_v14  ;;  %v15428_v14 = vld [vmem:[#allocation8 + $0xa8c] ss:$16 sps:$4 sm:$0xff]   ;;  %v15473_v17 = vld [vmem:[#allocation8 + $0xe84] ss:$16 sps:$4 sm:$0xff]  }
 0x659   :  { %12082 = vmatprep.subr.bf16.mxu1 %v15410_v19  ;;  %v15471_v19 = vld [vmem:[#allocation8 + $0xe80] ss:$16 sps:$4 sm:$0xff]  }
 0x65a   :  { %11810 = vmatpush1.bf16.msra.mxu0 %v15399_v43  ;;  %v15474_v43 = vld [vmem:[#allocation8 + $0xb88] ss:$16 sps:$4 sm:$0xff]  }
 0x65b   :  { %11811 = vmatprep.subr.bf16.mxu0 %v15407_v16  ;;  %v15482_v16 = vld [vmem:[#allocation8 + $0xbac] ss:$16 sps:$4 sm:$0xff]  }
 0x65c   :  { %12083 = vmatpush1.bf16.msra.mxu1 %v15408_v22  ;;  %v15479_v22 = vld [vmem:[#allocation8 + $0xea4] ss:$16 sps:$4 sm:$0xff]  }
 0x65d   :  { %12084 = vmatprep.subr.bf16.mxu1 %v15416_v9  ;;  %v15477_v9 = vld [vmem:[#allocation8 + $0xea0] ss:$16 sps:$4 sm:$0xff]  }
 0x65e   :  { %11812 = vmatpush1.bf16.msra.mxu0 %v15405_v49  ;;  %v15480_v49 = vld [vmem:[#allocation8 + $0xba8] ss:$16 sps:$4 sm:$0xff]  }
 0x65f   :  { %11813 = vmatprep.subr.bf16.mxu0 %v15413_v23  ;;  %v15488_v23 = vld [vmem:[#allocation8 + $0xbcc] ss:$16 sps:$4 sm:$0xff]  }
 0x660   :  { %12085 = vmatpush1.bf16.msra.mxu1 %v15414_v60  ;;  %v15485_v60 = vld [vmem:[#allocation8 + $0xec4] ss:$16 sps:$4 sm:$0xff]  }
 0x661   :  { %12086 = vmatprep.subr.bf16.mxu1 %v15422_v54  ;;  %v15483_v54 = vld [vmem:[#allocation8 + $0xec0] ss:$16 sps:$4 sm:$0xff]  }
 0x662   :  { %11814 = vmatpush1.bf16.msra.mxu0 %v15411_v52  ;;  %v15486_v52 = vld [vmem:[#allocation8 + $0xbc8] ss:$16 sps:$4 sm:$0xff]  }
 0x663   :  { %11815 = vmatprep.subr.bf16.mxu0 %v15419_v5  ;;  %v15494_v5 = vld [vmem:[#allocation8 + $0xbec] ss:$16 sps:$4 sm:$0xff]  }
 0x664   :  { %12087 = vmatpush1.bf16.msra.mxu1 %v15420_v48  ;;  %v15491_v48 = vld [vmem:[#allocation8 + $0xee4] ss:$16 sps:$4 sm:$0xff]  }
 0x665   :  { %12088 = vmatprep.subr.bf16.mxu1 %v15428_v14  ;;  %v15489_v14 = vld [vmem:[#allocation8 + $0xee0] ss:$16 sps:$4 sm:$0xff]  }
 0x666   :  { %11816 = vmatpush1.bf16.msra.mxu0 %v15417_v62  ;;  %v15492_v62 = vld [vmem:[#allocation8 + $0xbe8] ss:$16 sps:$4 sm:$0xff]  }
 0x667   :  { %11817 = vmatprep.subr.bf16.mxu0 %v15425_v34  ;;  %v15500_v34 = vld [vmem:[#allocation8 + $0xc0c] ss:$16 sps:$4 sm:$0xff]  }
 0x668   :  { %12089 = vmatpush1.bf16.msra.mxu1 %v15426_v1  ;;  %v15497_v1 = vld [vmem:[#allocation8 + $0xf04] ss:$16 sps:$4 sm:$0xff]  }
 0x669   :  { %12090 = vmatprep.subr.bf16.mxu1 %v15434_v59  ;;  %v15495_v59 = vld [vmem:[#allocation8 + $0xf00] ss:$16 sps:$4 sm:$0xff]  }
 0x66a   :  { %11818 = vmatpush1.bf16.msra.mxu0 %v15423_v38  ;;  %v15498_v38 = vld [vmem:[#allocation8 + $0xc08] ss:$16 sps:$4 sm:$0xff]  }
 0x66b   :  { %11819 = vmatprep.subr.bf16.mxu0 %v15431_v51  ;;  %v15506_v51 = vld [vmem:[#allocation8 + $0xc2c] ss:$16 sps:$4 sm:$0xff]  }
 0x66c   :  { %12091 = vmatpush1.bf16.msra.mxu1 %v15432_v41  ;;  %v15503_v41 = vld [vmem:[#allocation8 + $0xf24] ss:$16 sps:$4 sm:$0xff]  }
 0x66d   :  { %12092 = vmatprep.subr.bf16.mxu1 %v15440_v21  ;;  %v15501_v21 = vld [vmem:[#allocation8 + $0xf20] ss:$16 sps:$4 sm:$0xff]  }
 0x66e   :  { %11820 = vmatpush1.bf16.msra.mxu0 %v15429_v29  ;;  %v15504_v29 = vld [vmem:[#allocation8 + $0xc28] ss:$16 sps:$4 sm:$0xff]  }
 0x66f   :  { %11821 = vmatprep.subr.bf16.mxu0 %v15437_v27  ;;  %v15509_v27 = vld [vmem:[#allocation8 + $0xf44] ss:$16 sps:$4 sm:$0xff]  }
 0x670   :  { %12093 = vmatpush1.bf16.msra.mxu1 %v15438_v55  ;;  %v15507_v55 = vld [vmem:[#allocation8 + $0xf40] ss:$16 sps:$4 sm:$0xff]  }
 0x671   :  { %12094 = vmatprep.subr.bf16.mxu1 %v15446_v53  ;;  %v15515_v53 = vld [vmem:[#allocation8 + $0xf64] ss:$16 sps:$4 sm:$0xff]  }
 0x672   :  { %11822 = vmatpush1.bf16.msra.mxu0 %v15435_v50  ;;  %v15518_v50 = vld [vmem:[#allocation8 + $0xc6c] ss:$16 sps:$4 sm:$0xff]  }
 0x673   :  { %11823 = vmatprep.subr.bf16.mxu0 %v15443_v56  ;;  %v15521_v56 = vld [vmem:[#allocation8 + $0xf84] ss:$16 sps:$4 sm:$0xff]  }
 0x674   :  { %12095 = vmatpush1.bf16.msra.mxu1 %v15444_v32  ;;  %v15519_v32 = vld [vmem:[#allocation8 + $0xf80] ss:$16 sps:$4 sm:$0xff]  }
 0x675   :  { %12096 = vmatprep.subr.bf16.mxu1 %v15452_v30  ;;  %v15527_v30 = vld [vmem:[#allocation8 + $0xfa4] ss:$16 sps:$4 sm:$0xff]  }
 0x676   :  { %11824 = vmatpush1.bf16.msra.mxu0 %v15441_v58  ;;  %v15530_v58 = vld [vmem:[#allocation8 + $0xcac] ss:$16 sps:$4 sm:$0xff]  }
 0x677   :  { %11834 = vmatprep.subr.bf16.mxu0 %v15449_v25  ;;  %v15525_v25 = vld [vmem:[#allocation8 + $0xfa0] ss:$16 sps:$4 sm:$0xff]  }
 0x678   :  { %12097 = vmatpush1.bf16.msra.mxu1 %v15450_v33  ;;  %v15728_v33 = vld [vmem:[#allocation7 + $0x8] sm:$0xff] }
 0x679   :  { %11826 = vmatmul.mubr.bf16.vlgmr.msra.gmra.mrb[20].mxu0 %v16432_v42  ;;  %12098 = vmatprep.subr.bf16.mxu1 %v15458_v8  ;;  %v15534_v8 = vld [vmem:[#allocation8 + $0xcc8] ss:$16 sps:$4 sm:$0xff]  }
 0x67a   :  { %11835 = vmatpush1.bf16.msra.mxu0 %v15447_v24  ;;  %11866 = vmatprep.mubr.bf16.mxu0 %v16434_v0  ;;  %v1307_v24 = vrot.slane %v15728_v33, %v1274_v2  ;;  %v15617_v2 = vld [vmem:[#allocation11 + $0x4] ss:$8 sps:$4 sm:$0xff]   ;;  %v15581_v33 = vld [vmem:[#allocation8 + $0xe8c] ss:$16 sps:$4 sm:$0xff]  }
 0x67b   :  { %11836 = vmatprep.subr.bf16.mxu0 %v15455_v63  ;;  %v15533_v63 = vld [vmem:[#allocation8 + $0xfc4] ss:$16 sps:$4 sm:$0xff]  }
 0x67c   :  { %12099 = vmatpush1.bf16.msra.mxu1 %v15456_v7  ;;  %v15531_v7 = vld [vmem:[#allocation8 + $0xfc0] ss:$16 sps:$4 sm:$0xff]  }
 0x67d   :  { %12100 = vmatprep.subr.bf16.mxu1 %v15464_v4  ;;  %v14625_v4 = vadd.f32 %v16393_v57, %v1307_v24  ;;  %v15620_v57 = vld [vmem:[#allocation11 + $0x14] ss:$8 sps:$4 sm:$0xff]   ;;  %v15653_v24 = vld [vmem:[#allocation11 + $0xc4] ss:$8 sps:$4 sm:$0xff]  }
 0x67e   :  { %11837 = vmatpush1.bf16.msra.mxu0 %v15453_v18  ;;  %v15542_v18 = vld [vmem:[#allocation8 + $0xcec] ss:$16 sps:$4 sm:$0xff]  }
 0x67f   :  { %11838 = vmatprep.subr.bf16.mxu0 %v15461_v39  ;;  %v15539_v39 = vld [vmem:[#allocation8 + $0xfe4] ss:$16 sps:$4 sm:$0xff]   ;;  %v8435_v10 = vmax.f32 %v14625_v4, 0.0  ;;  %v15582_v4 = vld [vmem:[#allocation8 + $0xea8] ss:$16 sps:$4 sm:$0xff]  }
 0x680   :  { %12101 = vmatpush1.bf16.msra.mxu1 %v15462_v11  ;;  %v15540_v11 = vld [vmem:[#allocation8 + $0xce8] ss:$16 sps:$4 sm:$0xff]  }
 0x681   :  { %12102 = vmatprep.subr.bf16.mxu1 %v15470_v13  ;;  %v15545_v13 = vld [vmem:[#allocation8 + $0xd0c] ss:$16 sps:$4 sm:$0xff]  }
 0x682   :  { %11839 = vmatpush1.bf16.msra.mxu0 %v15459_v12  ;;  %v15537_v12 = vld [vmem:[#allocation8 + $0xfe0] ss:$16 sps:$4 sm:$0xff]  }
 0x683   :  { %11840 = vmatprep.subr.bf16.mxu0 %v15467_v47  ;;  %v15543_v47 = vld [vmem:[#allocation8 + $0xd08] ss:$16 sps:$4 sm:$0xff]  }
 0x684   :  { %12103 = vmatpush1.bf16.msra.mxu1 %v15468_v15  ;;  %v15548_v15 = vld [vmem:[#allocation8 + $0xd2c] ss:$16 sps:$4 sm:$0xff]  }
 0x685   :  { %12104 = vmatprep.subr.bf16.mxu1 %v15476_v40  ;;  %v16443_v40 = vpack.c.bf16 %v8435_v10, %v8435_v10  ;;  %v15588_v10 = vld [vmem:[#allocation8 + $0xee8] ss:$16 sps:$4 sm:$0xff]  }
 0x686   :  { %11841 = vmatpush1.bf16.msra.mxu0 %v15465_v35  ;;  %v15615_v35 = vld [vmem:[#allocation11] ss:$8 sps:$4 sm:$0xff]  }
 0x687   :  { %11842 = vmatprep.subr.bf16.mxu0 %v15473_v17  ;;  %v15546_v17 = vld [vmem:[#allocation8 + $0xd28] ss:$16 sps:$4 sm:$0xff]  }
 0x688   :  { %12105 = vmatpush1.bf16.msra.mxu1 %v15474_v43  ;;  %v15551_v43 = vld [vmem:[#allocation8 + $0xd4c] ss:$16 sps:$4 sm:$0xff]  }
 0x689   :  { %12106 = vmatprep.subr.bf16.mxu1 %v15482_v16  ;;  %v15623_v16 = vld [vmem:[#allocation11 + $0x24] ss:$8 sps:$4 sm:$0xff]  }
 0x68a   :  { %11843 = vmatpush1.bf16.msra.mxu0 %v15471_v19  ;;  %v15618_v19 = vld [vmem:[#allocation11 + $0x10] ss:$8 sps:$4 sm:$0xff]  }
 0x68b   :  { %11844 = vmatprep.subr.bf16.mxu0 %v15479_v22  ;;  %v15549_v22 = vld [vmem:[#allocation8 + $0xd48] ss:$16 sps:$4 sm:$0xff]  }
 0x68c   :  { %12107 = vmatpush1.bf16.msra.mxu1 %v15480_v49  ;;  %v15554_v49 = vld [vmem:[#allocation8 + $0xd6c] ss:$16 sps:$4 sm:$0xff]  }
 0x68d   :  { %12108 = vmatprep.subr.bf16.mxu1 %v15488_v23  ;;  %v15626_v23 = vld [vmem:[#allocation11 + $0x34] ss:$8 sps:$4 sm:$0xff]  }
 0x68e   :  { %11845 = vmatpush1.bf16.msra.mxu0 %v15477_v9  ;;  %v15621_v9 = vld [vmem:[#allocation11 + $0x20] ss:$8 sps:$4 sm:$0xff]  }
 0x68f   :  { %11846 = vmatprep.subr.bf16.mxu0 %v15485_v60  ;;  %v15552_v60 = vld [vmem:[#allocation8 + $0xd68] ss:$16 sps:$4 sm:$0xff]  }
 0x690   :  { %12109 = vmatpush1.bf16.msra.mxu1 %v15486_v52  ;;  %v15557_v52 = vld [vmem:[#allocation8 + $0xd8c] ss:$16 sps:$4 sm:$0xff]  }
 0x691   :  { %12110 = vmatprep.subr.bf16.mxu1 %v15494_v5  ;;  %v15629_v5 = vld [vmem:[#allocation11 + $0x44] ss:$8 sps:$4 sm:$0xff]  }
 0x692   :  { %11847 = vmatpush1.bf16.msra.mxu0 %v15483_v54  ;;  %v15624_v54 = vld [vmem:[#allocation11 + $0x30] ss:$8 sps:$4 sm:$0xff]  }
 0x693   :  { %11848 = vmatprep.subr.bf16.mxu0 %v15491_v48  ;;  %v15555_v48 = vld [vmem:[#allocation8 + $0xd88] ss:$16 sps:$4 sm:$0xff]  }
 0x694   :  { %12111 = vmatpush1.bf16.msra.mxu1 %v15492_v62  ;;  %v15560_v62 = vld [vmem:[#allocation8 + $0xdac] ss:$16 sps:$4 sm:$0xff]  }
 0x695   :  { %12121 = vmatprep.subr.bf16.mxu1 %v15500_v34  ;;  %v15632_v34 = vld [vmem:[#allocation11 + $0x54] ss:$8 sps:$4 sm:$0xff]  }
 0x696   :  { %11849 = vmatpush1.bf16.msra.mxu0 %v15489_v14  ;;  %v15627_v14 = vld [vmem:[#allocation11 + $0x40] ss:$8 sps:$4 sm:$0xff]  }
 0x697   :  { %11850 = vmatprep.subr.bf16.mxu0 %v15497_v1  ;;  %12113 = vmatmul.mubr.bf16.vlgmr.msra.gmra.mrb[20].mxu1 %v16416_v45  ;;  %v15516_v45 = vld [vmem:[#allocation8 + $0xc68] ss:$16 sps:$4 sm:$0xff]  }
 0x698   :  { %12122 = vmatpush1.bf16.msra.mxu1 %v15498_v38  ;;  %12153 = vmatprep.mubr.bf16.mxu1 %v16418_v44  ;;  %v15524_v44 = vld [vmem:[#allocation8 + $0xc8c] ss:$16 sps:$4 sm:$0xff]   ;;  %v15558_v1 = vld [vmem:[#allocation8 + $0xda8] ss:$16 sps:$4 sm:$0xff]  }
 0x699   :  { %12123 = vmatprep.subr.bf16.mxu1 %v15506_v51  ;;  %v15563_v38 = vld [vmem:[#allocation8 + $0xdcc] ss:$16 sps:$4 sm:$0xff]   ;;  %v15635_v51 = vld [vmem:[#allocation11 + $0x64] ss:$8 sps:$4 sm:$0xff]  }
 0x69a   :  { %11851 = vmatpush1.bf16.msra.mxu0 %v15495_v59  ;;  %v15630_v59 = vld [vmem:[#allocation11 + $0x50] ss:$8 sps:$4 sm:$0xff]  }
 0x69b   :  { %11852 = vmatprep.subr.bf16.mxu0 %v15503_v41  ;;  %v15561_v41 = vld [vmem:[#allocation8 + $0xdc8] ss:$16 sps:$4 sm:$0xff]  }
 0x69c   :  { %12124 = vmatpush1.bf16.msra.mxu1 %v15504_v29  ;;  %v15566_v29 = vld [vmem:[#allocation8 + $0xdec] ss:$16 sps:$4 sm:$0xff]  }
 0x69d   :  { %12125 = vmatprep.subr.bf16.mxu1 %v15512_v46  ;;  %v15638_v46 = vld [vmem:[#allocation11 + $0x74] ss:$8 sps:$4 sm:$0xff]  }
 0x69e   :  { %11853 = vmatpush1.bf16.msra.mxu0 %v15501_v21  ;;  %v15633_v21 = vld [vmem:[#allocation11 + $0x60] ss:$8 sps:$4 sm:$0xff]  }
 0x69f   :  { %11854 = vmatprep.subr.bf16.mxu0 %v15509_v27  ;;  %v15564_v27 = vld [vmem:[#allocation8 + $0xde8] ss:$16 sps:$4 sm:$0xff]  }
 0x6a0   :  { %12126 = vmatpush1.bf16.msra.mxu1 %v15510_v61  ;;  %v15569_v61 = vld [vmem:[#allocation8 + $0xe0c] ss:$16 sps:$4 sm:$0xff]  }
 0x6a1   :  { %12127 = vmatprep.subr.bf16.mxu1 %v15518_v50  ;;  %v15641_v50 = vld [vmem:[#allocation11 + $0x84] ss:$8 sps:$4 sm:$0xff]  }
 0x6a2   :  { %11855 = vmatpush1.bf16.msra.mxu0 %v15507_v55  ;;  %v15636_v55 = vld [vmem:[#allocation11 + $0x70] ss:$8 sps:$4 sm:$0xff]  }
 0x6a3   :  { %11856 = vmatprep.subr.bf16.mxu0 %v15515_v53  ;;  %v15567_v53 = vld [vmem:[#allocation8 + $0xe08] ss:$16 sps:$4 sm:$0xff]  }
 0x6a4   :  { %12128 = vmatpush1.bf16.msra.mxu1 %v15516_v45  ;;  %v15572_v45 = vld [vmem:[#allocation8 + $0xe2c] ss:$16 sps:$4 sm:$0xff]  }
 0x6a5   :  { %12129 = vmatprep.subr.bf16.mxu1 %v15524_v44  ;;  %v15644_v44 = vld [vmem:[#allocation11 + $0x94] ss:$8 sps:$4 sm:$0xff]  }
 0x6a6   :  { %11857 = vmatpush1.bf16.msra.mxu0 %v15513_v26  ;;  %v15639_v26 = vld [vmem:[#allocation11 + $0x80] ss:$8 sps:$4 sm:$0xff]  }
 0x6a7   :  { %11858 = vmatprep.subr.bf16.mxu0 %v15521_v56  ;;  %v15570_v56 = vld [vmem:[#allocation8 + $0xe28] ss:$16 sps:$4 sm:$0xff]  }
 0x6a8   :  { %12130 = vmatpush1.bf16.msra.mxu1 %v15522_v37  ;;  %v15575_v37 = vld [vmem:[#allocation8 + $0xe4c] ss:$16 sps:$4 sm:$0xff]  }
 0x6a9   :  { %12131 = vmatprep.subr.bf16.mxu1 %v15530_v58  ;;  %v15647_v58 = vld [vmem:[#allocation11 + $0xa4] ss:$8 sps:$4 sm:$0xff]  }
 0x6aa   :  { %11859 = vmatpush1.bf16.msra.mxu0 %v15519_v32  ;;  %v15642_v32 = vld [vmem:[#allocation11 + $0x90] ss:$8 sps:$4 sm:$0xff]  }
 0x6ab   :  { %11860 = vmatprep.subr.bf16.mxu0 %v15527_v30  ;;  %v15573_v30 = vld [vmem:[#allocation8 + $0xe48] ss:$16 sps:$4 sm:$0xff]  }
 0x6ac   :  { %12132 = vmatpush1.bf16.msra.mxu1 %v15528_v3  ;;  %v15578_v3 = vld [vmem:[#allocation8 + $0xe6c] ss:$16 sps:$4 sm:$0xff]  }
 0x6ad   :  { %12133 = vmatprep.subr.bf16.mxu1 %v15536_v6  ;;  %v15650_v6 = vld [vmem:[#allocation11 + $0xb4] ss:$8 sps:$4 sm:$0xff]  }
 0x6ae   :  { %11861 = vmatpush1.bf16.msra.mxu0 %v15525_v25  ;;  %v15645_v25 = vld [vmem:[#allocation11 + $0xa0] ss:$8 sps:$4 sm:$0xff]  }
 0x6af   :  { %11862 = vmatprep.subr.bf16.mxu0 %v15533_v63  ;;  %v15579_v63 = vld [vmem:[#allocation8 + $0xe88] ss:$16 sps:$4 sm:$0xff]  }
 0x6b0   :  { %12134 = vmatpush1.bf16.msra.mxu1 %v15534_v8  ;;  %v15584_v8 = vld [vmem:[#allocation8 + $0xeac] ss:$16 sps:$4 sm:$0xff]  }
 0x6b1   :  { %12135 = vmatprep.subr.bf16.mxu1 %v15542_v18  ;;  %v15656_v18 = vld [vmem:[#allocation11 + $0xd4] ss:$8 sps:$4 sm:$0xff]  }
 0x6b2   :  { %11863 = vmatpush1.bf16.msra.mxu0 %v15531_v7  ;;  %v15651_v7 = vld [vmem:[#allocation11 + $0xc0] ss:$8 sps:$4 sm:$0xff]  }
 0x6b3   :  { %11864 = vmatprep.subr.bf16.mxu0 %v15539_v39  ;;  %v15587_v39 = vld [vmem:[#allocation8 + $0xecc] ss:$16 sps:$4 sm:$0xff]  }
 0x6b4   :  { %12136 = vmatpush1.bf16.msra.mxu1 %v15540_v11  ;;  %v15654_v11 = vld [vmem:[#allocation11 + $0xd0] ss:$8 sps:$4 sm:$0xff]  }
 0x6b5   :  { %12137 = vmatprep.subr.bf16.mxu1 %v15545_v13  ;;  %v15590_v13 = vld [vmem:[#allocation8 + $0xeec] ss:$16 sps:$4 sm:$0xff]  }
 0x6b6   :  { %11865 = vmatpush1.bf16.msra.mxu0 %v15537_v12  ;;  %v15585_v12 = vld [vmem:[#allocation8 + $0xec8] ss:$16 sps:$4 sm:$0xff]  }
 0x6b7   :  { %12607 = vmatprep.subr.bf16.mxu0 %v15617_v2  ;;  %v15593_v2 = vld [vmem:[#allocation8 + $0xf0c] ss:$16 sps:$4 sm:$0xff]  }
 0x6b8   :  { %12138 = vmatpush1.bf16.msra.mxu1 %v15543_v47  ;;  %v15591_v47 = vld [vmem:[#allocation8 + $0xf08] ss:$16 sps:$4 sm:$0xff]  }
 0x6b9   :  { %11867 = vmatmul.mubr.bf16.vlgmr.msra.gmra.mrb[20].mxu0 %v16443_v40  ;;  %12139 = vmatprep.subr.bf16.mxu1 %v15548_v15  ;;  %v15596_v15 = vld [vmem:[#allocation8 + $0xf2c] ss:$16 sps:$4 sm:$0xff]  }
 0x6ba   :  { %12608 = vmatpush1.bf16.msra.mxu0 %v15615_v35  ;;  %v15594_v35 = vld [vmem:[#allocation8 + $0xf28] ss:$16 sps:$4 sm:$0xff]  }
 0x6bb   :  { %12609 = vmatprep.subr.bf16.mxu0 %v15620_v57  ;;  %v15599_v57 = vld [vmem:[#allocation8 + $0xf4c] ss:$16 sps:$4 sm:$0xff]  }
 0x6bc   :  { %12140 = vmatpush1.bf16.msra.mxu1 %v15546_v17  ;;  %v15597_v17 = vld [vmem:[#allocation8 + $0xf48] ss:$16 sps:$4 sm:$0xff]  }
 0x6bd   :  { %12141 = vmatprep.subr.bf16.mxu1 %v15551_v43  ;;  %v15602_v43 = vld [vmem:[#allocation8 + $0xf6c] ss:$16 sps:$4 sm:$0xff]  }
 0x6be   :  { %12610 = vmatpush1.bf16.msra.mxu0 %v15618_v19  ;;  %v15600_v19 = vld [vmem:[#allocation8 + $0xf68] ss:$16 sps:$4 sm:$0xff]  }
 0x6bf   :  { %12611 = vmatprep.subr.bf16.mxu0 %v15623_v16  ;;  %v15605_v16 = vld [vmem:[#allocation8 + $0xf8c] ss:$16 sps:$4 sm:$0xff]  }
 0x6c0   :  { %12142 = vmatpush1.bf16.msra.mxu1 %v15549_v22  ;;  %v15603_v22 = vld [vmem:[#allocation8 + $0xf88] ss:$16 sps:$4 sm:$0xff]  }
 0x6c1   :  { %12143 = vmatprep.subr.bf16.mxu1 %v15554_v49  ;;  %v15608_v49 = vld [vmem:[#allocation8 + $0xfac] ss:$16 sps:$4 sm:$0xff]  }
 0x6c2   :  { %12612 = vmatpush1.bf16.msra.mxu0 %v15621_v9  ;;  %v15606_v9 = vld [vmem:[#allocation8 + $0xfa8] ss:$16 sps:$4 sm:$0xff]  }
 0x6c3   :  { %12613 = vmatprep.subr.bf16.mxu0 %v15626_v23  ;;  %v15611_v23 = vld [vmem:[#allocation8 + $0xfcc] ss:$16 sps:$4 sm:$0xff]  }
 0x6c4   :  { %12144 = vmatpush1.bf16.msra.mxu1 %v15552_v60  ;;  %v15659_v60 = vld [vmem:[#allocation11 + $0xe4] ss:$8 sps:$4 sm:$0xff]  }
 0x6c5   :  { %12145 = vmatprep.subr.bf16.mxu1 %v15557_v52  ;;  %v15657_v52 = vld [vmem:[#allocation11 + $0xe0] ss:$8 sps:$4 sm:$0xff]  }
 0x6c6   :  { %12614 = vmatpush1.bf16.msra.mxu0 %v15624_v54  ;;  %v15609_v54 = vld [vmem:[#allocation8 + $0xfc8] ss:$16 sps:$4 sm:$0xff]  }
 0x6c7   :  { %12615 = vmatprep.subr.bf16.mxu0 %v15629_v5  ;;  %v15614_v5 = vld [vmem:[#allocation8 + $0xfec] ss:$16 sps:$4 sm:$0xff]  }
 0x6c8   :  { %12146 = vmatpush1.bf16.msra.mxu1 %v15555_v48  ;;  %v15662_v48 = vld [vmem:[#allocation11 + $0xf4] ss:$8 sps:$4 sm:$0xff]  }
 0x6c9   :  { %12147 = vmatprep.subr.bf16.mxu1 %v15560_v62  ;;  %v15660_v62 = vld [vmem:[#allocation11 + $0xf0] ss:$8 sps:$4 sm:$0xff]  }
 0x6ca   :  { %12616 = vmatpush1.bf16.msra.mxu0 %v15627_v14  ;;  %v15612_v14 = vld [vmem:[#allocation8 + $0xfe8] ss:$16 sps:$4 sm:$0xff]  }
 0x6cb   :  { %12617 = vmatprep.subr.bf16.mxu0 %v15632_v34  ;;  %v15665_v34 = vld [vmem:[#allocation11 + $0x104] ss:$8 sps:$4 sm:$0xff]  }
 0x6cc   :  { %12148 = vmatpush1.bf16.msra.mxu1 %v15558_v1  ;;  %v15711_v1 = vld [vmem:[#allocation14 + $0x40] sm:$0xff]  }
 0x6cd   :  { %12149 = vmatprep.subr.bf16.mxu1 %v15563_v38  ;;  %v15712_v38 = vld [vmem:[#allocation14] sm:$0xff]  }
 0x6ce   :  { %12618 = vmatpush1.bf16.msra.mxu0 %v15630_v59  ;;  %v15713_v59 = vld [vmem:[#allocation14 + $0x48] sm:$0xff]  }
 0x6cf   :  { %12619 = vmatprep.subr.bf16.mxu0 %v15635_v51  ;;  %v15714_v51 = vld [vmem:[#allocation14 + $0x8] sm:$0xff]  }
 0x6d0   :  { %12150 = vmatpush1.bf16.msra.mxu1 %v15561_v41  ;;  %v15715_v41 = vld [vmem:[#allocation14 + $0x50] sm:$0xff]  }
 0x6d1   :  { %12151 = vmatprep.subr.bf16.mxu1 %v15566_v29  ;;  %v15716_v29 = vld [vmem:[#allocation14 + $0x10] sm:$0xff]  }
 0x6d2   :  { %12620 = vmatpush1.bf16.msra.mxu0 %v15633_v21  ;;  %v15717_v21 = vld [vmem:[#allocation14 + $0x58] sm:$0xff]  }
 0x6d3   :  { %12621 = vmatprep.subr.bf16.mxu0 %v15638_v46  ;;  %v15718_v46 = vld [vmem:[#allocation14 + $0x18] sm:$0xff]  }
 0x6d4   :  { %12152 = vmatpush1.bf16.msra.mxu1 %v15564_v27  ;;  %v15719_v27 = vld [vmem:[#allocation14 + $0x60] sm:$0xff]  }
 0x6d5   :  { %12162 = vmatprep.subr.bf16.mxu1 %v15569_v61  ;;  %v15720_v61 = vld [vmem:[#allocation14 + $0x20] sm:$0xff]  }
 0x6d6   :  { %12622 = vmatpush1.bf16.msra.mxu0 %v15636_v55  ;;  %v16449_v55 = vld [vmem:[#allocation10] sm:$0xf] }
 0x6d7   :  { %12623 = vmatprep.subr.bf16.mxu0 %v15641_v50  ;;  %12154 = vmatmul.mubr.bf16.vlgmr.msra.gmra.mrb[20].mxu1 %v16432_v42  ;;  %v15576_v42 = vld [vmem:[#allocation8 + $0xe68] ss:$16 sps:$4 sm:$0xff]   ;;  %v15722_v50 = vld [vmem:[#allocation14 + $0x28] sm:$0xff]  }
 0x6d8   :  { %12163 = vmatpush1.bf16.msra.mxu1 %v15567_v53  ;;  %12194 = vmatprep.mubr.bf16.mxu1 %v16434_v0  ;;  %v15648_v0 = vld [vmem:[#allocation11 + $0xb0] ss:$8 sps:$4 sm:$0xff]   ;;  %v8970_v53 = vrot.slane %v16449_v55, %v16199_v20 }
 0x6d9   :  { %12164 = vmatprep.subr.bf16.mxu1 %v15572_v45  ;;  %v8974_v45 = vrot.slane %v16449_v55, %v16204_v28 }
 0x6da   :  { %12624 = vmatpush1.bf16.msra.mxu0 %v15639_v26 }
 0x6db   :  { %12625 = vmatprep.subr.bf16.mxu0 %v15644_v44 }
 0x6dc   :  { %12165 = vmatpush1.bf16.msra.mxu1 %v15570_v56 }
 0x6dd   :  { %12166 = vmatprep.subr.bf16.mxu1 %v15575_v37 }
 0x6de   :  { %12626 = vmatpush1.bf16.msra.mxu0 %v15642_v32 }
 0x6df   :  { %12627 = vmatprep.subr.bf16.mxu0 %v15647_v58 }
 0x6e0   :  { %12167 = vmatpush1.bf16.msra.mxu1 %v15573_v30 }
 0x6e1   :  { %12168 = vmatprep.subr.bf16.mxu1 %v15578_v3 }
 0x6e2   :  { %12628 = vmatpush1.bf16.msra.mxu0 %v15645_v25 }
 0x6e3   :  { %12629 = vmatprep.subr.bf16.mxu0 %v15650_v6  ;;  %v15663_v6 = vld [vmem:[#allocation11 + $0x100] ss:$8 sps:$4 sm:$0xff]  }
 0x6e4   :  { %12169 = vmatpush1.bf16.msra.mxu1 %v15576_v42 }
 0x6e5   :  { %12170 = vmatprep.subr.bf16.mxu1 %v15581_v33  ;;  %v15668_v33 = vld [vmem:[#allocation11 + $0x114] ss:$8 sps:$4 sm:$0xff]  }
 0x6e6   :  { %12630 = vmatpush1.bf16.msra.mxu0 %v15648_v0  ;;  %v15666_v0 = vld [vmem:[#allocation11 + $0x110] ss:$8 sps:$4 sm:$0xff]  }
 0x6e7   :  { %12631 = vmatprep.subr.bf16.mxu0 %v15653_v24  ;;  %v15671_v24 = vld [vmem:[#allocation11 + $0x124] ss:$8 sps:$4 sm:$0xff]  }
 0x6e8   :  { %12171 = vmatpush1.bf16.msra.mxu1 %v15579_v63  ;;  %v15669_v63 = vld [vmem:[#allocation11 + $0x120] ss:$8 sps:$4 sm:$0xff]  }
 0x6e9   :  { %12172 = vmatprep.subr.bf16.mxu1 %v15584_v8  ;;  %v15674_v8 = vld [vmem:[#allocation11 + $0x134] ss:$8 sps:$4 sm:$0xff]  }
 0x6ea   :  { %12632 = vmatpush1.bf16.msra.mxu0 %v15651_v7  ;;  %v15672_v7 = vld [vmem:[#allocation11 + $0x130] ss:$8 sps:$4 sm:$0xff]  }
 0x6eb   :  { %12633 = vmatprep.subr.bf16.mxu0 %v15656_v18  ;;  %v15677_v18 = vld [vmem:[#allocation11 + $0x144] ss:$8 sps:$4 sm:$0xff]  }
 0x6ec   :  { %12173 = vmatpush1.bf16.msra.mxu1 %v15582_v4  ;;  %v15675_v4 = vld [vmem:[#allocation11 + $0x140] ss:$8 sps:$4 sm:$0xff]  }
 0x6ed   :  { %12174 = vmatprep.subr.bf16.mxu1 %v15587_v39  ;;  %v15680_v39 = vld [vmem:[#allocation11 + $0x154] ss:$8 sps:$4 sm:$0xff]  }
 0x6ee   :  { %12634 = vmatpush1.bf16.msra.mxu0 %v15654_v11  ;;  %v15678_v11 = vld [vmem:[#allocation11 + $0x150] ss:$8 sps:$4 sm:$0xff]  }
 0x6ef   :  { %12635 = vmatprep.subr.bf16.mxu0 %v15659_v60  ;;  %v15707_v60 = vld [vmem:[#allocation11 + $0x1e4] ss:$8 sps:$4 sm:$0xff]  }
 0x6f0   :  { %12175 = vmatpush1.bf16.msra.mxu1 %v15585_v12  ;;  %v15683_v12 = vld [vmem:[#allocation11 + $0x164] ss:$8 sps:$4 sm:$0xff]  }
 0x6f1   :  { %12176 = vmatprep.subr.bf16.mxu1 %v15590_v13  ;;  %v15681_v13 = vld [vmem:[#allocation11 + $0x160] ss:$8 sps:$4 sm:$0xff]  }
 0x6f2   :  { %12636 = vmatpush1.bf16.msra.mxu0 %v15657_v52  ;;  %v15705_v52 = vld [vmem:[#allocation11 + $0x1e0] ss:$8 sps:$4 sm:$0xff]  }
 0x6f3   :  { %12637 = vmatprep.subr.bf16.mxu0 %v15662_v48  ;;  %v8978_v48 = vrot.slane %v16449_v55, %v16234_v31  ;;  %v15725_v31 = vld [vmem:[#allocation14 + $0x78] sm:$0xff]  }
 0x6f4   :  { %12177 = vmatpush1.bf16.msra.mxu1 %v15588_v10  ;;  %v15686_v10 = vld [vmem:[#allocation11 + $0x174] ss:$8 sps:$4 sm:$0xff]  }
 0x6f5   :  { %12178 = vmatprep.subr.bf16.mxu1 %v15593_v2  ;;  %v15684_v2 = vld [vmem:[#allocation11 + $0x170] ss:$8 sps:$4 sm:$0xff]  }
 0x6f6   :  { %12638 = vmatpush1.bf16.msra.mxu0 %v15660_v62  ;;  %v8982_v62 = vrot.slane %v16449_v55, %v16237_v36  ;;  %v12275_v36 = vld [vmem:[#allocation13] sm:$0x3] }
 0x6f7   :  { %12648 = vmatprep.subr.bf16.mxu0 %v15665_v34  ;;  %v12280_v55 = vrot.slane %v12275_v36, %v16199_v20 }
 0x6f8   :  { %12179 = vmatpush1.bf16.msra.mxu1 %v15591_v47  ;;  %v15689_v47 = vld [vmem:[#allocation11 + $0x184] ss:$8 sps:$4 sm:$0xff]  }
 0x6f9   :  { %12180 = vmatprep.subr.bf16.mxu1 %v15596_v15  ;;  %v15687_v15 = vld [vmem:[#allocation11 + $0x180] ss:$8 sps:$4 sm:$0xff]  }
 0x6fc   :  { %12181 = vmatpush1.bf16.msra.mxu1 %v15594_v35  ;;  %v15692_v35 = vld [vmem:[#allocation11 + $0x194] ss:$8 sps:$4 sm:$0xff]  }
 0x6fd   :  { %12182 = vmatprep.subr.bf16.mxu1 %v15599_v57  ;;  %v15690_v57 = vld [vmem:[#allocation11 + $0x190] ss:$8 sps:$4 sm:$0xff]  }
 0x700   :  { %12183 = vmatpush1.bf16.msra.mxu1 %v15597_v17  ;;  %v15695_v17 = vld [vmem:[#allocation11 + $0x1a4] ss:$8 sps:$4 sm:$0xff]  }
 0x701   :  { %12184 = vmatprep.subr.bf16.mxu1 %v15602_v43  ;;  %v15693_v43 = vld [vmem:[#allocation11 + $0x1a0] ss:$8 sps:$4 sm:$0xff]  }
 0x704   :  { %12185 = vmatpush1.bf16.msra.mxu1 %v15600_v19  ;;  %v15698_v19 = vld [vmem:[#allocation11 + $0x1b4] ss:$8 sps:$4 sm:$0xff]  }
 0x705   :  { %12186 = vmatprep.subr.bf16.mxu1 %v15605_v16  ;;  %v15696_v16 = vld [vmem:[#allocation11 + $0x1b0] ss:$8 sps:$4 sm:$0xff]  }
 0x708   :  { %12187 = vmatpush1.bf16.msra.mxu1 %v15603_v22  ;;  %v15701_v22 = vld [vmem:[#allocation11 + $0x1c4] ss:$8 sps:$4 sm:$0xff]  }
 0x709   :  { %12188 = vmatprep.subr.bf16.mxu1 %v15608_v49  ;;  %v15699_v49 = vld [vmem:[#allocation11 + $0x1c0] ss:$8 sps:$4 sm:$0xff]  }
 0x70c   :  { %12189 = vmatpush1.bf16.msra.mxu1 %v15606_v9  ;;  %v15704_v9 = vld [vmem:[#allocation11 + $0x1d4] ss:$8 sps:$4 sm:$0xff]  }
 0x70d   :  { %12190 = vmatprep.subr.bf16.mxu1 %v15611_v23  ;;  %v15702_v23 = vld [vmem:[#allocation11 + $0x1d0] ss:$8 sps:$4 sm:$0xff]  }
 0x710   :  { %12191 = vmatpush1.bf16.msra.mxu1 %v15609_v54  ;;  %v15710_v54 = vld [vmem:[#allocation11 + $0x1f4] ss:$8 sps:$4 sm:$0xff]  }
 0x711   :  { %12192 = vmatprep.subr.bf16.mxu1 %v15614_v5  ;;  %v15708_v5 = vld [vmem:[#allocation11 + $0x1f0] ss:$8 sps:$4 sm:$0xff]  }
 0x714   :  { %12193 = vmatpush1.bf16.msra.mxu1 %v15612_v14 }
 0x715   :  { %14585 = vmatprep.subr.bf16.mxu1 %v15711_v1 }
 0x717   :  { %12195 = vmatmul.mubr.bf16.vlgmr.msra.gmra.mrb[20].mxu1 %v16443_v40  ;;  %v15721_v40 = vld [vmem:[#allocation14 + $0x68] sm:$0xff]  }
 0x718   :  { %14586 = vmatpush3.bf16.msra.mxu1 %v15712_v38 }
 0x719   :  { %14587 = vmatprep.subr.bf16.mxu1 %v15713_v59 }
 0x71c   :  { %14588 = vmatpush3.bf16.msra.mxu1 %v15714_v51 }
 0x71d   :  { %14589 = vmatprep.subr.bf16.mxu1 %v15715_v41 }
 0x720   :  { %14590 = vmatpush3.bf16.msra.mxu1 %v15716_v29 }
 0x721   :  { %14591 = vmatprep.subr.bf16.mxu1 %v15717_v21 }
 0x724   :  { %14592 = vmatpush3.bf16.msra.mxu1 %v15718_v46 }
 0x725   :  { %14593 = vmatprep.subr.bf16.mxu1 %v15719_v27  ;;  %v15723_v27 = vld [vmem:[#allocation14 + $0x70] sm:$0xff]  }
 0x728   :  { %14594 = vmatpush3.bf16.msra.mxu1 %v15720_v61  ;;  %v15724_v61 = vld [vmem:[#allocation14 + $0x30] sm:$0xff]  }
 0x729   :  { %14595 = vmatprep.subr.bf16.mxu1 %v15721_v40  ;;  %v15726_v40 = vld [vmem:[#allocation14 + $0x38] sm:$0xff]  }
 0x72c   :  { %14596 = vmatpush3.bf16.msra.mxu1 %v15722_v50  ;;  %v12284_v50 = vrot.slane %v12275_v36, %v16204_v28 }
 0x72d   :  { %14597 = vmatprep.subr.bf16.mxu1 %v15723_v27 }
 0x730   :  { %14598 = vmatpush3.bf16.msra.mxu1 %v15724_v61 }
 0x731   :  { %14599 = vmatprep.subr.bf16.mxu1 %v15725_v31 }
 0x734   :  { %14600 = vmatpush3.bf16.msra.mxu1 %v15726_v40 }
 0x78c   :  { %v11868_v26 = vpop.f32.mrb[20].mxu0 }
 0x78d   :  { %v14627_v44 = vadd.f32 %v11868_v26, %v8970_v53  ;;  %v11870_v56 = vpop.f32.mrb[21].mxu0 }
 0x78e   :  { %v14628_v37 = vadd.f32 %v11870_v56, %v8974_v45  ;;  %v11872_v32 = vpop.f32.mrb[22].mxu0 }
 0x78f   :  { %v12203_v58 = vmax.f32 %v14627_v44, 0.0  ;;  %v11873_v30 = vpop.f32.mrb[23].mxu0 }
 0x790   :  { %v12204_v3 = vmax.f32 %v14628_v37, 0.0 }
 0x791   :  { %v12207_v42 = vpack.c.bf16 %v12203_v58, %v12203_v58 }
 0x792   :  { %v12208_v25 = vpack.c.bf16 %v12204_v3, %v12204_v3 }
 0x794   :  { %12639 = vmatprep.mubr.bf16.mxu0 %v12208_v25 }
 0x795   :  { %12640 = vmatmul.mubr.bf16.vlgmr.msra.gmra.mrb[24].mxu0 %v12207_v42 }
 0x796   :  { %12649 = vmatpush1.bf16.msra.mxu0 %v15663_v6  ;;  %v14568_v6 = vld [vmem:[#allocation16] ss:$0 sm:$0xff] }
 0x797   :  { %12650 = vmatprep.subr.bf16.mxu0 %v15668_v33 }
 0x79a   :  { %12651 = vmatpush1.bf16.msra.mxu0 %v15666_v0 }
 0x79b   :  { %12652 = vmatprep.subr.bf16.mxu0 %v15671_v24 }
 0x79e   :  { %12653 = vmatpush1.bf16.msra.mxu0 %v15669_v63 }
 0x79f   :  { %12654 = vmatprep.subr.bf16.mxu0 %v15674_v8 }
 0x7a2   :  { %12655 = vmatpush1.bf16.msra.mxu0 %v15672_v7 }
 0x7a3   :  { %12656 = vmatprep.subr.bf16.mxu0 %v15677_v18 }
 0x7a6   :  { %12657 = vmatpush1.bf16.msra.mxu0 %v15675_v4 }
 0x7a7   :  { %12658 = vmatprep.subr.bf16.mxu0 %v15680_v39 }
 0x7aa   :  { %12659 = vmatpush1.bf16.msra.mxu0 %v15678_v11 }
 0x7ab   :  { %12660 = vmatprep.subr.bf16.mxu0 %v15683_v12 }
 0x7ae   :  { %12661 = vmatpush1.bf16.msra.mxu0 %v15681_v13 }
 0x7af   :  { %12662 = vmatprep.subr.bf16.mxu0 %v15686_v10 }
 0x7b2   :  { %12663 = vmatpush1.bf16.msra.mxu0 %v15684_v2 }
 0x7b3   :  { %12664 = vmatprep.subr.bf16.mxu0 %v15689_v47 }
 0x7b6   :  { %12665 = vmatpush1.bf16.msra.mxu0 %v15687_v15 }
 0x7b7   :  { %12666 = vmatprep.subr.bf16.mxu0 %v15692_v35 }
 0x7ba   :  { %12667 = vmatpush1.bf16.msra.mxu0 %v15690_v57 }
 0x7bb   :  { %12668 = vmatprep.subr.bf16.mxu0 %v15695_v17 }
 0x7be   :  { %12669 = vmatpush1.bf16.msra.mxu0 %v15693_v43 }
 0x7bf   :  { %12670 = vmatprep.subr.bf16.mxu0 %v15698_v19 }
 0x7c2   :  { %12671 = vmatpush1.bf16.msra.mxu0 %v15696_v16 }
 0x7c3   :  { %12672 = vmatprep.subr.bf16.mxu0 %v15701_v22 }
 0x7c6   :  { %12673 = vmatpush1.bf16.msra.mxu0 %v15699_v49 }
 0x7c7   :  { %12674 = vmatprep.subr.bf16.mxu0 %v15704_v9 }
 0x7ca   :  { %12675 = vmatpush1.bf16.msra.mxu0 %v15702_v23 }
 0x7cb   :  { %12676 = vmatprep.subr.bf16.mxu0 %v15707_v60 }
 0x7ce   :  { %12677 = vmatpush1.bf16.msra.mxu0 %v15705_v52 }
 0x7cf   :  { %12678 = vmatprep.subr.bf16.mxu0 %v15710_v54 }
 0x7d2   :  { %12679 = vmatpush1.bf16.msra.mxu0 %v15708_v5 }
 0x7ea   :  { %v12196_v14 = vpop.f32.mrb[20].mxu1 }
 0x7eb   :  { %v14629_v34 = vadd.f32 %v12196_v14, %v8978_v48  ;;  %v12198_v1 = vpop.f32.mrb[21].mxu1 }
 0x7ec   :  { %v14630_v38 = vadd.f32 %v12198_v1, %v8982_v62  ;;  %v12200_v59 = vpop.f32.mrb[22].mxu1 }
 0x7ed   :  { %v12205_v51 = vmax.f32 %v14629_v34, 0.0  ;;  %v12201_v41 = vpop.f32.mrb[23].mxu1 }
 0x7ee   :  { %v12206_v29 = vmax.f32 %v14630_v38, 0.0 }
 0x7ef   :  { %v12209_v46 = vpack.c.bf16 %v12205_v51, %v12205_v51 }
 0x7f0   :  { %v12210_v21 = vpack.c.bf16 %v12206_v29, %v12206_v29 }
 0x7f2   :  { %12680 = vmatprep.mubr.bf16.mxu0 %v12210_v21 }
 0x7f3   :  { %12681 = vmatmul.mubr.bf16.vlgmr.msra.gmra.mrb[24].mxu0 %v12209_v46 }
 0x8c6   :  { %v12682_v53 = vpop.f32.mrb[24].mxu0 }
 0x8c7   :  { %v14631_v45 = vadd.f32 %v12682_v53, %v12280_v55  ;;  %v12684_v26 = vpop.f32.mrb[25].mxu0 }
 0x8c8   :  { %v14632_v44 = vadd.f32 %v12684_v26, %v12284_v50  ;;  %v12686_v56 = vpop.f32.mrb[26].mxu0 }
 0x8c9   :  { %v12689_v37 = vmax.f32 %v14631_v45, 0.0  ;;  %v12687_v32 = vpop.f32.mrb[27].mxu0 }
 0x8ca   :  { %v12690_v58 = vmax.f32 %v14632_v44, 0.0 }
 0x8cb   :  { %v12691_v3 = vpack.c.bf16 %v12689_v37, %v12689_v37 }
 0x8cc   :  { %v12692_v30 = vpack.c.bf16 %v12690_v58, %v12690_v58 }
 0x8ce   :  { %12860 = vmatprep.mubr.bf16.mxu1 %v12692_v30 }
 0x8cf   :  { %12861 = vmatmul.mubr.bf16.vlgmr.msra.gmra.mrb[24].mxu1 %v12691_v3 }
 0x9a2   :  { %v14601_v25 = vpop.f32.mrb[24].mxu1 }
 0x9a3   :  { %v14602_v42 = vpop.f32.mrb[25].mxu1 }
 0x9a4   :  { %v14603_v20 = vadd.f32 %v14602_v42, %v14601_v25  ;;  %v14604_v33 = vpop.f32.mrb[26].mxu1 }
 0x9a5   :  { %v14605_v28 = vpop.f32.mrb[27].mxu1 }
 0x9a6   :  { %v12863_v0 = vadd.f32 %v14603_v20, %v14568_v6 }
 0x9a8   :  { %12868 = vst [vmem:[#allocation17] sm:$0xff] %v12863_v0 }
 0x9a9   :  { %15938 = shalt.err (!%p15935_p6)
}
 0x9aa   :  { %s15939_s23 = scalar_lea.hbm %s16482_s9, 128 }
 0x9ab   :  { %p15940_p7 = scmp.ne.s32.totalorder %s16482_s9, %s15939_s23  ;;  %p15943_p8 = scmp.lt.u32.totalorder %s15939_s23, %s16482_s9 }
 0x9ad   :  { %p15945_p9 = pnand %p15943_p8, %p15940_p7 }
 0x9af   :  { %15948 = shalt.err (!%p15945_p9)
}
 0x9b0   :  { %12878 = dma.vmem_to_hbm [thread:$0]  %s12876_s24, 128, %s16482_s9, [#allocation4]  }
 0x9b1   :  { %15959 = dma.done.wait [#allocation4], 128  }
 0x9b2   :  { %15960 = vsyncadd [#allocation4], 4294967168 }
 0x9b3   :  { %12882 = vsyncpa [#allocation3], 1 }
 0x9b4   :  { %12883 = vsyncpa [#allocation6], 1 }
 0x9b5   :  { %12884 = vsyncpa [#allocation9], 1 }
 0x9b6   :  { %12885 = vsyncpa [#allocation12], 1 }
 0x9b7   :  { %12886 = vsyncpa [#allocation15], 1 }
 0x9b8   :  { %12887 = vsyncpa [#allocation4], 1 }

</bundles_post_ra>
